<compile_context>
chip_gen: v5e
topology: v5e:2x2
jax: 0.10.0
libtpu: 0.0.40
codegen_flags: <defaults>
</compile_context>

<pallas_src>
import math
from functools import partial

import jax
import jax.numpy as jnp
import numpy as np
from jax.experimental import pallas as pl
from jax.experimental.pallas import tpu as pltpu

_LANE = 128      # TPU lane width: all channel dims are zero-padded to this
_PADL = 8        # left spatial halo (W axis) in the conv2 scratch: keeps the
                 # h1 interior store sublane-aligned; taps load at 7/8/9


def _round_up(x, m):
    return ((x + m - 1) // m) * m


# ------------------------------ fused kernel ---------------------------------

def _resnext_block_kernel(x_ref, wA_ref, gA_ref, bA_ref,
                          w2_ref, g2_ref, b2_ref,
                          w3_ref, g3_ref, b3_ref,
                          o_ref, h1p_ref, *, N, H, W, eps, has_sc_conv):
    """Fused ResNeXt bottleneck.  Whole problem is VMEM resident (grid=(1,)).

    wA = [w1 | wsc] (shortcut conv fused into the first matmul when present);
    BN uses training-mode batch statistics (biased variance) in one pass and
    is applied as a per-channel scale/shift FMA.
    """
    M = N * H * W
    cmid = w2_ref.shape[1]                      # padded mid-channel count
    inv_m = 1.0 / float(M)

    def _bn_scale_shift(h, g, b):
        s = jnp.sum(h, axis=0, keepdims=True)
        ss = jnp.sum(h * h, axis=0, keepdims=True)
        mean = s * inv_m
        var = ss * inv_m - mean * mean          # one-pass biased variance
        scale = g * jax.lax.rsqrt(var + eps)
        shift = b - mean * scale
        return scale, shift

    x = x_ref[...]                                              # (M, Cin_p) bf16

    # ---- conv1 (+ shortcut 1x1 conv) : one wide MXU matmul, bf16 -> f32 ----
    hA = jnp.dot(x, wA_ref[...], preferred_element_type=jnp.float32)
    sA, shA = _bn_scale_shift(hA, gA_ref[...], bA_ref[...])     # BN1 (+BNsc)
    hA = hA * sA + shA
    h1 = jnp.maximum(hA[:, :cmid], 0.0)                         # (M, Cmid_p) f32
    if has_sc_conv:
        sc = hA[:, cmid:]                                       # (M, Cout_p) f32
    else:
        # TODO(synk): identity shortcut re-uses the bf16 copy of x (tiny
        # precision loss on the skip path); not exercised in this config.
        sc = x.astype(jnp.float32)

    # ---- conv2: grouped 3x3 (width==1 -> depthwise), stride 1, padding 1 ----
    # h1 goes into a zero-padded VMEM scratch (sublane-aligned interior store);
    # the nine taps are shifted-window loads accumulated on the VPU with
    # per-channel weights.  No im2col HBM expansion, no block-diagonal
    # (cardinality-x inflated) zero FLOPs on the MXU.
    h1p_ref[...] = jnp.zeros_like(h1p_ref)
    h1p_ref[:, 1:H + 1, _PADL:_PADL + W, :] = h1.reshape(N, H, W, cmid)
    acc2 = None
    for t in range(9):
        dy, dx = divmod(t, 3)                                   # offsets in {0,1,2}
        tap = h1p_ref[:, dy:dy + H, _PADL - 1 + dx:_PADL - 1 + dx + W, :]
        term = tap * w2_ref[t:t + 1, :]                         # per-channel VPU FMA
        acc2 = term if acc2 is None else acc2 + term
    h2 = acc2.reshape(M, cmid)
    s2, sh2 = _bn_scale_shift(h2, g2_ref[...], b2_ref[...])
    h2 = jnp.maximum(h2 * s2 + sh2, 0.0)

    # ---- conv3 (1x1) + BN3 --------------------------------------------------
    h3 = jnp.dot(h2.astype(jnp.bfloat16), w3_ref[...],
                 preferred_element_type=jnp.float32)
    s3, sh3 = _bn_scale_shift(h3, g3_ref[...], b3_ref[...])
    h3 = h3 * s3 + sh3

    # ---- residual add + ReLU; lane-dense (128-wide) store -------------------
    o_ref[...] = jnp.maximum(h3 + sc, 0.0).astype(o_ref.dtype)


# ------------------------------- wrapper --------------------------------------

def resnext_bottleneck_forward(x_nchw, p, *, stride, cardinality, eps=1e-5):
    """Forward pass of ResNeXtBottleneck (training-mode BatchNorm)."""
    del cardinality  # group structure is read off the weight shapes
    N, Cin, H, W = x_nchw.shape
    cmid, width = p["w2"].shape[0], p["w2"].shape[1]
    cout = p["w3"].shape[0]

    if stride != 1:
        # TODO(synk): stride>1 needs strided tap loads and a strided shortcut
        # gather; not needed for the exercised configuration.
        raise NotImplementedError("fused kernel currently supports stride=1")
    if width != 1:
        # TODO(synk): width>1 grouped conv needs per-group (or 128-lane
        # bundled) matmul tiles to avoid the cardinality-x FLOP inflation.
        raise NotImplementedError("fused kernel currently supports group width=1")

    cin_p, cmid_p, cout_p = (_round_up(c, _LANE) for c in (Cin, cmid, cout))
    M = N * H * W
    has_sc_conv = (stride != 1) or (Cin != cout)

    def pad2(a, rows, cols):
        return jnp.pad(a, ((0, rows - a.shape[0]), (0, cols - a.shape[1])))

    def bn_params(g, b, cp):
        # zero-padded gamma/beta => padded channels produce exactly 0 after BN
        return (pad2(g.reshape(1, -1).astype(jnp.float32), 1, cp),
                pad2(b.reshape(1, -1).astype(jnp.float32), 1, cp))

    # activations: NCHW -> NHWC -> (M, Cin_p); bf16 operands for the MXU
    x = jnp.transpose(x_nchw, (0, 2, 3, 1)).reshape(M, Cin)
    x = pad2(x, M, cin_p).astype(jnp.bfloat16)

    w1 = pad2(p["w1"][:, :, 0, 0].T, cin_p, cmid_p).astype(jnp.bfloat16)
    w3 = pad2(p["w3"][:, :, 0, 0].T, cmid_p, cout_p).astype(jnp.bfloat16)
    # depthwise 3x3 taps: (9, Cmid_p); kept f32 for the VPU elementwise path
    w2 = pad2(p["w2"][:, 0].reshape(cmid, 9).T, 9, cmid_p).astype(jnp.float32)

    g1, b1 = bn_params(p["g1"], p["b1"], cmid_p)
    g2, b2 = bn_params(p["g2"], p["b2"], cmid_p)
    g3, b3 = bn_params(p["g3"], p["b3"], cout_p)

    if has_sc_conv:
        # Fuse conv1 and the shortcut conv into one 256-wide MXU matmul; their
        # per-channel BNs share one stats pass over the combined activation.
        wsc = pad2(p["wsc"][:, :, 0, 0].T, cin_p, cout_p).astype(jnp.bfloat16)
        gsc, bsc = bn_params(p["gsc"], p["bsc"], cout_p)
        wA = jnp.concatenate([w1, wsc], axis=1)          # (Cin_p, Cmid_p+Cout_p)
        gA = jnp.concatenate([g1, gsc], axis=1)
        bA = jnp.concatenate([b1, bsc], axis=1)
    else:
        assert cin_p == cout_p
        wA, gA, bA = w1, g1, b1

    inputs = [x, wA, gA, bA, w2, g2, b2, w3, g3, b3]

    def full_spec(a):
        n = a.ndim
        return pl.BlockSpec(a.shape, lambda i, _n=n: (0,) * _n)

    scratch_shape = (N, H + 2, W + 2 * _PADL, cmid_p)

    # VMEM budget derived from the actual footprint (stays far below v7x's
    # 64 MiB physical VMEM); grid=(1,) keeps the whole ~1.5 MiB problem resident.
    in_bytes = sum(int(np.prod(a.shape)) * a.dtype.itemsize for a in inputs)
    out_bytes = M * cout_p * 4
    scratch_bytes = int(np.prod(scratch_shape)) * 4
    footprint = 2 * in_bytes + 2 * out_bytes + scratch_bytes
    vmem_limit = int(min(max(4 * footprint, 16 << 20), 48 << 20))

    flops = 2 * M * cin_p * cmid_p + 2 * 9 * M * cmid_p + 2 * M * cmid_p * cout_p
    if has_sc_conv:
        flops += 2 * M * cin_p * cout_p
    cost = pl.CostEstimate(flops=flops,
                           transcendentals=2 * (cmid_p + cout_p),
                           bytes_accessed=in_bytes + out_bytes)

    kernel = partial(_resnext_block_kernel, N=N, H=H, W=W, eps=eps,
                     has_sc_conv=has_sc_conv)

    out = pl.pallas_call(
        kernel,
        grid=(1,),   # whole block is VMEM resident at this size: one fused step
        in_specs=[full_spec(a) for a in inputs],
        out_specs=pl.BlockSpec((M, cout_p), lambda i: (0, 0)),
        out_shape=jax.ShapeDtypeStruct((M, cout_p), jnp.float32),
        scratch_shapes=[pltpu.VMEM(scratch_shape, jnp.float32)],
        compiler_params=pltpu.CompilerParams(
            dimension_semantics=("arbitrary",),
            vmem_limit_bytes=vmem_limit),
        cost_estimate=cost,
    )(*inputs)

    out = out[:, :cout].reshape(N, H, W, cout)
    return jnp.transpose(out, (0, 3, 1, 2))       # NHWC -> NCHW


# ------------------------ pure-JAX reference (check) --------------------------

def reference_forward(x, p, *, stride, cardinality, eps=1e-5):
    def conv(x, w, stride=1, groups=1, padding=0):
        return jax.lax.conv_general_dilated(
            x, w, window_strides=(stride, stride),
            padding=[(padding, padding), (padding, padding)],
            dimension_numbers=("NCHW", "OIHW", "NCHW"),
            feature_group_count=groups)

    def bn(h, g, b):
        mean = h.mean(axis=(0, 2, 3), keepdims=True)
        var = ((h - mean) ** 2).mean(axis=(0, 2, 3), keepdims=True)
        return ((h - mean) * jax.lax.rsqrt(var + eps)
                * g[None, :, None, None] + b[None, :, None, None])

    h = jax.nn.relu(bn(conv(x, p["w1"]), p["g1"], p["b1"]))
    h = jax.nn.relu(bn(conv(h, p["w2"], stride=stride, groups=cardinality,
                            padding=1), p["g2"], p["b2"]))
    h = bn(conv(h, p["w3"]), p["g3"], p["b3"])
    cout = p["w3"].shape[0]
    if stride != 1 or x.shape[1] != cout:
        sc = bn(conv(x, p["wsc"], stride=stride), p["gsc"], p["bsc"])
    else:
        sc = x
    return jax.nn.relu(h + sc)


# ------------------------------- params init ---------------------------------

def init_params(key, inplanes, planes, cardinality, base_width):
    width = int(math.floor(planes * (base_width / 64.0)))
    cmid = width * cardinality
    cout = planes * 4
    ks = jax.random.split(key, 16)

    def conv_w(k, shape, fan_in):
        return jax.random.normal(k, shape, jnp.float32) / math.sqrt(fan_in)

    def bn_gb(kg, kb, c):
        g = 1.0 + 0.1 * jax.random.normal(kg, (c,), jnp.float32)
        b = 0.1 * jax.random.normal(kb, (c,), jnp.float32)
        return g, b

    p = {}
    p["w1"] = conv_w(ks[0], (cmid, inplanes, 1, 1), inplanes)
    p["g1"], p["b1"] = bn_gb(ks[1], ks[2], cmid)
    p["w2"] = conv_w(ks[3], (cmid, width, 3, 3), width * 9)
    p["g2"], p["b2"] = bn_gb(ks[4], ks[5], cmid)
    p["w3"] = conv_w(ks[6], (cout, cmid, 1, 1), cmid)
    p["g3"], p["b3"] = bn_gb(ks[7], ks[8], cout)
    p["wsc"] = conv_w(ks[9], (cout, inplanes, 1, 1), inplanes)
    p["gsc"], p["bsc"] = bn_gb(ks[10], ks[11], cout)
    return p


# ---------------------------------- main --------------------------------------

if __name__ == "__main__":
    # ResNeXt bottleneck: inplanes=16, planes=16, cardinality=32, base_width=4
    #   -> width=1, cmid=32, cout=64, stride=1, 1x1 shortcut conv (Cin != cout)
    N, Cin, H, W = 2, 16, 16, 16
    planes, cardinality, base_width, stride = 16, 32, 4, 1

    key = jax.random.PRNGKey(0)
    kx, kp = jax.random.split(key)
    x = jax.random.normal(kx, (N, Cin, H, W), jnp.float32)   # NCHW, like PyTorch
    params = init_params(kp, Cin, planes, cardinality, base_width)

    out = resnext_bottleneck_forward(x, params, stride=stride,
                                     cardinality=cardinality)
    out = jax.block_until_ready(out)

    ref = reference_forward(x, params, stride=stride, cardinality=cardinality)
    assert out.shape == (N, planes * 4, H // stride, W // stride), out.shape

    diff = jnp.abs(out - ref)
    max_diff = float(jnp.max(diff))
    rel_err = float(jnp.linalg.norm(out - ref) / (jnp.linalg.norm(ref) + 1e-12))
    assert np.isfinite(max_diff), max_diff
    # bf16 MXU operands (BN math in f32): loose absolute / tight relative checks
    assert rel_err < 5e-2, f"rel_err={rel_err}"
    assert max_diff < 4e-1, f"max_diff={max_diff}"

    print("KERNEL_OK")
</pallas_src>

<mosaic_0001>
module attributes {stable_mosaic.version = 11 : i64} {
  func.func @_resnext_block_kernel(%arg0: i32, %arg1: memref<512x128xbf16, #tpu.memory_space<vmem>>, %arg2: memref<128x256xbf16, #tpu.memory_space<vmem>>, %arg3: memref<1x256xf32, #tpu.memory_space<vmem>>, %arg4: memref<1x256xf32, #tpu.memory_space<vmem>>, %arg5: memref<9x128xf32, #tpu.memory_space<vmem>>, %arg6: memref<1x128xf32, #tpu.memory_space<vmem>>, %arg7: memref<1x128xf32, #tpu.memory_space<vmem>>, %arg8: memref<128x128xbf16, #tpu.memory_space<vmem>>, %arg9: memref<1x128xf32, #tpu.memory_space<vmem>>, %arg10: memref<1x128xf32, #tpu.memory_space<vmem>>, %arg11: memref<512x128xf32, #tpu.memory_space<vmem>>, %arg12: memref<2x18x32x128xf32, #tpu.memory_space<vmem>>) attributes {dimension_semantics = [#tpu.dimension_semantics<arbitrary>], iteration_bounds = array<i64: 1>, scalar_prefetch = 0 : i64, scratch_operands = 1 : i64, tpu.core_type = #tpu.core_type<tc>, window_params = [{pipeline_mode = #tpu.pipeline_mode<synchronous>, transform_indices = @transform_0, window_bounds = array<i64: 512, 128>}, {pipeline_mode = #tpu.pipeline_mode<synchronous>, transform_indices = @transform_1, window_bounds = array<i64: 128, 256>}, {pipeline_mode = #tpu.pipeline_mode<synchronous>, transform_indices = @transform_2, window_bounds = array<i64: 1, 256>}, {pipeline_mode = #tpu.pipeline_mode<synchronous>, transform_indices = @transform_3, window_bounds = array<i64: 1, 256>}, {pipeline_mode = #tpu.pipeline_mode<synchronous>, transform_indices = @transform_4, window_bounds = array<i64: 9, 128>}, {pipeline_mode = #tpu.pipeline_mode<synchronous>, transform_indices = @transform_5, window_bounds = array<i64: 1, 128>}, {pipeline_mode = #tpu.pipeline_mode<synchronous>, transform_indices = @transform_6, window_bounds = array<i64: 1, 128>}, {pipeline_mode = #tpu.pipeline_mode<synchronous>, transform_indices = @transform_7, window_bounds = array<i64: 128, 128>}, {pipeline_mode = #tpu.pipeline_mode<synchronous>, transform_indices = @transform_8, window_bounds = array<i64: 1, 128>}, {pipeline_mode = #tpu.pipeline_mode<synchronous>, transform_indices = @transform_9, window_bounds = array<i64: 1, 128>}, {pipeline_mode = #tpu.pipeline_mode<synchronous>, transform_indices = @transform_10, window_bounds = array<i64: 512, 128>}]} {
    %c0 = arith.constant 0 : index
    %c0_0 = arith.constant 0 : index
    %0 = vector.load %arg1[%c0, %c0_0] : memref<512x128xbf16, #tpu.memory_space<vmem>>, vector<512x128xbf16>
    %c0_1 = arith.constant 0 : index
    %c0_2 = arith.constant 0 : index
    %1 = vector.load %arg2[%c0_1, %c0_2] : memref<128x256xbf16, #tpu.memory_space<vmem>>, vector<128x256xbf16>
    %cst = arith.constant dense<0.000000e+00> : vector<512x256xf32>
    %2 = tpu.matmul %0, %1, %cst {dimension_numbers = #tpu.dot_dimension_numbers<[1], [0], [0], [1], [0, 0, 1, 1], [], []>} : vector<512x128xbf16>, vector<128x256xbf16>, vector<512x256xf32> -> vector<512x256xf32>
    %c0_3 = arith.constant 0 : index
    %c0_4 = arith.constant 0 : index
    %3 = vector.load %arg3[%c0_3, %c0_4] : memref<1x256xf32, #tpu.memory_space<vmem>>, vector<1x256xf32>
    %c0_5 = arith.constant 0 : index
    %c0_6 = arith.constant 0 : index
    %4 = vector.load %arg4[%c0_5, %c0_6] : memref<1x256xf32, #tpu.memory_space<vmem>>, vector<1x256xf32>
    %cst_7 = arith.constant dense<0.000000e+00> : vector<256xf32>
    %5 = vector.multi_reduction <add>, %2, %cst_7 [0] : vector<512x256xf32> to vector<256xf32>
    %6 = vector.shape_cast %5 : vector<256xf32> to vector<1x256xf32>
    %7 = arith.mulf %2, %2 : vector<512x256xf32>
    %cst_8 = arith.constant dense<0.000000e+00> : vector<256xf32>
    %8 = vector.multi_reduction <add>, %7, %cst_8 [0] : vector<512x256xf32> to vector<256xf32>
    %9 = vector.shape_cast %8 : vector<256xf32> to vector<1x256xf32>
    %cst_9 = arith.constant 0.001953125 : f32
    %10 = vector.broadcast %cst_9 : f32 to vector<1x256xf32>
    %11 = arith.mulf %6, %10 : vector<1x256xf32>
    %cst_10 = arith.constant 0.001953125 : f32
    %12 = vector.broadcast %cst_10 : f32 to vector<1x256xf32>
    %13 = arith.mulf %9, %12 : vector<1x256xf32>
    %14 = arith.mulf %11, %11 : vector<1x256xf32>
    %15 = arith.subf %13, %14 : vector<1x256xf32>
    %cst_11 = arith.constant 9.99999974E-6 : f32
    %16 = vector.broadcast %cst_11 : f32 to vector<1x256xf32>
    %17 = arith.addf %15, %16 : vector<1x256xf32>
    %18 = math.rsqrt %17 : vector<1x256xf32>
    %19 = arith.mulf %3, %18 : vector<1x256xf32>
    %20 = arith.mulf %11, %19 : vector<1x256xf32>
    %21 = arith.subf %4, %20 : vector<1x256xf32>
    %22 = vector.broadcast %19 : vector<1x256xf32> to vector<512x256xf32>
    %23 = arith.mulf %2, %22 : vector<512x256xf32>
    %24 = vector.broadcast %21 : vector<1x256xf32> to vector<512x256xf32>
    %25 = arith.addf %23, %24 : vector<512x256xf32>
    %26 = vector.extract_strided_slice %25 {offsets = [0, 0], sizes = [512, 128], strides = [1, 1]} : vector<512x256xf32> to vector<512x128xf32>
    %cst_12 = arith.constant 0.000000e+00 : f32
    %27 = vector.broadcast %cst_12 : f32 to vector<512x128xf32>
    %28 = arith.maximumf %26, %27 : vector<512x128xf32>
    %29 = vector.extract_strided_slice %25 {offsets = [0, 128], sizes = [512, 128], strides = [1, 1]} : vector<512x256xf32> to vector<512x128xf32>
    %cst_13 = arith.constant 0.000000e+00 : f32
    %30 = vector.broadcast %cst_13 : f32 to vector<2x18x32x128xf32>
    %c0_14 = arith.constant 0 : index
    %c0_15 = arith.constant 0 : index
    %c0_16 = arith.constant 0 : index
    %c0_17 = arith.constant 0 : index
    %31 = vector.load %arg12[%c0_14, %c0_15, %c0_16, %c0_17] : memref<2x18x32x128xf32, #tpu.memory_space<vmem>>, vector<2x18x32x128xf32>
    tpu.vector_store %arg12[%c0_14, %c0_15, %c0_16, %c0_17], %30 {strides = array<i32>} : memref<2x18x32x128xf32, #tpu.memory_space<vmem>>, vector<2x18x32x128xf32>,
    %32 = vector.shape_cast %28 : vector<512x128xf32> to vector<2x16x16x128xf32>
    %c0_18 = arith.constant 0 : index
    %c1 = arith.constant 1 : index
    %c8 = arith.constant 8 : index
    %c0_19 = arith.constant 0 : index
    %33 = vector.load %arg12[%c0_18, %c1, %c8, %c0_19] : memref<2x18x32x128xf32, #tpu.memory_space<vmem>>, vector<2x16x16x128xf32>
    tpu.vector_store %arg12[%c0_18, %c1, %c8, %c0_19], %32 {strides = array<i32>} : memref<2x18x32x128xf32, #tpu.memory_space<vmem>>, vector<2x16x16x128xf32>,
    %c0_20 = arith.constant 0 : index
    %c0_21 = arith.constant 0 : index
    %c7 = arith.constant 7 : index
    %c0_22 = arith.constant 0 : index
    %34 = vector.load %arg12[%c0_20, %c0_21, %c7, %c0_22] : memref<2x18x32x128xf32, #tpu.memory_space<vmem>>, vector<2x16x16x128xf32>
    %c0_23 = arith.constant 0 : index
    %c0_24 = arith.constant 0 : index
    %35 = vector.load %arg5[%c0_23, %c0_24] : memref<9x128xf32, #tpu.memory_space<vmem>>, vector<1x128xf32>
    %36 = vector.shape_cast %35 : vector<1x128xf32> to vector<1x1x1x128xf32>
    %37 = vector.broadcast %36 : vector<1x1x1x128xf32> to vector<2x16x16x128xf32>
    %38 = arith.mulf %34, %37 : vector<2x16x16x128xf32>
    %c0_25 = arith.constant 0 : index
    %c0_26 = arith.constant 0 : index
    %c8_27 = arith.constant 8 : index
    %c0_28 = arith.constant 0 : index
    %39 = vector.load %arg12[%c0_25, %c0_26, %c8_27, %c0_28] : memref<2x18x32x128xf32, #tpu.memory_space<vmem>>, vector<2x16x16x128xf32>
    %c1_29 = arith.constant 1 : index
    %c0_30 = arith.constant 0 : index
    %40 = vector.load %arg5[%c1_29, %c0_30] : memref<9x128xf32, #tpu.memory_space<vmem>>, vector<1x128xf32>
    %41 = vector.shape_cast %40 : vector<1x128xf32> to vector<1x1x1x128xf32>
    %42 = vector.broadcast %41 : vector<1x1x1x128xf32> to vector<2x16x16x128xf32>
    %43 = arith.mulf %39, %42 : vector<2x16x16x128xf32>
    %44 = arith.addf %38, %43 : vector<2x16x16x128xf32>
    %c0_31 = arith.constant 0 : index
    %c0_32 = arith.constant 0 : index
    %c9 = arith.constant 9 : index
    %c0_33 = arith.constant 0 : index
    %45 = vector.load %arg12[%c0_31, %c0_32, %c9, %c0_33] : memref<2x18x32x128xf32, #tpu.memory_space<vmem>>, vector<2x16x16x128xf32>
    %c2 = arith.constant 2 : index
    %c0_34 = arith.constant 0 : index
    %46 = vector.load %arg5[%c2, %c0_34] : memref<9x128xf32, #tpu.memory_space<vmem>>, vector<1x128xf32>
    %47 = vector.shape_cast %46 : vector<1x128xf32> to vector<1x1x1x128xf32>
    %48 = vector.broadcast %47 : vector<1x1x1x128xf32> to vector<2x16x16x128xf32>
    %49 = arith.mulf %45, %48 : vector<2x16x16x128xf32>
    %50 = arith.addf %44, %49 : vector<2x16x16x128xf32>
    %c0_35 = arith.constant 0 : index
    %c1_36 = arith.constant 1 : index
    %c7_37 = arith.constant 7 : index
    %c0_38 = arith.constant 0 : index
    %51 = vector.load %arg12[%c0_35, %c1_36, %c7_37, %c0_38] : memref<2x18x32x128xf32, #tpu.memory_space<vmem>>, vector<2x16x16x128xf32>
    %c3 = arith.constant 3 : index
    %c0_39 = arith.constant 0 : index
    %52 = vector.load %arg5[%c3, %c0_39] : memref<9x128xf32, #tpu.memory_space<vmem>>, vector<1x128xf32>
    %53 = vector.shape_cast %52 : vector<1x128xf32> to vector<1x1x1x128xf32>
    %54 = vector.broadcast %53 : vector<1x1x1x128xf32> to vector<2x16x16x128xf32>
    %55 = arith.mulf %51, %54 : vector<2x16x16x128xf32>
    %56 = arith.addf %50, %55 : vector<2x16x16x128xf32>
    %c0_40 = arith.constant 0 : index
    %c1_41 = arith.constant 1 : index
    %c8_42 = arith.constant 8 : index
    %c0_43 = arith.constant 0 : index
    %57 = vector.load %arg12[%c0_40, %c1_41, %c8_42, %c0_43] : memref<2x18x32x128xf32, #tpu.memory_space<vmem>>, vector<2x16x16x128xf32>
    %c4 = arith.constant 4 : index
    %c0_44 = arith.constant 0 : index
    %58 = vector.load %arg5[%c4, %c0_44] : memref<9x128xf32, #tpu.memory_space<vmem>>, vector<1x128xf32>
    %59 = vector.shape_cast %58 : vector<1x128xf32> to vector<1x1x1x128xf32>
    %60 = vector.broadcast %59 : vector<1x1x1x128xf32> to vector<2x16x16x128xf32>
    %61 = arith.mulf %57, %60 : vector<2x16x16x128xf32>
    %62 = arith.addf %56, %61 : vector<2x16x16x128xf32>
    %c0_45 = arith.constant 0 : index
    %c1_46 = arith.constant 1 : index
    %c9_47 = arith.constant 9 : index
    %c0_48 = arith.constant 0 : index
    %63 = vector.load %arg12[%c0_45, %c1_46, %c9_47, %c0_48] : memref<2x18x32x128xf32, #tpu.memory_space<vmem>>, vector<2x16x16x128xf32>
    %c5 = arith.constant 5 : index
    %c0_49 = arith.constant 0 : index
    %64 = vector.load %arg5[%c5, %c0_49] : memref<9x128xf32, #tpu.memory_space<vmem>>, vector<1x128xf32>
    %65 = vector.shape_cast %64 : vector<1x128xf32> to vector<1x1x1x128xf32>
    %66 = vector.broadcast %65 : vector<1x1x1x128xf32> to vector<2x16x16x128xf32>
    %67 = arith.mulf %63, %66 : vector<2x16x16x128xf32>
    %68 = arith.addf %62, %67 : vector<2x16x16x128xf32>
    %c0_50 = arith.constant 0 : index
    %c2_51 = arith.constant 2 : index
    %c7_52 = arith.constant 7 : index
    %c0_53 = arith.constant 0 : index
    %69 = vector.load %arg12[%c0_50, %c2_51, %c7_52, %c0_53] : memref<2x18x32x128xf32, #tpu.memory_space<vmem>>, vector<2x16x16x128xf32>
    %c6 = arith.constant 6 : index
    %c0_54 = arith.constant 0 : index
    %70 = vector.load %arg5[%c6, %c0_54] : memref<9x128xf32, #tpu.memory_space<vmem>>, vector<1x128xf32>
    %71 = vector.shape_cast %70 : vector<1x128xf32> to vector<1x1x1x128xf32>
    %72 = vector.broadcast %71 : vector<1x1x1x128xf32> to vector<2x16x16x128xf32>
    %73 = arith.mulf %69, %72 : vector<2x16x16x128xf32>
    %74 = arith.addf %68, %73 : vector<2x16x16x128xf32>
    %c0_55 = arith.constant 0 : index
    %c2_56 = arith.constant 2 : index
    %c8_57 = arith.constant 8 : index
    %c0_58 = arith.constant 0 : index
    %75 = vector.load %arg12[%c0_55, %c2_56, %c8_57, %c0_58] : memref<2x18x32x128xf32, #tpu.memory_space<vmem>>, vector<2x16x16x128xf32>
    %c7_59 = arith.constant 7 : index
    %c0_60 = arith.constant 0 : index
    %76 = vector.load %arg5[%c7_59, %c0_60] : memref<9x128xf32, #tpu.memory_space<vmem>>, vector<1x128xf32>
    %77 = vector.shape_cast %76 : vector<1x128xf32> to vector<1x1x1x128xf32>
    %78 = vector.broadcast %77 : vector<1x1x1x128xf32> to vector<2x16x16x128xf32>
    %79 = arith.mulf %75, %78 : vector<2x16x16x128xf32>
    %80 = arith.addf %74, %79 : vector<2x16x16x128xf32>
    %c0_61 = arith.constant 0 : index
    %c2_62 = arith.constant 2 : index
    %c9_63 = arith.constant 9 : index
    %c0_64 = arith.constant 0 : index
    %81 = vector.load %arg12[%c0_61, %c2_62, %c9_63, %c0_64] : memref<2x18x32x128xf32, #tpu.memory_space<vmem>>, vector<2x16x16x128xf32>
    %c8_65 = arith.constant 8 : index
    %c0_66 = arith.constant 0 : index
    %82 = vector.load %arg5[%c8_65, %c0_66] : memref<9x128xf32, #tpu.memory_space<vmem>>, vector<1x128xf32>
    %83 = vector.shape_cast %82 : vector<1x128xf32> to vector<1x1x1x128xf32>
    %84 = vector.broadcast %83 : vector<1x1x1x128xf32> to vector<2x16x16x128xf32>
    %85 = arith.mulf %81, %84 : vector<2x16x16x128xf32>
    %86 = arith.addf %80, %85 : vector<2x16x16x128xf32>
    %87 = vector.shape_cast %86 : vector<2x16x16x128xf32> to vector<512x128xf32>
    %c0_67 = arith.constant 0 : index
    %c0_68 = arith.constant 0 : index
    %88 = vector.load %arg6[%c0_67, %c0_68] : memref<1x128xf32, #tpu.memory_space<vmem>>, vector<1x128xf32>
    %c0_69 = arith.constant 0 : index
    %c0_70 = arith.constant 0 : index
    %89 = vector.load %arg7[%c0_69, %c0_70] : memref<1x128xf32, #tpu.memory_space<vmem>>, vector<1x128xf32>
    %cst_71 = arith.constant dense<0.000000e+00> : vector<128xf32>
    %90 = vector.multi_reduction <add>, %87, %cst_71 [0] : vector<512x128xf32> to vector<128xf32>
    %91 = vector.shape_cast %90 : vector<128xf32> to vector<1x128xf32>
    %92 = arith.mulf %87, %87 : vector<512x128xf32>
    %cst_72 = arith.constant dense<0.000000e+00> : vector<128xf32>
    %93 = vector.multi_reduction <add>, %92, %cst_72 [0] : vector<512x128xf32> to vector<128xf32>
    %94 = vector.shape_cast %93 : vector<128xf32> to vector<1x128xf32>
    %cst_73 = arith.constant 0.001953125 : f32
    %95 = vector.broadcast %cst_73 : f32 to vector<1x128xf32>
    %96 = arith.mulf %91, %95 : vector<1x128xf32>
    %cst_74 = arith.constant 0.001953125 : f32
    %97 = vector.broadcast %cst_74 : f32 to vector<1x128xf32>
    %98 = arith.mulf %94, %97 : vector<1x128xf32>
    %99 = arith.mulf %96, %96 : vector<1x128xf32>
    %100 = arith.subf %98, %99 : vector<1x128xf32>
    %cst_75 = arith.constant 9.99999974E-6 : f32
    %101 = vector.broadcast %cst_75 : f32 to vector<1x128xf32>
    %102 = arith.addf %100, %101 : vector<1x128xf32>
    %103 = math.rsqrt %102 : vector<1x128xf32>
    %104 = arith.mulf %88, %103 : vector<1x128xf32>
    %105 = arith.mulf %96, %104 : vector<1x128xf32>
    %106 = arith.subf %89, %105 : vector<1x128xf32>
    %107 = vector.broadcast %104 : vector<1x128xf32> to vector<512x128xf32>
    %108 = arith.mulf %87, %107 : vector<512x128xf32>
    %109 = vector.broadcast %106 : vector<1x128xf32> to vector<512x128xf32>
    %110 = arith.addf %108, %109 : vector<512x128xf32>
    %cst_76 = arith.constant 0.000000e+00 : f32
    %111 = vector.broadcast %cst_76 : f32 to vector<512x128xf32>
    %112 = arith.maximumf %110, %111 : vector<512x128xf32>
    %113 = arith.truncf %112 : vector<512x128xf32> to vector<512x128xbf16>
    %c0_77 = arith.constant 0 : index
    %c0_78 = arith.constant 0 : index
    %114 = vector.load %arg8[%c0_77, %c0_78] : memref<128x128xbf16, #tpu.memory_space<vmem>>, vector<128x128xbf16>
    %cst_79 = arith.constant dense<0.000000e+00> : vector<512x128xf32>
    %115 = tpu.matmul %113, %114, %cst_79 {dimension_numbers = #tpu.dot_dimension_numbers<[1], [0], [0], [1], [0, 0, 1, 1], [], []>} : vector<512x128xbf16>, vector<128x128xbf16>, vector<512x128xf32> -> vector<512x128xf32>
    %c0_80 = arith.constant 0 : index
    %c0_81 = arith.constant 0 : index
    %116 = vector.load %arg9[%c0_80, %c0_81] : memref<1x128xf32, #tpu.memory_space<vmem>>, vector<1x128xf32>
    %c0_82 = arith.constant 0 : index
    %c0_83 = arith.constant 0 : index
    %117 = vector.load %arg10[%c0_82, %c0_83] : memref<1x128xf32, #tpu.memory_space<vmem>>, vector<1x128xf32>
    %cst_84 = arith.constant dense<0.000000e+00> : vector<128xf32>
    %118 = vector.multi_reduction <add>, %115, %cst_84 [0] : vector<512x128xf32> to vector<128xf32>
    %119 = vector.shape_cast %118 : vector<128xf32> to vector<1x128xf32>
    %120 = arith.mulf %115, %115 : vector<512x128xf32>
    %cst_85 = arith.constant dense<0.000000e+00> : vector<128xf32>
    %121 = vector.multi_reduction <add>, %120, %cst_85 [0] : vector<512x128xf32> to vector<128xf32>
    %122 = vector.shape_cast %121 : vector<128xf32> to vector<1x128xf32>
    %cst_86 = arith.constant 0.001953125 : f32
    %123 = vector.broadcast %cst_86 : f32 to vector<1x128xf32>
    %124 = arith.mulf %119, %123 : vector<1x128xf32>
    %cst_87 = arith.constant 0.001953125 : f32
    %125 = vector.broadcast %cst_87 : f32 to vector<1x128xf32>
    %126 = arith.mulf %122, %125 : vector<1x128xf32>
    %127 = arith.mulf %124, %124 : vector<1x128xf32>
    %128 = arith.subf %126, %127 : vector<1x128xf32>
    %cst_88 = arith.constant 9.99999974E-6 : f32
    %129 = vector.broadcast %cst_88 : f32 to vector<1x128xf32>
    %130 = arith.addf %128, %129 : vector<1x128xf32>
    %131 = math.rsqrt %130 : vector<1x128xf32>
    %132 = arith.mulf %116, %131 : vector<1x128xf32>
    %133 = arith.mulf %124, %132 : vector<1x128xf32>
    %134 = arith.subf %117, %133 : vector<1x128xf32>
    %135 = vector.broadcast %132 : vector<1x128xf32> to vector<512x128xf32>
    %136 = arith.mulf %115, %135 : vector<512x128xf32>
    %137 = vector.broadcast %134 : vector<1x128xf32> to vector<512x128xf32>
    %138 = arith.addf %136, %137 : vector<512x128xf32>
    %139 = arith.addf %138, %29 : vector<512x128xf32>
    %cst_89 = arith.constant 0.000000e+00 : f32
    %140 = vector.broadcast %cst_89 : f32 to vector<512x128xf32>
    %141 = arith.maximumf %139, %140 : vector<512x128xf32>
    %c0_90 = arith.constant 0 : index
    %c0_91 = arith.constant 0 : index
    %142 = vector.load %arg11[%c0_90, %c0_91] : memref<512x128xf32, #tpu.memory_space<vmem>>, vector<512x128xf32>
    tpu.vector_store %arg11[%c0_90, %c0_91], %141 {strides = array<i32>} : memref<512x128xf32, #tpu.memory_space<vmem>>, vector<512x128xf32>,
    return
  }
  func.func @transform_0(%arg0: i32) -> (i32, i32) {
    %c0_i32 = arith.constant 0 : i32
    %c0_i32_0 = arith.constant 0 : i32
    %c0_i32_1 = arith.constant 0 : i32
    return %c0_i32, %c0_i32_0 : i32, i32
  }
  func.func @transform_1(%arg0: i32) -> (i32, i32) {
    %c0_i32 = arith.constant 0 : i32
    %c0_i32_0 = arith.constant 0 : i32
    %c0_i32_1 = arith.constant 0 : i32
    return %c0_i32, %c0_i32_0 : i32, i32
  }
  func.func @transform_2(%arg0: i32) -> (i32, i32) {
    %c0_i32 = arith.constant 0 : i32
    %c0_i32_0 = arith.constant 0 : i32
    %c0_i32_1 = arith.constant 0 : i32
    return %c0_i32, %c0_i32_0 : i32, i32
  }
  func.func @transform_3(%arg0: i32) -> (i32, i32) {
    %c0_i32 = arith.constant 0 : i32
    %c0_i32_0 = arith.constant 0 : i32
    %c0_i32_1 = arith.constant 0 : i32
    return %c0_i32, %c0_i32_0 : i32, i32
  }
  func.func @transform_4(%arg0: i32) -> (i32, i32) {
    %c0_i32 = arith.constant 0 : i32
    %c0_i32_0 = arith.constant 0 : i32
    %c0_i32_1 = arith.constant 0 : i32
    return %c0_i32, %c0_i32_0 : i32, i32
  }
  func.func @transform_5(%arg0: i32) -> (i32, i32) {
    %c0_i32 = arith.constant 0 : i32
    %c0_i32_0 = arith.constant 0 : i32
    %c0_i32_1 = arith.constant 0 : i32
    return %c0_i32, %c0_i32_0 : i32, i32
  }
  func.func @transform_6(%arg0: i32) -> (i32, i32) {
    %c0_i32 = arith.constant 0 : i32
    %c0_i32_0 = arith.constant 0 : i32
    %c0_i32_1 = arith.constant 0 : i32
    return %c0_i32, %c0_i32_0 : i32, i32
  }
  func.func @transform_7(%arg0: i32) -> (i32, i32) {
    %c0_i32 = arith.constant 0 : i32
    %c0_i32_0 = arith.constant 0 : i32
    %c0_i32_1 = arith.constant 0 : i32
    return %c0_i32, %c0_i32_0 : i32, i32
  }
  func.func @transform_8(%arg0: i32) -> (i32, i32) {
    %c0_i32 = arith.constant 0 : i32
    %c0_i32_0 = arith.constant 0 : i32
    %c0_i32_1 = arith.constant 0 : i32
    return %c0_i32, %c0_i32_0 : i32, i32
  }
  func.func @transform_9(%arg0: i32) -> (i32, i32) {
    %c0_i32 = arith.constant 0 : i32
    %c0_i32_0 = arith.constant 0 : i32
    %c0_i32_1 = arith.constant 0 : i32
    return %c0_i32, %c0_i32_0 : i32, i32
  }
  func.func @transform_10(%arg0: i32) -> (i32, i32) {
    %c0_i32 = arith.constant 0 : i32
    %c0_i32_0 = arith.constant 0 : i32
    %c0_i32_1 = arith.constant 0 : i32
    return %c0_i32, %c0_i32_0 : i32, i32
  }
}

</mosaic_0001>

<bundles_post_ra>
// kernel: tpu_custom_call.1
= control target key start
LH: loop header
LB: loop body
LE: loop exit
PB: predicated region body
PF: predicated region fallthrough
CT: control target
= control target key end

     0   :  { %15 = vsyncpa [#allocation4], 0  ;;  %s11037_s0 = inlined_call_operand.hbm [shape: bf16[512,128], index: 0, kind: input, shape index: {}]   ;;  %s11038_s1 = inlined_call_operand.hbm [shape: bf16[128,256], index: 1, kind: input, shape index: {}]   ;;  %s11039_s2 = inlined_call_operand.hbm [shape: f32[1,256], index: 2, kind: input, shape index: {}]   ;;  %s11040_s3 = inlined_call_operand.vmem [shape: f32[1,256], index: 3, kind: input, shape index: {}]   ;;  %s11041_s4 = inlined_call_operand.hbm [shape: f32[9,128], index: 4, kind: input, shape index: {}]   ;;  %s11042_s5 = inlined_call_operand.vmem [shape: f32[1,128], index: 5, kind: input, shape index: {}]   ;;  %s11043_s6 = inlined_call_operand.vmem [shape: f32[1,128], index: 6, kind: input, shape index: {}]   ;;  %s11044_s7 = inlined_call_operand.hbm [shape: bf16[128,128], index: 7, kind: input, shape index: {}]   ;;  %s11045_s8 = inlined_call_operand.vmem [shape: f32[1,128], index: 8, kind: input, shape index: {}]   ;;  %s11046_s9 = inlined_call_operand.vmem [shape: f32[1,128], index: 9, kind: input, shape index: {}]   ;;  %s11047_s10 = inlined_call_operand.hbm [shape: f32[512,128], index: 10, kind: output, shape index: {}]  }
   0x1   :  { %16 = vsyncpa [#allocation7], 0 }
   0x2   :  { %17 = vsyncpa [#allocation10], 0  ;;  %s36_s15 = sshll.u32 %s11038_s1, 4  ;;  %s37_s15 = int_to_ptr.hbm [resolvable:$true] %s36_s15 }
   0x3   :  { %18 = vsyncpa [#allocation5], 0  ;;  %s5279_s16 = smov [#allocation6]   ;;  %s62_s20 = sshll.u32 %s11041_s4, 4  ;;  %s63_s20 = int_to_ptr.hbm [resolvable:$true] %s62_s20 }
   0x4   :  { %s38_s17 = sshll.u32 %s5279_s16, 4  ;;  %s5280_s21 = smov 128   ;;  %s39_s17 = int_to_ptr.vmem [resolvable:$true] %s38_s17 }
   0x5   :  { %s5281_s22 = smov 8   ;;  %s5282_s23 = smov [#allocation9]  }
   0x6   :  { %44 = dma.hbm_to_vmem [thread:$0]  %s37_s15, 2048, %s39_s17, [#allocation7], %s5280_s21, %s5280_s21, %s5281_s22  }
   0x7   :  { %s64_s24 = sshll.u32 %s5282_s23, 4  ;;  %s23_s26 = sshll.u32 %s11037_s0, 4  ;;  %s65_s24 = int_to_ptr.vmem [resolvable:$true] %s64_s24  ;;  %s24_s26 = int_to_ptr.hbm [resolvable:$true] %s23_s26 }
   0x8   :  { %70 = dma.hbm_to_vmem [thread:$0]  %s63_s20, 256, %s65_s24, [#allocation10], %s5280_s21, %s5280_s21, %s5281_s22  }
   0x9   :  { %s5283_s4 = smov [#allocation3]   ;;  %s50_s30 = sshll.u32 %s11039_s2, 4  ;;  %s51_s30 = int_to_ptr.hbm [resolvable:$true] %s50_s30 }
   0xa   :  { %s25_s27 = sshll.u32 %s5283_s4, 4  ;;  %s5284_s11 = smov 64   ;;  %s26_s27 = int_to_ptr.vmem [resolvable:$true] %s25_s27 }
   0xb   :  { %s5285_s12 = smov 4   ;;  %s5286_s13 = smov [#allocation8]  }
   0xc   :  { %31 = dma.hbm_to_vmem [thread:$0]  %s24_s26, 4096, %s26_s27, [#allocation4], %s5284_s11, %s5284_s11, %s5285_s12  }
   0xd   :  { %s52_s14 = sshll.u32 %s5286_s13, 4  ;;  %s79_s16 = sshll.u32 %s11044_s7, 4  ;;  %s53_s14 = int_to_ptr.vmem [resolvable:$true] %s52_s14  ;;  %s80_s16 = int_to_ptr.hbm [resolvable:$true] %s79_s16 }
   0xe   :  { %55 = dma.hbm_to_vmem [thread:$0]  %s51_s30, 32, %s53_s14, [#allocation7]  }
   0xf   :  { %s5287_s17 = smov [#allocation11]  }
  0x10   :  { %s81_s18 = sshll.u32 %s5287_s17, 4  ;;  %s82_s18 = int_to_ptr.vmem [resolvable:$true] %s81_s18 }
  0x11   :  { %87 = dma.hbm_to_vmem [thread:$0]  %s80_s16, 1024, %s82_s18, [#allocation10], %s5284_s11, %s5284_s11, %s5285_s12  }
  0x12   :  { %5271 = dma.done.wait [#allocation4], 4096  }
  0x13   :  { %5272 = vsyncadd [#allocation4], 4294963200 }
  0x14   :  { %5273 = dma.done.wait [#allocation7], 2080  }
  0x15   :  { %5274 = vsyncadd [#allocation7], 4294965216 }
  0x16   :  { %5275 = dma.done.wait [#allocation10], 1280  }
  0x17   :  { %5276 = vsyncadd [#allocation10], 4294966016  ;;  %v4915_v0 = vld [vmem:[#allocation6 + $0x70] sm:$0xf]  ;;  %v5000_v1 = vld [vmem:[#allocation6 + $0x74] sm:$0xf0] }
  0x18   :  { %v4999_v2 = vld [vmem:[#allocation6 + $0x74] sm:$0xf]  ;;  %v4916_v3 = vor.u32 %v5000_v1, %v4915_v0  ;;  %v4917_v4 = vld [vmem:[#allocation6 + $0x78] sm:$0xf0]  ;;  %v4907_v5 = vld [vmem:[#allocation6 + $0x60] sm:$0xf] }
  0x19   :  { %v4998_v6 = vld [vmem:[#allocation6 + $0x64] sm:$0xf0]  ;;  %v5366_v7 = vor.u32 %v4999_v2, %v4917_v4  ;;  %v4997_v8 = vld [vmem:[#allocation6 + $0x64] sm:$0xf]  ;;  %v4909_v9 = vld [vmem:[#allocation6 + $0x68] sm:$0xf0] }
  0x1a   :  { %464 = vmatpush.bf16.msra.mxu0 %v4916_v3  ;;  %v4908_v10 = vor.u32 %v4998_v6, %v4907_v5  ;;  %5009 = vmatpush.bf16.msra.mxu3 %v4916_v3  ;;  %v4912_v11 = vor.u32 %v4997_v8, %v4909_v9  ;;  %v4899_v12 = vld [vmem:[#allocation6 + $0x50] sm:$0xf]  ;;  %v4996_v13 = vld [vmem:[#allocation6 + $0x54] sm:$0xf0]  ;;  %v4995_v14 = vld [vmem:[#allocation6 + $0x54] sm:$0xf] }
  0x1b   :  { %633 = vmatpush.bf16.msra.mxu1 %v5366_v7  ;;  %v4901_v15 = vld [vmem:[#allocation6 + $0x58] sm:$0xf0]  ;;  %v4900_v16 = vor.u32 %v4996_v13, %v4899_v12  ;;  %v4891_v18 = vld [vmem:[#allocation6 + $0x40] sm:$0xf]  ;;  %v4994_v19 = vld [vmem:[#allocation6 + $0x44] sm:$0xf0] }
  0x1c   :  { %v4904_v17 = vor.u32 %v4995_v14, %v4901_v15  ;;  %v4993_v20 = vld [vmem:[#allocation6 + $0x44] sm:$0xf]  ;;  %v4893_v21 = vld [vmem:[#allocation6 + $0x48] sm:$0xf0]  ;;  %v4883_v22 = vld [vmem:[#allocation6 + $0x30] sm:$0xf]  ;;  %v4892_v24 = vor.u32 %v4994_v19, %v4891_v18 }
  0x1d   :  { %v4992_v23 = vld [vmem:[#allocation6 + $0x34] sm:$0xf0]  ;;  %v4991_v25 = vld [vmem:[#allocation6 + $0x34] sm:$0xf]  ;;  %v4885_v26 = vld [vmem:[#allocation6 + $0x38] sm:$0xf0]  ;;  %v4896_v27 = vor.u32 %v4993_v20, %v4893_v21 }
  0x1e   :  { %465 = vmatpush.bf16.msra.mxu0 %v4908_v10  ;;  %5010 = vmatpush.bf16.msra.mxu3 %v4908_v10  ;;  %v4884_v28 = vor.u32 %v4992_v23, %v4883_v22  ;;  %v4888_v29 = vor.u32 %v4991_v25, %v4885_v26  ;;  %v4875_v30 = vld [vmem:[#allocation6 + $0x20] sm:$0xf]  ;;  %v4990_v31 = vld [vmem:[#allocation6 + $0x24] sm:$0xf0]  ;;  %v4989_v32 = vld [vmem:[#allocation6 + $0x24] sm:$0xf] }
  0x1f   :  { %634 = vmatpush.bf16.msra.mxu1 %v4912_v11  ;;  %v4877_v33 = vld [vmem:[#allocation6 + $0x28] sm:$0xf0]  ;;  %v4876_v34 = vor.u32 %v4990_v31, %v4875_v30  ;;  %v4867_v36 = vld [vmem:[#allocation6 + $0x10] sm:$0xf]  ;;  %v4988_v37 = vld [vmem:[#allocation6 + $0x14] sm:$0xf0] }
  0x20   :  { %v4880_v35 = vor.u32 %v4989_v32, %v4877_v33  ;;  %v4987_v38 = vld [vmem:[#allocation6 + $0x14] sm:$0xf]  ;;  %v4869_v39 = vld [vmem:[#allocation6 + $0x18] sm:$0xf0]  ;;  %v4868_v40 = vor.u32 %v4988_v37, %v4867_v36  ;;  %v4859_v42 = vld [vmem:[#allocation6] sm:$0xf] }
  0x21   :  { %v4872_v41 = vor.u32 %v4987_v38, %v4869_v39  ;;  %v4986_v43 = vld [vmem:[#allocation6 + $0x4] sm:$0xf0]  ;;  %v4985_v44 = vld [vmem:[#allocation6 + $0x4] sm:$0xf]  ;;  %v4861_v45 = vld [vmem:[#allocation6 + $0x8] sm:$0xf0] }
  0x22   :  { %466 = vmatpush.bf16.msra.mxu0 %v4900_v16  ;;  %5011 = vmatpush.bf16.msra.mxu3 %v4900_v16  ;;  %v4860_v46 = vor.u32 %v4986_v43, %v4859_v42  ;;  %v4864_v47 = vor.u32 %v4985_v44, %v4861_v45  ;;  %v4953_v48 = vld [vmem:[#allocation3] sm:$0xff]  ;;  %v4954_v49 = vld [vmem:[#allocation3 + $0x8] sm:$0xff]  ;;  %v4955_v50 = vld [vmem:[#allocation3 + $0x10] sm:$0xff]  ;;  %v5288_v55 = vmov 0.0   ;;  %vm1241_vm5 = vcmask 1040384   ;;  %s4714_s4 = sshll.u32 %s11047_s10, 4  ;;  %s4715_s4 = int_to_ptr.hbm [resolvable:$true] %s4714_s4 }
  0x23   :  { %635 = vmatpush.bf16.msra.mxu1 %v4904_v17  ;;  %v4956_v51 = vld [vmem:[#allocation3 + $0x18] sm:$0xff]  ;;  %v4957_v52 = vld [vmem:[#allocation3 + $0x20] sm:$0xff]  ;;  %v4958_v53 = vld [vmem:[#allocation3 + $0x28] sm:$0xff]  ;;  %1583 = vst [vmem:[#allocation2] sm:$0xff] %v5288_v55 }
  0x24   :  { %v4959_v54 = vld [vmem:[#allocation3 + $0x30] sm:$0xff]  ;;  %1584 = vst [vmem:[#allocation2 + $0x8] sm:$0xff] %v5288_v55  ;;  %v4960_v56 = vld [vmem:[#allocation3 + $0x38] sm:$0xff]  ;;  %v5389_v57 = vld [vmem:[#allocation3 + $0xc0] sm:$0xff] }
  0x25   :  { %1585 = vst [vmem:[#allocation2 + $0x10] sm:$0xff] %v5288_v55  ;;  %v4961_v58 = vld [vmem:[#allocation3 + $0x40] sm:$0xff]  ;;  %v5412_v61 = vld [vmem:[#allocation3 + $0xc8] sm:$0xff]  ;;  %v5439_v3 = vld [vmem:[#allocation3 + $0xd0] sm:$0xff] }
  0x26   :  { %467 = vmatpush.bf16.msra.mxu0 %v4892_v24  ;;  %5012 = vmatpush.bf16.msra.mxu3 %v4892_v24  ;;  %1586 = vst [vmem:[#allocation2 + $0x18] sm:$0xff] %v5288_v55  ;;  %v4962_v0 = vld [vmem:[#allocation3 + $0x48] sm:$0xff]  ;;  %v4963_v6 = vld [vmem:[#allocation3 + $0x50] sm:$0xff]  ;;  %v5466_v9 = vld [vmem:[#allocation3 + $0xd8] sm:$0xff] }
  0x27   :  { %636 = vmatpush.bf16.msra.mxu1 %v4896_v27  ;;  %1587 = vst [vmem:[#allocation2 + $0x20] sm:$0xff] %v5288_v55  ;;  %v4964_v12 = vld [vmem:[#allocation3 + $0x58] sm:$0xff]  ;;  %v5490_v15 = vld [vmem:[#allocation3 + $0xe0] sm:$0xff]  ;;  %v5501_v21 = vld [vmem:[#allocation3 + $0xe8] sm:$0xff] }
  0x28   :  { %1590 = vst [vmem:[#allocation2 + $0x38] sm:$0xff] %v5288_v55  ;;  %v4965_v18 = vld [vmem:[#allocation3 + $0x60] sm:$0xff]  ;;  %v4966_v24 = vld [vmem:[#allocation3 + $0x68] sm:$0xff]  ;;  %v4967_v30 = vld [vmem:[#allocation3 + $0x70] sm:$0xff] }
  0x29   :  { %1591 = vst [vmem:[#allocation2 + $0x40] sm:$0xff] %v5288_v55  ;;  %v5523_v33 = vld [vmem:[#allocation3 + $0xf8] sm:$0xff]  ;;  %v4969_v42 = vld [vmem:[#allocation3 + $0x80] sm:$0xff] }
  0x2a   :  { %468 = vmatpush.bf16.msra.mxu0 %v4884_v28  ;;  %5013 = vmatpush.bf16.msra.mxu3 %v4884_v28  ;;  %1594 = vst [vmem:[#allocation2 + $0x58] sm:$0xff] %v5288_v55  ;;  %v4968_v36 = vld [vmem:[#allocation3 + $0x78] sm:$0xff] }
  0x2b   :  { %637 = vmatpush.bf16.msra.mxu1 %v4888_v29  ;;  %1595 = vst [vmem:[#allocation2 + $0x60] sm:$0xff] %v5288_v55 }
  0x2c   :  { %1598 = vst [vmem:[#allocation2 + $0x78] sm:$0xff] %v5288_v55 }
  0x2d   :  { %1599 = vst [vmem:[#allocation2 + $0x80] sm:$0xff] %v5288_v55 }
  0x2e   :  { %469 = vmatpush.bf16.msra.mxu0 %v4876_v34  ;;  %5014 = vmatpush.bf16.msra.mxu3 %v4876_v34  ;;  %1602 = vst [vmem:[#allocation2 + $0x98] sm:$0xff] %v5288_v55 }
  0x2f   :  { %638 = vmatpush.bf16.msra.mxu1 %v4880_v35  ;;  %1603 = vst [vmem:[#allocation2 + $0xa0] sm:$0xff] %v5288_v55 }
  0x30   :  { %1606 = vst [vmem:[#allocation2 + $0xb8] sm:$0xff] %v5288_v55 }
  0x31   :  { %1607 = vst [vmem:[#allocation2 + $0xc0] sm:$0xff] %v5288_v55 }
  0x32   :  { %470 = vmatpush.bf16.msra.mxu0 %v4868_v40  ;;  %5015 = vmatpush.bf16.msra.mxu3 %v4868_v40  ;;  %1610 = vst [vmem:[#allocation2 + $0xd8] sm:$0xff] %v5288_v55 }
  0x33   :  { %639 = vmatpush.bf16.msra.mxu1 %v4872_v41  ;;  %1611 = vst [vmem:[#allocation2 + $0xe0] sm:$0xff] %v5288_v55 }
  0x34   :  { %1614 = vst [vmem:[#allocation2 + $0xf8] sm:$0xff] %v5288_v55 }
  0x35   :  { %1615 = vst [vmem:[#allocation2 + $0x100] sm:$0xff] %v5288_v55 }
  0x36   :  { %471 = vmatpush.bf16.msra.mxu0 %v4860_v46  ;;  %5016 = vmatpush.bf16.msra.mxu3 %v4860_v46  ;;  %1618 = vst [vmem:[#allocation2 + $0x118] sm:$0xff] %v5288_v55 }
  0x37   :  { %640 = vmatpush.bf16.msra.mxu1 %v4864_v47  ;;  %1619 = vst [vmem:[#allocation2 + $0x120] sm:$0xff] %v5288_v55 }
  0x38   :  { %1622 = vst [vmem:[#allocation2 + $0x138] sm:$0xff] %v5288_v55 }
  0x39   :  { %472 = vmatmul.bf16.vlgmr.msra.gmra.mxu0 %v4953_v48  ;;  %592 = vmatmul.bf16.vlgmr.msra.gmra.mxu3 %v5389_v57  ;;  %1623 = vst [vmem:[#allocation2 + $0x140] sm:$0xff] %v5288_v55 }
  0x3a   :  { %5017 = vmatpush.bf16.msrb.mxu3 %v5366_v7  ;;  %641 = vmatmul.bf16.vlgmr.msra.gmra.mxu1 %v4953_v48  ;;  %1626 = vst [vmem:[#allocation2 + $0x158] sm:$0xff] %v5288_v55 }
  0x3b   :  { %1627 = vst [vmem:[#allocation2 + $0x160] sm:$0xff] %v5288_v55 }
  0x3c   :  { %1630 = vst [vmem:[#allocation2 + $0x178] sm:$0xff] %v5288_v55 }
  0x3d   :  { %1631 = vst [vmem:[#allocation2 + $0x180] sm:$0xff] %v5288_v55 }
  0x3e   :  { %5018 = vmatpush.bf16.msrb.mxu3 %v4912_v11  ;;  %1634 = vst [vmem:[#allocation2 + $0x198] sm:$0xff] %v5288_v55 }
  0x3f   :  { %1635 = vst [vmem:[#allocation2 + $0x1a0] sm:$0xff] %v5288_v55 }
  0x40   :  { %1638 = vst [vmem:[#allocation2 + $0x1b8] sm:$0xff] %v5288_v55 }
  0x41   :  { %1639 = vst [vmem:[#allocation2 + $0x1c0] sm:$0xff] %v5288_v55 }
  0x42   :  { %5019 = vmatpush.bf16.msrb.mxu3 %v4904_v17  ;;  %1642 = vst [vmem:[#allocation2 + $0x1d8] sm:$0xff] %v5288_v55 }
  0x43   :  { %1643 = vst [vmem:[#allocation2 + $0x1e0] sm:$0xff] %v5288_v55 }
  0x44   :  { %1646 = vst [vmem:[#allocation2 + $0x1f8] sm:$0xff] %v5288_v55 }
  0x45   :  { %1647 = vst [vmem:[#allocation2 + $0x200] sm:$0xff] %v5288_v55 }
  0x46   :  { %5020 = vmatpush.bf16.msrb.mxu3 %v4896_v27  ;;  %1650 = vst [vmem:[#allocation2 + $0x218] sm:$0xff] %v5288_v55  ;;  %v5512_v27 = vld [vmem:[#allocation3 + $0xf0] sm:$0xff] }
  0x47   :  { %1651 = vst [vmem:[#allocation2 + $0x220] sm:$0xff] %v5288_v55 }
  0x48   :  { %1652 = vst [vmem:[#allocation2 + $0x228] sm:$0xff] %v5288_v55 }
  0x49   :  { %477 = vmatmul.bf16.gmra.mxu0 %v4954_v49  ;;  %597 = vmatmul.bf16.gmra.mxu3 %v5412_v61  ;;  %1653 = vst [vmem:[#allocation2 + $0x230] sm:$0xff] %v5288_v55 }
  0x4a   :  { %5021 = vmatpush.bf16.msrb.mxu3 %v4888_v29  ;;  %646 = vmatmul.bf16.gmra.mxu1 %v4954_v49  ;;  %1654 = vst [vmem:[#allocation2 + $0x238] sm:$0xff] %v5288_v55  ;;  %v4970_v49 = vld [vmem:[#allocation3 + $0x88] sm:$0xff] }
  0x4b   :  { %1655 = vst [vmem:[#allocation2 + $0x240] sm:$0xff] %v5288_v55 }
  0x4c   :  { %1656 = vst [vmem:[#allocation2 + $0x248] sm:$0xff] %v5288_v55 }
  0x4d   :  { %1657 = vst [vmem:[#allocation2 + $0x250] sm:$0xff] %v5288_v55 }
  0x4e   :  { %5022 = vmatpush.bf16.msrb.mxu3 %v4880_v35  ;;  %1658 = vst [vmem:[#allocation2 + $0x258] sm:$0xff] %v5288_v55 }
  0x4f   :  { %1659 = vst [vmem:[#allocation2 + $0x260] sm:$0xff] %v5288_v55 }
  0x50   :  { %1662 = vst [vmem:[#allocation2 + $0x278] sm:$0xff] %v5288_v55 }
  0x51   :  { %1663 = vst [vmem:[#allocation2 + $0x280] sm:$0xff] %v5288_v55 }
  0x52   :  { %5023 = vmatpush.bf16.msrb.mxu3 %v4872_v41  ;;  %1666 = vst [vmem:[#allocation2 + $0x298] sm:$0xff] %v5288_v55 }
  0x53   :  { %1667 = vst [vmem:[#allocation2 + $0x2a0] sm:$0xff] %v5288_v55 }
  0x54   :  { %1670 = vst [vmem:[#allocation2 + $0x2b8] sm:$0xff] %v5288_v55 }
  0x55   :  { %1671 = vst [vmem:[#allocation2 + $0x2c0] sm:$0xff] %v5288_v55 }
  0x56   :  { %5024 = vmatpush.bf16.msrb.mxu3 %v4864_v47  ;;  %1674 = vst [vmem:[#allocation2 + $0x2d8] sm:$0xff] %v5288_v55 }
  0x57   :  { %1675 = vst [vmem:[#allocation2 + $0x2e0] sm:$0xff] %v5288_v55 }
  0x58   :  { %1678 = vst [vmem:[#allocation2 + $0x2f8] sm:$0xff] %v5288_v55 }
  0x59   :  { %482 = vmatmul.bf16.gmra.mxu0 %v4955_v50  ;;  %602 = vmatmul.bf16.gmra.mxu3 %v5439_v3  ;;  %1679 = vst [vmem:[#allocation2 + $0x300] sm:$0xff] %v5288_v55 }
  0x5a   :  { %651 = vmatmul.bf16.gmra.mxu1 %v4955_v50  ;;  %1682 = vst [vmem:[#allocation2 + $0x318] sm:$0xff] %v5288_v55 }
  0x5b   :  { %1683 = vst [vmem:[#allocation2 + $0x320] sm:$0xff] %v5288_v55 }
  0x5c   :  { %1686 = vst [vmem:[#allocation2 + $0x338] sm:$0xff] %v5288_v55 }
  0x5d   :  { %1687 = vst [vmem:[#allocation2 + $0x340] sm:$0xff] %v5288_v55 }
  0x5e   :  { %1690 = vst [vmem:[#allocation2 + $0x358] sm:$0xff] %v5288_v55 }
  0x5f   :  { %1691 = vst [vmem:[#allocation2 + $0x360] sm:$0xff] %v5288_v55 }
  0x60   :  { %1694 = vst [vmem:[#allocation2 + $0x378] sm:$0xff] %v5288_v55 }
  0x61   :  { %1695 = vst [vmem:[#allocation2 + $0x380] sm:$0xff] %v5288_v55 }
  0x62   :  { %1698 = vst [vmem:[#allocation2 + $0x398] sm:$0xff] %v5288_v55 }
  0x63   :  { %1699 = vst [vmem:[#allocation2 + $0x3a0] sm:$0xff] %v5288_v55 }
  0x64   :  { %1702 = vst [vmem:[#allocation2 + $0x3b8] sm:$0xff] %v5288_v55 }
  0x65   :  { %1703 = vst [vmem:[#allocation2 + $0x3c0] sm:$0xff] %v5288_v55 }
  0x66   :  { %1706 = vst [vmem:[#allocation2 + $0x3d8] sm:$0xff] %v5288_v55 }
  0x67   :  { %1707 = vst [vmem:[#allocation2 + $0x3e0] sm:$0xff] %v5288_v55 }
  0x68   :  { %1710 = vst [vmem:[#allocation2 + $0x3f8] sm:$0xff] %v5288_v55 }
  0x69   :  { %487 = vmatmul.bf16.gmra.mxu0 %v4956_v51  ;;  %607 = vmatmul.bf16.gmra.mxu3 %v5466_v9  ;;  %1711 = vst [vmem:[#allocation2 + $0x400] sm:$0xff] %v5288_v55 }
  0x6a   :  { %656 = vmatmul.bf16.gmra.mxu1 %v4956_v51  ;;  %1714 = vst [vmem:[#allocation2 + $0x418] sm:$0xff] %v5288_v55 }
  0x6b   :  { %1715 = vst [vmem:[#allocation2 + $0x420] sm:$0xff] %v5288_v55 }
  0x6c   :  { %1718 = vst [vmem:[#allocation2 + $0x438] sm:$0xff] %v5288_v55 }
  0x6d   :  { %1719 = vst [vmem:[#allocation2 + $0x440] sm:$0xff] %v5288_v55 }
  0x6e   :  { %1722 = vst [vmem:[#allocation2 + $0x458] sm:$0xff] %v5288_v55 }
  0x6f   :  { %1723 = vst [vmem:[#allocation2 + $0x460] sm:$0xff] %v5288_v55 }
  0x70   :  { %1724 = vst [vmem:[#allocation2 + $0x468] sm:$0xff] %v5288_v55 }
  0x71   :  { %1725 = vst [vmem:[#allocation2 + $0x470] sm:$0xff] %v5288_v55 }
  0x72   :  { %1726 = vst [vmem:[#allocation2 + $0x478] sm:$0xff] %v5288_v55 }
  0x79   :  { %492 = vmatmul.bf16.gmra.mxu0 %v4957_v52  ;;  %612 = vmatmul.bf16.gmra.mxu3 %v5490_v15 }
  0x7a   :  { %661 = vmatmul.bf16.gmra.mxu1 %v4957_v52 }
  0x89   :  { %497 = vmatmul.bf16.gmra.mxu0 %v4958_v53  ;;  %617 = vmatmul.bf16.gmra.mxu3 %v5501_v21 }
  0x8a   :  { %666 = vmatmul.bf16.gmra.mxu1 %v4958_v53 }
  0x99   :  { %502 = vmatmul.bf16.gmra.mxu0 %v4959_v54  ;;  %622 = vmatmul.bf16.gmra.mxu3 %v5512_v27 }
  0x9a   :  { %671 = vmatmul.bf16.gmra.mxu1 %v4959_v54 }
  0xa9   :  { %507 = vmatmul.bf16.gmra.mxu0 %v4960_v56  ;;  %627 = vmatmul.bf16.gmra.mxu3 %v5523_v33 }
  0xaa   :  { %676 = vmatmul.bf16.gmra.mxu1 %v4960_v56  ;;  %v4971_v56 = vld [vmem:[#allocation3 + $0x90] sm:$0xff] }
  0xb6   :  { %v5403_v59 = vpop.f32.mrf.mxu0 }
  0xb7   :  { %11366 = vst [vmem:[#allocation17_spill] sm:$0xff] %v5403_v59  ;;  %v5407_v60 = vpop.f32.mrf.mxu1 }
  0xb8   :  { %11367 = vst [vmem:[#allocation18_spill] sm:$0xff] %v5407_v60 }
  0xb9   :  { %512 = vmatmul.bf16.gmra.mxu0 %v4961_v58  ;;  %761 = vmatmul.bf16.vlgmr.msrb.gmra.mxu3 %v5389_v57 }
  0xba   :  { %681 = vmatmul.bf16.gmra.mxu1 %v4961_v58 }
  0xbc   :  { %v5539_v41 = vpop.f32.mrf.mxu3 }
  0xbd   :  { %11383 = vst [vmem:[#allocation34_spill] sm:$0xff] %v5539_v41 }
  0xbe   :  { %v5419_v62 = vpop.f32.mrf.mxu0 }
  0xbf   :  { %11368 = vst [vmem:[#allocation19_spill] sm:$0xff] %v5419_v62  ;;  %v5422_v63 = vpop.f32.mrf.mxu1 }
  0xc0   :  { %11369 = vst [vmem:[#allocation20_spill] sm:$0xff] %v5422_v63 }
  0xc4   :  { %v5545_v45 = vpop.f32.mrf.mxu3 }
  0xc5   :  { %11385 = vst [vmem:[#allocation36_spill] sm:$0xff] %v5545_v45  ;;  %v4975_v45 = vld [vmem:[#allocation3 + $0xb0] sm:$0xff] }
  0xc6   :  { %v5431_v1 = vpop.f32.mrf.mxu0 }
  0xc7   :  { %11370 = vst [vmem:[#allocation21_spill] sm:$0xff] %v5431_v1  ;;  %v5434_v2 = vpop.f32.mrf.mxu1 }
  0xc8   :  { %11371 = vst [vmem:[#allocation22_spill] sm:$0xff] %v5434_v2 }
  0xc9   :  { %517 = vmatmul.bf16.gmra.mxu0 %v4962_v0  ;;  %766 = vmatmul.bf16.gmra.mxu3 %v5412_v61 }
  0xca   :  { %686 = vmatmul.bf16.gmra.mxu1 %v4962_v0 }
  0xcc   :  { %v5552_v48 = vpop.f32.mrf.mxu3 }
  0xcd   :  { %11387 = vst [vmem:[#allocation38_spill] sm:$0xff] %v5552_v48 }
  0xce   :  { %v5446_v4 = vpop.f32.mrf.mxu0 }
  0xcf   :  { %11372 = vst [vmem:[#allocation23_spill] sm:$0xff] %v5446_v4  ;;  %v5449_v5 = vpop.f32.mrf.mxu1 }
  0xd4   :  { %v5558_v52 = vpop.f32.mrf.mxu3 }
  0xd5   :  { %11389 = vst [vmem:[#allocation40_spill] sm:$0xff] %v5558_v52 }
  0xd6   :  { %v5458_v7 = vpop.f32.mrf.mxu0 }
  0xd7   :  { %v5461_v8 = vpop.f32.mrf.mxu1 }
  0xd9   :  { %522 = vmatmul.bf16.gmra.mxu0 %v4963_v6  ;;  %771 = vmatmul.bf16.gmra.mxu3 %v5439_v3 }
  0xda   :  { %691 = vmatmul.bf16.gmra.mxu1 %v4963_v6 }
  0xdc   :  { %v5565_v55 = vpop.f32.mrf.mxu3 }
  0xdd   :  { %11392 = vst [vmem:[#allocation43_spill] sm:$0xff] %v5565_v55  ;;  %v4974_v55 = vld [vmem:[#allocation3 + $0xa8] sm:$0xff] }
  0xde   :  { %v5473_v10 = vpop.f32.mrf.mxu0 }
  0xdf   :  { %v5476_v11 = vpop.f32.mrf.mxu1 }
  0xe4   :  { %v5571_v61 = vpop.f32.mrf.mxu3 }
  0xe5   :  { %11395 = vst [vmem:[#allocation46_spill] sm:$0xff] %v5571_v61 }
  0xe6   :  { %v5485_v13 = vpop.f32.mrf.mxu0 }
  0xe7   :  { %11373 = vst [vmem:[#allocation24_spill] sm:$0xff] %v5485_v13  ;;  %v5488_v14 = vpop.f32.mrf.mxu1 }
  0xe8   :  { %11374 = vst [vmem:[#allocation25_spill] sm:$0xff] %v5488_v14 }
  0xe9   :  { %527 = vmatmul.bf16.gmra.mxu0 %v4964_v12  ;;  %776 = vmatmul.bf16.gmra.mxu3 %v5466_v9 }
  0xea   :  { %696 = vmatmul.bf16.gmra.mxu1 %v4964_v12  ;;  %v4972_v12 = vld [vmem:[#allocation3 + $0x98] sm:$0xff] }
  0xec   :  { %v5578_v6 = vpop.f32.mrf.mxu3 }
  0xed   :  { %11398 = vst [vmem:[#allocation49_spill] sm:$0xff] %v5578_v6 }
  0xee   :  { %v5493_v16 = vpop.f32.mrf.mxu0 }
  0xef   :  { %11375 = vst [vmem:[#allocation26_spill] sm:$0xff] %v5493_v16  ;;  %v5495_v17 = vpop.f32.mrf.mxu1 }
  0xf6   :  { %v5497_v19 = vpop.f32.mrf.mxu0 }
  0xf7   :  { %v5499_v20 = vpop.f32.mrf.mxu1 }
  0xf9   :  { %532 = vmatmul.bf16.gmra.mxu0 %v4965_v18  ;;  %781 = vmatmul.bf16.gmra.mxu3 %v5490_v15 }
  0xfa   :  { %701 = vmatmul.bf16.gmra.mxu1 %v4965_v18 }
  0xfe   :  { %v5504_v22 = vpop.f32.mrf.mxu0 }
  0xff   :  { %11376 = vst [vmem:[#allocation27_spill] sm:$0xff] %v5504_v22  ;;  %v5506_v23 = vpop.f32.mrf.mxu1 }
 0x106   :  { %v5508_v25 = vpop.f32.mrf.mxu0 }
 0x107   :  { %11377 = vst [vmem:[#allocation28_spill] sm:$0xff] %v5508_v25  ;;  %v5510_v26 = vpop.f32.mrf.mxu1 }
 0x109   :  { %537 = vmatmul.bf16.gmra.mxu0 %v4966_v24  ;;  %786 = vmatmul.bf16.gmra.mxu3 %v5501_v21 }
 0x10a   :  { %706 = vmatmul.bf16.gmra.mxu1 %v4966_v24 }
 0x10e   :  { %v5515_v28 = vpop.f32.mrf.mxu0 }
 0x10f   :  { %11378 = vst [vmem:[#allocation29_spill] sm:$0xff] %v5515_v28  ;;  %v5517_v29 = vpop.f32.mrf.mxu1 }
 0x116   :  { %v5519_v31 = vpop.f32.mrf.mxu0 }
 0x117   :  { %11379 = vst [vmem:[#allocation30_spill] sm:$0xff] %v5519_v31  ;;  %v5521_v32 = vpop.f32.mrf.mxu1 }
 0x119   :  { %542 = vmatmul.bf16.gmra.mxu0 %v4967_v30  ;;  %791 = vmatmul.bf16.gmra.mxu3 %v5512_v27 }
 0x11a   :  { %711 = vmatmul.bf16.gmra.mxu1 %v4967_v30  ;;  %v5584_v30 = vpop.f32.mrf.mxu3 }
 0x11b   :  { %11401 = vst [vmem:[#allocation52_spill] sm:$0xff] %v5584_v30 }
 0x11e   :  { %v5526_v34 = vpop.f32.mrf.mxu0 }
 0x11f   :  { %11380 = vst [vmem:[#allocation31_spill] sm:$0xff] %v5526_v34  ;;  %v5528_v35 = vpop.f32.mrf.mxu1 }
 0x126   :  { %v5530_v37 = vpop.f32.mrf.mxu0 }
 0x127   :  { %11381 = vst [vmem:[#allocation32_spill] sm:$0xff] %v5530_v37  ;;  %v5532_v38 = vpop.f32.mrf.mxu1 }
 0x129   :  { %547 = vmatmul.bf16.gmra.mxu0 %v4968_v36  ;;  %796 = vmatmul.bf16.gmra.mxu3 %v5523_v33 }
 0x12a   :  { %716 = vmatmul.bf16.gmra.mxu1 %v4968_v36 }
 0x12e   :  { %v5535_v39 = vpop.f32.mrf.mxu0 }
 0x12f   :  { %11382 = vst [vmem:[#allocation33_spill] sm:$0xff] %v5535_v39  ;;  %v5537_v40 = vpop.f32.mrf.mxu1 }
 0x136   :  { %v5541_v43 = vpop.f32.mrf.mxu0 }
 0x137   :  { %11384 = vst [vmem:[#allocation35_spill] sm:$0xff] %v5541_v43  ;;  %v5543_v44 = vpop.f32.mrf.mxu1 }
 0x139   :  { %552 = vmatmul.bf16.gmra.mxu0 %v4969_v42 }
 0x13a   :  { %721 = vmatmul.bf16.gmra.mxu1 %v4969_v42  ;;  %v5591_v42 = vpop.f32.mrf.mxu3 }
 0x13b   :  { %11404 = vst [vmem:[#allocation55_spill] sm:$0xff] %v5591_v42 }
 0x13e   :  { %v5548_v46 = vpop.f32.mrf.mxu0 }
 0x13f   :  { %11386 = vst [vmem:[#allocation37_spill] sm:$0xff] %v5548_v46  ;;  %v5550_v47 = vpop.f32.mrf.mxu1 }
 0x142   :  { %v5597_v61 = vpop.f32.mrf.mxu3 }
 0x143   :  { %11407 = vst [vmem:[#allocation58_spill] sm:$0xff] %v5597_v61 }
 0x146   :  { %v5554_v50 = vpop.f32.mrf.mxu0 }
 0x147   :  { %11388 = vst [vmem:[#allocation39_spill] sm:$0xff] %v5554_v50  ;;  %v5556_v51 = vpop.f32.mrf.mxu1 }
 0x149   :  { %557 = vmatmul.bf16.gmra.mxu0 %v4970_v49 }
 0x14a   :  { %726 = vmatmul.bf16.gmra.mxu1 %v4970_v49  ;;  %v4973_v49 = vld [vmem:[#allocation3 + $0xa0] sm:$0xff]  ;;  %v5604_v30 = vpop.f32.mrf.mxu3 }
 0x14b   :  { %11410 = vst [vmem:[#allocation61_spill] sm:$0xff] %v5604_v30 }
 0x14e   :  { %v5561_v53 = vpop.f32.mrf.mxu0 }
 0x14f   :  { %11390 = vst [vmem:[#allocation41_spill] sm:$0xff] %v5561_v53  ;;  %v5563_v54 = vpop.f32.mrf.mxu1 }
 0x150   :  { %11391 = vst [vmem:[#allocation42_spill] sm:$0xff] %v5563_v54 }
 0x152   :  { %v5610_v48 = vpop.f32.mrf.mxu3 }
 0x153   :  { %11413 = vst [vmem:[#allocation64_spill] sm:$0xff] %v5610_v48 }
 0x156   :  { %v5567_v57 = vpop.f32.mrf.mxu0 }
 0x157   :  { %11393 = vst [vmem:[#allocation44_spill] sm:$0xff] %v5567_v57  ;;  %v5569_v58 = vpop.f32.mrf.mxu1 }
 0x158   :  { %11394 = vst [vmem:[#allocation45_spill] sm:$0xff] %v5569_v58 }
 0x159   :  { %562 = vmatmul.bf16.gmra.mxu0 %v4971_v56 }
 0x15a   :  { %731 = vmatmul.bf16.gmra.mxu1 %v4971_v56  ;;  %v5617_v61 = vpop.f32.mrf.mxu3 }
 0x15b   :  { %11416 = vst [vmem:[#allocation67_spill] sm:$0xff] %v5617_v61 }
 0x15e   :  { %v5574_v0 = vpop.f32.mrf.mxu0 }
 0x15f   :  { %11396 = vst [vmem:[#allocation47_spill] sm:$0xff] %v5574_v0  ;;  %v5576_v3 = vpop.f32.mrf.mxu1 }
 0x160   :  { %11397 = vst [vmem:[#allocation48_spill] sm:$0xff] %v5576_v3 }
 0x166   :  { %v5580_v18 = vpop.f32.mrf.mxu0 }
 0x167   :  { %11399 = vst [vmem:[#allocation50_spill] sm:$0xff] %v5580_v18  ;;  %v5582_v24 = vpop.f32.mrf.mxu1 }
 0x168   :  { %11400 = vst [vmem:[#allocation51_spill] sm:$0xff] %v5582_v24 }
 0x169   :  { %567 = vmatmul.bf16.gmra.mxu0 %v4972_v12 }
 0x16a   :  { %736 = vmatmul.bf16.gmra.mxu1 %v4972_v12 }
 0x16e   :  { %v5587_v36 = vpop.f32.mrf.mxu0 }
 0x16f   :  { %11402 = vst [vmem:[#allocation53_spill] sm:$0xff] %v5587_v36  ;;  %v5589_v9 = vpop.f32.mrf.mxu1 }
 0x170   :  { %11403 = vst [vmem:[#allocation54_spill] sm:$0xff] %v5589_v9 }
 0x176   :  { %v5593_v56 = vpop.f32.mrf.mxu0 }
 0x177   :  { %11405 = vst [vmem:[#allocation56_spill] sm:$0xff] %v5593_v56  ;;  %v5595_v6 = vpop.f32.mrf.mxu1 }
 0x178   :  { %11406 = vst [vmem:[#allocation57_spill] sm:$0xff] %v5595_v6 }
 0x179   :  { %572 = vmatmul.bf16.gmra.mxu0 %v4973_v49 }
 0x17a   :  { %741 = vmatmul.bf16.gmra.mxu1 %v4973_v49 }
 0x17e   :  { %v5600_v12 = vpop.f32.mrf.mxu0 }
 0x17f   :  { %11408 = vst [vmem:[#allocation59_spill] sm:$0xff] %v5600_v12  ;;  %v5602_v15 = vpop.f32.mrf.mxu1 }
 0x180   :  { %11409 = vst [vmem:[#allocation60_spill] sm:$0xff] %v5602_v15  ;;  %v949_v15 = vmul.f32 %v5449_v5, %v5449_v5 }
 0x186   :  { %v5606_v52 = vpop.f32.mrf.mxu0 }
 0x187   :  { %11411 = vst [vmem:[#allocation62_spill] sm:$0xff] %v5606_v52  ;;  %v5608_v42 = vpop.f32.mrf.mxu1  ;;  %v5623_v52 = vpop.f32.mrf.mxu3 }
 0x188   :  { %11412 = vst [vmem:[#allocation63_spill] sm:$0xff] %v5608_v42 }
 0x189   :  { %577 = vmatmul.bf16.gmra.mxu0 %v4974_v55  ;;  %11419 = vst [vmem:[#allocation70_spill] sm:$0xff] %v5623_v52 }
 0x18a   :  { %746 = vmatmul.bf16.gmra.mxu1 %v4974_v55 }
 0x18e   :  { %v5613_v49 = vpop.f32.mrf.mxu0 }
 0x18f   :  { %11414 = vst [vmem:[#allocation65_spill] sm:$0xff] %v5613_v49  ;;  %v5615_v21 = vpop.f32.mrf.mxu1  ;;  %v5630_v48 = vpop.f32.mrf.mxu3 }
 0x190   :  { %11415 = vst [vmem:[#allocation66_spill] sm:$0xff] %v5615_v21  ;;  %v4976_v21 = vld [vmem:[#allocation3 + $0xb8] sm:$0xff] }
 0x191   :  { %11422 = vst [vmem:[#allocation73_spill] sm:$0xff] %v5630_v48 }
 0x196   :  { %v5619_v41 = vpop.f32.mrf.mxu0 }
 0x197   :  { %11417 = vst [vmem:[#allocation68_spill] sm:$0xff] %v5619_v41  ;;  %v5621_v30 = vpop.f32.mrf.mxu1 }
 0x198   :  { %11418 = vst [vmem:[#allocation69_spill] sm:$0xff] %v5621_v30  ;;  %v5636_v30 = vpop.f32.mrf.mxu3 }
 0x199   :  { %582 = vmatmul.bf16.gmra.mxu0 %v4975_v45  ;;  %11425 = vst [vmem:[#allocation76_spill] sm:$0xff] %v5636_v30 }
 0x19a   :  { %751 = vmatmul.bf16.gmra.mxu1 %v4975_v45 }
 0x19e   :  { %v5626_v55 = vpop.f32.mrf.mxu0 }
 0x19f   :  { %11420 = vst [vmem:[#allocation71_spill] sm:$0xff] %v5626_v55  ;;  %v5628_v27 = vpop.f32.mrf.mxu1 }
 0x1a0   :  { %11421 = vst [vmem:[#allocation72_spill] sm:$0xff] %v5628_v27  ;;  %v5646_v27 = vpop.f32.mrf.mxu3 }
 0x1a1   :  { %11430 = vst [vmem:[#allocation81_spill] sm:$0xff] %v5646_v27  ;;  %v945_v27 = vmul.f32 %v5422_v63, %v5422_v63 }
 0x1a6   :  { %v5632_v49 = vpop.f32.mrf.mxu0 }
 0x1a7   :  { %11423 = vst [vmem:[#allocation74_spill] sm:$0xff] %v5632_v49  ;;  %v5634_v61 = vpop.f32.mrf.mxu1 }
 0x1a8   :  { %11424 = vst [vmem:[#allocation75_spill] sm:$0xff] %v5634_v61  ;;  %v5652_v49 = vpop.f32.mrf.mxu3 }
 0x1a9   :  { %587 = vmatmul.bf16.gmra.mxu0 %v4976_v21  ;;  %11433 = vst [vmem:[#allocation84_spill] sm:$0xff] %v5652_v49  ;;  %v804_v49 = vadd.f32 %v5419_v62, %v5403_v59 }
 0x1aa   :  { %756 = vmatmul.bf16.gmra.mxu1 %v4976_v21 }
 0x1ae   :  { %v5638_v41 = vpop.f32.mrf.mxu0 }
 0x1af   :  { %11426 = vst [vmem:[#allocation77_spill] sm:$0xff] %v5638_v41  ;;  %v5640_v45 = vpop.f32.mrf.mxu1 }
 0x1b0   :  { %11427 = vst [vmem:[#allocation78_spill] sm:$0xff] %v5640_v45  ;;  %v5658_v30 = vpop.f32.mrf.mxu3 }
 0x1b1   :  { %11436 = vst [vmem:[#allocation87_spill] sm:$0xff] %v5658_v30  ;;  %v943_v30 = vmul.f32 %v5407_v60, %v5407_v60 }
 0x1b6   :  { %v5642_v33 = vpop.f32.mrf.mxu0 }
 0x1b7   :  { %11428 = vst [vmem:[#allocation79_spill] sm:$0xff] %v5642_v33  ;;  %v5644_v52 = vpop.f32.mrf.mxu1  ;;  %v948_v33 = vmul.f32 %v5446_v4, %v5446_v4 }
 0x1b8   :  { %11429 = vst [vmem:[#allocation80_spill] sm:$0xff] %v5644_v52  ;;  %v944_v52 = vmul.f32 %v5419_v62, %v5419_v62  ;;  %v5683_v42 = vpop.f32.mrf.mxu3  ;;  %v1139_v62 = vadd.f32 %v945_v27, %v943_v30  ;;  %v951_v30 = vmul.f32 %v5461_v8, %v5461_v8 }
 0x1b9   :  { %11439 = vst [vmem:[#allocation90_spill] sm:$0xff] %v5683_v42 }
 0x1be   :  { %v5648_v48 = vpop.f32.mrf.mxu0 }
 0x1bf   :  { %11431 = vst [vmem:[#allocation82_spill] sm:$0xff] %v5648_v48  ;;  %v5650_v55 = vpop.f32.mrf.mxu1  ;;  %v805_v48 = vadd.f32 %v804_v49, %v5431_v1 }
 0x1c0   :  { %11432 = vst [vmem:[#allocation83_spill] sm:$0xff] %v5650_v55  ;;  %v942_v55 = vmul.f32 %v5403_v59, %v5403_v59 }
 0x1c6   :  { %v5654_v61 = vpop.f32.mrf.mxu0 }
 0x1c7   :  { %11434 = vst [vmem:[#allocation85_spill] sm:$0xff] %v5654_v61  ;;  %v5656_v21 = vpop.f32.mrf.mxu1  ;;  %v1070_v61 = vadd.f32 %v944_v52, %v942_v55  ;;  %v950_v52 = vmul.f32 %v5458_v7, %v5458_v7 }
 0x1c8   :  { %11435 = vst [vmem:[#allocation86_spill] sm:$0xff] %v5656_v21  ;;  %v946_v21 = vmul.f32 %v5431_v1, %v5431_v1 }
 0x1ce   :  { %v5660_v41 = vpop.f32.mrf.mxu0 }
 0x1cf   :  { %11437 = vst [vmem:[#allocation88_spill] sm:$0xff] %v5660_v41  ;;  %v5662_v45 = vpop.f32.mrf.mxu1  ;;  %v947_v41 = vmul.f32 %v5434_v2, %v5434_v2 }
 0x1d0   :  { %11438 = vst [vmem:[#allocation89_spill] sm:$0xff] %v5662_v45  ;;  %v873_v45 = vadd.f32 %v5422_v63, %v5407_v60  ;;  %v1071_v63 = vadd.f32 %v1070_v61, %v946_v21  ;;  %v806_v60 = vadd.f32 %v805_v48, %v5446_v4  ;;  %v953_v21 = vmul.f32 %v5476_v11, %v5476_v11 }
 0x1d1   :  { %v1140_v55 = vadd.f32 %v1139_v62, %v947_v41 }
 0x1d2   :  { %v874_v59 = vadd.f32 %v873_v45, %v5434_v2  ;;  %v1072_v27 = vadd.f32 %v1071_v63, %v948_v33  ;;  %v807_v45 = vadd.f32 %v806_v60, %v5458_v7  ;;  %v952_v2 = vmul.f32 %v5473_v10, %v5473_v10 }
 0x1d3   :  { %v1141_v61 = vadd.f32 %v1140_v55, %v949_v15  ;;  %v955_v60 = vmul.f32 %v5488_v14, %v5488_v14 }
 0x1d4   :  { %v875_v1 = vadd.f32 %v874_v59, %v5449_v5  ;;  %v1073_v4 = vadd.f32 %v1072_v27, %v950_v52  ;;  %v808_v62 = vadd.f32 %v807_v45, %v5473_v10  ;;  %v954_v59 = vmul.f32 %v5485_v13, %v5485_v13 }
 0x1d5   :  { %v1142_v41 = vadd.f32 %v1141_v61, %v951_v30  ;;  %v957_v27 = vmul.f32 %v5495_v17, %v5495_v17 }
 0x1d6   :  { %v5688_v12 = vpop.f32.mrf.mxu0  ;;  %v876_v48 = vadd.f32 %v875_v1, %v5461_v8  ;;  %v1074_v33 = vadd.f32 %v1073_v4, %v952_v2  ;;  %v809_v15 = vadd.f32 %v808_v62, %v5485_v13  ;;  %v956_v1 = vmul.f32 %v5493_v16, %v5493_v16  ;;  %v5723_v4 = vpop.f32.mrf.mxu3 }
 0x1d7   :  { %11440 = vst [vmem:[#allocation91_spill] sm:$0xff] %v5688_v12  ;;  %v5693_v49 = vpop.f32.mrf.mxu1  ;;  %v1143_v55 = vadd.f32 %v1142_v41, %v953_v21  ;;  %v959_v41 = vmul.f32 %v5499_v20, %v5499_v20 }
 0x1d8   :  { %v877_v63 = vadd.f32 %v876_v48, %v5476_v11  ;;  %v1075_v30 = vadd.f32 %v1074_v33, %v954_v59  ;;  %v810_v61 = vadd.f32 %v809_v15, %v5493_v16  ;;  %v958_v48 = vmul.f32 %v5497_v19, %v5497_v19 }
 0x1d9   :  { %v1144_v62 = vadd.f32 %v1143_v55, %v955_v60  ;;  %v960_v59 = vmul.f32 %v5504_v22, %v5504_v22  ;;  %v961_v16 = vmul.f32 %v5506_v23, %v5506_v23  ;;  %v962_v55 = vmul.f32 %v5508_v25, %v5508_v25 }
 0x1da   :  { %v878_v52 = vadd.f32 %v877_v63, %v5488_v14  ;;  %v1076_v63 = vadd.f32 %v1075_v30, %v956_v1  ;;  %v811_v14 = vadd.f32 %v810_v61, %v5497_v19  ;;  %v963_v30 = vmul.f32 %v5510_v26, %v5510_v26 }
 0x1db   :  { %v1145_v33 = vadd.f32 %v1144_v62, %v957_v27  ;;  %v964_v62 = vmul.f32 %v5515_v28, %v5515_v28 }
 0x1dc   :  { %v879_v21 = vadd.f32 %v878_v52, %v5495_v17  ;;  %v1077_v13 = vadd.f32 %v1076_v63, %v958_v48  ;;  %v812_v60 = vadd.f32 %v811_v14, %v5504_v22  ;;  %v965_v14 = vmul.f32 %v5517_v29, %v5517_v29 }
 0x1dd   :  { %v1146_v52 = vadd.f32 %v1145_v33, %v959_v41 }
 0x1de   :  { %v5716_v45 = vpop.f32.mrf.mxu0  ;;  %v880_v15 = vadd.f32 %v879_v21, %v5499_v20  ;;  %v1078_v61 = vadd.f32 %v1077_v13, %v960_v59  ;;  %v813_v27 = vadd.f32 %v812_v60, %v5508_v25  ;;  %v968_v25 = vmul.f32 %v5526_v34, %v5526_v34 }
 0x1df   :  { %11441 = vst [vmem:[#allocation92_spill] sm:$0xff] %v5716_v45  ;;  %v5721_v2 = vpop.f32.mrf.mxu1  ;;  %v1147_v21 = vadd.f32 %v1146_v52, %v961_v16  ;;  %v967_v16 = vmul.f32 %v5521_v32, %v5521_v32 }
 0x1e0   :  { %v881_v1 = vadd.f32 %v880_v15, %v5506_v23  ;;  %v1079_v41 = vadd.f32 %v1078_v61, %v962_v55  ;;  %v814_v33 = vadd.f32 %v813_v27, %v5515_v28  ;;  %v966_v15 = vmul.f32 %v5519_v31, %v5519_v31  ;;  %v5759_v55 = vpop.f32.mrf.mxu3 }
 0x1e1   :  { %v1148_v59 = vadd.f32 %v1147_v21, %v963_v30  ;;  %v969_v28 = vmul.f32 %v5528_v35, %v5528_v35 }
 0x1e2   :  { %v882_v48 = vadd.f32 %v881_v1, %v5510_v26  ;;  %v1080_v52 = vadd.f32 %v1079_v41, %v964_v62  ;;  %v815_v1 = vadd.f32 %v814_v33, %v5519_v31  ;;  %v971_v33 = vmul.f32 %v5532_v38, %v5532_v38 }
 0x1e3   :  { %v1149_v61 = vadd.f32 %v1148_v59, %v965_v14  ;;  %v972_v59 = vmul.f32 %v5535_v39, %v5535_v39 }
 0x1e4   :  { %v883_v60 = vadd.f32 %v882_v48, %v5517_v29  ;;  %v1081_v30 = vadd.f32 %v1080_v52, %v966_v15  ;;  %v816_v21 = vadd.f32 %v815_v1, %v5526_v34  ;;  %v970_v48 = vmul.f32 %v5530_v37, %v5530_v37 }
 0x1e5   :  { %v1150_v62 = vadd.f32 %v1149_v61, %v967_v16  ;;  %v973_v52 = vmul.f32 %v5537_v40, %v5537_v40 }
 0x1e6   :  { %v5746_v63 = vpop.f32.mrf.mxu0  ;;  %v884_v27 = vadd.f32 %v883_v60, %v5521_v32  ;;  %v817_v31 = vadd.f32 %v816_v21, %v5530_v37  ;;  %v1082_v14 = vadd.f32 %v1081_v30, %v968_v25  ;;  %v975_v21 = vmul.f32 %v5543_v44, %v5543_v44 }
 0x1e7   :  { %11442 = vst [vmem:[#allocation93_spill] sm:$0xff] %v5746_v63  ;;  %v5751_v13 = vpop.f32.mrf.mxu1  ;;  %v1151_v15 = vadd.f32 %v1150_v62, %v969_v28 }
 0x1e8   :  { %v885_v41 = vadd.f32 %v884_v27, %v5528_v35  ;;  %v1083_v16 = vadd.f32 %v1082_v14, %v970_v48  ;;  %v818_v61 = vadd.f32 %v817_v31, %v5535_v39  ;;  %v974_v27 = vmul.f32 %v5541_v43, %v5541_v43 }
 0x1e9   :  { %v1152_v25 = vadd.f32 %v1151_v15, %v971_v33  ;;  %v977_v14 = vmul.f32 %v5550_v47, %v5550_v47  ;;  %v5795_v15 = vpop.f32.mrf.mxu3 }
 0x1ea   :  { %v886_v60 = vadd.f32 %v885_v41, %v5532_v38  ;;  %v819_v28 = vadd.f32 %v818_v61, %v5541_v43  ;;  %v1084_v62 = vadd.f32 %v1083_v16, %v972_v59  ;;  %v976_v41 = vmul.f32 %v5548_v46, %v5548_v46  ;;  %11444 = vst [vmem:[#allocation95_spill] sm:$0xff] %v5795_v15 }
 0x1eb   :  { %v1153_v31 = vadd.f32 %v1152_v25, %v973_v52  ;;  %v979_v16 = vmul.f32 %v5556_v51, %v5556_v51  ;;  %v980_v25 = vmul.f32 %v5561_v53, %v5561_v53 }
 0x1ec   :  { %v887_v30 = vadd.f32 %v886_v60, %v5537_v40  ;;  %v1085_v39 = vadd.f32 %v1084_v62, %v974_v27  ;;  %v820_v33 = vadd.f32 %v819_v28, %v5548_v46  ;;  %v978_v60 = vmul.f32 %v5554_v50, %v5554_v50 }
 0x1ed   :  { %v1154_v37 = vadd.f32 %v1153_v31, %v975_v21  ;;  %v981_v28 = vmul.f32 %v5563_v54, %v5563_v54  ;;  %v982_v31 = vmul.f32 %v5567_v57, %v5567_v57 }
 0x1ee   :  { %v5776_v1 = vpop.f32.mrf.mxu0  ;;  %v888_v48 = vadd.f32 %v887_v30, %v5543_v44  ;;  %v821_v61 = vadd.f32 %v820_v33, %v5554_v50  ;;  %v1086_v52 = vadd.f32 %v1085_v39, %v976_v41  ;;  %v983_v33 = vmul.f32 %v5569_v58, %v5569_v58 }
 0x1ef   :  { %11443 = vst [vmem:[#allocation94_spill] sm:$0xff] %v5776_v1  ;;  %v5781_v34 = vpop.f32.mrf.mxu1  ;;  %v1155_v30 = vadd.f32 %v1154_v37, %v977_v14 }
 0x1f0   :  { %v889_v59 = vadd.f32 %v888_v48, %v5550_v47  ;;  %v1087_v21 = vadd.f32 %v1086_v52, %v978_v60  ;;  %v822_v48 = vadd.f32 %v821_v61, %v5561_v53  ;;  %v985_v52 = vmul.f32 %v5576_v3, %v5576_v3 }
 0x1f1   :  { %v1156_v39 = vadd.f32 %v1155_v30, %v979_v16 }
 0x1f2   :  { %v890_v27 = vadd.f32 %v889_v59, %v5556_v51  ;;  %v823_v37 = vadd.f32 %v822_v48, %v5567_v57  ;;  %v1088_v14 = vadd.f32 %v1087_v21, %v980_v25  ;;  %v984_v59 = vmul.f32 %v5574_v0, %v5574_v0 }
 0x1f3   :  { %v1157_v61 = vadd.f32 %v1156_v39, %v981_v28  ;;  %v987_v25 = vmul.f32 %v5582_v24, %v5582_v24  ;;  %v988_v28 = vmul.f32 %v5587_v36, %v5587_v36  ;;  %v5831_v39 = vpop.f32.mrf.mxu3 }
 0x1f4   :  { %v891_v41 = vadd.f32 %v890_v27, %v5563_v54  ;;  %v1089_v53 = vadd.f32 %v1088_v14, %v982_v31  ;;  %v824_v16 = vadd.f32 %v823_v37, %v5574_v0  ;;  %v986_v27 = vmul.f32 %v5580_v18, %v5580_v18  ;;  %11446 = vst [vmem:[#allocation97_spill] sm:$0xff] %v5831_v39 }
 0x1f5   :  { %v1158_v30 = vadd.f32 %v1157_v61, %v983_v33  ;;  %v989_v37 = vmul.f32 %v5589_v9, %v5589_v9  ;;  %v990_v61 = vmul.f32 %v5593_v56, %v5593_v56 }
 0x1f6   :  { %v5806_v62 = vpop.f32.mrf.mxu0  ;;  %v892_v60 = vadd.f32 %v891_v41, %v5569_v58  ;;  %v825_v21 = vadd.f32 %v824_v16, %v5580_v18  ;;  %v1090_v48 = vadd.f32 %v1089_v53, %v984_v59  ;;  %v11448_v18 = vld [vmem:[#allocation59_spill] sm:$0xff] }
 0x1f7   :  { %11445 = vst [vmem:[#allocation96_spill] sm:$0xff] %v5806_v62  ;;  %v5811_v46 = vpop.f32.mrf.mxu1  ;;  %v1159_v41 = vadd.f32 %v1158_v30, %v985_v52  ;;  %v992_v0 = vmul.f32 %v11448_v18, %v11448_v18 }
 0x1f8   :  { %v893_v50 = vadd.f32 %v892_v60, %v5576_v3  ;;  %v1091_v14 = vadd.f32 %v1090_v48, %v986_v27  ;;  %v826_v60 = vadd.f32 %v825_v21, %v5587_v36  ;;  %v11449_v48 = vld [vmem:[#allocation60_spill] sm:$0xff] }
 0x1f9   :  { %v1160_v59 = vadd.f32 %v1159_v41, %v987_v25  ;;  %v993_v36 = vmul.f32 %v11449_v48, %v11449_v48  ;;  %v11450_v41 = vld [vmem:[#allocation62_spill] sm:$0xff] }
 0x1fa   :  { %v894_v31 = vadd.f32 %v893_v50, %v5582_v24  ;;  %v991_v50 = vmul.f32 %v5595_v6, %v5595_v6  ;;  %v827_v52 = vadd.f32 %v826_v60, %v5593_v56  ;;  %v1092_v30 = vadd.f32 %v1091_v14, %v988_v28  ;;  %v11451_v60 = vld [vmem:[#allocation63_spill] sm:$0xff] }
 0x1fb   :  { %v1161_v21 = vadd.f32 %v1160_v59, %v989_v37  ;;  %v995_v28 = vmul.f32 %v11451_v60, %v11451_v60 }
 0x1fc   :  { %v895_v16 = vadd.f32 %v894_v31, %v5589_v9  ;;  %v1093_v57 = vadd.f32 %v1092_v30, %v990_v61  ;;  %v828_v25 = vadd.f32 %v827_v52, %v11448_v18  ;;  %v994_v31 = vmul.f32 %v11450_v41, %v11450_v41  ;;  %v11453_v30 = vld [vmem:[#allocation66_spill] sm:$0xff] }
 0x1fd   :  { %v1162_v43 = vadd.f32 %v1161_v21, %v991_v50  ;;  %v997_v52 = vmul.f32 %v11453_v30, %v11453_v30  ;;  %v11455_v21 = vld [vmem:[#allocation68_spill] sm:$0xff] }
 0x1fe   :  { %v5836_v33 = vpop.f32.mrf.mxu0  ;;  %v896_v27 = vadd.f32 %v895_v16, %v5595_v6  ;;  %v1094_v14 = vadd.f32 %v1093_v57, %v992_v0  ;;  %v829_v56 = vadd.f32 %v828_v25, %v11450_v41  ;;  %v11452_v16 = vld [vmem:[#allocation65_spill] sm:$0xff]  ;;  %v5871_v0 = vpop.f32.mrf.mxu3  ;;  %v11458_v6 = vld [vmem:[#allocation71_spill] sm:$0xff] }
 0x1ff   :  { %11447 = vst [vmem:[#allocation98_spill] sm:$0xff] %v5836_v33  ;;  %v5841_v53 = vpop.f32.mrf.mxu1  ;;  %v996_v37 = vmul.f32 %v11452_v16, %v11452_v16  ;;  %v1163_v59 = vadd.f32 %v1162_v43, %v993_v36  ;;  %v11457_v36 = vld [vmem:[#allocation69_spill] sm:$0xff] }
 0x200   :  { %v897_v22 = vadd.f32 %v896_v27, %v11449_v48  ;;  %v1095_v50 = vadd.f32 %v1094_v14, %v994_v31  ;;  %v830_v27 = vadd.f32 %v829_v56, %v11452_v16  ;;  %v998_v48 = vmul.f32 %v11455_v21, %v11455_v21  ;;  %11456 = vst [vmem:[#allocation100_spill] sm:$0xff] %v5871_v0  ;;  %v11459_v16 = vld [vmem:[#allocation72_spill] sm:$0xff] }
 0x201   :  { %v1164_v25 = vadd.f32 %v1163_v59, %v995_v28  ;;  %v1000_v31 = vmul.f32 %v11458_v6, %v11458_v6  ;;  %v1001_v9 = vmul.f32 %v11459_v16, %v11459_v16  ;;  %v11460_v59 = vld [vmem:[#allocation74_spill] sm:$0xff] }
 0x202   :  { %v898_v61 = vadd.f32 %v897_v22, %v11451_v60  ;;  %v999_v22 = vmul.f32 %v11457_v36, %v11457_v36  ;;  %v1096_v41 = vadd.f32 %v1095_v50, %v996_v37  ;;  %v831_v60 = vadd.f32 %v830_v27, %v11455_v21  ;;  %v11461_v50 = vld [vmem:[#allocation75_spill] sm:$0xff] }
 0x203   :  { %v1165_v56 = vadd.f32 %v1164_v25, %v997_v52  ;;  %v1003_v27 = vmul.f32 %v11461_v50, %v11461_v50  ;;  %v11462_v25 = vld [vmem:[#allocation77_spill] sm:$0xff] }
 0x204   :  { %v899_v43 = vadd.f32 %v898_v61, %v11453_v30  ;;  %v1097_v24 = vadd.f32 %v1096_v41, %v998_v48  ;;  %v832_v28 = vadd.f32 %v831_v60, %v11458_v6  ;;  %v1002_v61 = vmul.f32 %v11460_v59, %v11460_v59  ;;  %v11463_v41 = vld [vmem:[#allocation78_spill] sm:$0xff] }
 0x205   :  { %v1166_v30 = vadd.f32 %v1165_v56, %v999_v22  ;;  %v1005_v60 = vmul.f32 %v11463_v41, %v11463_v41 }
 0x206   :  { %v5864_v18 = vpop.f32.mrf.mxu0  ;;  %v900_v14 = vadd.f32 %v899_v43, %v11457_v36  ;;  %v1098_v21 = vadd.f32 %v1097_v24, %v1000_v31  ;;  %v833_v52 = vadd.f32 %v832_v28, %v11460_v59  ;;  %v1004_v43 = vmul.f32 %v11462_v25, %v11462_v25  ;;  %v11466_v59 = vld [vmem:[#allocation80_spill] sm:$0xff] }
 0x207   :  { %11454 = vst [vmem:[#allocation99_spill] sm:$0xff] %v5864_v18  ;;  %v5869_v57 = vpop.f32.mrf.mxu1  ;;  %v1167_v36 = vadd.f32 %v1166_v30, %v1001_v9  ;;  %v1007_v9 = vmul.f32 %v11466_v59, %v11466_v59 }
 0x208   :  { %v901_v37 = vadd.f32 %v900_v14, %v11459_v16  ;;  %v1099_v22 = vadd.f32 %v1098_v21, %v1002_v61  ;;  %v834_v56 = vadd.f32 %v833_v52, %v11462_v25  ;;  %v11465_v14 = vld [vmem:[#allocation79_spill] sm:$0xff]  ;;  %v5907_v21 = vpop.f32.mrf.mxu3 }
 0x209   :  { %v1006_v16 = vmul.f32 %v11465_v14, %v11465_v14  ;;  %v1168_v31 = vadd.f32 %v1167_v36, %v1003_v27  ;;  %11468 = vst [vmem:[#allocation102_spill] sm:$0xff] %v5907_v21  ;;  %v11469_v25 = vld [vmem:[#allocation83_spill] sm:$0xff] }
 0x20a   :  { %v902_v48 = vadd.f32 %v901_v37, %v11461_v50  ;;  %v1100_v30 = vadd.f32 %v1099_v22, %v1004_v43  ;;  %v835_v37 = vadd.f32 %v834_v56, %v11465_v14  ;;  %v11467_v50 = vld [vmem:[#allocation82_spill] sm:$0xff]  ;;  %v1009_v58 = vmul.f32 %v11469_v25, %v11469_v25 }
 0x20b   :  { %v1008_v3 = vmul.f32 %v11467_v50, %v11467_v50  ;;  %v1169_v61 = vadd.f32 %v1168_v31, %v1005_v60  ;;  %v11471_v56 = vld [vmem:[#allocation86_spill] sm:$0xff]  ;;  %v11472_v31 = vld [vmem:[#allocation88_spill] sm:$0xff] }
 0x20c   :  { %v903_v28 = vadd.f32 %v902_v48, %v11463_v41  ;;  %v1101_v36 = vadd.f32 %v1100_v30, %v1006_v16  ;;  %v836_v27 = vadd.f32 %v835_v37, %v11467_v50  ;;  %v11470_v48 = vld [vmem:[#allocation85_spill] sm:$0xff]  ;;  %v1011_v14 = vmul.f32 %v11471_v56, %v11471_v56 }
 0x20d   :  { %v1010_v41 = vmul.f32 %v11470_v48, %v11470_v48  ;;  %v1170_v43 = vadd.f32 %v1169_v61, %v1007_v9  ;;  %v11473_v30 = vld [vmem:[#allocation89_spill] sm:$0xff] }
 0x20e   :  { %v5894_v6 = vpop.f32.mrf.mxu0  ;;  %v904_v52 = vadd.f32 %v903_v28, %v11466_v59  ;;  %v1102_v54 = vadd.f32 %v1101_v36, %v1008_v3  ;;  %v837_v60 = vadd.f32 %v836_v27, %v11470_v48  ;;  %v1012_v28 = vmul.f32 %v11472_v31, %v11472_v31 }
 0x20f   :  { %11464 = vst [vmem:[#allocation101_spill] sm:$0xff] %v5894_v6  ;;  %v5899_v24 = vpop.f32.mrf.mxu1  ;;  %v1171_v59 = vadd.f32 %v1170_v43, %v1009_v58  ;;  %v1013_v37 = vmul.f32 %v11473_v30, %v11473_v30  ;;  %v1015_v58 = vmul.f32 %v5693_v49, %v5693_v49  ;;  %v1016_v48 = vmul.f32 %v5716_v45, %v5716_v45 }
 0x210   :  { %v905_v22 = vadd.f32 %v904_v52, %v11469_v25  ;;  %v1103_v9 = vadd.f32 %v1102_v54, %v1010_v41  ;;  %v838_v61 = vadd.f32 %v837_v60, %v11472_v31  ;;  %v1014_v52 = vmul.f32 %v5688_v12, %v5688_v12 }
 0x211   :  { %v1172_v36 = vadd.f32 %v1171_v59, %v1011_v14  ;;  %v1017_v60 = vmul.f32 %v5721_v2, %v5721_v2  ;;  %v1018_v14 = vmul.f32 %v5746_v63, %v5746_v63 }
 0x212   :  { %v906_v16 = vadd.f32 %v905_v22, %v11471_v56  ;;  %v1104_v43 = vadd.f32 %v1103_v9, %v1012_v28  ;;  %v839_v22 = vadd.f32 %v838_v61, %v5688_v12  ;;  %v1019_v61 = vmul.f32 %v5751_v13, %v5751_v13 }
 0x213   :  { %v1173_v54 = vadd.f32 %v1172_v36, %v1013_v37 }
 0x214   :  { %v907_v27 = vadd.f32 %v906_v16, %v11473_v30  ;;  %v1105_v31 = vadd.f32 %v1104_v43, %v1014_v52  ;;  %v840_v59 = vadd.f32 %v839_v22, %v5716_v45  ;;  %v5943_v16 = vpop.f32.mrf.mxu3  ;;  %v1021_v22 = vmul.f32 %v5781_v34, %v5781_v34 }
 0x215   :  { %11475 = vst [vmem:[#allocation86_spill] sm:$0xff] %v5943_v16  ;;  %v1174_v28 = vadd.f32 %v1173_v54, %v1015_v58 }
 0x216   :  { %v5924_v50 = vpop.f32.mrf.mxu0  ;;  %v908_v41 = vadd.f32 %v907_v27, %v5693_v49  ;;  %v1106_v37 = vadd.f32 %v1105_v31, %v1016_v48  ;;  %v841_v36 = vadd.f32 %v840_v59, %v5746_v63  ;;  %v1020_v27 = vmul.f32 %v5776_v1, %v5776_v1 }
 0x217   :  { %11474 = vst [vmem:[#allocation83_spill] sm:$0xff] %v5924_v50  ;;  %v5929_v3 = vpop.f32.mrf.mxu1  ;;  %v1175_v52 = vadd.f32 %v1174_v28, %v1017_v60  ;;  %v1023_v60 = vmul.f32 %v5811_v46, %v5811_v46  ;;  %v1024_v63 = vmul.f32 %v5836_v33, %v5836_v33 }
 0x218   :  { %v909_v9 = vadd.f32 %v908_v41, %v5721_v2  ;;  %v1107_v58 = vadd.f32 %v1106_v37, %v1018_v14  ;;  %v842_v54 = vadd.f32 %v841_v36, %v5776_v1  ;;  %v1022_v41 = vmul.f32 %v5806_v62, %v5806_v62 }
 0x219   :  { %v1176_v31 = vadd.f32 %v1175_v52, %v1019_v61  ;;  %v1025_v36 = vmul.f32 %v5841_v53, %v5841_v53  ;;  %v1026_v52 = vmul.f32 %v5864_v18, %v5864_v18 }
 0x21a   :  { %v910_v43 = vadd.f32 %v909_v9, %v5751_v13  ;;  %v1108_v28 = vadd.f32 %v1107_v58, %v1020_v27  ;;  %v843_v9 = vadd.f32 %v842_v54, %v5806_v62  ;;  %v1027_v58 = vmul.f32 %v5869_v57, %v5869_v57 }
 0x21b   :  { %v1177_v14 = vadd.f32 %v1176_v31, %v1021_v22  ;;  %v1028_v31 = vmul.f32 %v5894_v6, %v5894_v6 }
 0x21c   :  { %v911_v59 = vadd.f32 %v910_v43, %v5781_v34  ;;  %v1109_v1 = vadd.f32 %v1108_v28, %v1022_v41  ;;  %v844_v61 = vadd.f32 %v843_v9, %v5836_v33  ;;  %v1029_v9 = vmul.f32 %v5899_v24, %v5899_v24 }
 0x21d   :  { %v1178_v43 = vadd.f32 %v1177_v14, %v1023_v60 }
 0x21e   :  { %v5954_v45 = vpop.f32.mrf.mxu0  ;;  %v912_v37 = vadd.f32 %v911_v59, %v5811_v46  ;;  %v1110_v54 = vadd.f32 %v1109_v1, %v1024_v63  ;;  %v845_v22 = vadd.f32 %v844_v61, %v5864_v18  ;;  %v5979_v59 = vpop.f32.mrf.mxu3  ;;  %v1030_v63 = vmul.f32 %v5924_v50, %v5924_v50 }
 0x21f   :  { %11476 = vst [vmem:[#allocation89_spill] sm:$0xff] %v5954_v45  ;;  %v5959_v48 = vpop.f32.mrf.mxu1  ;;  %v1179_v41 = vadd.f32 %v1178_v43, %v1025_v36  ;;  %v1031_v36 = vmul.f32 %v5929_v3, %v5929_v3  ;;  %v1032_v33 = vmul.f32 %v5954_v45, %v5954_v45 }
 0x220   :  { %v913_v27 = vadd.f32 %v912_v37, %v5841_v53  ;;  %11477 = vst [vmem:[#allocation103_spill] sm:$0xff] %v5979_v59  ;;  %v1111_v14 = vadd.f32 %v1110_v54, %v1026_v52  ;;  %v846_v37 = vadd.f32 %v845_v22, %v5894_v6  ;;  %v1033_v22 = vmul.f32 %v5959_v48, %v5959_v48 }
 0x221   :  { %v1180_v61 = vadd.f32 %v1179_v41, %v1027_v58 }
 0x222   :  { %v914_v28 = vadd.f32 %v913_v27, %v5869_v57  ;;  %v1112_v43 = vadd.f32 %v1111_v14, %v1028_v31  ;;  %v847_v27 = vadd.f32 %v846_v37, %v5924_v50 }
 0x223   :  { %v1181_v52 = vadd.f32 %v1180_v61, %v1029_v9 }
 0x224   :  { %v915_v18 = vadd.f32 %v914_v28, %v5899_v24  ;;  %v1113_v6 = vadd.f32 %v1112_v43, %v1030_v63  ;;  %v848_v58 = vadd.f32 %v847_v27, %v5954_v45  ;;  %v11485_v45 = vld [vmem:[#allocation84_spill] sm:$0xff] }
 0x225   :  { %v1182_v28 = vadd.f32 %v1181_v52, %v1031_v36  ;;  %v1041_v62 = vmul.f32 %v11485_v45, %v11485_v45 }
 0x226   :  { %v5984_v60 = vpop.f32.mrf.mxu0  ;;  %v916_v54 = vadd.f32 %v915_v18, %v5929_v3  ;;  %v1114_v37 = vadd.f32 %v1113_v6, %v1032_v33  ;;  %v6015_v52 = vpop.f32.mrf.mxu3 }
 0x227   :  { %11478 = vst [vmem:[#allocation104_spill] sm:$0xff] %v5984_v60  ;;  %v5989_v1 = vpop.f32.mrf.mxu1  ;;  %v1034_v41 = vmul.f32 %v5984_v60, %v5984_v60  ;;  %v849_v9 = vadd.f32 %v848_v58, %v5984_v60  ;;  %v1183_v61 = vadd.f32 %v1182_v28, %v1033_v22  ;;  %v11482_v22 = vld [vmem:[#allocation34_spill] sm:$0xff]  ;;  %v11484_v60 = vld [vmem:[#allocation36_spill] sm:$0xff] }
 0x228   :  { %v917_v31 = vadd.f32 %v916_v54, %v5959_v48  ;;  %v1035_v14 = vmul.f32 %v5989_v1, %v5989_v1  ;;  %11481 = vst [vmem:[#allocation107_spill] sm:$0xff] %v6015_v52  ;;  %v1038_v58 = vmul.f32 %v11482_v22, %v11482_v22 }
 0x229   :  { %v1115_v63 = vadd.f32 %v1114_v37, %v1034_v41 }
 0x22a   :  { %v918_v18 = vadd.f32 %v917_v31, %v5989_v1  ;;  %v1184_v54 = vadd.f32 %v1183_v61, %v1035_v14  ;;  %v11483_v31 = vld [vmem:[#allocation81_spill] sm:$0xff]  ;;  %v1040_v14 = vmul.f32 %v11484_v60, %v11484_v60 }
 0x22b   :  { %v1039_v37 = vmul.f32 %v11483_v31, %v11483_v31 }
 0x22e   :  { %v6008_v50 = vpop.f32.mrf.mxu0 }
 0x22f   :  { %11479 = vst [vmem:[#allocation105_spill] sm:$0xff] %v6008_v50  ;;  %v850_v43 = vadd.f32 %v849_v9, %v6008_v50  ;;  %v1036_v27 = vmul.f32 %v6008_v50, %v6008_v50  ;;  %v6013_v36 = vpop.f32.mrf.mxu1 }
 0x230   :  { %11480 = vst [vmem:[#allocation106_spill] sm:$0xff] %v6013_v36  ;;  %v919_v6 = vadd.f32 %v918_v18, %v6013_v36  ;;  %v1037_v33 = vmul.f32 %v6013_v36, %v6013_v36 }
 0x231   :  { %v851_v41 = vadd.f32 %v850_v43, %v11482_v22  ;;  %v1116_v28 = vadd.f32 %v1115_v63, %v1036_v27  ;;  %v11486_v43 = vld [vmem:[#allocation38_spill] sm:$0xff] }
 0x232   :  { %v920_v9 = vadd.f32 %v919_v6, %v11483_v31  ;;  %v1185_v50 = vadd.f32 %v1184_v54, %v1037_v33  ;;  %v1042_v63 = vmul.f32 %v11486_v43, %v11486_v43  ;;  %v11487_v6 = vld [vmem:[#allocation87_spill] sm:$0xff] }
 0x233   :  { %v852_v61 = vadd.f32 %v851_v41, %v11484_v60  ;;  %v1117_v18 = vadd.f32 %v1116_v28, %v1038_v58  ;;  %v1043_v54 = vmul.f32 %v11487_v6, %v11487_v6  ;;  %v11488_v41 = vld [vmem:[#allocation40_spill] sm:$0xff] }
 0x234   :  { %v921_v12 = vadd.f32 %v920_v9, %v11485_v45  ;;  %v1186_v36 = vadd.f32 %v1185_v50, %v1039_v37  ;;  %v1044_v58 = vmul.f32 %v11488_v41, %v11488_v41  ;;  %v1045_v50 = vmul.f32 %v5683_v42, %v5683_v42 }
 0x235   :  { %v853_v27 = vadd.f32 %v852_v61, %v11486_v43  ;;  %v1118_v22 = vadd.f32 %v1117_v18, %v1040_v14  ;;  %v11489_v61 = vld [vmem:[#allocation43_spill] sm:$0xff] }
 0x236   :  { %v922_v33 = vadd.f32 %v921_v12, %v11487_v6  ;;  %v1187_v31 = vadd.f32 %v1186_v36, %v1041_v62  ;;  %v1046_v14 = vmul.f32 %v11489_v61, %v11489_v61  ;;  %v6047_v12 = vpop.f32.mrf.mxu3  ;;  %v1047_v62 = vmul.f32 %v5723_v4, %v5723_v4 }
 0x237   :  { %v854_v28 = vadd.f32 %v853_v27, %v11488_v41  ;;  %v1119_v60 = vadd.f32 %v1118_v22, %v1042_v63  ;;  %11490 = vst [vmem:[#allocation84_spill] sm:$0xff] %v6047_v12  ;;  %v11491_v63 = vld [vmem:[#allocation46_spill] sm:$0xff] }
 0x238   :  { %v923_v37 = vadd.f32 %v922_v33, %v5683_v42  ;;  %v1188_v9 = vadd.f32 %v1187_v31, %v1043_v54  ;;  %v1048_v27 = vmul.f32 %v11491_v63, %v11491_v63  ;;  %v1049_v54 = vmul.f32 %v5759_v55, %v5759_v55 }
 0x239   :  { %v855_v18 = vadd.f32 %v854_v28, %v11489_v61  ;;  %v1120_v43 = vadd.f32 %v1119_v60, %v1044_v58  ;;  %v11492_v58 = vld [vmem:[#allocation49_spill] sm:$0xff] }
 0x23a   :  { %v924_v36 = vadd.f32 %v923_v37, %v5723_v4  ;;  %v1189_v22 = vadd.f32 %v1188_v9, %v1045_v50  ;;  %v1050_v61 = vmul.f32 %v11492_v58, %v11492_v58  ;;  %v1051_v50 = vmul.f32 %v5795_v15, %v5795_v15 }
 0x23b   :  { %v856_v33 = vadd.f32 %v855_v18, %v11491_v63  ;;  %v1121_v31 = vadd.f32 %v1120_v43, %v1046_v14  ;;  %v11493_v18 = vld [vmem:[#allocation52_spill] sm:$0xff] }
 0x23c   :  { %v925_v28 = vadd.f32 %v924_v36, %v5759_v55  ;;  %v1190_v60 = vadd.f32 %v1189_v22, %v1047_v62  ;;  %v1052_v43 = vmul.f32 %v11493_v18, %v11493_v18  ;;  %v1053_v62 = vmul.f32 %v5831_v39, %v5831_v39 }
 0x23d   :  { %v857_v41 = vadd.f32 %v856_v33, %v11492_v58  ;;  %v1122_v42 = vadd.f32 %v1121_v31, %v1048_v27  ;;  %v11494_v33 = vld [vmem:[#allocation55_spill] sm:$0xff] }
 0x23e   :  { %v1191_v37 = vadd.f32 %v1190_v60, %v1049_v54  ;;  %v926_v9 = vadd.f32 %v925_v28, %v5795_v15  ;;  %v1054_v27 = vmul.f32 %v11494_v33, %v11494_v33  ;;  %v1055_v28 = vmul.f32 %v5871_v0, %v5871_v0 }
 0x23f   :  { %v858_v14 = vadd.f32 %v857_v41, %v11493_v18  ;;  %v1123_v63 = vadd.f32 %v1122_v42, %v1050_v61  ;;  %v11495_v41 = vld [vmem:[#allocation58_spill] sm:$0xff] }
 0x240   :  { %v927_v36 = vadd.f32 %v926_v9, %v5831_v39  ;;  %v1192_v22 = vadd.f32 %v1191_v37, %v1051_v50  ;;  %v1056_v42 = vmul.f32 %v11495_v41, %v11495_v41  ;;  %v6079_v9 = vpop.f32.mrf.mxu3  ;;  %v1057_v50 = vmul.f32 %v5907_v21, %v5907_v21 }
 0x241   :  { %v859_v31 = vadd.f32 %v858_v14, %v11494_v33  ;;  %v1124_v54 = vadd.f32 %v1123_v63, %v1052_v43  ;;  %11496 = vst [vmem:[#allocation87_spill] sm:$0xff] %v6079_v9  ;;  %v11497_v43 = vld [vmem:[#allocation61_spill] sm:$0xff] }
 0x242   :  { %v928_v60 = vadd.f32 %v927_v36, %v5871_v0  ;;  %v1193_v58 = vadd.f32 %v1192_v22, %v1053_v62  ;;  %v1058_v14 = vmul.f32 %v11497_v43, %v11497_v43  ;;  %v1059_v22 = vmul.f32 %v5943_v16, %v5943_v16 }
 0x243   :  { %v860_v61 = vadd.f32 %v859_v31, %v11495_v41  ;;  %v1125_v18 = vadd.f32 %v1124_v54, %v1054_v27  ;;  %v11498_v54 = vld [vmem:[#allocation64_spill] sm:$0xff] }
 0x244   :  { %v929_v37 = vadd.f32 %v928_v60, %v5907_v21  ;;  %v1194_v63 = vadd.f32 %v1193_v58, %v1055_v28  ;;  %v1060_v41 = vmul.f32 %v11498_v54, %v11498_v54  ;;  %v1061_v58 = vmul.f32 %v5979_v59, %v5979_v59 }
 0x245   :  { %v861_v36 = vadd.f32 %v860_v61, %v11497_v43  ;;  %v1126_v62 = vadd.f32 %v1125_v18, %v1056_v42  ;;  %v11499_v61 = vld [vmem:[#allocation67_spill] sm:$0xff] }
 0x246   :  { %v930_v31 = vadd.f32 %v929_v37, %v5943_v16  ;;  %v1195_v27 = vadd.f32 %v1194_v63, %v1057_v50  ;;  %v1062_v18 = vmul.f32 %v11499_v61, %v11499_v61  ;;  %v1063_v37 = vmul.f32 %v6015_v52, %v6015_v52 }
 0x247   :  { %v862_v33 = vadd.f32 %v861_v36, %v11498_v54  ;;  %v1127_v0 = vadd.f32 %v1126_v62, %v1058_v14  ;;  %v11500_v36 = vld [vmem:[#allocation70_spill] sm:$0xff] }
 0x248   :  { %v931_v28 = vadd.f32 %v930_v31, %v5979_v59  ;;  %v1196_v60 = vadd.f32 %v1195_v27, %v1059_v22  ;;  %v1064_v14 = vmul.f32 %v11500_v36, %v11500_v36  ;;  %v1065_v27 = vmul.f32 %v6047_v12, %v6047_v12 }
 0x249   :  { %v863_v42 = vadd.f32 %v862_v33, %v11499_v61  ;;  %v1128_v43 = vadd.f32 %v1127_v0, %v1060_v41  ;;  %v11501_v33 = vld [vmem:[#allocation73_spill] sm:$0xff]  ;;  %v6111_v61 = vpop.f32.mrf.mxu3 }
 0x24a   :  { %v932_v50 = vadd.f32 %v931_v28, %v6015_v52  ;;  %v1197_v63 = vadd.f32 %v1196_v60, %v1061_v58  ;;  %v1066_v0 = vmul.f32 %v11501_v33, %v11501_v33 }
 0x24b   :  { %v864_v62 = vadd.f32 %v863_v42, %v11500_v36  ;;  %v1129_v54 = vadd.f32 %v1128_v43, %v1062_v18  ;;  %v1067_v43 = vmul.f32 %v6079_v9, %v6079_v9  ;;  %v11502_v18 = vld [vmem:[#allocation76_spill] sm:$0xff] }
 0x24c   :  { %v1198_v31 = vadd.f32 %v1197_v63, %v1063_v37  ;;  %v933_v22 = vadd.f32 %v932_v50, %v6047_v12  ;;  %v1068_v42 = vmul.f32 %v11502_v18, %v11502_v18 }
 0x24d   :  { %v865_v41 = vadd.f32 %v864_v62, %v11501_v33  ;;  %v1130_v28 = vadd.f32 %v1129_v54, %v1064_v14  ;;  %v1069_v54 = vmul.f32 %v6111_v61, %v6111_v61 }
 0x24e   :  { %v1199_v58 = vadd.f32 %v1198_v31, %v1065_v27  ;;  %v934_v60 = vadd.f32 %v933_v22, %v6079_v9 }
 0x24f   :  { %v1131_v50 = vadd.f32 %v1130_v28, %v1066_v0  ;;  %v866_v37 = vadd.f32 %v865_v41, %v11502_v18 }
 0x250   :  { %v1200_v63 = vadd.f32 %v1199_v58, %v1067_v43  ;;  %v935_v36 = vadd.f32 %v934_v60, %v6111_v61 }
 0x251   :  { %v1132_v14 = vadd.f32 %v1131_v50, %v1068_v42  ;;  %v867_v62 = vrot.slane %v866_v37, 4 }
 0x252   :  { %v936_v31 = vrot.slane %v935_v36, 4  ;;  %v1201_v27 = vadd.f32 %v1200_v63, %v1069_v54 }
 0x253   :  { %v868_v22 = vadd.f32 %v867_v62, %v866_v37  ;;  %v1133_v33 = vrot.slane %v1132_v14, 4 }
 0x254   :  { %v937_v12 = vadd.f32 %v936_v31, %v935_v36  ;;  %v1202_v9 = vrot.slane %v1201_v27, 4 }
 0x255   :  { %v869_v52 = vrot.slane %v868_v22, 2  ;;  %v1134_v59 = vadd.f32 %v1133_v33, %v1132_v14 }
 0x256   :  { %v938_v16 = vrot.slane %v937_v12, 2  ;;  %v1203_v0 = vadd.f32 %v1202_v9, %v1201_v27 }
 0x257   :  { %v870_v28 = vadd.f32 %v869_v52, %v868_v22  ;;  %v1135_v41 = vrot.slane %v1134_v59, 2 }
 0x258   :  { %v939_v58 = vadd.f32 %v938_v16, %v937_v12  ;;  %v1204_v43 = vrot.slane %v1203_v0, 2 }
 0x259   :  { %v871_v60 = vrot.slane %v870_v28, 1  ;;  %v1136_v18 = vadd.f32 %v1135_v41, %v1134_v59 }
 0x25a   :  { %v940_v21 = vrot.slane %v939_v58, 1  ;;  %v1205_v39 = vadd.f32 %v1204_v43, %v1203_v0 }
 0x25b   :  { %v872_v42 = vadd.f32 %v871_v60, %v870_v28  ;;  %v1137_v50 = vrot.slane %v1136_v18, 1 }
 0x25c   :  { %v941_v15 = vadd.f32 %v940_v21, %v939_v58  ;;  %v1206_v63 = vrot.slane %v1205_v39, 1 }
 0x25d   :  { %v1138_v37 = vadd.f32 %v1137_v50, %v1136_v18  ;;  %v1208_v54 = vmul.f32 0.001953125, %v872_v42  ;;  %v802_v50 = vld [vmem:[#allocation8] sm:$0x3] }
 0x25e   :  { %v1207_v36 = vadd.f32 %v1206_v63, %v1205_v39  ;;  %v1209_v62 = vmul.f32 0.001953125, %v941_v15 }
 0x25f   :  { %v1210_v31 = vmul.f32 0.001953125, %v1138_v37  ;;  %v1212_v33 = vmul.f32 %v1208_v54, %v1208_v54 }
 0x260   :  { %v1211_v14 = vmul.f32 0.001953125, %v1207_v36  ;;  %v1213_v9 = vmul.f32 %v1209_v62, %v1209_v62 }
 0x261   :  { %v1214_v52 = vsub.f32 %v1210_v31, %v1212_v33 }
 0x262   :  { %v1215_v27 = vsub.f32 %v1211_v14, %v1213_v9 }
 0x263   :  { %v1216_v16 = vadd.f32 1e-05, %v1214_v52  ;;  %v803_v52 = vld [vmem:[%s11040_s3] sm:$0x3] }
 0x264   :  { %v1217_v12 = vadd.f32 1e-05, %v1215_v27 }
 0x265   :  { %5053 = vrsqrt.f32 %v1216_v16  ;;  %vm1224_vm4 = vweird.f32 %v1216_v16 }
 0x266   :  { %5055 = vrsqrt.f32 %v1217_v12  ;;  %vm1234_vm2 = vweird.f32 %v1217_v12 }
 0x26b   :  { %v5054_v59 = vpop.eup %5053 }
 0x26c   :  { %v5056_v22 = vpop.eup %5055  ;;  %v1219_v0 = vmul.f32 %v5054_v59, %v1216_v16  ;;  %vm1225_vm1 = vweird.f32 %v5054_v59 }
 0x26d   :  { %v1229_v28 = vmul.f32 %v5056_v22, %v1217_v12  ;;  %vm1235_vm0 = vweird.f32 %v5056_v22  ;;  %vm1226_vm6 = vmor %vm1224_vm4, %vm1225_vm1 }
 0x26e   :  { %v1220_v21 = vmul.f32 %v5054_v59, %v1219_v0  ;;  %vm1236_vm3 = vmor %vm1234_vm2, %vm1235_vm0 }
 0x26f   :  { %v1230_v41 = vmul.f32 %v5056_v22, %v1229_v28 }
 0x270   :  { %v1221_v18 = vmul.f32 0.5, %v1220_v21  ;;  %v11504_v21 = vld [vmem:[#allocation17_spill] sm:$0xff] }
 0x271   :  { %v1231_v58 = vmul.f32 0.5, %v1230_v41  ;;  %v11505_v41 = vld [vmem:[#allocation18_spill] sm:$0xff] }
 0x272   :  { %v1222_v39 = vsub.f32 1.5, %v1221_v18 }
 0x273   :  { %v1232_v15 = vsub.f32 1.5, %v1231_v58  ;;  %v11506_v58 = vld [vmem:[#allocation19_spill] sm:$0xff] }
 0x274   :  { %v1223_v43 = vmul.f32 %v5054_v59, %v1222_v39  ;;  %v11507_v39 = vld [vmem:[#allocation20_spill] sm:$0xff] }
 0x275   :  { %v1233_v60 = vmul.f32 %v5056_v22, %v1232_v15 }
 0x276   :  { %v1227_v37 = vsel %vm1226_vm6, %v5054_v59, %v1223_v43 }
 0x277   :  { %v1237_v42 = vsel %vm1236_vm3, %v5056_v22, %v1233_v60  ;;  %v11509_v60 = vld [vmem:[#allocation22_spill] sm:$0xff] }
 0x278   :  { %v1240_v63 = vrot.slane %v1237_v42, 7 }
 0x27a   :  { %v1242_v36 = vsel %vm1241_vm5, %v1227_v37, %v1240_v63 }
 0x27b   :  { %v1244_v31 = vmul.f32 %v1242_v36, %v802_v50  ;;  %v11510_v50 = vld [vmem:[#allocation23_spill] sm:$0xff] }
 0x27d   :  { %v6122_v33 = vperm.slane %v1244_v31, 0  ;;  %v6124_v14 = vperm.slane %v1244_v31, 1 }
 0x27f   :  { %v1251_v9 = vmul.f32 %v6124_v14, %v1209_v62  ;;  %v1250_v27 = vmul.f32 %v6122_v33, %v1208_v54  ;;  %v1385_v59 = vmul.f32 %v6124_v14, %v6111_v61  ;;  %v6140_v62 = vmul.f32 %v6122_v33, %v11504_v21  ;;  %v11508_v61 = vld [vmem:[#allocation21_spill] sm:$0xff] }
 0x280   :  { %v1259_v18 = vmul.f32 %v6124_v14, %v11505_v41  ;;  %v6146_v54 = vmul.f32 %v6122_v33, %v11506_v58  ;;  %v1261_v15 = vmul.f32 %v6124_v14, %v11507_v39  ;;  %v6152_v43 = vmul.f32 %v6122_v33, %v11508_v61 }
 0x281   :  { %v1254_v16 = vrot.slane %v1251_v9, 7  ;;  %v1263_v42 = vmul.f32 %v6124_v14, %v11509_v60  ;;  %v6158_v63 = vmul.f32 %v6122_v33, %v11510_v50  ;;  %v1265_v37 = vmul.f32 %v6124_v14, %v5449_v5 }
 0x282   :  { %v6164_v36 = vmul.f32 %v6122_v33, %v5458_v7  ;;  %v1267_v31 = vmul.f32 %v6124_v14, %v5461_v8  ;;  %v6170_v9 = vmul.f32 %v6122_v33, %v5473_v10  ;;  %v1273_v8 = vmul.f32 %v6124_v14, %v5495_v17 }
 0x283   :  { %v1255_v12 = vsel %vm1241_vm5, %v1250_v27, %v1254_v16  ;;  %v11511_v27 = vld [vmem:[#allocation24_spill] sm:$0xff]  ;;  %v6188_v10 = vmul.f32 %v6122_v33, %v5497_v19  ;;  %v1277_v21 = vmul.f32 %v6124_v14, %v5506_v23  ;;  %v1279_v58 = vmul.f32 %v6124_v14, %v5510_v26 }
 0x284   :  { %v1257_v22 = vsub.f32 %v803_v52, %v1255_v12  ;;  %v1269_v52 = vmul.f32 %v6124_v14, %v5476_v11  ;;  %v6176_v16 = vmul.f32 %v6122_v33, %v11511_v27  ;;  %v11512_v12 = vld [vmem:[#allocation25_spill] sm:$0xff]  ;;  %v1275_v11 = vmul.f32 %v6124_v14, %v5499_v20 }
 0x285   :  { %v1271_v5 = vmul.f32 %v6124_v14, %v11512_v12  ;;  %v1281_v19 = vmul.f32 %v6124_v14, %v5517_v29  ;;  %v1283_v20 = vmul.f32 %v6124_v14, %v5521_v32  ;;  %v1285_v26 = vmul.f32 %v6124_v14, %v5528_v35  ;;  %v11528_v12 = vld [vmem:[#allocation48_spill] sm:$0xff] }
 0x286   :  { %v6133_v0 = vperm.slane %v1257_v22, 1  ;;  %v6194_v41 = vperm.slane %v1257_v22, 0  ;;  %v1287_v22 = vmul.f32 %v6124_v14, %v5532_v38  ;;  %v1289_v32 = vmul.f32 %v6124_v14, %v5537_v40 }
 0x287   :  { %v1293_v38 = vmul.f32 %v6124_v14, %v5550_v47 }
 0x288   :  { %v6136_v28 = vadd.f32 %v6133_v0, %v1385_v59  ;;  %v11513_v59 = vld [vmem:[#allocation26_spill] sm:$0xff]  ;;  %v6199_v39 = vadd.f32 %v6133_v0, %v1259_v18  ;;  %v6202_v17 = vadd.f32 %v6133_v0, %v1261_v15  ;;  %v6209_v61 = vadd.f32 %v6133_v0, %v1263_v42 }
 0x289   :  { %v6182_v7 = vmul.f32 %v6122_v33, %v11513_v59  ;;  %v6212_v23 = vadd.f32 %v6133_v0, %v1265_v37  ;;  %v6219_v18 = vadd.f32 %v6133_v0, %v1267_v31  ;;  %v6222_v29 = vadd.f32 %v6133_v0, %v1269_v52  ;;  %v11524_v37 = vld [vmem:[#allocation42_spill] sm:$0xff]  ;;  %v11525_v31 = vld [vmem:[#allocation45_spill] sm:$0xff] }
 0x28a   :  { %11503 = vst [vmem:[#allocation108_spill] sm:$0xff] %v6136_v28  ;;  %v1291_v15 = vmul.f32 %v6124_v14, %v5543_v44  ;;  %v6229_v60 = vadd.f32 %v6133_v0, %v1271_v5  ;;  %v6232_v35 = vadd.f32 %v6133_v0, %v1273_v8  ;;  %v1295_v42 = vmul.f32 %v6124_v14, %v5556_v51  ;;  %v11529_v5 = vld [vmem:[#allocation51_spill] sm:$0xff] }
 0x28b   :  { %11514 = vst [vmem:[#allocation17_spill] sm:$0xff] %v6199_v39  ;;  %v6239_v50 = vadd.f32 %v6133_v0, %v1275_v11  ;;  %v6242_v40 = vadd.f32 %v6133_v0, %v1277_v21  ;;  %v1297_v44 = vmul.f32 %v6124_v14, %v11524_v37  ;;  %v1299_v52 = vmul.f32 %v6124_v14, %v11525_v31  ;;  %v11532_v21 = vld [vmem:[#allocation54_spill] sm:$0xff]  ;;  %v11586_v28 = vld [vmem:[#allocation103_spill] sm:$0xff] }
 0x28c   :  { %11515 = vst [vmem:[#allocation18_spill] sm:$0xff] %v6202_v17  ;;  %v6249_v27 = vadd.f32 %v6133_v0, %v1279_v58  ;;  %v6252_v47 = vadd.f32 %v6133_v0, %v1281_v19  ;;  %v1301_v51 = vmul.f32 %v6124_v14, %v11528_v12  ;;  %v1303_v59 = vmul.f32 %v6124_v14, %v11529_v5  ;;  %v11533_v58 = vld [vmem:[#allocation57_spill] sm:$0xff] }
 0x28d   :  { %11516 = vst [vmem:[#allocation19_spill] sm:$0xff] %v6209_v61  ;;  %v6259_v8 = vadd.f32 %v6133_v0, %v1283_v20  ;;  %v6262_v11 = vadd.f32 %v6133_v0, %v1285_v26  ;;  %v1305_v37 = vmul.f32 %v6124_v14, %v11532_v21  ;;  %v1307_v31 = vmul.f32 %v6124_v14, %v11533_v58  ;;  %v11537_v20 = vld [vmem:[#allocation63_spill] sm:$0xff] }
 0x28e   :  { %11517 = vst [vmem:[#allocation20_spill] sm:$0xff] %v6212_v23  ;;  %v6269_v19 = vadd.f32 %v6133_v0, %v1287_v22  ;;  %v6272_v12 = vadd.f32 %v6133_v0, %v1289_v32  ;;  %v6279_v26 = vadd.f32 %v6133_v0, %v1291_v15  ;;  %v6282_v21 = vadd.f32 %v6133_v0, %v1293_v38  ;;  %v11541_v22 = vld [vmem:[#allocation69_spill] sm:$0xff]  ;;  %v11545_v15 = vld [vmem:[#allocation75_spill] sm:$0xff] }
 0x28f   :  { %11518 = vst [vmem:[#allocation21_spill] sm:$0xff] %v6219_v18  ;;  %v6289_v32 = vadd.f32 %v6133_v0, %v1295_v42  ;;  %v6299_v38 = vadd.f32 %v6133_v0, %v1299_v52  ;;  %v11549_v42 = vld [vmem:[#allocation80_spill] sm:$0xff]  ;;  %v1327_v52 = vmul.f32 %v6124_v14, %v11471_v56  ;;  %v1333_v56 = vmul.f32 %v6124_v14, %v5721_v2 }
 0x290   :  { %11519 = vst [vmem:[#allocation22_spill] sm:$0xff] %v6222_v29 }
 0x291   :  { %11520 = vst [vmem:[#allocation23_spill] sm:$0xff] %v6229_v60 }
 0x292   :  { %11521 = vst [vmem:[#allocation24_spill] sm:$0xff] %v6232_v35 }
 0x293   :  { %11522 = vst [vmem:[#allocation25_spill] sm:$0xff] %v6239_v50  ;;  %v11582_v50 = vld [vmem:[#allocation102_spill] sm:$0xff] }
 0x294   :  { %11523 = vst [vmem:[#allocation26_spill] sm:$0xff] %v6242_v40 }
 0x295   :  { %11526 = vst [vmem:[#allocation42_spill] sm:$0xff] %v6249_v27  ;;  %v11578_v27 = vld [vmem:[#allocation97_spill] sm:$0xff] }
 0x296   :  { %11527 = vst [vmem:[#allocation45_spill] sm:$0xff] %v6252_v47  ;;  %v11536_v47 = vld [vmem:[#allocation60_spill] sm:$0xff] }
 0x297   :  { %11530 = vst [vmem:[#allocation48_spill] sm:$0xff] %v6259_v8  ;;  %v1309_v5 = vmul.f32 %v6124_v14, %v11536_v47  ;;  %v1311_v8 = vmul.f32 %v6124_v14, %v11537_v20  ;;  %v6292_v47 = vadd.f32 %v6133_v0, %v1297_v44  ;;  %v6309_v44 = vadd.f32 %v6133_v0, %v1303_v59 }
 0x298   :  { %11531 = vst [vmem:[#allocation51_spill] sm:$0xff] %v6262_v11  ;;  %v11540_v11 = vld [vmem:[#allocation66_spill] sm:$0xff]  ;;  %v1331_v59 = vmul.f32 %v6124_v14, %v5693_v49  ;;  %v1337_v49 = vmul.f32 %v6124_v14, %v5781_v34 }
 0x299   :  { %11534 = vst [vmem:[#allocation54_spill] sm:$0xff] %v6269_v19  ;;  %v1313_v58 = vmul.f32 %v6124_v14, %v11540_v11  ;;  %v1315_v19 = vmul.f32 %v6124_v14, %v11541_v22  ;;  %v6302_v11 = vadd.f32 %v6133_v0, %v1301_v51  ;;  %v6319_v51 = vadd.f32 %v6133_v0, %v1307_v31 }
 0x29a   :  { %11535 = vst [vmem:[#allocation57_spill] sm:$0xff] %v6272_v12  ;;  %v11544_v12 = vld [vmem:[#allocation72_spill] sm:$0xff]  ;;  %v1335_v31 = vmul.f32 %v6124_v14, %v5751_v13  ;;  %v1341_v13 = vmul.f32 %v6124_v14, %v5841_v53 }
 0x29b   :  { %11538 = vst [vmem:[#allocation60_spill] sm:$0xff] %v6279_v26  ;;  %v1317_v20 = vmul.f32 %v6124_v14, %v11544_v12  ;;  %v1319_v26 = vmul.f32 %v6124_v14, %v11545_v15  ;;  %v6312_v12 = vadd.f32 %v6133_v0, %v1305_v37  ;;  %v1325_v15 = vmul.f32 %v6124_v14, %v11469_v25 }
 0x29c   :  { %11539 = vst [vmem:[#allocation63_spill] sm:$0xff] %v6282_v21  ;;  %v11548_v21 = vld [vmem:[#allocation78_spill] sm:$0xff]  ;;  %v6329_v37 = vadd.f32 %v6133_v0, %v1311_v8  ;;  %v6332_v25 = vadd.f32 %v6133_v0, %v1313_v58  ;;  %v1339_v8 = vmul.f32 %v6124_v14, %v5811_v46  ;;  %v1345_v46 = vmul.f32 %v6124_v14, %v5899_v24 }
 0x29d   :  { %11542 = vst [vmem:[#allocation66_spill] sm:$0xff] %v6289_v32  ;;  %v1321_v22 = vmul.f32 %v6124_v14, %v11548_v21  ;;  %v1323_v32 = vmul.f32 %v6124_v14, %v11549_v42  ;;  %v6322_v21 = vadd.f32 %v6133_v0, %v1309_v5  ;;  %v1329_v42 = vmul.f32 %v6124_v14, %v11473_v30 }
 0x29e   :  { %11543 = vst [vmem:[#allocation69_spill] sm:$0xff] %v6292_v47  ;;  %v6339_v5 = vadd.f32 %v6133_v0, %v1315_v19  ;;  %v6342_v30 = vadd.f32 %v6133_v0, %v1317_v20  ;;  %v6349_v58 = vadd.f32 %v6133_v0, %v1319_v26  ;;  %v1343_v19 = vmul.f32 %v6124_v14, %v5869_v57 }
 0x29f   :  { %11546 = vst [vmem:[#allocation72_spill] sm:$0xff] %v6299_v38  ;;  %v6352_v2 = vadd.f32 %v6133_v0, %v1321_v22  ;;  %v6359_v20 = vadd.f32 %v6133_v0, %v1323_v32  ;;  %v6362_v34 = vadd.f32 %v6133_v0, %v1325_v15  ;;  %v1347_v26 = vmul.f32 %v6124_v14, %v5929_v3  ;;  %v11572_v38 = vld [vmem:[#allocation90_spill] sm:$0xff] }
 0x2a0   :  { %11547 = vst [vmem:[#allocation75_spill] sm:$0xff] %v6302_v11  ;;  %v6369_v22 = vadd.f32 %v6133_v0, %v1327_v52  ;;  %v6372_v53 = vadd.f32 %v6133_v0, %v1329_v42  ;;  %v1349_v57 = vmul.f32 %v6124_v14, %v5959_v48  ;;  %v1351_v32 = vmul.f32 %v6124_v14, %v5989_v1  ;;  %v11567_v52 = vld [vmem:[#allocation81_spill] sm:$0xff] }
 0x2a1   :  { %11550 = vst [vmem:[#allocation78_spill] sm:$0xff] %v6309_v44  ;;  %v6379_v15 = vadd.f32 %v6133_v0, %v1331_v59  ;;  %v6382_v24 = vadd.f32 %v6133_v0, %v1333_v56  ;;  %v11566_v44 = vld [vmem:[#allocation106_spill] sm:$0xff]  ;;  %v1355_v11 = vmul.f32 %v6124_v14, %v11567_v52  ;;  %v6389_v42 = vadd.f32 %v6133_v0, %v1335_v31 }
 0x2a2   :  { %11551 = vst [vmem:[#allocation80_spill] sm:$0xff] %v6312_v12  ;;  %v1353_v3 = vmul.f32 %v6124_v14, %v11566_v44  ;;  %v6392_v48 = vadd.f32 %v6133_v0, %v1337_v49  ;;  %v1357_v1 = vmul.f32 %v6124_v14, %v11485_v45  ;;  %v1359_v59 = vmul.f32 %v6124_v14, %v11487_v6 }
 0x2a3   :  { %11552 = vst [vmem:[#allocation109_spill] sm:$0xff] %v6319_v51  ;;  %v6399_v56 = vadd.f32 %v6133_v0, %v1339_v8  ;;  %v6402_v44 = vadd.f32 %v6133_v0, %v1341_v13  ;;  %v1361_v52 = vmul.f32 %v6124_v14, %v11572_v38  ;;  %v1363_v31 = vmul.f32 %v6124_v14, %v5723_v4  ;;  %v11575_v8 = vld [vmem:[#allocation95_spill] sm:$0xff] }
 0x2a4   :  { %11553 = vst [vmem:[#allocation110_spill] sm:$0xff] %v6322_v21  ;;  %v6409_v49 = vadd.f32 %v6133_v0, %v1343_v19  ;;  %v6412_v45 = vadd.f32 %v6133_v0, %v1345_v46  ;;  %v1365_v6 = vmul.f32 %v6124_v14, %v5759_v55  ;;  %v1367_v47 = vmul.f32 %v6124_v14, %v11575_v8  ;;  %v11579_v19 = vld [vmem:[#allocation100_spill] sm:$0xff] }
 0x2a5   :  { %11554 = vst [vmem:[#allocation111_spill] sm:$0xff] %v6329_v37  ;;  %v6419_v13 = vadd.f32 %v6133_v0, %v1347_v26  ;;  %v6422_v38 = vadd.f32 %v6133_v0, %v1349_v57  ;;  %v1369_v4 = vmul.f32 %v6124_v14, %v11578_v27  ;;  %v1371_v40 = vmul.f32 %v6124_v14, %v11579_v19  ;;  %v11583_v26 = vld [vmem:[#allocation86_spill] sm:$0xff] }
 0x2a6   :  { %11555 = vst [vmem:[#allocation112_spill] sm:$0xff] %v6332_v25  ;;  %v6429_v46 = vadd.f32 %v6133_v0, %v1351_v32  ;;  %v6432_v55 = vadd.f32 %v6133_v0, %v1353_v3  ;;  %v1373_v8 = vmul.f32 %v6124_v14, %v11582_v50  ;;  %v1375_v35 = vmul.f32 %v6124_v14, %v11583_v26  ;;  %v11587_v32 = vld [vmem:[#allocation107_spill] sm:$0xff] }
 0x2a7   :  { %11556 = vst [vmem:[#allocation113_spill] sm:$0xff] %v6339_v5  ;;  %v6439_v57 = vadd.f32 %v6133_v0, %v1355_v11  ;;  %v6442_v27 = vadd.f32 %v6133_v0, %v1357_v1  ;;  %v1377_v19 = vmul.f32 %v6124_v14, %v11586_v28  ;;  %v6449_v3 = vadd.f32 %v6133_v0, %v1359_v59  ;;  %v11591_v11 = vld [vmem:[#allocation87_spill] sm:$0xff] }
 0x2a8   :  { %11557 = vst [vmem:[#allocation114_spill] sm:$0xff] %v6342_v30  ;;  %v6452_v50 = vadd.f32 %v6133_v0, %v1361_v52  ;;  %v6459_v1 = vadd.f32 %v6133_v0, %v1363_v31  ;;  %v6462_v28 = vadd.f32 %v6133_v0, %v1365_v6  ;;  %v1393_v59 = vadd.f32 %v6194_v41, %v6146_v54 }
 0x2a9   :  { %11558 = vst [vmem:[#allocation115_spill] sm:$0xff] %v6349_v58  ;;  %v6469_v52 = vadd.f32 %v6133_v0, %v1367_v47  ;;  %v1397_v31 = vadd.f32 %v6194_v41, %v6158_v63  ;;  %v6479_v6 = vadd.f32 %v6133_v0, %v1371_v40  ;;  %v6488_v47 = vadd.f32 %v6194_v41, %v6164_v36  ;;  %v11601_v63 = vld [vmem:[#allocation27_spill] sm:$0xff] }
 0x2aa   :  { %11559 = vst [vmem:[#allocation116_spill] sm:$0xff] %v6352_v2  ;;  %v1276_v40 = vmul.f32 %v6122_v33, %v11601_v63  ;;  %v6510_v36 = vadd.f32 %v6194_v41, %v6176_v16  ;;  %v6526_v16 = vadd.f32 %v6194_v41, %v6188_v10  ;;  %v11662_v58 = vld [vmem:[#allocation99_spill] sm:$0xff] }
 0x2ab   :  { %11560 = vst [vmem:[#allocation117_spill] sm:$0xff] %v6359_v20  ;;  %v11658_v20 = vld [vmem:[#allocation94_spill] sm:$0xff] }
 0x2ac   :  { %11561 = vst [vmem:[#allocation118_spill] sm:$0xff] %v6362_v34 }
 0x2ad   :  { %11562 = vst [vmem:[#allocation119_spill] sm:$0xff] %v6369_v22  ;;  %v11654_v22 = vld [vmem:[#allocation92_spill] sm:$0xff] }
 0x2ae   :  { %11563 = vst [vmem:[#allocation120_spill] sm:$0xff] %v6372_v53 }
 0x2af   :  { %11564 = vst [vmem:[#allocation121_spill] sm:$0xff] %v6379_v15  ;;  %v11650_v15 = vld [vmem:[#allocation88_spill] sm:$0xff] }
 0x2b0   :  { %11565 = vst [vmem:[#allocation122_spill] sm:$0xff] %v6382_v24 }
 0x2b1   :  { %11568 = vst [vmem:[#allocation106_spill] sm:$0xff] %v6389_v42  ;;  %v11646_v42 = vld [vmem:[#allocation82_spill] sm:$0xff] }
 0x2b2   :  { %11569 = vst [vmem:[#allocation81_spill] sm:$0xff] %v6392_v48 }
 0x2b3   :  { %11570 = vst [vmem:[#allocation123_spill] sm:$0xff] %v6399_v56 }
 0x2b4   :  { %11571 = vst [vmem:[#allocation124_spill] sm:$0xff] %v6402_v44 }
 0x2b5   :  { %11573 = vst [vmem:[#allocation90_spill] sm:$0xff] %v6409_v49 }
 0x2b6   :  { %11574 = vst [vmem:[#allocation125_spill] sm:$0xff] %v6412_v45 }
 0x2b7   :  { %11576 = vst [vmem:[#allocation95_spill] sm:$0xff] %v6419_v13 }
 0x2b8   :  { %11577 = vst [vmem:[#allocation126_spill] sm:$0xff] %v6422_v38  ;;  %v11590_v38 = vld [vmem:[#allocation84_spill] sm:$0xff] }
 0x2b9   :  { %11580 = vst [vmem:[#allocation97_spill] sm:$0xff] %v6429_v46  ;;  %v1379_v46 = vmul.f32 %v6124_v14, %v11587_v32  ;;  %v1381_v26 = vmul.f32 %v6124_v14, %v11590_v38  ;;  %v1391_v32 = vadd.f32 %v6194_v41, %v6140_v62  ;;  %v6472_v38 = vadd.f32 %v6133_v0, %v1369_v4 }
 0x2ba   :  { %11581 = vst [vmem:[#allocation100_spill] sm:$0xff] %v6432_v55  ;;  %v6482_v62 = vadd.f32 %v6133_v0, %v1373_v8  ;;  %v6491_v4 = vadd.f32 %v6133_v0, %v1375_v35  ;;  %v6500_v8 = vadd.f32 %v6194_v41, %v6170_v9  ;;  %v6520_v9 = vadd.f32 %v6194_v41, %v6182_v7  ;;  %v11609_v7 = vld [vmem:[#allocation32_spill] sm:$0xff] }
 0x2bb   :  { %11584 = vst [vmem:[#allocation102_spill] sm:$0xff] %v6439_v57  ;;  %v1383_v57 = vmul.f32 %v6124_v14, %v11591_v11  ;;  %v1395_v14 = vadd.f32 %v6194_v41, %v6152_v43  ;;  %v11598_v11 = vld [vmem:[#allocation76_spill] sm:$0xff]  ;;  %v6494_v43 = vadd.f32 %v6133_v0, %v1377_v19  ;;  %v1519_v63 = vmax.f32 %v1391_v32, 0.0 }
 0x2bc   :  { %11585 = vst [vmem:[#allocation86_spill] sm:$0xff] %v6442_v27  ;;  %v1384_v54 = vmul.f32 %v6122_v33, %v11598_v11  ;;  %v6506_v11 = vadd.f32 %v6133_v0, %v1381_v26  ;;  %v11605_v26 = vld [vmem:[#allocation28_spill] sm:$0xff] }
 0x2bd   :  { %11588 = vst [vmem:[#allocation103_spill] sm:$0xff] %v6449_v3  ;;  %v6513_v35 = vadd.f32 %v6133_v0, %v1383_v57  ;;  %v11606_v57 = vld [vmem:[#allocation29_spill] sm:$0xff] }
 0x2be   :  { %11589 = vst [vmem:[#allocation107_spill] sm:$0xff] %v6452_v50  ;;  %v6516_v19 = vadd.f32 %v6194_v41, %v1384_v54  ;;  %v1280_v32 = vmul.f32 %v6122_v33, %v11606_v57  ;;  %v6532_v54 = vadd.f32 %v6194_v41, %v1276_v40 }
 0x2bf   :  { %11592 = vst [vmem:[#allocation84_spill] sm:$0xff] %v6459_v1 }
 0x2c0   :  { %11593 = vst [vmem:[#allocation87_spill] sm:$0xff] %v6462_v28  ;;  %v6544_v57 = vadd.f32 %v6194_v41, %v1280_v32 }
 0x2c1   :  { %11594 = vst [vmem:[#allocation127_spill] sm:$0xff] %v6469_v52 }
 0x2c2   :  { %11595 = vst [vmem:[#allocation128_spill] sm:$0xff] %v6472_v38 }
 0x2c3   :  { %11596 = vst [vmem:[#allocation129_spill] sm:$0xff] %v6479_v6 }
 0x2c4   :  { %11597 = vst [vmem:[#allocation130_spill] sm:$0xff] %v6482_v62  ;;  %v6503_v62 = vadd.f32 %v6133_v0, %v1379_v46  ;;  %v1520_v46 = vmax.f32 %v1393_v59, 0.0  ;;  %v11180_v0 = vmax.f32 %v6488_v47, 0.0  ;;  %v11607_v59 = vld [vmem:[#allocation30_spill] sm:$0xff] }
 0x2c5   :  { %11599 = vst [vmem:[#allocation76_spill] sm:$0xff] %v6491_v4 }
 0x2c6   :  { %11600 = vst [vmem:[#allocation131_spill] sm:$0xff] %v6494_v43  ;;  %v1522_v43 = vmax.f32 %v1397_v31, 0.0 }
 0x2c7   :  { %11602 = vst [vmem:[#allocation27_spill] sm:$0xff] %v6503_v62  ;;  %v1521_v62 = vmax.f32 %v1395_v14, 0.0  ;;  %v1282_v14 = vmul.f32 %v6122_v33, %v11607_v59 }
 0x2c8   :  { %11603 = vst [vmem:[#allocation132_spill] sm:$0xff] %v6506_v11  ;;  %v1278_v11 = vmul.f32 %v6122_v33, %v11605_v26  ;;  %v11608_v26 = vld [vmem:[#allocation31_spill] sm:$0xff] }
 0x2c9   :  { %11604 = vst [vmem:[#allocation133_spill] sm:$0xff] %v6513_v35  ;;  %v6550_v59 = vadd.f32 %v6194_v41, %v1282_v14 }
 0x2ca   :  { %1728 = vst [vmem:[#allocation2 + $0x28] sm:$0xff] %v1519_v63  ;;  %v6538_v31 = vadd.f32 %v6194_v41, %v1278_v11  ;;  %v1284_v63 = vmul.f32 %v6122_v33, %v11608_v26 }
 0x2cb   :  { %1729 = vst [vmem:[#allocation2 + $0x30] sm:$0xff] %v1520_v46  ;;  %v1286_v46 = vmul.f32 %v6122_v33, %v11609_v7  ;;  %v11612_v7 = vld [vmem:[#allocation35_spill] sm:$0xff] }
 0x2cc   :  { %1730 = vst [vmem:[#allocation2 + $0x48] sm:$0xff] %v1521_v62  ;;  %v11610_v62 = vld [vmem:[#allocation33_spill] sm:$0xff]  ;;  %v6558_v32 = vadd.f32 %v6194_v41, %v1284_v63  ;;  %v1290_v14 = vmul.f32 %v6122_v33, %v11612_v7  ;;  %v11616_v7 = vld [vmem:[#allocation39_spill] sm:$0xff] }
 0x2cd   :  { %1731 = vst [vmem:[#allocation2 + $0x50] sm:$0xff] %v1522_v43  ;;  %v1288_v26 = vmul.f32 %v6122_v33, %v11610_v62  ;;  %v11611_v43 = vmax.f32 %v6500_v8, 0.0  ;;  %v6566_v10 = vadd.f32 %v6194_v41, %v1286_v46  ;;  %v11614_v62 = vld [vmem:[#allocation37_spill] sm:$0xff]  ;;  %v1294_v46 = vmul.f32 %v6122_v33, %v11616_v7  ;;  %v11620_v7 = vld [vmem:[#allocation44_spill] sm:$0xff] }
 0x2ce   :  { %1732 = vst [vmem:[#allocation2 + $0x68] sm:$0xff] %v11180_v0  ;;  %v11613_v0 = vmax.f32 %v6510_v36, 0.0  ;;  %v1292_v63 = vmul.f32 %v6122_v33, %v11614_v62  ;;  %v6582_v4 = vadd.f32 %v6194_v41, %v1290_v14  ;;  %v11618_v62 = vld [vmem:[#allocation41_spill] sm:$0xff]  ;;  %v1298_v14 = vmul.f32 %v6122_v33, %v11620_v7  ;;  %v11624_v7 = vld [vmem:[#allocation50_spill] sm:$0xff] }
 0x2cf   :  { %1733 = vst [vmem:[#allocation2 + $0x70] sm:$0xff] %v11611_v43  ;;  %v6574_v35 = vadd.f32 %v6194_v41, %v1288_v26  ;;  %v11615_v43 = vmax.f32 %v6520_v9, 0.0  ;;  %v1296_v26 = vmul.f32 %v6122_v33, %v11618_v62  ;;  %v6598_v38 = vadd.f32 %v6194_v41, %v1294_v46  ;;  %v11622_v62 = vld [vmem:[#allocation47_spill] sm:$0xff] }
 0x2d0   :  { %1734 = vst [vmem:[#allocation2 + $0x88] sm:$0xff] %v11613_v0  ;;  %v11617_v0 = vmax.f32 %v6526_v16, 0.0  ;;  %v6590_v6 = vadd.f32 %v6194_v41, %v1292_v63  ;;  %v1300_v63 = vmul.f32 %v6122_v33, %v11622_v62  ;;  %v1302_v46 = vmul.f32 %v6122_v33, %v11624_v7  ;;  %v11626_v62 = vld [vmem:[#allocation53_spill] sm:$0xff]  ;;  %v11628_v7 = vld [vmem:[#allocation56_spill] sm:$0xff] }
 0x2d1   :  { %1735 = vst [vmem:[#allocation2 + $0x90] sm:$0xff] %v11615_v43  ;;  %v11619_v43 = vmax.f32 %v6532_v54, 0.0  ;;  %v6606_v52 = vadd.f32 %v6194_v41, %v1296_v26  ;;  %v6614_v28 = vadd.f32 %v6194_v41, %v1298_v14  ;;  %v1304_v26 = vmul.f32 %v6122_v33, %v11626_v62  ;;  %v11630_v62 = vld [vmem:[#allocation59_spill] sm:$0xff] }
 0x2d2   :  { %1736 = vst [vmem:[#allocation2 + $0xa8] sm:$0xff] %v11617_v0  ;;  %v11621_v0 = vmax.f32 %v6538_v31, 0.0  ;;  %v6622_v1 = vadd.f32 %v6194_v41, %v1300_v63  ;;  %v1306_v14 = vmul.f32 %v6122_v33, %v11628_v7  ;;  %v6630_v50 = vadd.f32 %v6194_v41, %v1302_v46  ;;  %v11632_v7 = vld [vmem:[#allocation62_spill] sm:$0xff] }
 0x2d3   :  { %1737 = vst [vmem:[#allocation2 + $0xb0] sm:$0xff] %v11619_v43  ;;  %v11623_v43 = vmax.f32 %v6544_v57, 0.0  ;;  %v1308_v63 = vmul.f32 %v6122_v33, %v11630_v62  ;;  %v6638_v3 = vadd.f32 %v6194_v41, %v1304_v26  ;;  %v1310_v46 = vmul.f32 %v6122_v33, %v11632_v7  ;;  %v11634_v62 = vld [vmem:[#allocation65_spill] sm:$0xff]  ;;  %v11636_v7 = vld [vmem:[#allocation68_spill] sm:$0xff] }
 0x2d4   :  { %1738 = vst [vmem:[#allocation2 + $0xc8] sm:$0xff] %v11621_v0  ;;  %v11625_v0 = vmax.f32 %v6550_v59, 0.0  ;;  %v6646_v27 = vadd.f32 %v6194_v41, %v1306_v14  ;;  %v1312_v26 = vmul.f32 %v6122_v33, %v11634_v62  ;;  %v1314_v14 = vmul.f32 %v6122_v33, %v11636_v7  ;;  %v11638_v62 = vld [vmem:[#allocation71_spill] sm:$0xff]  ;;  %v11640_v7 = vld [vmem:[#allocation74_spill] sm:$0xff] }
 0x2d5   :  { %1739 = vst [vmem:[#allocation2 + $0xd0] sm:$0xff] %v11623_v43  ;;  %v11627_v43 = vmax.f32 %v6558_v32, 0.0  ;;  %v6654_v13 = vadd.f32 %v6194_v41, %v1308_v63  ;;  %v6662_v45 = vadd.f32 %v6194_v41, %v1310_v46  ;;  %v1316_v63 = vmul.f32 %v6122_v33, %v11638_v62  ;;  %v11642_v62 = vld [vmem:[#allocation77_spill] sm:$0xff] }
 0x2d6   :  { %1740 = vst [vmem:[#allocation2 + $0xe8] sm:$0xff] %v11625_v0  ;;  %v11629_v0 = vmax.f32 %v6566_v10, 0.0  ;;  %v6670_v49 = vadd.f32 %v6194_v41, %v1312_v26  ;;  %v1318_v46 = vmul.f32 %v6122_v33, %v11640_v7  ;;  %v6678_v44 = vadd.f32 %v6194_v41, %v1314_v14  ;;  %v11644_v7 = vld [vmem:[#allocation79_spill] sm:$0xff] }
 0x2d7   :  { %1741 = vst [vmem:[#allocation2 + $0xf0] sm:$0xff] %v11627_v43  ;;  %v11631_v43 = vmax.f32 %v6574_v35, 0.0  ;;  %v1320_v26 = vmul.f32 %v6122_v33, %v11642_v62  ;;  %v6686_v56 = vadd.f32 %v6194_v41, %v1316_v63  ;;  %v1322_v14 = vmul.f32 %v6122_v33, %v11644_v7 }
 0x2d8   :  { %1742 = vst [vmem:[#allocation2 + $0x108] sm:$0xff] %v11629_v0  ;;  %v11633_v0 = vmax.f32 %v6582_v4, 0.0  ;;  %v1451_v48 = vadd.f32 %v6194_v41, %v1318_v46  ;;  %v1324_v62 = vmul.f32 %v6122_v33, %v11646_v42  ;;  %v11647_v24 = vmax.f32 %v6638_v3, 0.0 }
 0x2d9   :  { %1743 = vst [vmem:[#allocation2 + $0x110] sm:$0xff] %v11631_v43  ;;  %v11635_v43 = vmax.f32 %v6590_v6, 0.0  ;;  %v1453_v63 = vadd.f32 %v6194_v41, %v1320_v26  ;;  %v6706_v46 = vadd.f32 %v6194_v41, %v1322_v14  ;;  %v1328_v42 = vmul.f32 %v6122_v33, %v11650_v15 }
 0x2da   :  { %1744 = vst [vmem:[#allocation2 + $0x128] sm:$0xff] %v11633_v0  ;;  %v11637_v0 = vmax.f32 %v6598_v38, 0.0  ;;  %v6714_v26 = vadd.f32 %v6194_v41, %v1324_v62  ;;  %v1549_v11 = vmax.f32 %v1451_v48, 0.0  ;;  %v1332_v15 = vmul.f32 %v6122_v33, %v11654_v22 }
 0x2db   :  { %1745 = vst [vmem:[#allocation2 + $0x130] sm:$0xff] %v11635_v43  ;;  %v11639_v43 = vmax.f32 %v6606_v52, 0.0  ;;  %v6729_v62 = vadd.f32 %v6194_v41, %v1328_v42  ;;  %v1550_v40 = vmax.f32 %v1453_v63, 0.0  ;;  %v11655_v34 = vmax.f32 %v6670_v49, 0.0 }
 0x2dc   :  { %1746 = vst [vmem:[#allocation2 + $0x148] sm:$0xff] %v11637_v0  ;;  %v11641_v0 = vmax.f32 %v6614_v28, 0.0  ;;  %v1336_v22 = vmul.f32 %v6122_v33, %v11658_v20  ;;  %v6744_v42 = vadd.f32 %v6194_v41, %v1332_v15  ;;  %v11663_v48 = vmax.f32 %v6706_v46, 0.0 }
 0x2dd   :  { %1747 = vst [vmem:[#allocation2 + $0x150] sm:$0xff] %v11639_v43  ;;  %v11643_v43 = vmax.f32 %v6622_v1, 0.0 }
 0x2de   :  { %1748 = vst [vmem:[#allocation2 + $0x168] sm:$0xff] %v11641_v0  ;;  %v11645_v0 = vmax.f32 %v6630_v50, 0.0  ;;  %v6758_v15 = vadd.f32 %v6194_v41, %v1336_v22 }
 0x2df   :  { %1749 = vst [vmem:[#allocation2 + $0x170] sm:$0xff] %v11643_v43  ;;  %v11648_v43 = vld [vmem:[#allocation85_spill] sm:$0xff] }
 0x2e0   :  { %1750 = vst [vmem:[#allocation2 + $0x188] sm:$0xff] %v11645_v0  ;;  %v1326_v7 = vmul.f32 %v6122_v33, %v11648_v43  ;;  %v11649_v0 = vmax.f32 %v6646_v27, 0.0  ;;  %v11652_v43 = vld [vmem:[#allocation91_spill] sm:$0xff] }
 0x2e1   :  { %1751 = vst [vmem:[#allocation2 + $0x190] sm:$0xff] %v11647_v24  ;;  %v11651_v24 = vmax.f32 %v6654_v13, 0.0  ;;  %v1330_v14 = vmul.f32 %v6122_v33, %v11652_v43 }
 0x2e2   :  { %1752 = vst [vmem:[#allocation2 + $0x1a8] sm:$0xff] %v11649_v0  ;;  %v6722_v53 = vadd.f32 %v6194_v41, %v1326_v7  ;;  %v11653_v0 = vmax.f32 %v6662_v45, 0.0 }
 0x2e3   :  { %1753 = vst [vmem:[#allocation2 + $0x1b0] sm:$0xff] %v11651_v24  ;;  %v11656_v24 = vld [vmem:[#allocation93_spill] sm:$0xff]  ;;  %v6736_v7 = vadd.f32 %v6194_v41, %v1330_v14 }
 0x2e4   :  { %1754 = vst [vmem:[#allocation2 + $0x1c8] sm:$0xff] %v11653_v0  ;;  %v1334_v43 = vmul.f32 %v6122_v33, %v11656_v24  ;;  %v11657_v0 = vmax.f32 %v6678_v44, 0.0  ;;  %v11660_v24 = vld [vmem:[#allocation96_spill] sm:$0xff] }
 0x2e5   :  { %1755 = vst [vmem:[#allocation2 + $0x1d0] sm:$0xff] %v11655_v34  ;;  %v11659_v34 = vmax.f32 %v6686_v56, 0.0  ;;  %v1338_v14 = vmul.f32 %v6122_v33, %v11660_v24 }
 0x2e6   :  { %1756 = vst [vmem:[#allocation2 + $0x1e8] sm:$0xff] %v11657_v0  ;;  %v6752_v2 = vadd.f32 %v6194_v41, %v1334_v43  ;;  %v11661_v0 = vld [vmem:[#allocation98_spill] sm:$0xff] }
 0x2e7   :  { %1757 = vst [vmem:[#allocation2 + $0x1f0] sm:$0xff] %v11659_v34  ;;  %v1340_v20 = vmul.f32 %v6122_v33, %v11661_v0  ;;  %v1342_v34 = vmul.f32 %v6122_v33, %v11662_v58  ;;  %v6764_v24 = vadd.f32 %v6194_v41, %v1338_v14  ;;  %v11666_v58 = vld [vmem:[#allocation83_spill] sm:$0xff] }
 0x2e8   :  { %1758 = vst [vmem:[#allocation2 + $0x208] sm:$0xff] %v1549_v11  ;;  %v11664_v11 = vld [vmem:[#allocation101_spill] sm:$0xff]  ;;  %v1346_v14 = vmul.f32 %v6122_v33, %v11666_v58  ;;  %v11671_v58 = vld [vmem:[#allocation104_spill] sm:$0xff] }
 0x2e9   :  { %1759 = vst [vmem:[#allocation2 + $0x210] sm:$0xff] %v1550_v40  ;;  %v1344_v0 = vmul.f32 %v6122_v33, %v11664_v11  ;;  %v6772_v22 = vadd.f32 %v6194_v41, %v1340_v20  ;;  %v11665_v40 = vmax.f32 %v6714_v26, 0.0  ;;  %v6780_v30 = vadd.f32 %v6194_v41, %v1342_v34  ;;  %v11668_v11 = vld [vmem:[#allocation89_spill] sm:$0xff] }
 0x2ea   :  { %1760 = vst [vmem:[#allocation2 + $0x268] sm:$0xff] %v11663_v48  ;;  %v11667_v48 = vmax.f32 %v6722_v53, 0.0  ;;  %v1348_v20 = vmul.f32 %v6122_v33, %v11668_v11  ;;  %v1350_v34 = vmul.f32 %v6122_v33, %v11671_v58  ;;  %v6796_v25 = vadd.f32 %v6194_v41, %v1346_v14  ;;  %v11674_v11 = vld [vmem:[#allocation105_spill] sm:$0xff]  ;;  %v11677_v58 = vld [vmem:[#allocation34_spill] sm:$0xff] }
 0x2eb   :  { %1761 = vst [vmem:[#allocation2 + $0x270] sm:$0xff] %v11665_v40  ;;  %v6788_v5 = vadd.f32 %v6194_v41, %v1344_v0  ;;  %v11670_v40 = vmax.f32 %v6729_v62, 0.0  ;;  %v1352_v0 = vmul.f32 %v6122_v33, %v11674_v11  ;;  %v1354_v14 = vmul.f32 %v6122_v33, %v11677_v58  ;;  %v11680_v11 = vld [vmem:[#allocation36_spill] sm:$0xff]  ;;  %v11683_v58 = vld [vmem:[#allocation38_spill] sm:$0xff] }
 0x2ec   :  { %1762 = vst [vmem:[#allocation2 + $0x288] sm:$0xff] %v11667_v48  ;;  %v11673_v48 = vmax.f32 %v6736_v7, 0.0  ;;  %v6804_v37 = vadd.f32 %v6194_v41, %v1348_v20  ;;  %v6812_v21 = vadd.f32 %v6194_v41, %v1350_v34  ;;  %v1356_v20 = vmul.f32 %v6122_v33, %v11680_v11  ;;  %v11686_v11 = vld [vmem:[#allocation40_spill] sm:$0xff] }
 0x2ed   :  { %11669 = vst [vmem:[#allocation28_spill] sm:$0xff] %v6788_v5  ;;  %v6820_v51 = vadd.f32 %v6194_v41, %v1352_v0  ;;  %v1358_v34 = vmul.f32 %v6122_v33, %v11683_v58  ;;  %v6828_v12 = vadd.f32 %v6194_v41, %v1354_v14  ;;  %v1360_v0 = vmul.f32 %v6122_v33, %v11686_v11  ;;  %v11689_v58 = vld [vmem:[#allocation43_spill] sm:$0xff]  ;;  %v11692_v11 = vld [vmem:[#allocation46_spill] sm:$0xff] }
 0x2ee   :  { %1763 = vst [vmem:[#allocation2 + $0x290] sm:$0xff] %v11670_v40  ;;  %v11676_v40 = vmax.f32 %v6744_v42, 0.0  ;;  %v6836_v60 = vadd.f32 %v6194_v41, %v1356_v20  ;;  %v1362_v14 = vmul.f32 %v6122_v33, %v11689_v58  ;;  %v1364_v20 = vmul.f32 %v6122_v33, %v11692_v11  ;;  %v11695_v58 = vld [vmem:[#allocation49_spill] sm:$0xff]  ;;  %v11698_v11 = vld [vmem:[#allocation52_spill] sm:$0xff] }
 0x2ef   :  { %11672 = vst [vmem:[#allocation29_spill] sm:$0xff] %v6796_v25  ;;  %v6844_v29 = vadd.f32 %v6194_v41, %v1358_v34  ;;  %v6852_v18 = vadd.f32 %v6194_v41, %v1360_v0  ;;  %v1366_v34 = vmul.f32 %v6122_v33, %v11695_v58  ;;  %v1368_v0 = vmul.f32 %v6122_v33, %v11698_v11  ;;  %v11701_v58 = vld [vmem:[#allocation55_spill] sm:$0xff]  ;;  %v11704_v11 = vld [vmem:[#allocation58_spill] sm:$0xff] }
 0x2f0   :  { %1764 = vst [vmem:[#allocation2 + $0x2a8] sm:$0xff] %v11673_v48  ;;  %v11679_v48 = vmax.f32 %v6752_v2, 0.0  ;;  %v6860_v23 = vadd.f32 %v6194_v41, %v1362_v14  ;;  %v6868_v61 = vadd.f32 %v6194_v41, %v1364_v20  ;;  %v1370_v14 = vmul.f32 %v6122_v33, %v11701_v58  ;;  %v11707_v58 = vld [vmem:[#allocation61_spill] sm:$0xff] }
 0x2f1   :  { %11675 = vst [vmem:[#allocation30_spill] sm:$0xff] %v6804_v37  ;;  %v6876_v17 = vadd.f32 %v6194_v41, %v1366_v34  ;;  %v1372_v20 = vmul.f32 %v6122_v33, %v11704_v11  ;;  %v6884_v39 = vadd.f32 %v6194_v41, %v1368_v0  ;;  %v1374_v34 = vmul.f32 %v6122_v33, %v11707_v58  ;;  %v11710_v11 = vld [vmem:[#allocation64_spill] sm:$0xff]  ;;  %v11713_v58 = vld [vmem:[#allocation67_spill] sm:$0xff] }
 0x2f2   :  { %1765 = vst [vmem:[#allocation2 + $0x2b0] sm:$0xff] %v11676_v40  ;;  %v11682_v40 = vmax.f32 %v6758_v15, 0.0  ;;  %v6892_v55 = vadd.f32 %v6194_v41, %v1370_v14  ;;  %v1376_v0 = vmul.f32 %v6122_v33, %v11710_v11  ;;  %v1378_v14 = vmul.f32 %v6122_v33, %v11713_v58  ;;  %v11716_v11 = vld [vmem:[#allocation70_spill] sm:$0xff]  ;;  %v11719_v58 = vld [vmem:[#allocation73_spill] sm:$0xff] }
 0x2f3   :  { %11678 = vst [vmem:[#allocation31_spill] sm:$0xff] %v6812_v21  ;;  %v11723_v63 = vmax.f32 %v6868_v61, 0.0  ;;  %v11725_v43 = vmax.f32 %v6884_v39, 0.0 }
 0x2f4   :  { %1766 = vst [vmem:[#allocation2 + $0x2c8] sm:$0xff] %v11679_v48  ;;  %v11685_v48 = vmax.f32 %v6764_v24, 0.0 }
 0x2f5   :  { %11681 = vst [vmem:[#allocation32_spill] sm:$0xff] %v6820_v51 }
 0x2f6   :  { %1767 = vst [vmem:[#allocation2 + $0x2d0] sm:$0xff] %v11682_v40  ;;  %v11688_v40 = vmax.f32 %v6772_v22, 0.0 }
 0x2f7   :  { %11684 = vst [vmem:[#allocation33_spill] sm:$0xff] %v6828_v12 }
 0x2f8   :  { %1768 = vst [vmem:[#allocation2 + $0x2e8] sm:$0xff] %v11685_v48  ;;  %v11691_v48 = vmax.f32 %v6780_v30, 0.0 }
 0x2f9   :  { %11687 = vst [vmem:[#allocation35_spill] sm:$0xff] %v6836_v60 }
 0x2fa   :  { %1769 = vst [vmem:[#allocation2 + $0x2f0] sm:$0xff] %v11688_v40  ;;  %v11694_v40 = vmax.f32 %v6788_v5, 0.0 }
 0x2fb   :  { %11690 = vst [vmem:[#allocation37_spill] sm:$0xff] %v6844_v29 }
 0x2fc   :  { %1770 = vst [vmem:[#allocation2 + $0x308] sm:$0xff] %v11691_v48  ;;  %v11697_v48 = vmax.f32 %v6796_v25, 0.0 }
 0x2fd   :  { %11693 = vst [vmem:[#allocation39_spill] sm:$0xff] %v6852_v18 }
 0x2fe   :  { %1771 = vst [vmem:[#allocation2 + $0x310] sm:$0xff] %v11694_v40  ;;  %v11700_v40 = vmax.f32 %v6804_v37, 0.0 }
 0x2ff   :  { %11696 = vst [vmem:[#allocation41_spill] sm:$0xff] %v6860_v23 }
 0x300   :  { %1772 = vst [vmem:[#allocation2 + $0x328] sm:$0xff] %v11697_v48  ;;  %v11703_v48 = vmax.f32 %v6812_v21, 0.0  ;;  %v6900_v21 = vadd.f32 %v6194_v41, %v1372_v20  ;;  %v1380_v20 = vmul.f32 %v6122_v33, %v11716_v11 }
 0x301   :  { %11699 = vst [vmem:[#allocation44_spill] sm:$0xff] %v6868_v61 }
 0x302   :  { %1773 = vst [vmem:[#allocation2 + $0x330] sm:$0xff] %v11700_v40  ;;  %v11706_v40 = vmax.f32 %v6820_v51, 0.0  ;;  %v6908_v51 = vadd.f32 %v6194_v41, %v1374_v34  ;;  %v1382_v34 = vmul.f32 %v6122_v33, %v11719_v58  ;;  %v6930_v11 = vadd.f32 %v6194_v41, %v1380_v20 }
 0x303   :  { %11702 = vst [vmem:[#allocation47_spill] sm:$0xff] %v6876_v17 }
 0x304   :  { %1774 = vst [vmem:[#allocation2 + $0x348] sm:$0xff] %v11703_v48  ;;  %v11709_v48 = vmax.f32 %v6828_v12, 0.0  ;;  %v6916_v12 = vadd.f32 %v6194_v41, %v1376_v0  ;;  %v11185_v33 = vmax.f32 %v6908_v51, 0.0  ;;  %v11190_v0 = vmax.f32 %v6930_v11, 0.0 }
 0x305   :  { %11705 = vst [vmem:[#allocation50_spill] sm:$0xff] %v6884_v39  ;;  %v3312_v39 = vld [vmem:[#allocation2 + $0x231] sm:$0xff] }
 0x306   :  { %1775 = vst [vmem:[#allocation2 + $0x350] sm:$0xff] %v11706_v40  ;;  %v11712_v40 = vmax.f32 %v6836_v60, 0.0  ;;  %v6924_v60 = vadd.f32 %v6194_v41, %v1378_v14  ;;  %v11724_v14 = vmax.f32 %v6876_v17, 0.0  ;;  %v11186_v58 = vmax.f32 %v6916_v12, 0.0 }
 0x307   :  { %11708 = vst [vmem:[#allocation53_spill] sm:$0xff] %v6892_v55 }
 0x308   :  { %1776 = vst [vmem:[#allocation2 + $0x368] sm:$0xff] %v11709_v48  ;;  %v11715_v48 = vmax.f32 %v6844_v29, 0.0  ;;  %v11188_v20 = vmax.f32 %v6924_v60, 0.0 }
 0x309   :  { %11711 = vst [vmem:[#allocation56_spill] sm:$0xff] %v6900_v21 }
 0x30a   :  { %1777 = vst [vmem:[#allocation2 + $0x370] sm:$0xff] %v11712_v40  ;;  %v11718_v40 = vmax.f32 %v6852_v18, 0.0  ;;  %v2956_v18 = vld [vmem:[#allocation2 + $0x46f] sm:$0xff] }
 0x30b   :  { %11714 = vst [vmem:[#allocation59_spill] sm:$0xff] %v6908_v51 }
 0x30c   :  { %1778 = vst [vmem:[#allocation2 + $0x388] sm:$0xff] %v11715_v48  ;;  %v11721_v48 = vmax.f32 %v6860_v23, 0.0  ;;  %v2955_v23 = vld [vmem:[#allocation2 + $0x467] sm:$0xff] }
 0x30d   :  { %11717 = vst [vmem:[#allocation62_spill] sm:$0xff] %v6916_v12 }
 0x30e   :  { %1779 = vst [vmem:[#allocation2 + $0x390] sm:$0xff] %v11718_v40  ;;  %v1515_v40 = vadd.f32 %v6194_v41, %v1382_v34  ;;  %v1582_v34 = vmax.f32 %v6516_v19, 0.0 }
 0x30f   :  { %11720 = vst [vmem:[#allocation65_spill] sm:$0xff] %v6924_v60  ;;  %v2148_v60 = vld [vmem:[#allocation2 + $0x249] sm:$0xff] }
 0x310   :  { %1780 = vst [vmem:[#allocation2 + $0x3a8] sm:$0xff] %v11721_v48  ;;  %v11726_v48 = vmax.f32 %v6892_v55, 0.0  ;;  %v1581_v41 = vmax.f32 %v1515_v40, 0.0  ;;  %v6959_v40 = vld [vmem:[#allocation9 + $0x1] ss:$0 sm:$0xff]  ;;  %v3311_v55 = vld [vmem:[#allocation2 + $0x229] sm:$0xff] }
 0x311   :  { %11722 = vst [vmem:[#allocation68_spill] sm:$0xff] %v6930_v11  ;;  %v2149_v11 = vld [vmem:[#allocation2 + $0x251] sm:$0xff] }
 0x312   :  { %1781 = vst [vmem:[#allocation2 + $0x3b0] sm:$0xff] %v11723_v63  ;;  %v11727_v63 = vmax.f32 %v6900_v21, 0.0  ;;  %v2924_v21 = vld [vmem:[#allocation2 + $0x22f] sm:$0xff] }
 0x313   :  { %1782 = vst [vmem:[#allocation2 + $0x3c8] sm:$0xff] %v11724_v14  ;;  %v1824_v14 = vld [vmem:[#allocation2 + $0x247] sm:$0xff] }
 0x314   :  { %1783 = vst [vmem:[#allocation2 + $0x3d0] sm:$0xff] %v11725_v43  ;;  %v6957_v43 = vld [vmem:[#allocation9] ss:$0 sm:$0xff] }
 0x315   :  { %1784 = vst [vmem:[#allocation2 + $0x3e8] sm:$0xff] %v11726_v48  ;;  %v1825_v48 = vld [vmem:[#allocation2 + $0x24f] sm:$0xff]  ;;  %v1890_v19 = vmul.f32 %v6957_v43, %v1824_v14  ;;  %v5052_v14 = vld [vmem:[#allocation9 + $0x8] ss:$0 sm:$0xff] }
 0x316   :  { %1785 = vst [vmem:[#allocation2 + $0x3f0] sm:$0xff] %v11727_v63  ;;  %v6961_v63 = vld [vmem:[#allocation9 + $0x2] ss:$0 sm:$0xff]  ;;  %v6974_v25 = vmul.f32 %v5052_v14, %v3311_v55  ;;  %v1801_v55 = vld [vmem:[#allocation2 + $0x8f] sm:$0xff] }
 0x317   :  { %1786 = vst [vmem:[#allocation2 + $0x408] sm:$0xff] %v11185_v33  ;;  %v5061_v33 = vld [vmem:[#allocation2] sm:$0xff]  ;;  %v2214_v51 = vmul.f32 %v6961_v63, %v2148_v60  ;;  %v2215_v61 = vmul.f32 %v6961_v63, %v2149_v11 }
 0x318   :  { %1787 = vst [vmem:[#allocation2 + $0x410] sm:$0xff] %v11186_v58  ;;  %v2020_v58 = vmul.f32 %v5061_v33, %v6959_v40 }
 0x319   :  { %1788 = vst [vmem:[#allocation2 + $0x428] sm:$0xff] %v11188_v20  ;;  %v1891_v20 = vmul.f32 %v6957_v43, %v1825_v48 }
 0x31a   :  { %1789 = vst [vmem:[#allocation2 + $0x430] sm:$0xff] %v11190_v0  ;;  %v5050_v0 = vld [vmem:[#allocation9 + $0x6] ss:$0 sm:$0xff]  ;;  %v2084_v12 = vadd.f32 %v2020_v58, %v1890_v19  ;;  %v6976_v19 = vmul.f32 %v5052_v14, %v3312_v39  ;;  %v11741_v39 = vmax.f32 %v6500_v8, 0.0  ;;  %v7017_v14 = vld [vmem:[#allocation2 + $0xcf] sm:$0xff] }
 0x31b   :  { %1790 = vst [vmem:[#allocation2 + $0x448] sm:$0xff] %v1581_v41  ;;  %v5051_v41 = vld [vmem:[#allocation9 + $0x7] ss:$0 sm:$0xff]  ;;  %v2085_v17 = vadd.f32 %v2020_v58, %v1891_v20  ;;  %v6972_v48 = vmul.f32 %v5050_v0, %v2924_v21  ;;  %v6982_v58 = vmul.f32 %v5050_v0, %v2955_v23  ;;  %v6984_v11 = vmul.f32 %v5050_v0, %v2956_v18  ;;  %v1799_v21 = vld [vmem:[#allocation2 + $0x6f] sm:$0xff] }
 0x31c   :  { %1791 = vst [vmem:[#allocation2 + $0x450] sm:$0xff] %v1582_v34  ;;  %v2923_v34 = vld [vmem:[#allocation2 + $0x227] sm:$0xff]  ;;  %v6970_v37 = vmul.f32 %v5061_v33, %v5051_v41  ;;  %v6978_v60 = vadd.f32 %v2214_v51, %v2084_v12  ;;  %v11744_v18 = vmax.f32 %v6520_v9, 0.0  ;;  %v11745_v51 = vmax.f32 %v6526_v16, 0.0 }
 0x31d   :  { %11728 = vst [vmem:[#allocation71_spill] sm:$0xff] %v6961_v63  ;;  %v6968_v29 = vmul.f32 %v5050_v0, %v2923_v34  ;;  %v6980_v5 = vadd.f32 %v2215_v61, %v2085_v17  ;;  %v1798_v20 = vld [vmem:[#allocation2 + $0x67] sm:$0xff]  ;;  %v11738_v34 = vmax.f32 %v6488_v47, 0.0  ;;  %v6996_v17 = vmul.f32 %v6959_v40, %v11741_v39  ;;  %v7013_v0 = vld [vmem:[#allocation2 + $0xaf] sm:$0xff] }
 0x31e   :  { %11730 = vst [vmem:[#allocation77_spill] sm:$0xff] %v6970_v37  ;;  %v1800_v41 = vld [vmem:[#allocation2 + $0x87] sm:$0xff]  ;;  %v11743_v61 = vmax.f32 %v6510_v36, 0.0  ;;  %v7006_v12 = vmul.f32 %v6959_v40, %v11744_v18  ;;  %v7011_v47 = vmul.f32 %v6959_v40, %v11745_v51  ;;  %v11749_v36 = vmax.f32 %v6532_v54, 0.0  ;;  %v7041_v54 = vld [vmem:[#allocation2 + $0xef] sm:$0xff] }
 0x31f   :  { %11729 = vst [vmem:[#allocation74_spill] sm:$0xff] %v6968_v29  ;;  %v6989_v33 = vmul.f32 %v6959_v40, %v11738_v34  ;;  %v7015_v8 = vld [vmem:[#allocation2 + $0xc7] sm:$0xff]  ;;  %v11750_v9 = vmax.f32 %v6538_v31, 0.0  ;;  %v11751_v16 = vmax.f32 %v6544_v57, 0.0  ;;  %v11752_v18 = vmax.f32 %v6550_v59, 0.0 }
 0x320   :  { %11731 = vst [vmem:[#allocation79_spill] sm:$0xff] %v6972_v48  ;;  %v7001_v23 = vmul.f32 %v6959_v40, %v11743_v61  ;;  %v7022_v34 = vmul.f32 %v6959_v40, %v11749_v36  ;;  %v7043_v36 = vld [vmem:[#allocation2 + $0x107] sm:$0xff]  ;;  %v11756_v31 = vmax.f32 %v6558_v32, 0.0  ;;  %v11757_v57 = vmax.f32 %v6566_v10, 0.0 }
 0x321   :  { %11732 = vst [vmem:[#allocation82_spill] sm:$0xff] %v6974_v25  ;;  %v6991_v25 = vld [vmem:[#allocation2 + $0xa7] sm:$0xff]  ;;  %v7027_v39 = vmul.f32 %v6959_v40, %v11750_v9  ;;  %v7032_v61 = vmul.f32 %v6959_v40, %v11751_v16  ;;  %v7037_v51 = vmul.f32 %v6959_v40, %v11752_v18  ;;  %v11758_v59 = vmax.f32 %v6574_v35, 0.0 }
 0x322   :  { %11733 = vst [vmem:[#allocation85_spill] sm:$0xff] %v6976_v19  ;;  %v7039_v19 = vld [vmem:[#allocation2 + $0xe7] sm:$0xff]  ;;  %v7048_v9 = vmul.f32 %v6959_v40, %v11756_v31  ;;  %v7053_v16 = vmul.f32 %v6959_v40, %v11757_v57  ;;  %v11759_v48 = vmax.f32 %v6582_v4, 0.0  ;;  %v7069_v31 = vld [vmem:[#allocation2 + $0x12f] sm:$0xff]  ;;  %v11763_v10 = vmax.f32 %v6590_v6, 0.0 }
 0x323   :  { %11734 = vst [vmem:[#allocation88_spill] sm:$0xff] %v6978_v60  ;;  %v7058_v18 = vmul.f32 %v6959_v40, %v11758_v59  ;;  %v7067_v32 = vld [vmem:[#allocation2 + $0x127] sm:$0xff]  ;;  %v11764_v35 = vmax.f32 %v6598_v38, 0.0  ;;  %v11766_v4 = vmax.f32 %v6606_v52, 0.0  ;;  %v7093_v6 = vld [vmem:[#allocation2 + $0x14f] sm:$0xff]  ;;  %v7098_v38 = vmul.f32 %v6957_v43, %v1798_v20 }
 0x324   :  { %11735 = vst [vmem:[#allocation91_spill] sm:$0xff] %v6980_v5  ;;  %v7063_v29 = vmul.f32 %v6959_v40, %v11759_v48  ;;  %v7074_v57 = vmul.f32 %v6959_v40, %v11763_v10  ;;  %v7095_v10 = vld [vmem:[#allocation2 + $0x167] sm:$0xff]  ;;  %v7115_v5 = vld [vmem:[#allocation2 + $0x16f] sm:$0xff] }
 0x325   :  { %11736 = vst [vmem:[#allocation92_spill] sm:$0xff] %v6982_v58  ;;  %v7079_v59 = vmul.f32 %v6959_v40, %v11764_v35  ;;  %v7084_v48 = vmul.f32 %v6959_v40, %v11766_v4  ;;  %v11774_v35 = vmax.f32 %v6622_v1, 0.0  ;;  %v11776_v4 = vmax.f32 %v6630_v50, 0.0  ;;  %v7117_v60 = vld [vmem:[#allocation2 + $0x187] sm:$0xff]  ;;  %v7119_v20 = vld [vmem:[#allocation2 + $0x18f] sm:$0xff] }
 0x326   :  { %11737 = vst [vmem:[#allocation93_spill] sm:$0xff] %v6984_v11  ;;  %v7091_v11 = vld [vmem:[#allocation2 + $0x147] sm:$0xff]  ;;  %v7122_v1 = vmul.f32 %v6957_v43, %v1799_v21  ;;  %v7128_v50 = vmul.f32 %v6957_v43, %v1801_v55  ;;  %v7142_v21 = vmul.f32 %v6957_v43, %v7013_v0  ;;  %v7150_v55 = vmul.f32 %v6957_v43, %v7017_v14 }
 0x327   :  { %11739 = vst [vmem:[#allocation94_spill] sm:$0xff] %v6989_v33  ;;  %v11768_v33 = vmax.f32 %v6614_v28, 0.0  ;;  %v7103_v52 = vmul.f32 %v6959_v40, %v11774_v35  ;;  %v7108_v28 = vmul.f32 %v6959_v40, %v11776_v4  ;;  %v7125_v35 = vmul.f32 %v6957_v43, %v1800_v41  ;;  %v7134_v4 = vld [vmem:[#allocation2 + $0x1a7] sm:$0xff] }
 0x328   :  { %11740 = vst [vmem:[#allocation96_spill] sm:$0xff] %v6991_v25  ;;  %v7146_v41 = vmul.f32 %v6957_v43, %v7015_v8  ;;  %v7158_v63 = vld [vmem:[#allocation2 + $0x1e7] sm:$0xff] }
 0x329   :  { %11742 = vst [vmem:[#allocation98_spill] sm:$0xff] %v6996_v17  ;;  %v7065_v17 = vld [vmem:[#allocation2 + $0x10f] sm:$0xff]  ;;  %v7089_v37 = vmul.f32 %v6959_v40, %v11768_v33  ;;  %v11778_v33 = vmax.f32 %v6638_v3, 0.0  ;;  %v7132_v3 = vmul.f32 %v6957_v43, %v6991_v25 }
 0x32a   :  { %11746 = vst [vmem:[#allocation99_spill] sm:$0xff] %v7013_v0  ;;  %v7156_v25 = vld [vmem:[#allocation2 + $0x1cf] sm:$0xff]  ;;  %v7164_v0 = vmul.f32 %v6957_v43, %v7041_v54 }
 0x32b   :  { %11747 = vst [vmem:[#allocation101_spill] sm:$0xff] %v7015_v8  ;;  %v7113_v58 = vmul.f32 %v6959_v40, %v11778_v33  ;;  %v7136_v33 = vld [vmem:[#allocation2 + $0x1af] sm:$0xff]  ;;  %v7168_v8 = vmul.f32 %v6957_v43, %v7043_v36 }
 0x32c   :  { %11748 = vst [vmem:[#allocation83_spill] sm:$0xff] %v7017_v14  ;;  %v7172_v14 = vmul.f32 %v6957_v43, %v7065_v17 }
 0x32d   :  { %11753 = vst [vmem:[#allocation89_spill] sm:$0xff] %v7039_v19 }
 0x32e   :  { %11754 = vst [vmem:[#allocation104_spill] sm:$0xff] %v7041_v54  ;;  %v7186_v54 = vmul.f32 %v6957_v43, %v7069_v31 }
 0x32f   :  { %11755 = vst [vmem:[#allocation105_spill] sm:$0xff] %v7043_v36  ;;  %v7190_v36 = vmul.f32 %v6957_v43, %v7091_v11 }
 0x330   :  { %11760 = vst [vmem:[#allocation34_spill] sm:$0xff] %v7065_v17  ;;  %v7194_v17 = vmul.f32 %v6957_v43, %v7093_v6 }
 0x331   :  { %11761 = vst [vmem:[#allocation36_spill] sm:$0xff] %v7067_v32 }
 0x332   :  { %11762 = vst [vmem:[#allocation38_spill] sm:$0xff] %v7069_v31  ;;  %v7206_v31 = vmul.f32 %v6957_v43, %v7115_v5 }
 0x333   :  { %11765 = vst [vmem:[#allocation40_spill] sm:$0xff] %v7079_v59  ;;  %v7202_v59 = vld [vmem:[#allocation2 + $0x2a7] sm:$0xff] }
 0x334   :  { %11767 = vst [vmem:[#allocation43_spill] sm:$0xff] %v7084_v48  ;;  %v7200_v48 = vld [vmem:[#allocation2 + $0x28f] sm:$0xff] }
 0x335   :  { %11769 = vst [vmem:[#allocation46_spill] sm:$0xff] %v7089_v37  ;;  %v7182_v37 = vld [vmem:[#allocation2 + $0x287] sm:$0xff] }
 0x336   :  { %11770 = vst [vmem:[#allocation49_spill] sm:$0xff] %v7091_v11  ;;  %v7210_v11 = vmul.f32 %v6957_v43, %v7117_v60 }
 0x337   :  { %11771 = vst [vmem:[#allocation52_spill] sm:$0xff] %v7093_v6  ;;  %v7214_v6 = vmul.f32 %v6957_v43, %v7119_v20 }
 0x338   :  { %11772 = vst [vmem:[#allocation55_spill] sm:$0xff] %v7095_v10 }
 0x339   :  { %11773 = vst [vmem:[#allocation58_spill] sm:$0xff] %v7098_v38  ;;  %v7138_v38 = vld [vmem:[#allocation2 + $0x1c7] sm:$0xff] }
 0x33a   :  { %11775 = vst [vmem:[#allocation61_spill] sm:$0xff] %v7103_v52  ;;  %v7180_v52 = vld [vmem:[#allocation2 + $0x26f] sm:$0xff] }
 0x33b   :  { %11777 = vst [vmem:[#allocation64_spill] sm:$0xff] %v7108_v28  ;;  %v7178_v28 = vld [vmem:[#allocation2 + $0x267] sm:$0xff] }
 0x33c   :  { %11779 = vst [vmem:[#allocation67_spill] sm:$0xff] %v7113_v58  ;;  %v7160_v58 = vld [vmem:[#allocation2 + $0x1ef] sm:$0xff] }
 0x33d   :  { %11780 = vst [vmem:[#allocation70_spill] sm:$0xff] %v7115_v5  ;;  %v7228_v5 = vmul.f32 %v6957_v43, %v7138_v38 }
 0x33e   :  { %11781 = vst [vmem:[#allocation73_spill] sm:$0xff] %v7117_v60  ;;  %v7232_v60 = vmul.f32 %v6957_v43, %v7156_v25 }
 0x33f   :  { %11782 = vst [vmem:[#allocation134_spill] sm:$0xff] %v7119_v20  ;;  %v7236_v20 = vmul.f32 %v6957_v43, %v7158_v63 }
 0x340   :  { %11783 = vst [vmem:[#allocation135_spill] sm:$0xff] %v7122_v1  ;;  %v7154_v1 = vmul.f32 %v6957_v43, %v7039_v19  ;;  %v7176_v19 = vmul.f32 %v6957_v43, %v7067_v32  ;;  %v7198_v32 = vmul.f32 %v6957_v43, %v7095_v10  ;;  %v7218_v10 = vmul.f32 %v6957_v43, %v7134_v4 }
 0x341   :  { %11784 = vst [vmem:[#allocation136_spill] sm:$0xff] %v7134_v4  ;;  %v7238_v4 = vld [vmem:[#allocation2 + $0x2c7] sm:$0xff] }
 0x342   :  { %11785 = vst [vmem:[#allocation137_spill] sm:$0xff] %v7136_v33 }
 0x343   :  { %11786 = vst [vmem:[#allocation138_spill] sm:$0xff] %v7138_v38  ;;  %v7250_v38 = vmul.f32 %v6957_v43, %v7180_v52 }
 0x344   :  { %11787 = vst [vmem:[#allocation139_spill] sm:$0xff] %v7156_v25  ;;  %v7254_v25 = vmul.f32 %v6957_v43, %v7182_v37 }
 0x345   :  { %11788 = vst [vmem:[#allocation140_spill] sm:$0xff] %v7158_v63  ;;  %v7256_v63 = vld [vmem:[#allocation2 + $0x2cf] sm:$0xff] }
 0x346   :  { %11789 = vst [vmem:[#allocation141_spill] sm:$0xff] %v7160_v58 }
 0x347   :  { %11790 = vst [vmem:[#allocation142_spill] sm:$0xff] %v7178_v28 }
 0x348   :  { %11791 = vst [vmem:[#allocation143_spill] sm:$0xff] %v7180_v52  ;;  %v11807_v52 = vmax.f32 %v6654_v13, 0.0  ;;  %v11812_v13 = vmax.f32 %v6678_v44, 0.0  ;;  %v11817_v44 = vmax.f32 %v6714_v26, 0.0  ;;  %v11822_v26 = vmax.f32 %v6736_v7, 0.0 }
 0x349   :  { %11792 = vst [vmem:[#allocation144_spill] sm:$0xff] %v7182_v37  ;;  %v11827_v7 = vmax.f32 %v6758_v15, 0.0  ;;  %v11834_v15 = vmax.f32 %v6780_v30, 0.0  ;;  %v11844_v30 = vld [vmem:[#allocation30_spill] sm:$0xff] }
 0x34a   :  { %11793 = vst [vmem:[#allocation145_spill] sm:$0xff] %v7194_v17  ;;  %v7224_v17 = vmul.f32 %v6957_v43, %v7136_v33  ;;  %v7246_v33 = vmul.f32 %v6957_v43, %v7178_v28  ;;  %v11806_v28 = vmax.f32 %v6646_v27, 0.0  ;;  %v7274_v37 = vmul.f32 %v6959_v40, %v11807_v52 }
 0x34b   :  { %11794 = vst [vmem:[#allocation146_spill] sm:$0xff] %v7198_v32  ;;  %v7220_v32 = vld [vmem:[#allocation2 + $0x2af] sm:$0xff]  ;;  %v11811_v27 = vmax.f32 %v6670_v49, 0.0  ;;  %v7295_v52 = vmul.f32 %v6959_v40, %v11812_v13  ;;  %v11816_v49 = vmax.f32 %v6706_v46, 0.0  ;;  %v7316_v13 = vmul.f32 %v6959_v40, %v11817_v44 }
 0x34c   :  { %11795 = vst [vmem:[#allocation147_spill] sm:$0xff] %v7200_v48  ;;  %v11821_v46 = vmax.f32 %v6729_v62, 0.0  ;;  %v7337_v44 = vmul.f32 %v6959_v40, %v11822_v26  ;;  %v11826_v62 = vmax.f32 %v6752_v2, 0.0  ;;  %v7358_v26 = vmul.f32 %v6959_v40, %v11827_v7 }
 0x34d   :  { %11796 = vst [vmem:[#allocation148_spill] sm:$0xff] %v7202_v59  ;;  %v11832_v2 = vmax.f32 %v6772_v22, 0.0  ;;  %v7379_v7 = vmul.f32 %v6959_v40, %v11834_v15  ;;  %v11841_v22 = vld [vmem:[#allocation29_spill] sm:$0xff] }
 0x34e   :  { %11797 = vst [vmem:[#allocation149_spill] sm:$0xff] %v7218_v10  ;;  %v7242_v10 = vmul.f32 %v6957_v43, %v7160_v58  ;;  %v7264_v58 = vmul.f32 %v6957_v43, %v7202_v59 }
 0x34f   :  { %11798 = vst [vmem:[#allocation150_spill] sm:$0xff] %v7220_v32 }
 0x350   :  { %11799 = vst [vmem:[#allocation151_spill] sm:$0xff] %v7236_v20  ;;  %v7260_v20 = vmul.f32 %v6957_v43, %v7200_v48  ;;  %v7280_v48 = vmul.f32 %v6957_v43, %v7220_v32  ;;  %v7301_v32 = vmul.f32 %v6957_v43, %v7238_v4 }
 0x351   :  { %11800 = vst [vmem:[#allocation152_spill] sm:$0xff] %v7238_v4  ;;  %v7322_v4 = vmul.f32 %v6957_v43, %v7256_v63 }
 0x352   :  { %11801 = vst [vmem:[#allocation153_spill] sm:$0xff] %v7246_v33  ;;  %v7269_v33 = vmul.f32 %v6959_v40, %v11806_v28  ;;  %v7290_v28 = vmul.f32 %v6959_v40, %v11811_v27  ;;  %v7311_v27 = vmul.f32 %v6959_v40, %v11816_v49  ;;  %v7332_v49 = vmul.f32 %v6959_v40, %v11821_v46 }
 0x353   :  { %11802 = vst [vmem:[#allocation154_spill] sm:$0xff] %v7254_v25  ;;  %v7276_v25 = vld [vmem:[#allocation2 + $0x2e7] sm:$0xff]  ;;  %v7353_v46 = vmul.f32 %v6959_v40, %v11826_v62  ;;  %v7374_v62 = vmul.f32 %v6959_v40, %v11832_v2 }
 0x354   :  { %11803 = vst [vmem:[#allocation155_spill] sm:$0xff] %v7256_v63  ;;  %v7343_v63 = vmul.f32 %v6957_v43, %v7276_v25 }
 0x355   :  { %11804 = vst [vmem:[#allocation156_spill] sm:$0xff] %v7260_v20  ;;  %v11810_v20 = vmax.f32 %v6662_v45, 0.0  ;;  %v11815_v45 = vmax.f32 %v6686_v56, 0.0  ;;  %v11820_v56 = vmax.f32 %v6722_v53, 0.0  ;;  %v11825_v53 = vmax.f32 %v6744_v42, 0.0 }
 0x356   :  { %11805 = vst [vmem:[#allocation157_spill] sm:$0xff] %v7264_v58  ;;  %v7297_v58 = vld [vmem:[#allocation2 + $0x2ef] sm:$0xff]  ;;  %v11830_v42 = vmax.f32 %v6764_v24, 0.0 }
 0x357   :  { %11808 = vst [vmem:[#allocation158_spill] sm:$0xff] %v7276_v25  ;;  %v7285_v59 = vmul.f32 %v6959_v40, %v11810_v20  ;;  %v7306_v20 = vmul.f32 %v6959_v40, %v11815_v45  ;;  %v7327_v45 = vmul.f32 %v6959_v40, %v11820_v56  ;;  %v7348_v56 = vmul.f32 %v6959_v40, %v11825_v53  ;;  %v11838_v24 = vld [vmem:[#allocation28_spill] sm:$0xff] }
 0x358   :  { %11809 = vst [vmem:[#allocation159_spill] sm:$0xff] %v7280_v48  ;;  %v7318_v48 = vld [vmem:[#allocation2 + $0x307] sm:$0xff]  ;;  %v7364_v25 = vmul.f32 %v6957_v43, %v7297_v58  ;;  %v7369_v53 = vmul.f32 %v6959_v40, %v11830_v42 }
 0x359   :  { %11813 = vst [vmem:[#allocation160_spill] sm:$0xff] %v7297_v58  ;;  %v7385_v58 = vmul.f32 %v6957_v43, %v7318_v48 }
 0x35a   :  { %11814 = vst [vmem:[#allocation161_spill] sm:$0xff] %v7301_v32  ;;  %v7339_v32 = vld [vmem:[#allocation2 + $0x30f] sm:$0xff] }
 0x35b   :  { %11818 = vst [vmem:[#allocation162_spill] sm:$0xff] %v7318_v48  ;;  %v7406_v48 = vmul.f32 %v6957_v43, %v7339_v32 }
 0x35c   :  { %11819 = vst [vmem:[#allocation163_spill] sm:$0xff] %v7322_v4  ;;  %v7360_v4 = vld [vmem:[#allocation2 + $0x327] sm:$0xff] }
 0x35d   :  { %11823 = vst [vmem:[#allocation164_spill] sm:$0xff] %v7339_v32  ;;  %v7427_v32 = vmul.f32 %v6957_v43, %v7360_v4 }
 0x35e   :  { %11824 = vst [vmem:[#allocation165_spill] sm:$0xff] %v7343_v63  ;;  %v7381_v63 = vld [vmem:[#allocation2 + $0x32f] sm:$0xff] }
 0x35f   :  { %11828 = vst [vmem:[#allocation166_spill] sm:$0xff] %v7360_v4  ;;  %v7448_v4 = vmul.f32 %v6957_v43, %v7381_v63 }
 0x360   :  { %11829 = vst [vmem:[#allocation167_spill] sm:$0xff] %v7364_v25  ;;  %v11839_v25 = vmax.f32 %v11838_v24, 0.0  ;;  %v11849_v24 = vld [vmem:[#allocation31_spill] sm:$0xff] }
 0x361   :  { %11831 = vst [vmem:[#allocation168_spill] sm:$0xff] %v7369_v53  ;;  %v11842_v53 = vmax.f32 %v11841_v22, 0.0  ;;  %v11852_v22 = vld [vmem:[#allocation32_spill] sm:$0xff] }
 0x362   :  { %11833 = vst [vmem:[#allocation169_spill] sm:$0xff] %v7374_v62  ;;  %v7390_v42 = vmul.f32 %v6959_v40, %v11839_v25  ;;  %v11845_v62 = vmax.f32 %v11844_v30, 0.0  ;;  %v11855_v30 = vld [vmem:[#allocation33_spill] sm:$0xff] }
 0x363   :  { %11835 = vst [vmem:[#allocation170_spill] sm:$0xff] %v7379_v7  ;;  %v7395_v2 = vmul.f32 %v6959_v40, %v11842_v53  ;;  %v7402_v7 = vld [vmem:[#allocation2 + $0x347] sm:$0xff] }
 0x364   :  { %11836 = vst [vmem:[#allocation171_spill] sm:$0xff] %v7381_v63  ;;  %v7400_v15 = vmul.f32 %v6959_v40, %v11845_v62  ;;  %v7469_v63 = vmul.f32 %v6957_v43, %v7402_v7 }
 0x365   :  { %11837 = vst [vmem:[#allocation172_spill] sm:$0xff] %v7385_v58  ;;  %v11850_v58 = vmax.f32 %v11849_v24, 0.0  ;;  %v11860_v24 = vld [vmem:[#allocation35_spill] sm:$0xff] }
 0x366   :  { %11840 = vst [vmem:[#allocation28_spill] sm:$0xff] %v7390_v42  ;;  %v11853_v42 = vmax.f32 %v11852_v22, 0.0  ;;  %v11863_v22 = vld [vmem:[#allocation37_spill] sm:$0xff] }
 0x367   :  { %11843 = vst [vmem:[#allocation29_spill] sm:$0xff] %v7395_v2  ;;  %v7411_v25 = vmul.f32 %v6959_v40, %v11850_v58  ;;  %v11856_v2 = vmax.f32 %v11855_v30, 0.0  ;;  %v11866_v30 = vld [vmem:[#allocation39_spill] sm:$0xff] }
 0x368   :  { %11846 = vst [vmem:[#allocation30_spill] sm:$0xff] %v7400_v15  ;;  %v7416_v53 = vmul.f32 %v6959_v40, %v11853_v42  ;;  %v7423_v15 = vld [vmem:[#allocation2 + $0x34f] sm:$0xff] }
 0x369   :  { %11847 = vst [vmem:[#allocation173_spill] sm:$0xff] %v7402_v7  ;;  %v7421_v62 = vmul.f32 %v6959_v40, %v11856_v2  ;;  %v7490_v7 = vmul.f32 %v6957_v43, %v7423_v15 }
 0x36a   :  { %11848 = vst [vmem:[#allocation174_spill] sm:$0xff] %v7406_v48  ;;  %v11861_v48 = vmax.f32 %v11860_v24, 0.0  ;;  %v11871_v24 = vld [vmem:[#allocation41_spill] sm:$0xff] }
 0x36b   :  { %11851 = vst [vmem:[#allocation31_spill] sm:$0xff] %v7411_v25  ;;  %v11864_v25 = vmax.f32 %v11863_v22, 0.0  ;;  %v11874_v22 = vld [vmem:[#allocation44_spill] sm:$0xff] }
 0x36c   :  { %11854 = vst [vmem:[#allocation32_spill] sm:$0xff] %v7416_v53  ;;  %v7432_v58 = vmul.f32 %v6959_v40, %v11861_v48  ;;  %v11867_v53 = vmax.f32 %v11866_v30, 0.0  ;;  %v11877_v30 = vld [vmem:[#allocation47_spill] sm:$0xff] }
 0x36d   :  { %11857 = vst [vmem:[#allocation33_spill] sm:$0xff] %v7421_v62  ;;  %v7437_v42 = vmul.f32 %v6959_v40, %v11864_v25  ;;  %v7444_v62 = vld [vmem:[#allocation2 + $0x367] sm:$0xff] }
 0x36e   :  { %11858 = vst [vmem:[#allocation175_spill] sm:$0xff] %v7423_v15  ;;  %v7442_v2 = vmul.f32 %v6959_v40, %v11867_v53  ;;  %v7511_v15 = vmul.f32 %v6957_v43, %v7444_v62 }
 0x36f   :  { %11859 = vst [vmem:[#allocation176_spill] sm:$0xff] %v7427_v32  ;;  %v11872_v32 = vmax.f32 %v11871_v24, 0.0  ;;  %v11882_v24 = vld [vmem:[#allocation50_spill] sm:$0xff] }
 0x370   :  { %11862 = vst [vmem:[#allocation35_spill] sm:$0xff] %v7432_v58  ;;  %v11875_v58 = vmax.f32 %v11874_v22, 0.0  ;;  %v11885_v22 = vld [vmem:[#allocation53_spill] sm:$0xff] }
 0x371   :  { %11865 = vst [vmem:[#allocation37_spill] sm:$0xff] %v7437_v42  ;;  %v7453_v48 = vmul.f32 %v6959_v40, %v11872_v32  ;;  %v11878_v42 = vmax.f32 %v11877_v30, 0.0  ;;  %v11888_v30 = vld [vmem:[#allocation56_spill] sm:$0xff] }
 0x372   :  { %11868 = vst [vmem:[#allocation39_spill] sm:$0xff] %v7442_v2  ;;  %v7458_v25 = vmul.f32 %v6959_v40, %v11875_v58  ;;  %v7465_v2 = vld [vmem:[#allocation2 + $0x36f] sm:$0xff] }
 0x373   :  { %11869 = vst [vmem:[#allocation177_spill] sm:$0xff] %v7444_v62  ;;  %v7463_v53 = vmul.f32 %v6959_v40, %v11878_v42  ;;  %v11959_v62 = vld [vmem:[#allocation29_spill] sm:$0xff] }
 0x374   :  { %11870 = vst [vmem:[#allocation178_spill] sm:$0xff] %v7448_v4  ;;  %v11883_v4 = vmax.f32 %v11882_v24, 0.0  ;;  %v11893_v24 = vld [vmem:[#allocation59_spill] sm:$0xff] }
 0x375   :  { %11873 = vst [vmem:[#allocation41_spill] sm:$0xff] %v7453_v48  ;;  %v11886_v48 = vmax.f32 %v11885_v22, 0.0  ;;  %v11895_v22 = vld [vmem:[#allocation62_spill] sm:$0xff] }
 0x376   :  { %11876 = vst [vmem:[#allocation44_spill] sm:$0xff] %v7458_v25  ;;  %v7474_v32 = vmul.f32 %v6959_v40, %v11883_v4  ;;  %v11889_v25 = vmax.f32 %v11888_v30, 0.0  ;;  %v11897_v30 = vld [vmem:[#allocation65_spill] sm:$0xff] }
 0x377   :  { %11879 = vst [vmem:[#allocation47_spill] sm:$0xff] %v7463_v53  ;;  %v7479_v58 = vmul.f32 %v6959_v40, %v11886_v48  ;;  %v7486_v53 = vld [vmem:[#allocation2 + $0x387] sm:$0xff] }
 0x378   :  { %11880 = vst [vmem:[#allocation179_spill] sm:$0xff] %v7465_v2  ;;  %v7484_v42 = vmul.f32 %v6959_v40, %v11889_v25 }
 0x379   :  { %11881 = vst [vmem:[#allocation180_spill] sm:$0xff] %v7469_v63  ;;  %v11894_v63 = vmax.f32 %v11893_v24, 0.0  ;;  %v11900_v24 = vld [vmem:[#allocation68_spill] sm:$0xff] }
 0x37a   :  { %11884 = vst [vmem:[#allocation50_spill] sm:$0xff] %v7474_v32  ;;  %v11896_v32 = vmax.f32 %v11895_v22, 0.0  ;;  %v7524_v22 = vadd.f32 %v7006_v12, %v7128_v50  ;;  %v7544_v12 = vld [vmem:[#allocation2 + $0x3af] sm:$0xff]  ;;  %v7552_v50 = vadd.f32 %v7032_v61, %v7150_v55  ;;  %v7572_v61 = vadd.f32 %v7058_v18, %v7172_v14  ;;  %v11910_v14 = vld [vmem:[#allocation43_spill] sm:$0xff] }
 0x37b   :  { %11887 = vst [vmem:[#allocation53_spill] sm:$0xff] %v7479_v58  ;;  %v7495_v4 = vmul.f32 %v6959_v40, %v11894_v63  ;;  %v11898_v58 = vmax.f32 %v11897_v30, 0.0  ;;  %v7530_v30 = vmul.f32 %v6957_v43, %v7465_v2  ;;  %v7594_v55 = vld [vmem:[#allocation2 + $0x3e7] sm:$0xff] }
 0x37c   :  { %11890 = vst [vmem:[#allocation56_spill] sm:$0xff] %v7484_v42  ;;  %v7500_v48 = vmul.f32 %v6959_v40, %v11896_v32  ;;  %v7507_v42 = vld [vmem:[#allocation2 + $0x38f] sm:$0xff]  ;;  %v7520_v32 = vadd.f32 %v7001_v23, %v7125_v35  ;;  %v7542_v23 = vadd.f32 %v7027_v39, %v7146_v41  ;;  %v7548_v35 = vmul.f32 %v6957_v43, %v7486_v53  ;;  %v7562_v39 = vld [vmem:[#allocation2 + $0x3c7] sm:$0xff] }
 0x37d   :  { %11891 = vst [vmem:[#allocation181_spill] sm:$0xff] %v7486_v53  ;;  %v7505_v25 = vmul.f32 %v6959_v40, %v11898_v58  ;;  %v7526_v58 = vld [vmem:[#allocation2 + $0x3a7] sm:$0xff]  ;;  %v11909_v41 = vld [vmem:[#allocation145_spill] sm:$0xff] }
 0x37e   :  { %11892 = vst [vmem:[#allocation182_spill] sm:$0xff] %v7490_v7  ;;  %v11901_v7 = vmax.f32 %v11900_v24, 0.0  ;;  %v7534_v24 = vadd.f32 %v7011_v47, %v7132_v3  ;;  %v7556_v47 = vadd.f32 %v7037_v51, %v7154_v1  ;;  %v1911_v3 = vmul.f32 %v6957_v43, %v7507_v42  ;;  %v7578_v1 = vld [vmem:[#allocation2 + $0x3cf] sm:$0xff] }
 0x37f   :  { %11899 = vst [vmem:[#allocation59_spill] sm:$0xff] %v7507_v42  ;;  %v7576_v51 = vadd.f32 %v7063_v29, %v7176_v19  ;;  %v7592_v18 = vadd.f32 %v11910_v14, %v11909_v41  ;;  %v1913_v29 = vmul.f32 %v6957_v43, %v7544_v12  ;;  %v11912_v19 = vld [vmem:[#allocation146_spill] sm:$0xff]  ;;  %v1914_v41 = vmul.f32 %v6957_v43, %v7562_v39  ;;  %v11917_v14 = vld [vmem:[#allocation67_spill] sm:$0xff]  ;;  %v11950_v42 = vld [vmem:[#allocation169_spill] sm:$0xff] }
 0x380   :  { %v7516_v63 = vmul.f32 %v6959_v40, %v11901_v7  ;;  %11902 = vst [vmem:[#allocation62_spill] sm:$0xff] %v7520_v32  ;;  %v7538_v40 = vadd.f32 %v7022_v34, %v7142_v21  ;;  %v7560_v34 = vadd.f32 %v7048_v9, %v7164_v0  ;;  %v7568_v21 = vadd.f32 %v7053_v16, %v7168_v8  ;;  %v11908_v8 = vld [vmem:[#allocation40_spill] sm:$0xff]  ;;  %v11913_v7 = vld [vmem:[#allocation46_spill] sm:$0xff] }
 0x381   :  { %11903 = vst [vmem:[#allocation65_spill] sm:$0xff] %v7524_v22  ;;  %v1912_v0 = vmul.f32 %v6957_v43, %v7526_v58  ;;  %v7584_v9 = vadd.f32 %v7074_v57, %v7186_v54  ;;  %v7588_v16 = vadd.f32 %v11908_v8, %v7190_v36  ;;  %v7600_v22 = vadd.f32 %v11913_v7, %v11912_v19  ;;  %v11914_v54 = vld [vmem:[#allocation61_spill] sm:$0xff]  ;;  %v11915_v36 = vld [vmem:[#allocation64_spill] sm:$0xff] }
 0x382   :  { %11904 = vst [vmem:[#allocation68_spill] sm:$0xff] %v7526_v58  ;;  %v7604_v57 = vadd.f32 %v11914_v54, %v7206_v31  ;;  %v7608_v8 = vadd.f32 %v11915_v36, %v7210_v11  ;;  %v7610_v32 = vld [vmem:[#allocation2 + $0x3ef] sm:$0xff]  ;;  %v7624_v31 = vadd.f32 %v7274_v37, %v7224_v17  ;;  %v7626_v7 = vld [vmem:[#allocation2 + $0x407] sm:$0xff]  ;;  %v1915_v11 = vmul.f32 %v6957_v43, %v7578_v1 }
 0x383   :  { %11905 = vst [vmem:[#allocation183_spill] sm:$0xff] %v7544_v12  ;;  %v7616_v12 = vadd.f32 %v11917_v14, %v7214_v6  ;;  %v11919_v58 = vld [vmem:[#allocation149_spill] sm:$0xff]  ;;  %v7632_v54 = vadd.f32 %v7285_v59, %v7228_v5  ;;  %v7636_v6 = vadd.f32 %v7290_v28, %v7232_v60  ;;  %v11925_v36 = vld [vmem:[#allocation151_spill] sm:$0xff]  ;;  %v1916_v37 = vmul.f32 %v6957_v43, %v7594_v55 }
 0x384   :  { %11906 = vst [vmem:[#allocation184_spill] sm:$0xff] %v7562_v39  ;;  %v7620_v19 = vadd.f32 %v7269_v33, %v11919_v58  ;;  %v7640_v33 = vadd.f32 %v7295_v52, %v11925_v36  ;;  %v7642_v58 = vld [vmem:[#allocation2 + $0x40f] sm:$0xff]  ;;  %v7648_v17 = vadd.f32 %v7306_v20, %v7242_v10  ;;  %v7656_v60 = vadd.f32 %v7316_v13, %v7250_v38  ;;  %v7658_v59 = vld [vmem:[#allocation2 + $0x427] sm:$0xff]  ;;  %v11933_v52 = vld [vmem:[#allocation154_spill] sm:$0xff] }
 0x385   :  { %11907 = vst [vmem:[#allocation185_spill] sm:$0xff] %v7578_v1  ;;  %v11929_v14 = vld [vmem:[#allocation153_spill] sm:$0xff]  ;;  %v1917_v28 = vmul.f32 %v6957_v43, %v7610_v32  ;;  %v7664_v36 = vadd.f32 %v7327_v45, %v11933_v52  ;;  %v1918_v38 = vmul.f32 %v6957_v43, %v7626_v7  ;;  %v11940_v13 = vld [vmem:[#allocation159_spill] sm:$0xff] }
 0x386   :  { %11911 = vst [vmem:[#allocation40_spill] sm:$0xff] %v7594_v55  ;;  %v7652_v5 = vadd.f32 %v7311_v27, %v11929_v14  ;;  %v11935_v55 = vld [vmem:[#allocation156_spill] sm:$0xff]  ;;  %v11937_v20 = vld [vmem:[#allocation157_spill] sm:$0xff]  ;;  %v11944_v52 = vld [vmem:[#allocation163_spill] sm:$0xff] }
 0x387   :  { %11916 = vst [vmem:[#allocation145_spill] sm:$0xff] %v7610_v32  ;;  %v7668_v10 = vadd.f32 %v7332_v49, %v11935_v55  ;;  %v7672_v27 = vadd.f32 %v7337_v44, %v11937_v20  ;;  %v7674_v14 = vld [vmem:[#allocation2 + $0x42f] sm:$0xff]  ;;  %v7680_v32 = vadd.f32 %v7348_v56, %v11940_v13  ;;  %v7688_v49 = vadd.f32 %v7358_v26, %v11944_v52  ;;  %v11953_v13 = vld [vmem:[#allocation170_spill] sm:$0xff] }
 0x388   :  { %11918 = vst [vmem:[#allocation43_spill] sm:$0xff] %v7616_v12  ;;  %v11942_v1 = vld [vmem:[#allocation161_spill] sm:$0xff]  ;;  %v1919_v44 = vmul.f32 %v6957_v43, %v7642_v58  ;;  %v11947_v20 = vld [vmem:[#allocation168_spill] sm:$0xff]  ;;  %v11955_v26 = vld [vmem:[#allocation174_spill] sm:$0xff] }
 0x389   :  { %11920 = vst [vmem:[#allocation146_spill] sm:$0xff] %v7620_v19  ;;  %v7684_v45 = vadd.f32 %v7353_v46, %v11942_v1  ;;  %v11946_v55 = vld [vmem:[#allocation165_spill] sm:$0xff]  ;;  %v11952_v56 = vld [vmem:[#allocation172_spill] sm:$0xff]  ;;  %v1920_v46 = vmul.f32 %v6957_v43, %v7658_v59 }
 0x38a   :  { %11921 = vst [vmem:[#allocation46_spill] sm:$0xff] %v7624_v31  ;;  %v7694_v39 = vadd.f32 %v11947_v20, %v11946_v55  ;;  %v7702_v2 = vadd.f32 %v11953_v13, %v11952_v56  ;;  %v11956_v1 = vld [vmem:[#allocation28_spill] sm:$0xff]  ;;  %v11961_v55 = vld [vmem:[#allocation178_spill] sm:$0xff]  ;;  %v1921_v56 = vmul.f32 %v6957_v43, %v7674_v14  ;;  %v11974_v43 = vld [vmem:[#allocation35_spill] sm:$0xff] }
 0x38b   :  { %11922 = vst [vmem:[#allocation61_spill] sm:$0xff] %v7626_v7  ;;  %v11949_v7 = vld [vmem:[#allocation167_spill] sm:$0xff]  ;;  %v7708_v52 = vadd.f32 %v11956_v1, %v11955_v26  ;;  %v11962_v20 = vld [vmem:[#allocation30_spill] sm:$0xff]  ;;  %v11964_v13 = vld [vmem:[#allocation180_spill] sm:$0xff] }
 0x38c   :  { %11923 = vst [vmem:[#allocation64_spill] sm:$0xff] %v7632_v54  ;;  %v7698_v53 = vadd.f32 %v11950_v42, %v11949_v7  ;;  %v2124_v42 = vld [vmem:[#allocation2 + $0x89] sm:$0xff]  ;;  %v2125_v7 = vld [vmem:[#allocation2 + $0x91] sm:$0xff]  ;;  %v11967_v26 = vld [vmem:[#allocation182_spill] sm:$0xff] }
 0x38d   :  { %11924 = vst [vmem:[#allocation67_spill] sm:$0xff] %v7636_v6  ;;  %v11968_v1 = vld [vmem:[#allocation32_spill] sm:$0xff] }
 0x38e   :  { %11926 = vst [vmem:[#allocation149_spill] sm:$0xff] %v7640_v33  ;;  %v7930_v33 = vld [vmem:[#allocation2 + $0x369] sm:$0xff]  ;;  %v7932_v6 = vld [vmem:[#allocation2 + $0x371] sm:$0xff] }
 0x38f   :  { %11927 = vst [vmem:[#allocation151_spill] sm:$0xff] %v7642_v58  ;;  %v11958_v58 = vld [vmem:[#allocation176_spill] sm:$0xff] }
 0x390   :  { %11928 = vst [vmem:[#allocation186_spill] sm:$0xff] %v7648_v17  ;;  %v7928_v17 = vld [vmem:[#allocation2 + $0x351] sm:$0xff]  ;;  %v7978_v54 = vld [vmem:[#allocation2 + $0x3e9] sm:$0xff] }
 0x391   :  { %11930 = vst [vmem:[#allocation153_spill] sm:$0xff] %v7652_v5  ;;  %v7910_v5 = vld [vmem:[#allocation2 + $0x349] sm:$0xff]  ;;  %v7996_v19 = vld [vmem:[#allocation2 + $0x431] sm:$0xff] }
 0x392   :  { %11931 = vst [vmem:[#allocation187_spill] sm:$0xff] %v7656_v60  ;;  %v7908_v60 = vld [vmem:[#allocation2 + $0x331] sm:$0xff] }
 0x393   :  { %11932 = vst [vmem:[#allocation188_spill] sm:$0xff] %v7658_v59  ;;  %v11965_v59 = vld [vmem:[#allocation31_spill] sm:$0xff] }
 0x394   :  { %11934 = vst [vmem:[#allocation154_spill] sm:$0xff] %v7664_v36  ;;  %v7906_v36 = vld [vmem:[#allocation2 + $0x329] sm:$0xff] }
 0x395   :  { %11936 = vst [vmem:[#allocation156_spill] sm:$0xff] %v7668_v10  ;;  %v7888_v10 = vld [vmem:[#allocation2 + $0x311] sm:$0xff] }
 0x396   :  { %11938 = vst [vmem:[#allocation157_spill] sm:$0xff] %v7672_v27  ;;  %v7886_v27 = vld [vmem:[#allocation2 + $0x309] sm:$0xff] }
 0x397   :  { %11939 = vst [vmem:[#allocation189_spill] sm:$0xff] %v7674_v14  ;;  %v7738_v14 = vadd.f32 %v11974_v43, %v7530_v30  ;;  %v11986_v30 = vld [vmem:[#allocation44_spill] sm:$0xff] }
 0x398   :  { %11941 = vst [vmem:[#allocation159_spill] sm:$0xff] %v7680_v32  ;;  %v7759_v43 = vadd.f32 %v11986_v30, %v1913_v29  ;;  %v11998_v32 = vld [vmem:[#allocation56_spill] sm:$0xff] }
 0x399   :  { %11943 = vst [vmem:[#allocation161_spill] sm:$0xff] %v7684_v45  ;;  %v7756_v45 = vld [vmem:[#allocation2 + $0x129] sm:$0xff]  ;;  %v7779_v29 = vadd.f32 %v11998_v32, %v1917_v28  ;;  %v7799_v32 = vadd.f32 %v7516_v63, %v1921_v56  ;;  %v7801_v28 = vld [vmem:[#allocation2 + $0x1b1] sm:$0xff] }
 0x39a   :  { %11945 = vst [vmem:[#allocation163_spill] sm:$0xff] %v7688_v49  ;;  %v7712_v49 = vadd.f32 %v11959_v62, %v11958_v58  ;;  %v11970_v62 = vld [vmem:[#allocation33_spill] sm:$0xff]  ;;  %v7792_v30 = vld [vmem:[#allocation2 + $0x189] sm:$0xff] }
 0x39b   :  { %11948 = vst [vmem:[#allocation165_spill] sm:$0xff] %v7694_v39  ;;  %v7716_v39 = vadd.f32 %v11962_v20, %v11961_v55  ;;  %v7730_v58 = vadd.f32 %v11970_v62, %v7511_v15  ;;  %v2127_v55 = vld [vmem:[#allocation2 + $0xb1] sm:$0xff]  ;;  %v2128_v20 = vld [vmem:[#allocation2 + $0xc9] sm:$0xff] }
 0x39c   :  { %11951 = vst [vmem:[#allocation168_spill] sm:$0xff] %v7698_v53  ;;  %v2126_v53 = vld [vmem:[#allocation2 + $0xa9] sm:$0xff]  ;;  %v7750_v62 = vld [vmem:[#allocation2 + $0xf1] sm:$0xff] }
 0x39d   :  { %11954 = vst [vmem:[#allocation167_spill] sm:$0xff] %v7702_v2  ;;  %v7722_v2 = vadd.f32 %v11965_v59, %v11964_v13  ;;  %v11976_v59 = vld [vmem:[#allocation37_spill] sm:$0xff]  ;;  %v7820_v63 = vld [vmem:[#allocation2 + $0x269] sm:$0xff] }
 0x39e   :  { %11957 = vst [vmem:[#allocation169_spill] sm:$0xff] %v7708_v52  ;;  %v7726_v52 = vadd.f32 %v11968_v1, %v11967_v26  ;;  %v7742_v13 = vadd.f32 %v11976_v59, %v7548_v35  ;;  %v11978_v26 = vld [vmem:[#allocation39_spill] sm:$0xff]  ;;  %v11990_v59 = vld [vmem:[#allocation50_spill] sm:$0xff]  ;;  %v7822_v56 = vld [vmem:[#allocation2 + $0x271] sm:$0xff] }
 0x39f   :  { %11960 = vst [vmem:[#allocation172_spill] sm:$0xff] %v7712_v49  ;;  %v7734_v49 = vld [vmem:[#allocation2 + $0xe9] sm:$0xff]  ;;  %v7745_v1 = vadd.f32 %v11978_v26, %v1911_v3  ;;  %v7765_v3 = vadd.f32 %v11990_v59, %v1915_v11  ;;  %v11992_v26 = vld [vmem:[#allocation53_spill] sm:$0xff]  ;;  %v7785_v11 = vadd.f32 %v7500_v48, %v1919_v44 }
 0x3a0   :  { %11963 = vst [vmem:[#allocation170_spill] sm:$0xff] %v7716_v39  ;;  %v7732_v39 = vld [vmem:[#allocation2 + $0xd1] sm:$0xff] }
 0x3a1   :  { %11966 = vst [vmem:[#allocation174_spill] sm:$0xff] %v7722_v2  ;;  %v7754_v2 = vld [vmem:[#allocation2 + $0x111] sm:$0xff] }
 0x3a2   :  { %11969 = vst [vmem:[#allocation28_spill] sm:$0xff] %v7726_v52  ;;  %v11980_v52 = vld [vmem:[#allocation41_spill] sm:$0xff] }
 0x3a3   :  { %11971 = vst [vmem:[#allocation176_spill] sm:$0xff] %v7730_v58  ;;  %v7748_v15 = vadd.f32 %v11980_v52, %v1912_v0  ;;  %v7752_v58 = vld [vmem:[#allocation2 + $0x109] sm:$0xff]  ;;  %v7768_v0 = vadd.f32 %v11992_v26, %v1916_v37  ;;  %v7770_v52 = vld [vmem:[#allocation2 + $0x131] sm:$0xff]  ;;  %v7788_v37 = vadd.f32 %v7505_v25, %v1920_v46 }
 0x3a4   :  { %11972 = vst [vmem:[#allocation29_spill] sm:$0xff] %v7732_v39  ;;  %v7794_v59 = vld [vmem:[#allocation2 + $0x191] sm:$0xff]  ;;  %v7796_v26 = vld [vmem:[#allocation2 + $0x1a9] sm:$0xff] }
 0x3a5   :  { %11973 = vst [vmem:[#allocation178_spill] sm:$0xff] %v7734_v49  ;;  %v7805_v48 = vld [vmem:[#allocation2 + $0x1d1] sm:$0xff]  ;;  %v12012_v25 = vld [vmem:[#allocation71_spill] sm:$0xff] }
 0x3a6   :  { %11975 = vst [vmem:[#allocation30_spill] sm:$0xff] %v7738_v14  ;;  %v11988_v14 = vld [vmem:[#allocation47_spill] sm:$0xff]  ;;  %v7810_v44 = vmul.f32 %v12012_v25, %v2124_v42  ;;  %v7813_v46 = vmul.f32 %v12012_v25, %v2125_v7  ;;  %v7830_v42 = vmul.f32 %v12012_v25, %v2128_v20  ;;  %v7834_v7 = vmul.f32 %v12012_v25, %v7732_v39 }
 0x3a7   :  { %11977 = vst [vmem:[#allocation180_spill] sm:$0xff] %v7742_v13  ;;  %v7762_v35 = vadd.f32 %v11988_v14, %v1914_v41  ;;  %v7776_v13 = vld [vmem:[#allocation2 + $0x169] sm:$0xff]  ;;  %v7782_v41 = vadd.f32 %v7495_v4, %v1918_v38  ;;  %v7790_v14 = vld [vmem:[#allocation2 + $0x171] sm:$0xff]  ;;  %v7852_v20 = vmul.f32 %v12012_v25, %v7752_v58  ;;  %v7856_v39 = vmul.f32 %v12012_v25, %v7754_v2 }
 0x3a8   :  { %11979 = vst [vmem:[#allocation31_spill] sm:$0xff] %v7745_v1  ;;  %v7774_v1 = vld [vmem:[#allocation2 + $0x151] sm:$0xff]  ;;  %v7803_v4 = vld [vmem:[#allocation2 + $0x1c9] sm:$0xff]  ;;  %v2227_v31 = vmul.f32 %v12012_v25, %v7888_v10 }
 0x3a9   :  { %11981 = vst [vmem:[#allocation182_spill] sm:$0xff] %v7748_v15  ;;  %v7772_v15 = vld [vmem:[#allocation2 + $0x149] sm:$0xff] }
 0x3aa   :  { %11982 = vst [vmem:[#allocation32_spill] sm:$0xff] %v7750_v62  ;;  %v7807_v38 = vld [vmem:[#allocation2 + $0x1e9] sm:$0xff] }
 0x3ab   :  { %11983 = vst [vmem:[#allocation33_spill] sm:$0xff] %v7752_v58  ;;  %v7874_v58 = vmul.f32 %v12012_v25, %v7772_v15 }
 0x3ac   :  { %11984 = vst [vmem:[#allocation35_spill] sm:$0xff] %v7754_v2  ;;  %v7878_v2 = vmul.f32 %v12012_v25, %v7774_v1 }
 0x3ad   :  { %11985 = vst [vmem:[#allocation37_spill] sm:$0xff] %v7756_v45 }
 0x3ae   :  { %11987 = vst [vmem:[#allocation39_spill] sm:$0xff] %v7759_v43  ;;  %v7884_v43 = vld [vmem:[#allocation2 + $0x2f1] sm:$0xff] }
 0x3af   :  { %11989 = vst [vmem:[#allocation41_spill] sm:$0xff] %v7762_v35  ;;  %v7866_v35 = vld [vmem:[#allocation2 + $0x2e9] sm:$0xff] }
 0x3b0   :  { %11991 = vst [vmem:[#allocation44_spill] sm:$0xff] %v7765_v3  ;;  %v7864_v3 = vld [vmem:[#allocation2 + $0x2d1] sm:$0xff] }
 0x3b1   :  { %11993 = vst [vmem:[#allocation47_spill] sm:$0xff] %v7768_v0  ;;  %v7862_v0 = vld [vmem:[#allocation2 + $0x2c9] sm:$0xff] }
 0x3b2   :  { %11994 = vst [vmem:[#allocation50_spill] sm:$0xff] %v7770_v52 }
 0x3b3   :  { %11995 = vst [vmem:[#allocation53_spill] sm:$0xff] %v7772_v15  ;;  %v7896_v15 = vmul.f32 %v12012_v25, %v7792_v30 }
 0x3b4   :  { %11996 = vst [vmem:[#allocation190_spill] sm:$0xff] %v7774_v1  ;;  %v7900_v1 = vmul.f32 %v12012_v25, %v7794_v59 }
 0x3b5   :  { %11997 = vst [vmem:[#allocation191_spill] sm:$0xff] %v7776_v13 }
 0x3b6   :  { %11999 = vst [vmem:[#allocation56_spill] sm:$0xff] %v7779_v29  ;;  %v7844_v29 = vld [vmem:[#allocation2 + $0x2b1] sm:$0xff] }
 0x3b7   :  { %12000 = vst [vmem:[#allocation192_spill] sm:$0xff] %v7782_v41  ;;  %v7827_v41 = vmul.f32 %v12012_v25, %v2127_v55  ;;  %v7848_v55 = vmul.f32 %v12012_v25, %v7750_v62  ;;  %v7870_v62 = vmul.f32 %v12012_v25, %v7770_v52  ;;  %v7892_v52 = vmul.f32 %v12012_v25, %v7790_v14 }
 0x3b8   :  { %12001 = vst [vmem:[#allocation193_spill] sm:$0xff] %v7785_v11  ;;  %v7818_v11 = vld [vmem:[#allocation2 + $0x1f1] sm:$0xff] }
 0x3b9   :  { %12002 = vst [vmem:[#allocation194_spill] sm:$0xff] %v7788_v37  ;;  %v7816_v37 = vmul.f32 %v12012_v25, %v2126_v53  ;;  %v7838_v53 = vmul.f32 %v12012_v25, %v7734_v49  ;;  %v7860_v49 = vmul.f32 %v12012_v25, %v7756_v45  ;;  %v7882_v45 = vmul.f32 %v12012_v25, %v7776_v13 }
 0x3ba   :  { %12003 = vst [vmem:[#allocation195_spill] sm:$0xff] %v7790_v14  ;;  %v7904_v13 = vmul.f32 %v12012_v25, %v7796_v26  ;;  %v7914_v14 = vmul.f32 %v12012_v25, %v7801_v28 }
 0x3bb   :  { %12004 = vst [vmem:[#allocation196_spill] sm:$0xff] %v7792_v30  ;;  %v7918_v30 = vmul.f32 %v12012_v25, %v7803_v4 }
 0x3bc   :  { %12005 = vst [vmem:[#allocation197_spill] sm:$0xff] %v7794_v59  ;;  %v7922_v59 = vmul.f32 %v12012_v25, %v7805_v48 }
 0x3bd   :  { %12006 = vst [vmem:[#allocation198_spill] sm:$0xff] %v7796_v26  ;;  %v7926_v26 = vmul.f32 %v12012_v25, %v7807_v38 }
 0x3be   :  { %12007 = vst [vmem:[#allocation199_spill] sm:$0xff] %v7799_v32  ;;  %v7824_v32 = vld [vmem:[#allocation2 + $0x289] sm:$0xff] }
 0x3bf   :  { %12008 = vst [vmem:[#allocation200_spill] sm:$0xff] %v7801_v28  ;;  %v7936_v28 = vmul.f32 %v12012_v25, %v7818_v11 }
 0x3c0   :  { %12009 = vst [vmem:[#allocation201_spill] sm:$0xff] %v7803_v4  ;;  %v7940_v4 = vmul.f32 %v12012_v25, %v7820_v63 }
 0x3c1   :  { %12010 = vst [vmem:[#allocation202_spill] sm:$0xff] %v7805_v48  ;;  %v7944_v48 = vmul.f32 %v12012_v25, %v7822_v56 }
 0x3c2   :  { %12011 = vst [vmem:[#allocation203_spill] sm:$0xff] %v7807_v38  ;;  %v7948_v38 = vmul.f32 %v12012_v25, %v7824_v32 }
 0x3c3   :  { %12013 = vst [vmem:[#allocation71_spill] sm:$0xff] %v7810_v44  ;;  %v7842_v44 = vld [vmem:[#allocation2 + $0x2a9] sm:$0xff] }
 0x3c4   :  { %12014 = vst [vmem:[#allocation204_spill] sm:$0xff] %v7813_v46  ;;  %v7840_v46 = vld [vmem:[#allocation2 + $0x291] sm:$0xff] }
 0x3c5   :  { %12015 = vst [vmem:[#allocation205_spill] sm:$0xff] %v7818_v11  ;;  %v2219_v11 = vmul.f32 %v12012_v25, %v7840_v46 }
 0x3c6   :  { %12016 = vst [vmem:[#allocation206_spill] sm:$0xff] %v7820_v63  ;;  %v2220_v63 = vmul.f32 %v12012_v25, %v7842_v44 }
 0x3c7   :  { %12017 = vst [vmem:[#allocation207_spill] sm:$0xff] %v7822_v56  ;;  %v2221_v56 = vmul.f32 %v12012_v25, %v7844_v29 }
 0x3c8   :  { %12018 = vst [vmem:[#allocation208_spill] sm:$0xff] %v7824_v32  ;;  %v7964_v32 = vld [vmem:[#allocation2 + $0x3b1] sm:$0xff] }
 0x3c9   :  { %12019 = vst [vmem:[#allocation209_spill] sm:$0xff] %v7840_v46  ;;  %v2224_v46 = vmul.f32 %v12012_v25, %v7866_v35 }
 0x3ca   :  { %12020 = vst [vmem:[#allocation210_spill] sm:$0xff] %v7842_v44  ;;  %v2225_v44 = vmul.f32 %v12012_v25, %v7884_v43 }
 0x3cb   :  { %12021 = vst [vmem:[#allocation211_spill] sm:$0xff] %v7844_v29  ;;  %v2226_v29 = vmul.f32 %v12012_v25, %v7886_v27 }
 0x3cc   :  { %12022 = vst [vmem:[#allocation212_spill] sm:$0xff] %v7862_v0 }
 0x3cd   :  { %12023 = vst [vmem:[#allocation213_spill] sm:$0xff] %v7864_v3 }
 0x3ce   :  { %12024 = vst [vmem:[#allocation214_spill] sm:$0xff] %v7866_v35  ;;  %v2229_v35 = vmul.f32 %v12012_v25, %v7908_v60 }
 0x3cf   :  { %12025 = vst [vmem:[#allocation215_spill] sm:$0xff] %v7884_v43  ;;  %v2230_v43 = vmul.f32 %v12012_v25, %v7910_v5 }
 0x3d0   :  { %12026 = vst [vmem:[#allocation216_spill] sm:$0xff] %v7886_v27  ;;  %v7994_v27 = vld [vmem:[#allocation2 + $0x429] sm:$0xff] }
 0x3d1   :  { %12027 = vst [vmem:[#allocation217_spill] sm:$0xff] %v7888_v10  ;;  %v2232_v10 = vmul.f32 %v12012_v25, %v7930_v33 }
 0x3d2   :  { %12028 = vst [vmem:[#allocation218_spill] sm:$0xff] %v7896_v15  ;;  %v2237_v15 = vmul.f32 %v12012_v25, %v7964_v32 }
 0x3d3   :  { %12029 = vst [vmem:[#allocation219_spill] sm:$0xff] %v7900_v1  ;;  %v2231_v1 = vmul.f32 %v12012_v25, %v7928_v17 }
 0x3d4   :  { %12030 = vst [vmem:[#allocation220_spill] sm:$0xff] %v7904_v13  ;;  %v7992_v13 = vld [vmem:[#allocation2 + $0x411] sm:$0xff] }
 0x3d5   :  { %12031 = vst [vmem:[#allocation221_spill] sm:$0xff] %v7906_v36 }
 0x3d6   :  { %12032 = vst [vmem:[#allocation222_spill] sm:$0xff] %v7908_v60 }
 0x3d7   :  { %12033 = vst [vmem:[#allocation223_spill] sm:$0xff] %v7910_v5 }
 0x3d8   :  { %12034 = vst [vmem:[#allocation224_spill] sm:$0xff] %v7914_v14  ;;  %v7982_v14 = vld [vmem:[#allocation2 + $0x409] sm:$0xff] }
 0x3d9   :  { %12035 = vst [vmem:[#allocation225_spill] sm:$0xff] %v7918_v30  ;;  %v7954_v30 = vld [vmem:[#allocation2 + $0x3a9] sm:$0xff] }
 0x3da   :  { %12036 = vst [vmem:[#allocation226_spill] sm:$0xff] %v7922_v59  ;;  %v7952_v59 = vld [vmem:[#allocation2 + $0x391] sm:$0xff]  ;;  %v2236_v12 = vmul.f32 %v12012_v25, %v7954_v30 }
 0x3db   :  { %12037 = vst [vmem:[#allocation227_spill] sm:$0xff] %v7926_v26  ;;  %v7950_v26 = vld [vmem:[#allocation2 + $0x389] sm:$0xff]  ;;  %v2235_v5 = vmul.f32 %v12012_v25, %v7952_v59 }
 0x3dc   :  { %12038 = vst [vmem:[#allocation228_spill] sm:$0xff] %v7928_v17  ;;  %v2234_v60 = vmul.f32 %v12012_v25, %v7950_v26 }
 0x3dd   :  { %12039 = vst [vmem:[#allocation229_spill] sm:$0xff] %v7930_v33 }
 0x3de   :  { %12040 = vst [vmem:[#allocation230_spill] sm:$0xff] %v7932_v6 }
 0x3df   :  { %12041 = vst [vmem:[#allocation231_spill] sm:$0xff] %v7936_v28  ;;  %v2223_v28 = vmul.f32 %v12012_v25, %v7864_v3  ;;  %v2228_v3 = vmul.f32 %v12012_v25, %v7906_v36  ;;  %v2233_v36 = vmul.f32 %v12012_v25, %v7932_v6  ;;  %v2240_v6 = vmul.f32 %v12012_v25, %v7978_v54 }
 0x3e0   :  { %12042 = vst [vmem:[#allocation232_spill] sm:$0xff] %v7940_v4  ;;  %v7968_v4 = vld [vmem:[#allocation2 + $0x3d1] sm:$0xff] }
 0x3e1   :  { %12043 = vst [vmem:[#allocation233_spill] sm:$0xff] %v7944_v48  ;;  %v2222_v48 = vmul.f32 %v12012_v25, %v7862_v0  ;;  %v7980_v0 = vld [vmem:[#allocation2 + $0x3f1] sm:$0xff]  ;;  %v2239_v33 = vmul.f32 %v12012_v25, %v7968_v4 }
 0x3e2   :  { %12044 = vst [vmem:[#allocation234_spill] sm:$0xff] %v7948_v38  ;;  %v7966_v38 = vld [vmem:[#allocation2 + $0x3c9] sm:$0xff] }
 0x3e3   :  { %12045 = vst [vmem:[#allocation235_spill] sm:$0xff] %v7950_v26  ;;  %v2238_v17 = vmul.f32 %v12012_v25, %v7966_v38  ;;  %v2241_v26 = vmul.f32 %v12012_v25, %v7980_v0 }
 0x3e4   :  { %12046 = vst [vmem:[#allocation236_spill] sm:$0xff] %v7952_v59  ;;  %v2242_v59 = vmul.f32 %v12012_v25, %v7982_v14 }
 0x3e5   :  { %12047 = vst [vmem:[#allocation237_spill] sm:$0xff] %v7954_v30  ;;  %v2243_v30 = vmul.f32 %v12012_v25, %v7992_v13 }
 0x3e6   :  { %12048 = vst [vmem:[#allocation238_spill] sm:$0xff] %v7964_v32  ;;  %v2244_v32 = vmul.f32 %v12012_v25, %v7994_v27 }
 0x3e7   :  { %12049 = vst [vmem:[#allocation239_spill] sm:$0xff] %v7966_v38  ;;  %v2245_v38 = vmul.f32 %v12012_v25, %v7996_v19  ;;  %v12078_v25 = vld [vmem:[#allocation225_spill] sm:$0xff] }
 0x3e8   :  { %12050 = vst [vmem:[#allocation240_spill] sm:$0xff] %v7968_v4  ;;  %v8030_v4 = vadd.f32 %v7816_v37, %v7534_v24  ;;  %v8050_v24 = vadd.f32 %v7848_v55, %v7560_v34  ;;  %v8070_v34 = vadd.f32 %v7874_v58, %v7588_v16  ;;  %v12071_v58 = vld [vmem:[#allocation146_spill] sm:$0xff]  ;;  %v12075_v37 = vld [vmem:[#allocation224_spill] sm:$0xff] }
 0x3e9   :  { %12051 = vst [vmem:[#allocation241_spill] sm:$0xff] %v7978_v54  ;;  %v8034_v54 = vadd.f32 %v7827_v41, %v7538_v40  ;;  %v8054_v40 = vadd.f32 %v7852_v20, %v7568_v21  ;;  %v8074_v21 = vadd.f32 %v7878_v2, %v7592_v18  ;;  %v12072_v41 = vld [vmem:[#allocation220_spill] sm:$0xff]  ;;  %v12074_v18 = vld [vmem:[#allocation46_spill] sm:$0xff] }
 0x3ea   :  { %12052 = vst [vmem:[#allocation242_spill] sm:$0xff] %v7980_v0  ;;  %v8094_v2 = vadd.f32 %v12072_v41, %v12071_v58  ;;  %v12086_v20 = vld [vmem:[#allocation186_spill] sm:$0xff]  ;;  %v12090_v58 = vld [vmem:[#allocation232_spill] sm:$0xff] }
 0x3eb   :  { %12053 = vst [vmem:[#allocation243_spill] sm:$0xff] %v7982_v14  ;;  %v8038_v14 = vadd.f32 %v7830_v42, %v7542_v23  ;;  %v8058_v23 = vadd.f32 %v7856_v39, %v7572_v61  ;;  %v8078_v39 = vadd.f32 %v7882_v45, %v7600_v22  ;;  %v8082_v61 = vadd.f32 %v7892_v52, %v7604_v57  ;;  %v12077_v45 = vld [vmem:[#allocation64_spill] sm:$0xff]  ;;  %v12080_v52 = vld [vmem:[#allocation67_spill] sm:$0xff]  ;;  %v12081_v42 = vld [vmem:[#allocation226_spill] sm:$0xff] }
 0x3ec   :  { %12054 = vst [vmem:[#allocation244_spill] sm:$0xff] %v7992_v13  ;;  %v8042_v13 = vadd.f32 %v7834_v7, %v7552_v50  ;;  %v8062_v50 = vadd.f32 %v7860_v49, %v7576_v51  ;;  %v12066_v51 = vld [vmem:[#allocation218_spill] sm:$0xff]  ;;  %v12068_v49 = vld [vmem:[#allocation43_spill] sm:$0xff]  ;;  %v8098_v22 = vadd.f32 %v12075_v37, %v12074_v18  ;;  %v8102_v57 = vadd.f32 %v12078_v25, %v12077_v45  ;;  %v12083_v7 = vld [vmem:[#allocation149_spill] sm:$0xff] }
 0x3ed   :  { %12055 = vst [vmem:[#allocation245_spill] sm:$0xff] %v7994_v27  ;;  %v8046_v27 = vadd.f32 %v7838_v53, %v7556_v47  ;;  %v8066_v47 = vadd.f32 %v7870_v62, %v7584_v9  ;;  %v8086_v9 = vadd.f32 %v12066_v51, %v7608_v8  ;;  %v12069_v62 = vld [vmem:[#allocation219_spill] sm:$0xff]  ;;  %v8106_v8 = vadd.f32 %v12081_v42, %v12080_v52  ;;  %v12093_v37 = vld [vmem:[#allocation233_spill] sm:$0xff]  ;;  %v12095_v25 = vld [vmem:[#allocation154_spill] sm:$0xff] }
 0x3ee   :  { %12056 = vst [vmem:[#allocation246_spill] sm:$0xff] %v7996_v19  ;;  %v8090_v16 = vadd.f32 %v12069_v62, %v12068_v49  ;;  %v12084_v53 = vld [vmem:[#allocation227_spill] sm:$0xff]  ;;  %v12089_v62 = vld [vmem:[#allocation153_spill] sm:$0xff]  ;;  %v12096_v19 = vld [vmem:[#allocation234_spill] sm:$0xff] }
 0x3ef   :  { %12057 = vst [vmem:[#allocation247_spill] sm:$0xff] %v8050_v24  ;;  %v8110_v55 = vadd.f32 %v12084_v53, %v12083_v7  ;;  %v12087_v51 = vld [vmem:[#allocation231_spill] sm:$0xff]  ;;  %v8118_v41 = vadd.f32 %v12090_v58, %v12089_v62  ;;  %v8126_v52 = vadd.f32 %v12096_v19, %v12095_v25  ;;  %v12098_v42 = vld [vmem:[#allocation156_spill] sm:$0xff]  ;;  %v12100_v7 = vld [vmem:[#allocation157_spill] sm:$0xff] }
 0x3f0   :  { %12058 = vst [vmem:[#allocation248_spill] sm:$0xff] %v8054_v40  ;;  %v8114_v49 = vadd.f32 %v12087_v51, %v12086_v20  ;;  %v12092_v18 = vld [vmem:[#allocation187_spill] sm:$0xff]  ;;  %v8129_v0 = vadd.f32 %v2219_v11, %v12098_v42  ;;  %v8132_v53 = vadd.f32 %v2220_v63, %v12100_v7  ;;  %v12110_v19 = vld [vmem:[#allocation168_spill] sm:$0xff]  ;;  %v12114_v7 = vld [vmem:[#allocation169_spill] sm:$0xff] }
 0x3f1   :  { %12059 = vst [vmem:[#allocation249_spill] sm:$0xff] %v8058_v23  ;;  %v8122_v45 = vadd.f32 %v12093_v37, %v12092_v18  ;;  %v12102_v20 = vld [vmem:[#allocation159_spill] sm:$0xff]  ;;  %v12108_v18 = vld [vmem:[#allocation165_spill] sm:$0xff]  ;;  %v8147_v25 = vadd.f32 %v2225_v44, %v12110_v19  ;;  %v12124_v19 = vld [vmem:[#allocation176_spill] sm:$0xff] }
 0x3f2   :  { %12060 = vst [vmem:[#allocation250_spill] sm:$0xff] %v8062_v50  ;;  %v8135_v51 = vadd.f32 %v2221_v56, %v12102_v20  ;;  %v12106_v58 = vld [vmem:[#allocation163_spill] sm:$0xff]  ;;  %v8144_v37 = vadd.f32 %v2224_v46, %v12108_v18  ;;  %v8155_v56 = vadd.f32 %v2227_v31, %v12114_v7  ;;  %v12116_v20 = vld [vmem:[#allocation172_spill] sm:$0xff]  ;;  %v12206_v40 = vld [vmem:[#allocation61_spill] sm:$0xff] }
 0x3f3   :  { %12061 = vst [vmem:[#allocation251_spill] sm:$0xff] %v8066_v47  ;;  %v12112_v11 = vld [vmem:[#allocation167_spill] sm:$0xff]  ;;  %v12122_v18 = vld [vmem:[#allocation28_spill] sm:$0xff]  ;;  %v12201_v47 = vld [vmem:[#allocation185_spill] sm:$0xff] }
 0x3f4   :  { %12062 = vst [vmem:[#allocation252_spill] sm:$0xff] %v8070_v34  ;;  %v8150_v42 = vadd.f32 %v2226_v29, %v12112_v11  ;;  %v8152_v63 = vld [vmem:[#allocation9 + $0x3] ss:$0 sm:$0xff]  ;;  %v8167_v44 = vadd.f32 %v2231_v1, %v12122_v18  ;;  %v8170_v29 = vadd.f32 %v2232_v10, %v12124_v19  ;;  %v12126_v11 = vld [vmem:[#allocation30_spill] sm:$0xff]  ;;  %v12128_v31 = vld [vmem:[#allocation180_spill] sm:$0xff] }
 0x3f5   :  { %12063 = vst [vmem:[#allocation253_spill] sm:$0xff] %v8074_v21  ;;  %v8176_v7 = vadd.f32 %v2234_v60, %v12128_v31  ;;  %v12136_v1 = vld [vmem:[#allocation41_spill] sm:$0xff]  ;;  %v12138_v10 = vld [vmem:[#allocation44_spill] sm:$0xff]  ;;  %v12199_v21 = vld [vmem:[#allocation183_spill] sm:$0xff]  ;;  %v8315_v50 = vmul.f32 %v8152_v63, %v12201_v47 }
 0x3f6   :  { %12064 = vst [vmem:[#allocation254_spill] sm:$0xff] %v8078_v39  ;;  %v8188_v18 = vadd.f32 %v2238_v17, %v12136_v1  ;;  %v8191_v19 = vadd.f32 %v2239_v33, %v12138_v10  ;;  %v12142_v60 = vld [vmem:[#allocation56_spill] sm:$0xff]  ;;  %v12150_v17 = vld [vmem:[#allocation199_spill] sm:$0xff] }
 0x3f7   :  { %12065 = vst [vmem:[#allocation255_spill] sm:$0xff] %v8082_v61  ;;  %v8197_v31 = vadd.f32 %v2241_v26, %v12142_v60  ;;  %v8209_v1 = vadd.f32 %v2245_v38, %v12150_v17  ;;  %v12152_v33 = vld [vmem:[#allocation96_spill] sm:$0xff]  ;;  %v12157_v60 = vld [vmem:[#allocation83_spill] sm:$0xff] }
 0x3f8   :  { %12067 = vst [vmem:[#allocation218_spill] sm:$0xff] %v8086_v9  ;;  %v8213_v10 = vmul.f32 %v8152_v63, %v12152_v33  ;;  %v12161_v33 = vld [vmem:[#allocation34_spill] sm:$0xff]  ;;  %v12196_v9 = vld [vmem:[#allocation181_spill] sm:$0xff]  ;;  %v12197_v61 = vld [vmem:[#allocation59_spill] sm:$0xff] }
 0x3f9   :  { %12070 = vst [vmem:[#allocation43_spill] sm:$0xff] %v8090_v16  ;;  %v12195_v16 = vld [vmem:[#allocation179_spill] sm:$0xff]  ;;  %v12198_v39 = vld [vmem:[#allocation68_spill] sm:$0xff] }
 0x3fa   :  { %12073 = vst [vmem:[#allocation219_spill] sm:$0xff] %v8094_v2  ;;  %v2372_v2 = vld [vmem:[#allocation2 + $0x447] sm:$0xff] }
 0x3fb   :  { %12076 = vst [vmem:[#allocation146_spill] sm:$0xff] %v8098_v22  ;;  %v12194_v22 = vld [vmem:[#allocation177_spill] sm:$0xff]  ;;  %v12200_v34 = vld [vmem:[#allocation184_spill] sm:$0xff] }
 0x3fc   :  { %12079 = vst [vmem:[#allocation220_spill] sm:$0xff] %v8102_v57  ;;  %v12193_v57 = vld [vmem:[#allocation175_spill] sm:$0xff] }
 0x3fd   :  { %12082 = vst [vmem:[#allocation46_spill] sm:$0xff] %v8106_v8  ;;  %v12192_v8 = vld [vmem:[#allocation173_spill] sm:$0xff] }
 0x3fe   :  { %12085 = vst [vmem:[#allocation224_spill] sm:$0xff] %v8110_v55  ;;  %v12191_v55 = vld [vmem:[#allocation171_spill] sm:$0xff] }
 0x3ff   :  { %12088 = vst [vmem:[#allocation64_spill] sm:$0xff] %v8114_v49  ;;  %v12104_v49 = vld [vmem:[#allocation161_spill] sm:$0xff] }
 0x400   :  { %12091 = vst [vmem:[#allocation225_spill] sm:$0xff] %v8118_v41  ;;  %v8138_v62 = vadd.f32 %v2222_v48, %v12104_v49  ;;  %v8141_v41 = vadd.f32 %v2223_v28, %v12106_v58  ;;  %v8158_v48 = vadd.f32 %v2228_v3, %v12116_v20  ;;  %v12118_v49 = vld [vmem:[#allocation170_spill] sm:$0xff]  ;;  %v12130_v3 = vld [vmem:[#allocation31_spill] sm:$0xff] }
 0x401   :  { %12094 = vst [vmem:[#allocation67_spill] sm:$0xff] %v8122_v45  ;;  %v8161_v28 = vadd.f32 %v2229_v35, %v12118_v49  ;;  %v12120_v58 = vld [vmem:[#allocation174_spill] sm:$0xff]  ;;  %v8179_v20 = vadd.f32 %v2235_v5, %v12130_v3  ;;  %v12144_v5 = vld [vmem:[#allocation192_spill] sm:$0xff] }
 0x402   :  { %12097 = vst [vmem:[#allocation226_spill] sm:$0xff] %v8126_v52  ;;  %v8164_v46 = vadd.f32 %v2230_v43, %v12120_v58  ;;  %v12132_v35 = vld [vmem:[#allocation182_spill] sm:$0xff]  ;;  %v12134_v43 = vld [vmem:[#allocation39_spill] sm:$0xff]  ;;  %v8200_v3 = vadd.f32 %v2242_v59, %v12144_v5  ;;  %v12158_v5 = vld [vmem:[#allocation89_spill] sm:$0xff] }
 0x403   :  { %12099 = vst [vmem:[#allocation149_spill] sm:$0xff] %v8129_v0  ;;  %v8182_v49 = vadd.f32 %v2236_v12, %v12132_v35  ;;  %v8185_v58 = vadd.f32 %v2237_v15, %v12134_v43  ;;  %v12146_v12 = vld [vmem:[#allocation193_spill] sm:$0xff]  ;;  %v12148_v15 = vld [vmem:[#allocation194_spill] sm:$0xff]  ;;  %v12189_v52 = vld [vmem:[#allocation164_spill] sm:$0xff] }
 0x404   :  { %12101 = vst [vmem:[#allocation227_spill] sm:$0xff] %v8132_v53  ;;  %v8203_v35 = vadd.f32 %v2243_v30, %v12146_v12  ;;  %v8206_v43 = vadd.f32 %v2244_v32, %v12148_v15  ;;  %v2387_v30 = vmul.f32 %v8152_v63, %v12157_v60  ;;  %v2388_v32 = vmul.f32 %v8152_v63, %v12158_v5  ;;  %v12159_v12 = vld [vmem:[#allocation104_spill] sm:$0xff]  ;;  %v12160_v15 = vld [vmem:[#allocation105_spill] sm:$0xff]  ;;  %v12165_v60 = vld [vmem:[#allocation38_spill] sm:$0xff] }
 0x405   :  { %12103 = vst [vmem:[#allocation186_spill] sm:$0xff] %v8135_v51  ;;  %v2389_v38 = vmul.f32 %v8152_v63, %v12159_v12  ;;  %v2390_v17 = vmul.f32 %v8152_v63, %v12160_v15  ;;  %v12166_v5 = vld [vmem:[#allocation49_spill] sm:$0xff]  ;;  %v12167_v12 = vld [vmem:[#allocation52_spill] sm:$0xff]  ;;  %v12168_v15 = vld [vmem:[#allocation55_spill] sm:$0xff] }
 0x406   :  { %12105 = vst [vmem:[#allocation231_spill] sm:$0xff] %v8138_v62  ;;  %v12185_v62 = vld [vmem:[#allocation155_spill] sm:$0xff]  ;;  %v12186_v51 = vld [vmem:[#allocation158_spill] sm:$0xff]  ;;  %v12187_v53 = vld [vmem:[#allocation160_spill] sm:$0xff] }
 0x407   :  { %12107 = vst [vmem:[#allocation153_spill] sm:$0xff] %v8141_v41  ;;  %v12184_v41 = vld [vmem:[#allocation152_spill] sm:$0xff]  ;;  %v12188_v0 = vld [vmem:[#allocation162_spill] sm:$0xff] }
 0x408   :  { %12109 = vst [vmem:[#allocation232_spill] sm:$0xff] %v8144_v37  ;;  %v12183_v37 = vld [vmem:[#allocation150_spill] sm:$0xff] }
 0x409   :  { %12111 = vst [vmem:[#allocation187_spill] sm:$0xff] %v8147_v25  ;;  %v12182_v25 = vld [vmem:[#allocation148_spill] sm:$0xff]  ;;  %v12190_v45 = vld [vmem:[#allocation166_spill] sm:$0xff] }
 0x40a   :  { %12113 = vst [vmem:[#allocation233_spill] sm:$0xff] %v8150_v42  ;;  %v8173_v42 = vadd.f32 %v2233_v36, %v12126_v11  ;;  %v12140_v36 = vld [vmem:[#allocation47_spill] sm:$0xff] }
 0x40b   :  { %12115 = vst [vmem:[#allocation154_spill] sm:$0xff] %v8155_v56  ;;  %v8194_v11 = vadd.f32 %v2240_v6, %v12140_v36  ;;  %v12154_v6 = vld [vmem:[#allocation99_spill] sm:$0xff]  ;;  %v12156_v36 = vld [vmem:[#allocation101_spill] sm:$0xff] }
 0x40c   :  { %12117 = vst [vmem:[#allocation234_spill] sm:$0xff] %v8158_v48  ;;  %v8217_v26 = vmul.f32 %v8152_v63, %v12154_v6  ;;  %v2386_v59 = vmul.f32 %v8152_v63, %v12156_v36  ;;  %v12162_v6 = vld [vmem:[#allocation36_spill] sm:$0xff]  ;;  %v12181_v56 = vld [vmem:[#allocation147_spill] sm:$0xff] }
 0x40d   :  { %12119 = vst [vmem:[#allocation156_spill] sm:$0xff] %v8161_v28  ;;  %v8235_v36 = vld [vmem:[#allocation2 + $0x20f] sm:$0xff]  ;;  %v12179_v28 = vld [vmem:[#allocation143_spill] sm:$0xff] }
 0x40e   :  { %12121 = vst [vmem:[#allocation157_spill] sm:$0xff] %v8164_v46  ;;  %v12178_v46 = vld [vmem:[#allocation142_spill] sm:$0xff]  ;;  %v12180_v48 = vld [vmem:[#allocation144_spill] sm:$0xff] }
 0x40f   :  { %12123 = vst [vmem:[#allocation159_spill] sm:$0xff] %v8167_v44  ;;  %v12177_v44 = vld [vmem:[#allocation141_spill] sm:$0xff] }
 0x410   :  { %12125 = vst [vmem:[#allocation161_spill] sm:$0xff] %v8170_v29  ;;  %v12176_v29 = vld [vmem:[#allocation140_spill] sm:$0xff] }
 0x411   :  { %12127 = vst [vmem:[#allocation163_spill] sm:$0xff] %v8173_v42  ;;  %v12175_v42 = vld [vmem:[#allocation139_spill] sm:$0xff] }
 0x412   :  { %12129 = vst [vmem:[#allocation165_spill] sm:$0xff] %v8176_v7  ;;  %v12174_v7 = vld [vmem:[#allocation138_spill] sm:$0xff] }
 0x413   :  { %12131 = vst [vmem:[#allocation168_spill] sm:$0xff] %v8179_v20  ;;  %v12173_v20 = vld [vmem:[#allocation137_spill] sm:$0xff] }
 0x414   :  { %12133 = vst [vmem:[#allocation167_spill] sm:$0xff] %v8182_v49  ;;  %v12172_v49 = vld [vmem:[#allocation136_spill] sm:$0xff] }
 0x415   :  { %12135 = vst [vmem:[#allocation169_spill] sm:$0xff] %v8185_v58 }
 0x416   :  { %12137 = vst [vmem:[#allocation172_spill] sm:$0xff] %v8188_v18  ;;  %v12171_v18 = vld [vmem:[#allocation134_spill] sm:$0xff] }
 0x417   :  { %12139 = vst [vmem:[#allocation170_spill] sm:$0xff] %v8191_v19  ;;  %v2399_v58 = vmul.f32 %v8152_v63, %v12171_v18 }
 0x418   :  { %12141 = vst [vmem:[#allocation174_spill] sm:$0xff] %v8194_v11 }
 0x419   :  { %12143 = vst [vmem:[#allocation28_spill] sm:$0xff] %v8197_v31  ;;  %v2396_v31 = vmul.f32 %v8152_v63, %v12168_v15  ;;  %v2403_v15 = vmul.f32 %v8152_v63, %v12175_v42  ;;  %v2410_v42 = vmul.f32 %v8152_v63, %v12180_v48  ;;  %v2417_v48 = vmul.f32 %v8152_v63, %v12187_v53 }
 0x41a   :  { %12145 = vst [vmem:[#allocation176_spill] sm:$0xff] %v8200_v3  ;;  %v2395_v3 = vmul.f32 %v8152_v63, %v12167_v12  ;;  %v2402_v12 = vmul.f32 %v8152_v63, %v12174_v7  ;;  %v2409_v7 = vmul.f32 %v8152_v63, %v12179_v28  ;;  %v2416_v28 = vmul.f32 %v8152_v63, %v12186_v51 }
 0x41b   :  { %12147 = vst [vmem:[#allocation30_spill] sm:$0xff] %v8203_v35  ;;  %v2394_v35 = vmul.f32 %v8152_v63, %v12166_v5  ;;  %v2401_v5 = vmul.f32 %v8152_v63, %v12173_v20  ;;  %v2408_v20 = vmul.f32 %v8152_v63, %v12178_v46  ;;  %v2415_v46 = vmul.f32 %v8152_v63, %v12185_v62 }
 0x41c   :  { %12149 = vst [vmem:[#allocation180_spill] sm:$0xff] %v8206_v43  ;;  %v2393_v43 = vmul.f32 %v8152_v63, %v12165_v60  ;;  %v2400_v60 = vmul.f32 %v8152_v63, %v12172_v49  ;;  %v2407_v49 = vmul.f32 %v8152_v63, %v8235_v36  ;;  %v2422_v62 = vmul.f32 %v8152_v63, %v12192_v8 }
 0x41d   :  { %12151 = vst [vmem:[#allocation31_spill] sm:$0xff] %v8209_v1  ;;  %v8233_v1 = vld [vmem:[#allocation2 + $0x207] sm:$0xff]  ;;  %v2423_v51 = vmul.f32 %v8152_v63, %v12193_v57  ;;  %v2424_v53 = vmul.f32 %v8152_v63, %v12194_v22  ;;  %v2428_v8 = vmul.f32 %v8152_v63, %v12198_v39  ;;  %v2429_v57 = vmul.f32 %v8152_v63, %v12199_v21 }
 0x41e   :  { %12153 = vst [vmem:[#allocation182_spill] sm:$0xff] %v8213_v10  ;;  %v2391_v10 = vmul.f32 %v8152_v63, %v12161_v33  ;;  %v12169_v33 = vld [vmem:[#allocation70_spill] sm:$0xff]  ;;  %v2406_v18 = vmul.f32 %v8152_v63, %v8233_v1  ;;  %v2430_v22 = vmul.f32 %v8152_v63, %v12200_v34  ;;  %v8327_v39 = vmul.f32 %v8152_v63, %v12206_v40  ;;  %v12207_v21 = vld [vmem:[#allocation151_spill] sm:$0xff]  ;;  %v12209_v34 = vld [vmem:[#allocation188_spill] sm:$0xff] }
 0x41f   :  { %12155 = vst [vmem:[#allocation39_spill] sm:$0xff] %v8217_v26  ;;  %v2392_v26 = vmul.f32 %v8152_v63, %v12162_v6  ;;  %v2397_v11 = vmul.f32 %v8152_v63, %v12169_v33  ;;  %v12170_v6 = vld [vmem:[#allocation73_spill] sm:$0xff]  ;;  %v2404_v33 = vmul.f32 %v8152_v63, %v12176_v29  ;;  %v2411_v29 = vmul.f32 %v8152_v63, %v12181_v56 }
 0x420   :  { %12163 = vst [vmem:[#allocation41_spill] sm:$0xff] %v8233_v1  ;;  %v2398_v19 = vmul.f32 %v8152_v63, %v12170_v6  ;;  %v2405_v6 = vmul.f32 %v8152_v63, %v12177_v44  ;;  %v2412_v44 = vmul.f32 %v8152_v63, %v12182_v25  ;;  %v2413_v1 = vmul.f32 %v8152_v63, %v12183_v37 }
 0x421   :  { %12164 = vst [vmem:[#allocation44_spill] sm:$0xff] %v8235_v36  ;;  %v2414_v36 = vmul.f32 %v8152_v63, %v12184_v41  ;;  %v2418_v56 = vmul.f32 %v8152_v63, %v12188_v0  ;;  %v2419_v25 = vmul.f32 %v8152_v63, %v12189_v52  ;;  %v2420_v37 = vmul.f32 %v8152_v63, %v12190_v45  ;;  %v2373_v0 = vld [vmem:[#allocation2 + $0x44f] sm:$0xff] }
 0x422   :  { %v2421_v41 = vmul.f32 %v8152_v63, %v12191_v55  ;;  %v2425_v52 = vmul.f32 %v8152_v63, %v12195_v16  ;;  %v2426_v45 = vmul.f32 %v8152_v63, %v12196_v9  ;;  %v2427_v55 = vmul.f32 %v8152_v63, %v12197_v61  ;;  %12202 = vst [vmem:[#allocation47_spill] sm:$0xff] %v8315_v50  ;;  %v12203_v16 = vld [vmem:[#allocation40_spill] sm:$0xff]  ;;  %v12205_v9 = vld [vmem:[#allocation145_spill] sm:$0xff] }
 0x423   :  { %v8319_v23 = vmul.f32 %v8152_v63, %v12203_v16  ;;  %v8323_v61 = vmul.f32 %v8152_v63, %v12205_v9  ;;  %v8331_v24 = vmul.f32 %v8152_v63, %v12207_v21  ;;  %v8335_v47 = vmul.f32 %v8152_v63, %v12209_v34  ;;  %v12210_v50 = vld [vmem:[#allocation189_spill] sm:$0xff] }
 0x424   :  { %v8339_v16 = vmul.f32 %v8152_v63, %v12210_v50  ;;  %v8345_v9 = vmul.f32 %v8152_v63, %v2373_v0  ;;  %v8348_v40 = vadd.f32 %v2386_v59, %v8030_v4  ;;  %v8351_v21 = vadd.f32 %v2387_v30, %v8034_v54  ;;  %v12216_v4 = vld [vmem:[#allocation249_spill] sm:$0xff]  ;;  %v12217_v54 = vld [vmem:[#allocation250_spill] sm:$0xff] }
 0x425   :  { %12204 = vst [vmem:[#allocation56_spill] sm:$0xff] %v8319_v23  ;;  %v8342_v23 = vmul.f32 %v8152_v63, %v2372_v2  ;;  %v8357_v34 = vadd.f32 %v2389_v38, %v8042_v13  ;;  %v8360_v50 = vadd.f32 %v2390_v17, %v8046_v27  ;;  %v12214_v2 = vld [vmem:[#allocation247_spill] sm:$0xff]  ;;  %v12215_v63 = vld [vmem:[#allocation248_spill] sm:$0xff]  ;;  %v8369_v59 = vadd.f32 %v2393_v43, %v12216_v4  ;;  %v12220_v27 = vld [vmem:[#allocation253_spill] sm:$0xff] }
 0x426   :  { %12208 = vst [vmem:[#allocation192_spill] sm:$0xff] %v8331_v24  ;;  %v8354_v24 = vadd.f32 %v2388_v32, %v8038_v14  ;;  %v8366_v0 = vadd.f32 %v2392_v26, %v12215_v63  ;;  %v8372_v30 = vadd.f32 %v2394_v35, %v12217_v54  ;;  %v12218_v14 = vld [vmem:[#allocation251_spill] sm:$0xff]  ;;  %v12219_v13 = vld [vmem:[#allocation252_spill] sm:$0xff]  ;;  %v8381_v17 = vadd.f32 %v2397_v11, %v12220_v27  ;;  %v12223_v43 = vld [vmem:[#allocation218_spill] sm:$0xff] }
 0x427   :  { %12211 = vst [vmem:[#allocation193_spill] sm:$0xff] %v8342_v23  ;;  %v8363_v23 = vadd.f32 %v2391_v10, %v12214_v2  ;;  %v8375_v32 = vadd.f32 %v2395_v3, %v12218_v14  ;;  %v8378_v38 = vadd.f32 %v2396_v31, %v12219_v13  ;;  %v12221_v10 = vld [vmem:[#allocation254_spill] sm:$0xff]  ;;  %v12222_v26 = vld [vmem:[#allocation255_spill] sm:$0xff]  ;;  %v8390_v4 = vadd.f32 %v2400_v60, %v12223_v43  ;;  %v12227_v11 = vld [vmem:[#allocation220_spill] sm:$0xff] }
 0x428   :  { %12212 = vst [vmem:[#allocation194_spill] sm:$0xff] %v8348_v40  ;;  %v8384_v2 = vadd.f32 %v2398_v19, %v12221_v10  ;;  %v8387_v63 = vadd.f32 %v2399_v58, %v12222_v26  ;;  %v12224_v35 = vld [vmem:[#allocation43_spill] sm:$0xff]  ;;  %v12226_v31 = vld [vmem:[#allocation146_spill] sm:$0xff]  ;;  %v8402_v27 = vadd.f32 %v2404_v33, %v12227_v11  ;;  %v12231_v58 = vld [vmem:[#allocation224_spill] sm:$0xff] }
 0x429   :  { %12213 = vst [vmem:[#allocation199_spill] sm:$0xff] %v8351_v21  ;;  %v8393_v54 = vadd.f32 %v2401_v5, %v12224_v35  ;;  %v12225_v3 = vld [vmem:[#allocation219_spill] sm:$0xff]  ;;  %v8399_v13 = vadd.f32 %v2403_v15, %v12226_v31  ;;  %v12229_v19 = vld [vmem:[#allocation46_spill] sm:$0xff]  ;;  %v8408_v26 = vadd.f32 %v2406_v18, %v12231_v58  ;;  %v12233_v60 = vld [vmem:[#allocation64_spill] sm:$0xff] }
 0x42a   :  { %v8396_v14 = vadd.f32 %v2402_v12, %v12225_v3  ;;  %12228 = vst [vmem:[#allocation96_spill] sm:$0xff] %v8402_v27  ;;  %v8405_v10 = vadd.f32 %v2405_v6, %v12229_v19  ;;  %v8411_v43 = vadd.f32 %v2407_v49, %v12233_v60  ;;  %v12235_v5 = vld [vmem:[#allocation88_spill] sm:$0xff]  ;;  %v12237_v12 = vld [vmem:[#allocation91_spill] sm:$0xff]  ;;  %v12239_v15 = vld [vmem:[#allocation225_spill] sm:$0xff] }
 0x42b   :  { %12232 = vst [vmem:[#allocation101_spill] sm:$0xff] %v8408_v26  ;;  %v8414_v35 = vadd.f32 %v2408_v20, %v12235_v5  ;;  %v8417_v3 = vadd.f32 %v2409_v7, %v12237_v12  ;;  %v8420_v31 = vadd.f32 %v2410_v42, %v12239_v15  ;;  %v12241_v33 = vld [vmem:[#allocation67_spill] sm:$0xff]  ;;  %v12243_v6 = vld [vmem:[#allocation226_spill] sm:$0xff]  ;;  %v12245_v18 = vld [vmem:[#allocation149_spill] sm:$0xff] }
 0x42c   :  { %12230 = vst [vmem:[#allocation99_spill] sm:$0xff] %v8405_v10  ;;  %v8423_v11 = vadd.f32 %v2411_v29, %v12241_v33  ;;  %v8426_v19 = vadd.f32 %v2412_v44, %v12243_v6  ;;  %v8429_v58 = vadd.f32 %v2413_v1, %v12245_v18  ;;  %v12247_v49 = vld [vmem:[#allocation227_spill] sm:$0xff]  ;;  %v12250_v5 = vld [vmem:[#allocation186_spill] sm:$0xff]  ;;  %v12254_v15 = vld [vmem:[#allocation153_spill] sm:$0xff] }
 0x42d   :  { %12234 = vst [vmem:[#allocation83_spill] sm:$0xff] %v8411_v43  ;;  %v8432_v60 = vadd.f32 %v2414_v36, %v12247_v49  ;;  %v8434_v20 = vld [vmem:[#allocation9 + $0x4] ss:$0 sm:$0xff]  ;;  %v8437_v7 = vadd.f32 %v2415_v46, %v12250_v5  ;;  %v8443_v29 = vadd.f32 %v2417_v48, %v12254_v15  ;;  %v12256_v33 = vld [vmem:[#allocation232_spill] sm:$0xff]  ;;  %v12260_v18 = vld [vmem:[#allocation233_spill] sm:$0xff] }
 0x42e   :  { %12236 = vst [vmem:[#allocation89_spill] sm:$0xff] %v8414_v35  ;;  %v12252_v12 = vld [vmem:[#allocation231_spill] sm:$0xff]  ;;  %v8446_v44 = vadd.f32 %v2418_v56, %v12256_v33  ;;  %v8452_v36 = vadd.f32 %v2420_v37, %v12260_v18  ;;  %v12262_v49 = vld [vmem:[#allocation154_spill] sm:$0xff]  ;;  %v12266_v48 = vld [vmem:[#allocation156_spill] sm:$0xff] }
 0x42f   :  { %12238 = vst [vmem:[#allocation104_spill] sm:$0xff] %v8417_v3  ;;  %v8440_v42 = vadd.f32 %v2416_v28, %v12252_v12  ;;  %v12258_v6 = vld [vmem:[#allocation187_spill] sm:$0xff]  ;;  %v8455_v21 = vadd.f32 %v2421_v41, %v12262_v49  ;;  %v12264_v46 = vld [vmem:[#allocation234_spill] sm:$0xff]  ;;  %v2515_v12 = vld [vmem:[#allocation2 + $0xd0] sm:$0xff]  ;;  %v8461_v15 = vadd.f32 %v2423_v51, %v12266_v48 }
 0x430   :  { %12240 = vst [vmem:[#allocation105_spill] sm:$0xff] %v8420_v31  ;;  %v8449_v1 = vadd.f32 %v2419_v25, %v12258_v6  ;;  %v8458_v5 = vadd.f32 %v2422_v62, %v12264_v46  ;;  %v2514_v28 = vld [vmem:[#allocation2 + $0xc8] sm:$0xff]  ;;  %v12268_v56 = vld [vmem:[#allocation157_spill] sm:$0xff] }
 0x431   :  { %12242 = vst [vmem:[#allocation34_spill] sm:$0xff] %v8423_v11  ;;  %v2516_v40 = vld [vmem:[#allocation2 + $0xe8] sm:$0xff]  ;;  %v8464_v33 = vadd.f32 %v2424_v53, %v12268_v56  ;;  %v12272_v37 = vld [vmem:[#allocation161_spill] sm:$0xff] }
 0x432   :  { %12244 = vst [vmem:[#allocation36_spill] sm:$0xff] %v8426_v19  ;;  %v12270_v25 = vld [vmem:[#allocation159_spill] sm:$0xff]  ;;  %v8470_v18 = vadd.f32 %v2426_v45, %v12272_v37  ;;  %v2517_v41 = vld [vmem:[#allocation2 + $0xf0] sm:$0xff] }
 0x433   :  { %12246 = vst [vmem:[#allocation38_spill] sm:$0xff] %v8429_v58  ;;  %v8467_v6 = vadd.f32 %v2425_v52, %v12270_v25  ;;  %v2518_v49 = vld [vmem:[#allocation2 + $0x108] sm:$0xff]  ;;  %v2521_v52 = vld [vmem:[#allocation2 + $0x130] sm:$0xff] }
 0x434   :  { %12248 = vst [vmem:[#allocation49_spill] sm:$0xff] %v8432_v60  ;;  %v2520_v62 = vld [vmem:[#allocation2 + $0x128] sm:$0xff]  ;;  %v2523_v45 = vld [vmem:[#allocation2 + $0x150] sm:$0xff] }
 0x435   :  { %12249 = vst [vmem:[#allocation52_spill] sm:$0xff] %v8434_v20  ;;  %v12274_v46 = vld [vmem:[#allocation163_spill] sm:$0xff]  ;;  %v12278_v51 = vld [vmem:[#allocation168_spill] sm:$0xff]  ;;  %v12282_v37 = vld [vmem:[#allocation169_spill] sm:$0xff] }
 0x436   :  { %12251 = vst [vmem:[#allocation55_spill] sm:$0xff] %v8437_v7  ;;  %v8479_v48 = vadd.f32 %v2429_v57, %v12278_v51  ;;  %v12280_v53 = vld [vmem:[#allocation167_spill] sm:$0xff]  ;;  %v12290_v57 = vld [vmem:[#allocation174_spill] sm:$0xff]  ;;  %v2525_v51 = vld [vmem:[#allocation2 + $0x170] sm:$0xff] }
 0x437   :  { %12253 = vst [vmem:[#allocation70_spill] sm:$0xff] %v8440_v42  ;;  %v8482_v56 = vadd.f32 %v2430_v22, %v12280_v53  ;;  %v2522_v25 = vld [vmem:[#allocation2 + $0x148] sm:$0xff]  ;;  %v2541_v60 = vld [vmem:[#allocation2 + $0x2b0] sm:$0xff] }
 0x438   :  { %12255 = vst [vmem:[#allocation73_spill] sm:$0xff] %v8443_v29  ;;  %v2524_v22 = vld [vmem:[#allocation2 + $0x168] sm:$0xff]  ;;  %v2539_v29 = vld [vmem:[#allocation2 + $0x290] sm:$0xff] }
 0x439   :  { %12257 = vst [vmem:[#allocation134_spill] sm:$0xff] %v8446_v44  ;;  %v2526_v53 = vld [vmem:[#allocation2 + $0x188] sm:$0xff]  ;;  %v8543_v44 = vmul.f32 %v8434_v20, %v2522_v25  ;;  %v2543_v31 = vld [vmem:[#allocation2 + $0x2d0] sm:$0xff] }
 0x43a   :  { %12259 = vst [vmem:[#allocation136_spill] sm:$0xff] %v8449_v1  ;;  %v2540_v42 = vld [vmem:[#allocation2 + $0x2a8] sm:$0xff]  ;;  %v8555_v7 = vmul.f32 %v8434_v20, %v2526_v53  ;;  %v2761_v53 = vld [vmem:[#allocation2 + $0x451] sm:$0xff] }
 0x43b   :  { %12261 = vst [vmem:[#allocation137_spill] sm:$0xff] %v8452_v36  ;;  %v12276_v36 = vld [vmem:[#allocation165_spill] sm:$0xff]  ;;  %v2760_v19 = vld [vmem:[#allocation2 + $0x449] sm:$0xff] }
 0x43c   :  { %12263 = vst [vmem:[#allocation138_spill] sm:$0xff] %v8455_v21  ;;  %v2519_v21 = vld [vmem:[#allocation2 + $0x110] sm:$0xff]  ;;  %v8476_v1 = vadd.f32 %v2428_v8, %v12276_v36  ;;  %v8498_v36 = vadd.f32 %v8327_v39, %v12290_v57  ;;  %v2528_v57 = vld [vmem:[#allocation2 + $0x1a8] sm:$0xff] }
 0x43d   :  { %12265 = vst [vmem:[#allocation139_spill] sm:$0xff] %v8458_v5  ;;  %v8473_v5 = vadd.f32 %v2427_v55, %v12274_v46  ;;  %v12288_v46 = vld [vmem:[#allocation170_spill] sm:$0xff]  ;;  %v2527_v39 = vld [vmem:[#allocation2 + $0x190] sm:$0xff]  ;;  %v2542_v11 = vld [vmem:[#allocation2 + $0x2c8] sm:$0xff] }
 0x43e   :  { %12267 = vst [vmem:[#allocation140_spill] sm:$0xff] %v8461_v15  ;;  %v12286_v15 = vld [vmem:[#allocation56_spill] sm:$0xff]  ;;  %v8494_v8 = vadd.f32 %v8323_v61, %v12288_v46  ;;  %v12300_v46 = vld [vmem:[#allocation193_spill] sm:$0xff] }
 0x43f   :  { %12269 = vst [vmem:[#allocation141_spill] sm:$0xff] %v8464_v33  ;;  %v12285_v33 = vld [vmem:[#allocation172_spill] sm:$0xff] }
 0x440   :  { %12271 = vst [vmem:[#allocation142_spill] sm:$0xff] %v8467_v6  ;;  %v8490_v55 = vadd.f32 %v12286_v15, %v12285_v33  ;;  %v12297_v15 = vld [vmem:[#allocation30_spill] sm:$0xff]  ;;  %v12299_v61 = vld [vmem:[#allocation180_spill] sm:$0xff] }
 0x441   :  { %12273 = vst [vmem:[#allocation143_spill] sm:$0xff] %v8470_v18  ;;  %v12283_v18 = vld [vmem:[#allocation47_spill] sm:$0xff]  ;;  %v8510_v33 = vadd.f32 %v8339_v16, %v12297_v15  ;;  %v8523_v16 = vmul.f32 %v8434_v20, %v2516_v40  ;;  %v2545_v35 = vld [vmem:[#allocation2 + $0x2f0] sm:$0xff] }
 0x442   :  { %12275 = vst [vmem:[#allocation144_spill] sm:$0xff] %v8473_v5  ;;  %v8486_v6 = vadd.f32 %v12283_v18, %v12282_v37  ;;  %v12295_v18 = vld [vmem:[#allocation176_spill] sm:$0xff]  ;;  %v8525_v15 = vld [vmem:[#allocation9 + $0x5] ss:$0 sm:$0xff] }
 0x443   :  { %12277 = vst [vmem:[#allocation147_spill] sm:$0xff] %v8476_v1  ;;  %v8506_v37 = vadd.f32 %v8335_v47, %v12295_v18  ;;  %v8517_v47 = vmul.f32 %v8434_v20, %v2514_v28  ;;  %v8520_v18 = vmul.f32 %v8434_v20, %v2515_v12  ;;  %v8534_v28 = vmul.f32 %v8434_v20, %v2519_v21  ;;  %v2536_v40 = vld [vmem:[#allocation2 + $0x268] sm:$0xff] }
 0x444   :  { %12279 = vst [vmem:[#allocation148_spill] sm:$0xff] %v8479_v48  ;;  %v12293_v48 = vld [vmem:[#allocation192_spill] sm:$0xff]  ;;  %v8537_v12 = vmul.f32 %v8434_v20, %v2520_v62  ;;  %v8552_v62 = vmul.f32 %v8434_v20, %v2525_v51 }
 0x445   :  { %12281 = vst [vmem:[#allocation150_spill] sm:$0xff] %v8482_v56  ;;  %v12292_v56 = vld [vmem:[#allocation28_spill] sm:$0xff] }
 0x446   :  { %12284 = vst [vmem:[#allocation152_spill] sm:$0xff] %v8486_v6  ;;  %v8502_v1 = vadd.f32 %v12293_v48, %v12292_v56  ;;  %v12301_v6 = vld [vmem:[#allocation31_spill] sm:$0xff]  ;;  %v2531_v48 = vld [vmem:[#allocation2 + $0x1d0] sm:$0xff] }
 0x447   :  { %12287 = vst [vmem:[#allocation155_spill] sm:$0xff] %v8490_v55  ;;  %v2530_v55 = vld [vmem:[#allocation2 + $0x1c8] sm:$0xff]  ;;  %v2503_v5 = vadd.f32 %v8345_v9, %v12301_v6  ;;  %v8531_v9 = vmul.f32 %v8434_v20, %v2518_v49  ;;  %v2535_v6 = vld [vmem:[#allocation2 + $0x210] sm:$0xff]  ;;  %v8549_v49 = vmul.f32 %v8434_v20, %v2524_v22  ;;  %v8563_v22 = vmul.f32 %v8434_v20, %v2528_v57 }
 0x448   :  { %12289 = vst [vmem:[#allocation158_spill] sm:$0xff] %v8494_v8  ;;  %v2502_v8 = vadd.f32 %v12300_v46, %v12299_v61  ;;  %v2566_v56 = vld [vmem:[#allocation2 + $0x448] sm:$0xff]  ;;  %v2533_v46 = vld [vmem:[#allocation2 + $0x1f0] sm:$0xff]  ;;  %v8569_v51 = vmul.f32 %v8434_v20, %v2530_v55  ;;  %v8584_v10 = vmul.f32 %v8434_v20, %v2535_v6 }
 0x449   :  { %12291 = vst [vmem:[#allocation160_spill] sm:$0xff] %v8498_v36  ;;  %v2529_v36 = vld [vmem:[#allocation2 + $0x1b0] sm:$0xff]  ;;  %v2532_v61 = vld [vmem:[#allocation2 + $0x1e8] sm:$0xff]  ;;  %v8578_v26 = vmul.f32 %v8434_v20, %v2533_v46  ;;  %v2826_v46 = vmul.f32 %v8525_v15, %v2760_v19 }
 0x44a   :  { %12294 = vst [vmem:[#allocation162_spill] sm:$0xff] %v8502_v1  ;;  %v2567_v1 = vld [vmem:[#allocation2 + $0x450] sm:$0xff]  ;;  %v2538_v21 = vld [vmem:[#allocation2 + $0x288] sm:$0xff]  ;;  %v8566_v58 = vmul.f32 %v8434_v20, %v2529_v36 }
 0x44b   :  { %12296 = vst [vmem:[#allocation164_spill] sm:$0xff] %v8506_v37  ;;  %v8528_v37 = vmul.f32 %v8434_v20, %v2517_v41  ;;  %v8546_v41 = vmul.f32 %v8434_v20, %v2523_v45  ;;  %v2633_v25 = vmul.f32 %v8434_v20, %v2567_v1  ;;  %v8560_v45 = vmul.f32 %v8434_v20, %v2527_v39  ;;  %v2546_v43 = vld [vmem:[#allocation2 + $0x308] sm:$0xff]  ;;  %v2547_v36 = vld [vmem:[#allocation2 + $0x310] sm:$0xff] }
 0x44c   :  { %12298 = vst [vmem:[#allocation166_spill] sm:$0xff] %v8510_v33  ;;  %v2534_v33 = vld [vmem:[#allocation2 + $0x208] sm:$0xff]  ;;  %v8572_v1 = vmul.f32 %v8434_v20, %v2531_v48  ;;  %v8575_v39 = vmul.f32 %v8434_v20, %v2532_v61  ;;  %v8587_v48 = vmul.f32 %v8434_v20, %v2536_v40  ;;  %v2549_v61 = vld [vmem:[#allocation2 + $0x330] sm:$0xff]  ;;  %v8601_v40 = vmul.f32 %v8434_v20, %v2540_v42 }
 0x44d   :  { %12302 = vst [vmem:[#allocation171_spill] sm:$0xff] %v8517_v47  ;;  %v8540_v47 = vmul.f32 %v8434_v20, %v2521_v52  ;;  %v2632_v52 = vmul.f32 %v8434_v20, %v2566_v56  ;;  %v2544_v56 = vld [vmem:[#allocation2 + $0x2e8] sm:$0xff]  ;;  %v2697_v57 = vadd.f32 %v2633_v25, %v2503_v5  ;;  %v8581_v55 = vmul.f32 %v8434_v20, %v2534_v33  ;;  %v2553_v6 = vld [vmem:[#allocation2 + $0x370] sm:$0xff] }
 0x44e   :  { %12303 = vst [vmem:[#allocation173_spill] sm:$0xff] %v8520_v18  ;;  %v2537_v18 = vld [vmem:[#allocation2 + $0x270] sm:$0xff]  ;;  %v2548_v27 = vld [vmem:[#allocation2 + $0x328] sm:$0xff]  ;;  %v2827_v33 = vmul.f32 %v8525_v15, %v2761_v53  ;;  %v8610_v53 = vmul.f32 %v8434_v20, %v2543_v31 }
 0x44f   :  { %12304 = vst [vmem:[#allocation175_spill] sm:$0xff] %v8525_v15  ;;  %v2696_v3 = vadd.f32 %v2632_v52, %v2502_v8  ;;  %v8590_v5 = vmul.f32 %v8434_v20, %v2537_v18  ;;  %v8593_v8 = vmul.f32 %v8434_v20, %v2538_v21  ;;  %v2551_v52 = vld [vmem:[#allocation2 + $0x350] sm:$0xff]  ;;  %v2552_v25 = vld [vmem:[#allocation2 + $0x368] sm:$0xff]  ;;  %v8607_v18 = vmul.f32 %v8434_v20, %v2542_v11 }
 0x450   :  { %12305 = vst [vmem:[#allocation177_spill] sm:$0xff] %v8575_v39  ;;  %v2550_v39 = vld [vmem:[#allocation2 + $0x348] sm:$0xff]  ;;  %v8613_v15 = vmul.f32 %v8434_v20, %v2544_v56  ;;  %v8619_v11 = vmul.f32 %v8434_v20, %v2546_v43  ;;  %v8625_v31 = vmul.f32 %v8434_v20, %v2548_v27  ;;  %v2561_v56 = vld [vmem:[#allocation2 + $0x3f0] sm:$0xff] }
 0x451   :  { %12306 = vst [vmem:[#allocation179_spill] sm:$0xff] %v8578_v26  ;;  %v2554_v21 = vld [vmem:[#allocation2 + $0x388] sm:$0xff] }
 0x452   :  { %12307 = vst [vmem:[#allocation181_spill] sm:$0xff] %v8581_v55  ;;  %v2556_v19 = vld [vmem:[#allocation2 + $0x3a8] sm:$0xff] }
 0x453   :  { %12308 = vst [vmem:[#allocation59_spill] sm:$0xff] %v8584_v10  ;;  %v8598_v10 = vmul.f32 %v8434_v20, %v2539_v29  ;;  %v2890_v29 = vadd.f32 %v2826_v46, %v2696_v3  ;;  %v2558_v42 = vld [vmem:[#allocation2 + $0x3c8] sm:$0xff]  ;;  %v2615_v3 = vmul.f32 %v8434_v20, %v2549_v61  ;;  %v2617_v46 = vmul.f32 %v8434_v20, %v2551_v52  ;;  %v12323_v52 = vld [vmem:[#allocation93_spill] sm:$0xff] }
 0x454   :  { %12309 = vst [vmem:[#allocation68_spill] sm:$0xff] %v8587_v48  ;;  %v8604_v48 = vmul.f32 %v8434_v20, %v2541_v60  ;;  %v8616_v60 = vmul.f32 %v8434_v20, %v2545_v35  ;;  %v2618_v35 = vmul.f32 %v8434_v20, %v2552_v25  ;;  %v2564_v43 = vld [vmem:[#allocation2 + $0x428] sm:$0xff]  ;;  %v2624_v61 = vmul.f32 %v8434_v20, %v2558_v42 }
 0x455   :  { %12310 = vst [vmem:[#allocation183_spill] sm:$0xff] %v8590_v5  ;;  %v2557_v5 = vld [vmem:[#allocation2 + $0x3b0] sm:$0xff]  ;;  %v8648_v42 = vadd.f32 %v8523_v16, %v8354_v24  ;;  %v8668_v24 = vadd.f32 %v8540_v47, %v8369_v59  ;;  %v8690_v59 = vadd.f32 %v8552_v62, %v8381_v17  ;;  %v8710_v17 = vadd.f32 %v8569_v51, %v8396_v14 }
 0x456   :  { %12311 = vst [vmem:[#allocation184_spill] sm:$0xff] %v8593_v8  ;;  %v2555_v8 = vld [vmem:[#allocation2 + $0x390] sm:$0xff] }
 0x457   :  { %12312 = vst [vmem:[#allocation185_spill] sm:$0xff] %v8598_v10  ;;  %v2891_v10 = vadd.f32 %v2827_v33, %v2697_v57  ;;  %v2616_v57 = vmul.f32 %v8434_v20, %v2550_v39  ;;  %v2563_v33 = vld [vmem:[#allocation2 + $0x410] sm:$0xff]  ;;  %v2621_v27 = vmul.f32 %v8434_v20, %v2555_v8 }
 0x458   :  { %12313 = vst [vmem:[#allocation40_spill] sm:$0xff] %v8601_v40  ;;  %v2559_v40 = vld [vmem:[#allocation2 + $0x3d0] sm:$0xff]  ;;  %v2629_v8 = vmul.f32 %v8434_v20, %v2563_v33 }
 0x459   :  { %12314 = vst [vmem:[#allocation145_spill] sm:$0xff] %v8604_v48  ;;  %v12322_v39 = vld [vmem:[#allocation92_spill] sm:$0xff]  ;;  %v3086_v55 = vadd.f32 %v12323_v52, %v2891_v10  ;;  %v2625_v25 = vmul.f32 %v8434_v20, %v2559_v40  ;;  %v8652_v10 = vadd.f32 %v8528_v37, %v8357_v34  ;;  %v8656_v40 = vadd.f32 %v8531_v9, %v8360_v50  ;;  %v12325_v37 = vld [vmem:[#allocation77_spill] sm:$0xff]  ;;  %v12330_v9 = vld [vmem:[#allocation99_spill] sm:$0xff] }
 0x45a   :  { %12315 = vst [vmem:[#allocation61_spill] sm:$0xff] %v8607_v18  ;;  %v8622_v18 = vmul.f32 %v8434_v20, %v2547_v36  ;;  %v2619_v36 = vmul.f32 %v8434_v20, %v2553_v6  ;;  %v3085_v48 = vadd.f32 %v12322_v39, %v2890_v29  ;;  %v2627_v6 = vmul.f32 %v8434_v20, %v2561_v56  ;;  %v12329_v47 = vld [vmem:[#allocation177_spill] sm:$0xff]  ;;  %v12337_v14 = vld [vmem:[#allocation59_spill] sm:$0xff]  ;;  %v12342_v51 = vld [vmem:[#allocation104_spill] sm:$0xff] }
 0x45b   :  { %12316 = vst [vmem:[#allocation151_spill] sm:$0xff] %v8610_v53  ;;  %v2560_v53 = vld [vmem:[#allocation2 + $0x3e8] sm:$0xff]  ;;  %v8672_v34 = vadd.f32 %v8543_v44, %v8372_v30  ;;  %v8678_v50 = vadd.f32 %v12325_v37, %v3086_v55  ;;  %v8694_v30 = vadd.f32 %v8555_v7, %v8384_v2  ;;  %v8698_v44 = vadd.f32 %v8560_v45, %v8387_v63  ;;  %v12339_v45 = vld [vmem:[#allocation89_spill] sm:$0xff]  ;;  %v12348_v56 = vld [vmem:[#allocation34_spill] sm:$0xff] }
 0x45c   :  { %12317 = vst [vmem:[#allocation188_spill] sm:$0xff] %v8613_v15  ;;  %v2562_v15 = vld [vmem:[#allocation2 + $0x408] sm:$0xff]  ;;  %v2626_v26 = vmul.f32 %v8434_v20, %v2560_v53  ;;  %v8664_v53 = vadd.f32 %v8537_v12, %v8366_v0  ;;  %v8675_v16 = vadd.f32 %v12325_v37, %v3085_v48  ;;  %v8686_v0 = vadd.f32 %v8549_v49, %v8378_v38  ;;  %v12333_v12 = vld [vmem:[#allocation101_spill] sm:$0xff]  ;;  %v12378_v37 = vld [vmem:[#allocation138_spill] sm:$0xff] }
 0x45d   :  { %12318 = vst [vmem:[#allocation189_spill] sm:$0xff] %v8616_v60  ;;  %v2623_v60 = vmul.f32 %v8434_v20, %v2557_v5  ;;  %v8706_v38 = vadd.f32 %v8566_v58, %v8393_v54  ;;  %v8714_v2 = vadd.f32 %v8572_v1, %v8399_v13  ;;  %v12328_v7 = vld [vmem:[#allocation96_spill] sm:$0xff]  ;;  %v12336_v49 = vld [vmem:[#allocation83_spill] sm:$0xff]  ;;  %v12345_v48 = vld [vmem:[#allocation105_spill] sm:$0xff] }
 0x45e   :  { %12319 = vst [vmem:[#allocation247_spill] sm:$0xff] %v8619_v11  ;;  %v2565_v11 = vld [vmem:[#allocation2 + $0x430] sm:$0xff]  ;;  %v8718_v63 = vadd.f32 %v12329_v47, %v12328_v7  ;;  %v8730_v62 = vadd.f32 %v12337_v14, %v12336_v49  ;;  %v12343_v1 = vld [vmem:[#allocation183_spill] sm:$0xff]  ;;  %v12354_v47 = vld [vmem:[#allocation38_spill] sm:$0xff] }
 0x45f   :  { %12320 = vst [vmem:[#allocation248_spill] sm:$0xff] %v8622_v18  ;;  %v2620_v18 = vmul.f32 %v8434_v20, %v2554_v21  ;;  %v2628_v21 = vmul.f32 %v8434_v20, %v2562_v15  ;;  %v2631_v5 = vmul.f32 %v8434_v20, %v2565_v11  ;;  %v8660_v15 = vadd.f32 %v8534_v28, %v8363_v23  ;;  %v12331_v28 = vld [vmem:[#allocation179_spill] sm:$0xff]  ;;  %v5008_v58 = vld [vmem:[#allocation11 + $0x38] sm:$0xff]  ;;  %v12349_v33 = vld [vmem:[#allocation185_spill] sm:$0xff] }
 0x460   :  { %12321 = vst [vmem:[#allocation249_spill] sm:$0xff] %v8625_v31  ;;  %v2622_v31 = vmul.f32 %v8434_v20, %v2556_v19  ;;  %v2630_v19 = vmul.f32 %v8434_v20, %v2564_v43  ;;  %v8682_v23 = vadd.f32 %v8546_v41, %v8375_v32  ;;  %v8702_v32 = vadd.f32 %v8563_v22, %v8390_v4  ;;  %v12334_v41 = vld [vmem:[#allocation181_spill] sm:$0xff]  ;;  %v12340_v13 = vld [vmem:[#allocation68_spill] sm:$0xff]  ;;  %v5007_v14 = vld [vmem:[#allocation11 + $0x30] sm:$0xff] }
 0x461   :  { %12324 = vst [vmem:[#allocation250_spill] sm:$0xff] %v8648_v42  ;;  %v8722_v4 = vadd.f32 %v12331_v28, %v12330_v9  ;;  %v8726_v54 = vadd.f32 %v12334_v41, %v12333_v12  ;;  %v8734_v22 = vadd.f32 %v12340_v13, %v12339_v45  ;;  %v8738_v55 = vadd.f32 %v12343_v1, %v12342_v51  ;;  %v12346_v29 = vld [vmem:[#allocation184_spill] sm:$0xff]  ;;  %v12355_v9 = vld [vmem:[#allocation145_spill] sm:$0xff]  ;;  %v12360_v45 = vld [vmem:[#allocation55_spill] sm:$0xff] }
 0x462   :  { %12326 = vst [vmem:[#allocation251_spill] sm:$0xff] %v8675_v16  ;;  %v8742_v11 = vadd.f32 %v12346_v29, %v12345_v48  ;;  %v8746_v43 = vadd.f32 %v12349_v33, %v12348_v56  ;;  %v12351_v39 = vld [vmem:[#allocation36_spill] sm:$0xff]  ;;  %v8754_v28 = vadd.f32 %v12355_v9, %v12354_v47  ;;  %v12357_v12 = vld [vmem:[#allocation49_spill] sm:$0xff]  ;;  %3991 = vmatpush.bf16.msra.mxu2 %v5008_v58  ;;  %v12361_v13 = vld [vmem:[#allocation151_spill] sm:$0xff] }
 0x463   :  { %12327 = vst [vmem:[#allocation252_spill] sm:$0xff] %v8678_v50  ;;  %v12352_v52 = vld [vmem:[#allocation40_spill] sm:$0xff]  ;;  %v12358_v41 = vld [vmem:[#allocation61_spill] sm:$0xff]  ;;  %v8762_v51 = vadd.f32 %v12361_v13, %v12360_v45  ;;  %v12363_v1 = vld [vmem:[#allocation70_spill] sm:$0xff]  ;;  %5025 = vmatpush.bf16.msra.mxu3 %v5008_v58 }
 0x464   :  { %12332 = vst [vmem:[#allocation253_spill] sm:$0xff] %v8722_v4  ;;  %v8750_v7 = vadd.f32 %v12352_v52, %v12351_v39  ;;  %v8758_v49 = vadd.f32 %v12358_v41, %v12357_v12  ;;  %v12364_v48 = vld [vmem:[#allocation188_spill] sm:$0xff]  ;;  %v12366_v56 = vld [vmem:[#allocation73_spill] sm:$0xff]  ;;  %v12369_v52 = vld [vmem:[#allocation134_spill] sm:$0xff] }
 0x465   :  { %12335 = vst [vmem:[#allocation254_spill] sm:$0xff] %v8726_v54  ;;  %v8766_v29 = vadd.f32 %v12364_v48, %v12363_v1  ;;  %v12367_v33 = vld [vmem:[#allocation189_spill] sm:$0xff]  ;;  %v12370_v47 = vld [vmem:[#allocation247_spill] sm:$0xff]  ;;  %v12372_v12 = vld [vmem:[#allocation136_spill] sm:$0xff]  ;;  %v8785_v1 = vadd.f32 %v2615_v3, %v12378_v37 }
 0x466   :  { %12338 = vst [vmem:[#allocation255_spill] sm:$0xff] %v8730_v62  ;;  %v8770_v39 = vadd.f32 %v12367_v33, %v12366_v56  ;;  %v8774_v9 = vadd.f32 %v12370_v47, %v12369_v52  ;;  %v12373_v41 = vld [vmem:[#allocation248_spill] sm:$0xff]  ;;  %v12375_v16 = vld [vmem:[#allocation137_spill] sm:$0xff]  ;;  %v12380_v48 = vld [vmem:[#allocation139_spill] sm:$0xff]  ;;  %3992 = vmatpush.bf16.msra.mxu2 %v5007_v14 }
 0x467   :  { %12341 = vst [vmem:[#allocation218_spill] sm:$0xff] %v8734_v22  ;;  %v8778_v50 = vadd.f32 %v12373_v41, %v12372_v12  ;;  %v12376_v45 = vld [vmem:[#allocation249_spill] sm:$0xff]  ;;  %v8788_v42 = vadd.f32 %v2616_v57, %v12380_v48  ;;  %v12382_v56 = vld [vmem:[#allocation140_spill] sm:$0xff]  ;;  %v12386_v58 = vld [vmem:[#allocation142_spill] sm:$0xff]  ;;  %5026 = vmatpush.bf16.msra.mxu3 %v5007_v14 }
 0x468   :  { %12344 = vst [vmem:[#allocation43_spill] sm:$0xff] %v8738_v55  ;;  %v8782_v13 = vadd.f32 %v12376_v45, %v12375_v16  ;;  %v8791_v33 = vadd.f32 %v2617_v46, %v12382_v56  ;;  %v12384_v52 = vld [vmem:[#allocation141_spill] sm:$0xff]  ;;  %v8797_v20 = vadd.f32 %v2619_v36, %v12386_v58  ;;  %v12388_v12 = vld [vmem:[#allocation143_spill] sm:$0xff]  ;;  %v12390_v16 = vld [vmem:[#allocation144_spill] sm:$0xff] }
 0x469   :  { %12347 = vst [vmem:[#allocation219_spill] sm:$0xff] %v8742_v11  ;;  %v8794_v47 = vadd.f32 %v2618_v35, %v12384_v52  ;;  %v8800_v41 = vadd.f32 %v2620_v18, %v12388_v12  ;;  %v8803_v45 = vadd.f32 %v2621_v27, %v12390_v16  ;;  %v12392_v3 = vld [vmem:[#allocation147_spill] sm:$0xff]  ;;  %v12394_v57 = vld [vmem:[#allocation148_spill] sm:$0xff]  ;;  %v12396_v46 = vld [vmem:[#allocation150_spill] sm:$0xff] }
 0x46a   :  { %12350 = vst [vmem:[#allocation146_spill] sm:$0xff] %v8746_v43  ;;  %v8806_v37 = vadd.f32 %v2622_v31, %v12392_v3  ;;  %v8809_v48 = vadd.f32 %v2623_v60, %v12394_v57  ;;  %v8812_v56 = vadd.f32 %v2624_v61, %v12396_v46  ;;  %v5006_v35 = vld [vmem:[#allocation11 + $0x28] sm:$0xff]  ;;  %v12398_v52 = vld [vmem:[#allocation152_spill] sm:$0xff]  ;;  %v12400_v58 = vld [vmem:[#allocation155_spill] sm:$0xff] }
 0x46b   :  { %12353 = vst [vmem:[#allocation220_spill] sm:$0xff] %v8750_v7  ;;  %v8815_v36 = vadd.f32 %v2625_v25, %v12398_v52  ;;  %v8818_v18 = vadd.f32 %v2626_v26, %v12400_v58  ;;  %v12402_v12 = vld [vmem:[#allocation158_spill] sm:$0xff]  ;;  %v12404_v16 = vld [vmem:[#allocation160_spill] sm:$0xff]  ;;  %v12412_v25 = vld [vmem:[#allocation29_spill] sm:$0xff]  ;;  %3993 = vmatpush.bf16.msra.mxu2 %v5006_v35  ;;  %5027 = vmatpush.bf16.msra.mxu3 %v5006_v35 }
 0x46c   :  { %12356 = vst [vmem:[#allocation46_spill] sm:$0xff] %v8754_v28  ;;  %v8821_v27 = vadd.f32 %v2627_v6, %v12402_v12  ;;  %v8824_v31 = vadd.f32 %v2628_v21, %v12404_v16  ;;  %v12406_v60 = vld [vmem:[#allocation162_spill] sm:$0xff]  ;;  %v12408_v61 = vld [vmem:[#allocation164_spill] sm:$0xff]  ;;  %v12413_v52 = vld [vmem:[#allocation175_spill] sm:$0xff] }
 0x46d   :  { %12359 = vst [vmem:[#allocation224_spill] sm:$0xff] %v8758_v49  ;;  %v8827_v3 = vadd.f32 %v2629_v8, %v12406_v60  ;;  %v8830_v57 = vadd.f32 %v2630_v19, %v12408_v61  ;;  %v12410_v46 = vld [vmem:[#allocation166_spill] sm:$0xff]  ;;  %v8837_v26 = vmul.f32 %v12413_v52, %v12412_v25  ;;  %v12417_v21 = vld [vmem:[#allocation32_spill] sm:$0xff]  ;;  %v12418_v12 = vld [vmem:[#allocation33_spill] sm:$0xff] }
 0x46e   :  { %12362 = vst [vmem:[#allocation64_spill] sm:$0xff] %v8762_v51  ;;  %v12415_v58 = vld [vmem:[#allocation178_spill] sm:$0xff]  ;;  %v2777_v14 = vmul.f32 %v12413_v52, %v12417_v21  ;;  %v2778_v8 = vmul.f32 %v12413_v52, %v12418_v12  ;;  %v12419_v16 = vld [vmem:[#allocation35_spill] sm:$0xff]  ;;  %v12420_v61 = vld [vmem:[#allocation37_spill] sm:$0xff] }
 0x46f   :  { %12365 = vst [vmem:[#allocation88_spill] sm:$0xff] %v8766_v29  ;;  %v8841_v6 = vmul.f32 %v12413_v52, %v12415_v58  ;;  %v2779_v19 = vmul.f32 %v12413_v52, %v12419_v16  ;;  %v2728_v60 = vld [vmem:[#allocation2 + $0x209] sm:$0xff]  ;;  %v12421_v25 = vld [vmem:[#allocation50_spill] sm:$0xff] }
 0x470   :  { %12368 = vst [vmem:[#allocation91_spill] sm:$0xff] %v8770_v39  ;;  %v12424_v12 = vld [vmem:[#allocation191_spill] sm:$0xff]  ;;  %v2794_v35 = vmul.f32 %v12413_v52, %v2728_v60  ;;  %v12441_v39 = vld [vmem:[#allocation213_spill] sm:$0xff]  ;;  %v12442_v29 = vld [vmem:[#allocation214_spill] sm:$0xff] }
 0x471   :  { %12371 = vst [vmem:[#allocation225_spill] sm:$0xff] %v8774_v9  ;;  %v12425_v16 = vld [vmem:[#allocation195_spill] sm:$0xff]  ;;  %v12440_v9 = vld [vmem:[#allocation212_spill] sm:$0xff]  ;;  %v12468_v4 = vld [vmem:[#allocation242_spill] sm:$0xff] }
 0x472   :  { %12374 = vst [vmem:[#allocation67_spill] sm:$0xff] %v8778_v50  ;;  %v12438_v50 = vld [vmem:[#allocation210_spill] sm:$0xff]  ;;  %v12439_v60 = vld [vmem:[#allocation211_spill] sm:$0xff]  ;;  %v12444_v49 = vld [vmem:[#allocation216_spill] sm:$0xff] }
 0x473   :  { %12377 = vst [vmem:[#allocation226_spill] sm:$0xff] %v8782_v13  ;;  %v12443_v51 = vld [vmem:[#allocation215_spill] sm:$0xff]  ;;  %v2806_v28 = vmul.f32 %v12413_v52, %v12444_v49  ;;  %v12449_v55 = vld [vmem:[#allocation228_spill] sm:$0xff]  ;;  %v12453_v49 = vld [vmem:[#allocation230_spill] sm:$0xff] }
 0x474   :  { %12379 = vst [vmem:[#allocation149_spill] sm:$0xff] %v8785_v1  ;;  %v12455_v62 = vld [vmem:[#allocation235_spill] sm:$0xff] }
 0x475   :  { %12381 = vst [vmem:[#allocation227_spill] sm:$0xff] %v8788_v42 }
 0x476   :  { %12383 = vst [vmem:[#allocation186_spill] sm:$0xff] %v8791_v33 }
 0x477   :  { %12385 = vst [vmem:[#allocation231_spill] sm:$0xff] %v8794_v47 }
 0x478   :  { %12387 = vst [vmem:[#allocation153_spill] sm:$0xff] %v8797_v20 }
 0x479   :  { %12389 = vst [vmem:[#allocation232_spill] sm:$0xff] %v8800_v41 }
 0x47a   :  { %12391 = vst [vmem:[#allocation187_spill] sm:$0xff] %v8803_v45 }
 0x47b   :  { %12393 = vst [vmem:[#allocation233_spill] sm:$0xff] %v8806_v37  ;;  %v12430_v37 = vld [vmem:[#allocation201_spill] sm:$0xff] }
 0x47c   :  { %12395 = vst [vmem:[#allocation154_spill] sm:$0xff] %v8809_v48  ;;  %v12429_v48 = vld [vmem:[#allocation200_spill] sm:$0xff]  ;;  %v2790_v45 = vmul.f32 %v12413_v52, %v12430_v37 }
 0x47d   :  { %12397 = vst [vmem:[#allocation234_spill] sm:$0xff] %v8812_v56  ;;  %v8833_v56 = vadd.f32 %v2631_v5, %v12410_v46  ;;  %v2729_v5 = vld [vmem:[#allocation2 + $0x211] sm:$0xff]  ;;  %v2780_v46 = vmul.f32 %v12413_v52, %v12420_v61 }
 0x47e   :  { %12399 = vst [vmem:[#allocation156_spill] sm:$0xff] %v8815_v36  ;;  %v12428_v36 = vld [vmem:[#allocation198_spill] sm:$0xff]  ;;  %v12436_v37 = vld [vmem:[#allocation208_spill] sm:$0xff] }
 0x47f   :  { %12401 = vst [vmem:[#allocation157_spill] sm:$0xff] %v8818_v18  ;;  %v12427_v18 = vld [vmem:[#allocation197_spill] sm:$0xff]  ;;  %v2798_v1 = vmul.f32 %v12413_v52, %v12436_v37  ;;  %v2804_v37 = vmul.f32 %v12413_v52, %v12442_v29  ;;  %v8911_v29 = vmul.f32 %v12413_v52, %v12449_v55 }
 0x480   :  { %12403 = vst [vmem:[#allocation159_spill] sm:$0xff] %v8821_v27  ;;  %v12426_v27 = vld [vmem:[#allocation196_spill] sm:$0xff]  ;;  %v12459_v55 = vld [vmem:[#allocation237_spill] sm:$0xff] }
 0x481   :  { %12405 = vst [vmem:[#allocation161_spill] sm:$0xff] %v8824_v31  ;;  %v2785_v31 = vmul.f32 %v12413_v52, %v12425_v16  ;;  %v2786_v61 = vmul.f32 %v12413_v52, %v12426_v27  ;;  %v12432_v16 = vld [vmem:[#allocation203_spill] sm:$0xff]  ;;  %v12433_v27 = vld [vmem:[#allocation205_spill] sm:$0xff] }
 0x482   :  { %12407 = vst [vmem:[#allocation163_spill] sm:$0xff] %v8827_v3  ;;  %v2784_v3 = vmul.f32 %v12413_v52, %v12424_v12  ;;  %v12431_v12 = vld [vmem:[#allocation202_spill] sm:$0xff]  ;;  %v2792_v20 = vmul.f32 %v12413_v52, %v12432_v16  ;;  %v2793_v47 = vmul.f32 %v12413_v52, %v12433_v27  ;;  %v5004_v16 = vld [vmem:[#allocation11 + $0x18] sm:$0xff]  ;;  %v2800_v27 = vmul.f32 %v12413_v52, %v12438_v50  ;;  %v12445_v50 = vld [vmem:[#allocation217_spill] sm:$0xff] }
 0x483   :  { %12409 = vst [vmem:[#allocation165_spill] sm:$0xff] %v8830_v57  ;;  %v5005_v57 = vld [vmem:[#allocation11 + $0x20] sm:$0xff]  ;;  %v2791_v41 = vmul.f32 %v12413_v52, %v12431_v12  ;;  %v2807_v7 = vmul.f32 %v12413_v52, %v12445_v50  ;;  %v8919_v50 = vmul.f32 %v12413_v52, %v12453_v49  ;;  %v12463_v49 = vld [vmem:[#allocation239_spill] sm:$0xff] }
 0x484   :  { %12411 = vst [vmem:[#allocation168_spill] sm:$0xff] %v8833_v56  ;;  %v12422_v56 = vld [vmem:[#allocation53_spill] sm:$0xff]  ;;  %3994 = vmatpush.bf16.msra.mxu2 %v5005_v57  ;;  %5028 = vmatpush.bf16.msra.mxu3 %v5005_v57 }
 0x485   :  { %12414 = vst [vmem:[#allocation167_spill] sm:$0xff] %v8837_v26  ;;  %v2781_v26 = vmul.f32 %v12413_v52, %v12421_v25  ;;  %v2782_v58 = vmul.f32 %v12413_v52, %v12422_v56  ;;  %v2787_v25 = vmul.f32 %v12413_v52, %v12427_v18  ;;  %v2788_v56 = vmul.f32 %v12413_v52, %v12428_v36  ;;  %v12434_v36 = vld [vmem:[#allocation206_spill] sm:$0xff]  ;;  %v12437_v12 = vld [vmem:[#allocation209_spill] sm:$0xff] }
 0x486   :  { %12416 = vst [vmem:[#allocation169_spill] sm:$0xff] %v8841_v6  ;;  %v12423_v6 = vld [vmem:[#allocation190_spill] sm:$0xff]  ;;  %v2795_v18 = vmul.f32 %v12413_v52, %v2729_v5  ;;  %v2796_v33 = vmul.f32 %v12413_v52, %v12434_v36  ;;  %v2799_v13 = vmul.f32 %v12413_v52, %v12437_v12  ;;  %v2801_v5 = vmul.f32 %v12413_v52, %v12439_v60  ;;  %v12446_v60 = vld [vmem:[#allocation221_spill] sm:$0xff] }
 0x487   :  { %v2783_v21 = vmul.f32 %v12413_v52, %v12423_v6  ;;  %v2789_v6 = vmul.f32 %v12413_v52, %v12429_v48  ;;  %v12435_v48 = vld [vmem:[#allocation207_spill] sm:$0xff]  ;;  %v2802_v36 = vmul.f32 %v12413_v52, %v12440_v9  ;;  %v2805_v12 = vmul.f32 %v12413_v52, %v12443_v51  ;;  %v12447_v9 = vld [vmem:[#allocation222_spill] sm:$0xff]  ;;  %12450 = vst [vmem:[#allocation47_spill] sm:$0xff] %v8911_v29  ;;  %v12451_v51 = vld [vmem:[#allocation229_spill] sm:$0xff] }
 0x488   :  { %v2797_v42 = vmul.f32 %v12413_v52, %v12435_v48  ;;  %v2803_v48 = vmul.f32 %v12413_v52, %v12441_v39  ;;  %v2808_v43 = vmul.f32 %v12413_v52, %v12446_v60  ;;  %v2809_v11 = vmul.f32 %v12413_v52, %v12447_v9  ;;  %v12448_v39 = vld [vmem:[#allocation223_spill] sm:$0xff]  ;;  %12454 = vst [vmem:[#allocation56_spill] sm:$0xff] %v8919_v50  ;;  %v12457_v9 = vld [vmem:[#allocation236_spill] sm:$0xff] }
 0x489   :  { %v2810_v57 = vmul.f32 %v12413_v52, %v12448_v39  ;;  %v8915_v22 = vmul.f32 %v12413_v52, %v12451_v51  ;;  %v8923_v60 = vmul.f32 %v12413_v52, %v12455_v62  ;;  %v8927_v54 = vmul.f32 %v12413_v52, %v12457_v9  ;;  %3995 = vmatpush.bf16.msra.mxu2 %v5004_v16  ;;  %v5003_v39 = vld [vmem:[#allocation11 + $0x10] sm:$0xff]  ;;  %v12461_v51 = vld [vmem:[#allocation238_spill] sm:$0xff]  ;;  %v12465_v62 = vld [vmem:[#allocation240_spill] sm:$0xff] }
 0x48a   :  { %v8931_v29 = vmul.f32 %v12413_v52, %v12459_v55  ;;  %v8939_v50 = vmul.f32 %v12413_v52, %v12463_v49  ;;  %5029 = vmatpush.bf16.msra.mxu3 %v5004_v16  ;;  %v12466_v9 = vld [vmem:[#allocation241_spill] sm:$0xff]  ;;  %v8951_v55 = vmul.f32 %v12413_v52, %v12468_v4  ;;  %v12473_v16 = vld [vmem:[#allocation246_spill] sm:$0xff]  ;;  %v8973_v4 = vadd.f32 %v2778_v8, %v8656_v40 }
 0x48b   :  { %12452 = vst [vmem:[#allocation172_spill] sm:$0xff] %v8915_v22  ;;  %v8935_v22 = vmul.f32 %v12413_v52, %v12461_v51  ;;  %v8991_v40 = vadd.f32 %v2784_v3, %v8686_v0  ;;  %v9012_v0 = vadd.f32 %v2791_v41, %v8714_v2  ;;  %v12494_v2 = vld [vmem:[#allocation219_spill] sm:$0xff] }
 0x48c   :  { %12456 = vst [vmem:[#allocation170_spill] sm:$0xff] %v8923_v60  ;;  %v8943_v60 = vmul.f32 %v12413_v52, %v12465_v62  ;;  %v9033_v41 = vadd.f32 %v2798_v1, %v12494_v2  ;;  %v12506_v1 = vld [vmem:[#allocation88_spill] sm:$0xff]  ;;  %v12520_v2 = vld [vmem:[#allocation186_spill] sm:$0xff] }
 0x48d   :  { %12458 = vst [vmem:[#allocation174_spill] sm:$0xff] %v8927_v54  ;;  %v8947_v54 = vmul.f32 %v12413_v52, %v12466_v9  ;;  %v8967_v9 = vmul.f32 %v12413_v52, %v12473_v16  ;;  %3996 = vmatpush.bf16.msra.mxu2 %v5003_v39  ;;  %v5002_v16 = vld [vmem:[#allocation11 + $0x8] sm:$0xff] }
 0x48e   :  { %12460 = vst [vmem:[#allocation28_spill] sm:$0xff] %v8931_v29  ;;  %v12469_v29 = vld [vmem:[#allocation243_spill] sm:$0xff]  ;;  %5030 = vmatpush.bf16.msra.mxu3 %v5003_v39 }
 0x48f   :  { %12462 = vst [vmem:[#allocation192_spill] sm:$0xff] %v8935_v22  ;;  %v8955_v51 = vmul.f32 %v12413_v52, %v12469_v29  ;;  %v12470_v22 = vld [vmem:[#allocation244_spill] sm:$0xff]  ;;  %v8976_v29 = vadd.f32 %v2779_v19, %v8660_v15  ;;  %v8994_v15 = vadd.f32 %v2785_v31, %v8690_v59  ;;  %v9015_v59 = vadd.f32 %v2792_v20, %v8718_v63  ;;  %v5001_v20 = vld [vmem:[#allocation11] sm:$0xff]  ;;  %v12496_v63 = vld [vmem:[#allocation146_spill] sm:$0xff] }
 0x490   :  { %12464 = vst [vmem:[#allocation176_spill] sm:$0xff] %v8939_v50  ;;  %v8959_v49 = vmul.f32 %v12413_v52, %v12470_v22  ;;  %v12472_v50 = vld [vmem:[#allocation245_spill] sm:$0xff]  ;;  %v8979_v22 = vadd.f32 %v2780_v46, %v8664_v53  ;;  %v8997_v53 = vadd.f32 %v2786_v61, %v8694_v30  ;;  %v12498_v19 = vld [vmem:[#allocation220_spill] sm:$0xff]  ;;  %v12512_v39 = vld [vmem:[#allocation67_spill] sm:$0xff] }
 0x491   :  { %12467 = vst [vmem:[#allocation30_spill] sm:$0xff] %v8947_v54  ;;  %v8963_v62 = vmul.f32 %v12413_v52, %v12472_v50  ;;  %v8970_v54 = vadd.f32 %v2777_v14, %v8652_v10  ;;  %v8985_v50 = vadd.f32 %v2782_v58, %v8672_v34  ;;  %v8988_v10 = vadd.f32 %v2783_v21, %v8682_v23  ;;  %v12484_v30 = vld [vmem:[#allocation253_spill] sm:$0xff]  ;;  %v12500_v58 = vld [vmem:[#allocation46_spill] sm:$0xff]  ;;  %v12502_v61 = vld [vmem:[#allocation224_spill] sm:$0xff] }
 0x492   :  { %12471 = vst [vmem:[#allocation180_spill] sm:$0xff] %v8959_v49  ;;  %v8982_v49 = vadd.f32 %v2781_v26, %v8668_v24  ;;  %v9000_v24 = vadd.f32 %v2787_v25, %v8698_v44  ;;  %v9003_v34 = vadd.f32 %v2788_v56, %v8702_v32  ;;  %v9006_v26 = vadd.f32 %v2789_v6, %v8706_v38  ;;  %v12486_v44 = vld [vmem:[#allocation254_spill] sm:$0xff]  ;;  %v12488_v32 = vld [vmem:[#allocation255_spill] sm:$0xff] }
 0x493   :  { %12474 = vst [vmem:[#allocation193_spill] sm:$0xff] %v8988_v10  ;;  %v9009_v23 = vadd.f32 %v2790_v45, %v8710_v17  ;;  %v9018_v31 = vadd.f32 %v2793_v47, %v12484_v30  ;;  %v9021_v3 = vadd.f32 %v2794_v35, %v12486_v44  ;;  %v9024_v14 = vadd.f32 %v2795_v18, %v12488_v32  ;;  %v12490_v38 = vld [vmem:[#allocation218_spill] sm:$0xff]  ;;  %v12492_v17 = vld [vmem:[#allocation43_spill] sm:$0xff] }
 0x494   :  { %12475 = vst [vmem:[#allocation31_spill] sm:$0xff] %v8991_v40  ;;  %v9027_v8 = vadd.f32 %v2796_v33, %v12490_v38  ;;  %v9030_v45 = vadd.f32 %v2797_v42, %v12492_v17  ;;  %3997 = vmatpush.bf16.msra.mxu2 %v5002_v16  ;;  %v9036_v47 = vadd.f32 %v2799_v13, %v12496_v63  ;;  %v12504_v42 = vld [vmem:[#allocation64_spill] sm:$0xff]  ;;  %v12508_v6 = vld [vmem:[#allocation91_spill] sm:$0xff]  ;;  %v12510_v13 = vld [vmem:[#allocation225_spill] sm:$0xff] }
 0x495   :  { %12476 = vst [vmem:[#allocation92_spill] sm:$0xff] %v8994_v15  ;;  %v9039_v46 = vadd.f32 %v2800_v27, %v12498_v19  ;;  %v9042_v21 = vadd.f32 %v2801_v5, %v12500_v58  ;;  %v9045_v33 = vadd.f32 %v2802_v36, %v12502_v61  ;;  %5031 = vmatpush.bf16.msra.mxu3 %v5002_v16  ;;  %v2905_v27 = vld [vmem:[#allocation2 + $0x107] sm:$0xff]  ;;  %v12514_v30 = vld [vmem:[#allocation226_spill] sm:$0xff]  ;;  %v12516_v16 = vld [vmem:[#allocation149_spill] sm:$0xff] }
 0x496   :  { %12477 = vst [vmem:[#allocation93_spill] sm:$0xff] %v8997_v53  ;;  %v9048_v25 = vadd.f32 %v2803_v48, %v12504_v42  ;;  %v9051_v56 = vadd.f32 %v2804_v37, %v12506_v1  ;;  %v9054_v35 = vadd.f32 %v2805_v12, %v12508_v6  ;;  %v9057_v18 = vadd.f32 %v2806_v28, %v12510_v13  ;;  %v12518_v48 = vld [vmem:[#allocation227_spill] sm:$0xff]  ;;  %v2906_v37 = vld [vmem:[#allocation2 + $0x10f] sm:$0xff]  ;;  %v12530_v1 = vld [vmem:[#allocation170_spill] sm:$0xff] }
 0x497   :  { %12478 = vst [vmem:[#allocation96_spill] sm:$0xff] %v9000_v24  ;;  %v9060_v5 = vadd.f32 %v2807_v7, %v12512_v39  ;;  %v9063_v36 = vadd.f32 %v2808_v43, %v12514_v30  ;;  %v9066_v44 = vadd.f32 %v2809_v11, %v12516_v16  ;;  %v9069_v32 = vadd.f32 %v2810_v57, %v12518_v48  ;;  %v2907_v38 = vld [vmem:[#allocation2 + $0x127] sm:$0xff]  ;;  %v2908_v12 = vld [vmem:[#allocation2 + $0x12f] sm:$0xff]  ;;  %v12533_v48 = vld [vmem:[#allocation174_spill] sm:$0xff] }
 0x498   :  { %12479 = vst [vmem:[#allocation177_spill] sm:$0xff] %v9003_v34  ;;  %v2909_v17 = vld [vmem:[#allocation2 + $0x147] sm:$0xff]  ;;  %v12526_v43 = vld [vmem:[#allocation153_spill] sm:$0xff]  ;;  %3998 = vmatpush.bf16.msra.mxu2 %v5001_v20 }
 0x499   :  { %12480 = vst [vmem:[#allocation99_spill] sm:$0xff] %v9006_v26  ;;  %v12521_v28 = vld [vmem:[#allocation47_spill] sm:$0xff]  ;;  %v12524_v7 = vld [vmem:[#allocation172_spill] sm:$0xff]  ;;  %5032 = vmatpush.bf16.msra.mxu3 %v5001_v20  ;;  %v12597_v26 = vld [vmem:[#allocation58_spill] sm:$0xff] }
 0x49a   :  { %12481 = vst [vmem:[#allocation179_spill] sm:$0xff] %v9009_v23  ;;  %v9073_v63 = vadd.f32 %v12521_v28, %v12520_v2  ;;  %v12523_v19 = vld [vmem:[#allocation231_spill] sm:$0xff]  ;;  %v12527_v61 = vld [vmem:[#allocation56_spill] sm:$0xff]  ;;  %v12535_v28 = vld [vmem:[#allocation233_spill] sm:$0xff] }
 0x49b   :  { %12482 = vst [vmem:[#allocation101_spill] sm:$0xff] %v9012_v0  ;;  %v9077_v58 = vadd.f32 %v12524_v7, %v12523_v19  ;;  %v9081_v42 = vadd.f32 %v12527_v61, %v12526_v43  ;;  %v12529_v11 = vld [vmem:[#allocation232_spill] sm:$0xff]  ;;  %v12532_v16 = vld [vmem:[#allocation187_spill] sm:$0xff] }
 0x49c   :  { %12483 = vst [vmem:[#allocation181_spill] sm:$0xff] %v9015_v59  ;;  %v9085_v57 = vadd.f32 %v12530_v1, %v12529_v11  ;;  %v2910_v6 = vld [vmem:[#allocation2 + $0x14f] sm:$0xff]  ;;  %v2911_v13 = vld [vmem:[#allocation2 + $0x167] sm:$0xff]  ;;  %v9089_v2 = vadd.f32 %v12533_v48, %v12532_v16  ;;  %v5066_v0 = vld [vmem:[#allocation9 + $0x2] ss:$0 sm:$0xff] }
 0x49d   :  { %12485 = vst [vmem:[#allocation83_spill] sm:$0xff] %v9018_v31  ;;  %v2912_v39 = vld [vmem:[#allocation2 + $0x16f] sm:$0xff]  ;;  %v2913_v30 = vld [vmem:[#allocation2 + $0x187] sm:$0xff] }
 0x49e   :  { %12487 = vst [vmem:[#allocation59_spill] sm:$0xff] %v9021_v3  ;;  %v12536_v19 = vld [vmem:[#allocation28_spill] sm:$0xff]  ;;  %v12546_v48 = vld [vmem:[#allocation157_spill] sm:$0xff]  ;;  %v12553_v20 = vld [vmem:[#allocation163_spill] sm:$0xff] }
 0x49f   :  { %12489 = vst [vmem:[#allocation89_spill] sm:$0xff] %v9024_v14  ;;  %v9093_v7 = vadd.f32 %v12536_v19, %v12535_v28  ;;  %v12539_v43 = vld [vmem:[#allocation192_spill] sm:$0xff]  ;;  %v12547_v28 = vld [vmem:[#allocation30_spill] sm:$0xff] }
 0x4a0   :  { %12491 = vst [vmem:[#allocation68_spill] sm:$0xff] %v9027_v8  ;;  %v12542_v11 = vld [vmem:[#allocation176_spill] sm:$0xff]  ;;  %v9109_v19 = vadd.f32 %v12547_v28, %v12546_v48 }
 0x4a1   :  { %12493 = vst [vmem:[#allocation104_spill] sm:$0xff] %v9030_v45  ;;  %v12558_v48 = vld [vmem:[#allocation168_spill] sm:$0xff] }
 0x4a2   :  { %12495 = vst [vmem:[#allocation183_spill] sm:$0xff] %v9033_v41  ;;  %v9129_v28 = vadd.f32 %v8967_v9, %v12558_v48  ;;  %v2931_v48 = vld [vmem:[#allocation2 + $0x2e7] sm:$0xff]  ;;  %v2944_v8 = vld [vmem:[#allocation2 + $0x3af] sm:$0xff] }
 0x4a3   :  { %12497 = vst [vmem:[#allocation105_spill] sm:$0xff] %v9036_v47  ;;  %v12571_v47 = vld [vmem:[#allocation44_spill] sm:$0xff] }
 0x4a4   :  { %12499 = vst [vmem:[#allocation184_spill] sm:$0xff] %v9039_v46  ;;  %v2941_v46 = vld [vmem:[#allocation2 + $0x387] sm:$0xff] }
 0x4a5   :  { %12501 = vst [vmem:[#allocation34_spill] sm:$0xff] %v9042_v21  ;;  %v2943_v45 = vld [vmem:[#allocation2 + $0x3a7] sm:$0xff] }
 0x4a6   :  { %12503 = vst [vmem:[#allocation185_spill] sm:$0xff] %v9045_v33  ;;  %v9279_v59 = vld [vmem:[#allocation2 + $0x29] sm:$0xff] }
 0x4a7   :  { %12505 = vst [vmem:[#allocation36_spill] sm:$0xff] %v9048_v25  ;;  %v2939_v25 = vld [vmem:[#allocation2 + $0x367] sm:$0xff] }
 0x4a8   :  { %12507 = vst [vmem:[#allocation40_spill] sm:$0xff] %v9051_v56  ;;  %v2938_v56 = vld [vmem:[#allocation2 + $0x34f] sm:$0xff]  ;;  %v9312_v53 = vld [vmem:[#allocation2 + $0x67] sm:$0xff] }
 0x4a9   :  { %12509 = vst [vmem:[#allocation38_spill] sm:$0xff] %v9054_v35  ;;  %v9366_v10 = vld [vmem:[#allocation2 + $0x89] sm:$0xff] }
 0x4aa   :  { %12511 = vst [vmem:[#allocation145_spill] sm:$0xff] %v9057_v18  ;;  %v2936_v18 = vld [vmem:[#allocation2 + $0x32f] sm:$0xff] }
 0x4ab   :  { %12513 = vst [vmem:[#allocation49_spill] sm:$0xff] %v9060_v5 }
 0x4ac   :  { %12515 = vst [vmem:[#allocation61_spill] sm:$0xff] %v9063_v36  ;;  %v12544_v36 = vld [vmem:[#allocation156_spill] sm:$0xff] }
 0x4ad   :  { %12517 = vst [vmem:[#allocation55_spill] sm:$0xff] %v9066_v44  ;;  %v2917_v44 = vld [vmem:[#allocation2 + $0x1c7] sm:$0xff]  ;;  %v9105_v16 = vadd.f32 %v8943_v60, %v12544_v36  ;;  %v12556_v60 = vld [vmem:[#allocation165_spill] sm:$0xff] }
 0x4ae   :  { %12519 = vst [vmem:[#allocation151_spill] sm:$0xff] %v9069_v32  ;;  %v2916_v32 = vld [vmem:[#allocation2 + $0x1af] sm:$0xff]  ;;  %v9125_v36 = vadd.f32 %v8963_v62, %v12556_v60 }
 0x4af   :  { %12522 = vst [vmem:[#allocation70_spill] sm:$0xff] %v9073_v63  ;;  %v2915_v63 = vld [vmem:[#allocation2 + $0x1a7] sm:$0xff] }
 0x4b0   :  { %12525 = vst [vmem:[#allocation188_spill] sm:$0xff] %v9077_v58  ;;  %v12538_v58 = vld [vmem:[#allocation154_spill] sm:$0xff] }
 0x4b1   :  { %12528 = vst [vmem:[#allocation73_spill] sm:$0xff] %v9081_v42  ;;  %v9097_v61 = vadd.f32 %v12539_v43, %v12538_v58  ;;  %v12541_v42 = vld [vmem:[#allocation234_spill] sm:$0xff]  ;;  %v12551_v43 = vld [vmem:[#allocation161_spill] sm:$0xff] }
 0x4b2   :  { %12531 = vst [vmem:[#allocation189_spill] sm:$0xff] %v9085_v57  ;;  %v9101_v1 = vadd.f32 %v12542_v11, %v12541_v42  ;;  %v2914_v57 = vld [vmem:[#allocation2 + $0x18f] sm:$0xff]  ;;  %v9117_v42 = vadd.f32 %v8955_v51, %v12551_v43  ;;  %v9131_v51 = vld [vmem:[#allocation9 + $0x6] ss:$0 sm:$0xff] }
 0x4b3   :  { %12534 = vst [vmem:[#allocation134_spill] sm:$0xff] %v9089_v2  ;;  %v2918_v11 = vld [vmem:[#allocation2 + $0x1cf] sm:$0xff]  ;;  %v9134_v43 = vmul.f32 %v9131_v51, %v2905_v27  ;;  %v9140_v62 = vmul.f32 %v9131_v51, %v2907_v38  ;;  %v9143_v9 = vmul.f32 %v9131_v51, %v2908_v12  ;;  %v9146_v60 = vmul.f32 %v9131_v51, %v2909_v17 }
 0x4b4   :  { %12537 = vst [vmem:[#allocation247_spill] sm:$0xff] %v9093_v7  ;;  %v12549_v7 = vld [vmem:[#allocation159_spill] sm:$0xff]  ;;  %v12554_v2 = vld [vmem:[#allocation180_spill] sm:$0xff]  ;;  %v9149_v27 = vmul.f32 %v9131_v51, %v2910_v6  ;;  %v9158_v38 = vmul.f32 %v9131_v51, %v2913_v30  ;;  %v9161_v17 = vmul.f32 %v9131_v51, %v2914_v57  ;;  %v9164_v35 = vmul.f32 %v9131_v51, %v2915_v63  ;;  %v12569_v63 = vld [vmem:[#allocation41_spill] sm:$0xff] }
 0x4b5   :  { %12540 = vst [vmem:[#allocation136_spill] sm:$0xff] %v9097_v61  ;;  %v9113_v58 = vadd.f32 %v8951_v55, %v12549_v7  ;;  %v2920_v61 = vld [vmem:[#allocation2 + $0x1ef] sm:$0xff]  ;;  %v9121_v5 = vadd.f32 %v12554_v2, %v12553_v20  ;;  %v2925_v55 = vld [vmem:[#allocation2 + $0x287] sm:$0xff]  ;;  %v9137_v20 = vmul.f32 %v9131_v51, %v2906_v37  ;;  %v9155_v37 = vmul.f32 %v9131_v51, %v2912_v39 }
 0x4b6   :  { %12543 = vst [vmem:[#allocation248_spill] sm:$0xff] %v9101_v1  ;;  %v2919_v1 = vld [vmem:[#allocation2 + $0x1e7] sm:$0xff]  ;;  %v2926_v7 = vld [vmem:[#allocation2 + $0x28f] sm:$0xff]  ;;  %v9167_v6 = vmul.f32 %v9131_v51, %v2916_v32  ;;  %v9173_v30 = vmul.f32 %v9131_v51, %v2918_v11  ;;  %v9179_v57 = vmul.f32 %v9131_v51, %v2920_v61  ;;  %v9183_v21 = vmul.f32 %v9131_v51, %v12569_v63 }
 0x4b7   :  { %12545 = vst [vmem:[#allocation137_spill] sm:$0xff] %v9105_v16  ;;  %v2930_v2 = vld [vmem:[#allocation2 + $0x2cf] sm:$0xff]  ;;  %v2935_v16 = vld [vmem:[#allocation2 + $0x327] sm:$0xff]  ;;  %v9176_v33 = vmul.f32 %v9131_v51, %v2919_v1  ;;  %v9187_v41 = vmul.f32 %v9131_v51, %v12571_v47  ;;  %v9190_v11 = vmul.f32 %v9131_v51, %v2925_v55  ;;  %v9193_v1 = vmul.f32 %v9131_v51, %v2926_v7 }
 0x4b8   :  { %12548 = vst [vmem:[#allocation249_spill] sm:$0xff] %v9109_v19  ;;  %v2929_v19 = vld [vmem:[#allocation2 + $0x2c7] sm:$0xff]  ;;  %v2934_v12 = vld [vmem:[#allocation2 + $0x30f] sm:$0xff]  ;;  %v9205_v47 = vmul.f32 %v9131_v51, %v2930_v2  ;;  %v9208_v55 = vmul.f32 %v9131_v51, %v2931_v48  ;;  %v9227_v48 = vmul.f32 %v9131_v51, %v2936_v18  ;;  %v9248_v18 = vmul.f32 %v9131_v51, %v2941_v46 }
 0x4b9   :  { %12550 = vst [vmem:[#allocation138_spill] sm:$0xff] %v9113_v58  ;;  %v2927_v58 = vld [vmem:[#allocation2 + $0x2a7] sm:$0xff]  ;;  %v2940_v32 = vld [vmem:[#allocation2 + $0x36f] sm:$0xff]  ;;  %v9202_v14 = vmul.f32 %v9131_v51, %v2929_v19  ;;  %v9263_v46 = vmul.f32 %v9131_v51, %v2944_v8 }
 0x4ba   :  { %12552 = vst [vmem:[#allocation139_spill] sm:$0xff] %v9117_v42  ;;  %v2928_v42 = vld [vmem:[#allocation2 + $0x2af] sm:$0xff]  ;;  %v2937_v39 = vld [vmem:[#allocation2 + $0x347] sm:$0xff]  ;;  %v9196_v61 = vmul.f32 %v9131_v51, %v2927_v58 }
 0x4bb   :  { %12555 = vst [vmem:[#allocation140_spill] sm:$0xff] %v9121_v5  ;;  %v9152_v5 = vmul.f32 %v9131_v51, %v2911_v13  ;;  %v9170_v13 = vmul.f32 %v9131_v51, %v2917_v44  ;;  %v2942_v44 = vld [vmem:[#allocation2 + $0x38f] sm:$0xff]  ;;  %v9199_v63 = vmul.f32 %v9131_v51, %v2928_v42  ;;  %v9220_v42 = vmul.f32 %v9131_v51, %v2935_v16 }
 0x4bc   :  { %12557 = vst [vmem:[#allocation141_spill] sm:$0xff] %v9125_v36  ;;  %v2933_v36 = vld [vmem:[#allocation2 + $0x307] sm:$0xff]  ;;  %v1793_v19 = vld [vmem:[#allocation2 + $0xf] sm:$0xff] }
 0x4bd   :  { %12559 = vst [vmem:[#allocation142_spill] sm:$0xff] %v9129_v28  ;;  %v2932_v28 = vld [vmem:[#allocation2 + $0x2ef] sm:$0xff]  ;;  %v9214_v58 = vmul.f32 %v9131_v51, %v2933_v36  ;;  %v9233_v36 = vmul.f32 %v9131_v51, %v2938_v56 }
 0x4be   :  { %12560 = vst [vmem:[#allocation143_spill] sm:$0xff] %v9155_v37  ;;  %v9211_v7 = vmul.f32 %v9131_v51, %v2932_v28  ;;  %v9224_v2 = vld [vmem:[#allocation2 + $0x2f] sm:$0xff]  ;;  %v9230_v28 = vmul.f32 %v9131_v51, %v2937_v39 }
 0x4bf   :  { %12561 = vst [vmem:[#allocation144_spill] sm:$0xff] %v9158_v38  ;;  %v9240_v16 = vld [vmem:[#allocation2 + $0x28] sm:$0xff]  ;;  %v9364_v37 = vld [vmem:[#allocation2 + $0x71] sm:$0xff] }
 0x4c0   :  { %12562 = vst [vmem:[#allocation147_spill] sm:$0xff] %v9161_v17  ;;  %v9250_v39 = vld [vmem:[#allocation2 + $0x4f] sm:$0xff] }
 0x4c1   :  { %12563 = vst [vmem:[#allocation148_spill] sm:$0xff] %v9164_v35 }
 0x4c2   :  { %12564 = vst [vmem:[#allocation150_spill] sm:$0xff] %v9167_v6  ;;  %v12599_v6 = vld [vmem:[#allocation135_spill] sm:$0xff] }
 0x4c3   :  { %12565 = vst [vmem:[#allocation152_spill] sm:$0xff] %v9170_v13  ;;  %v12598_v13 = vld [vmem:[#allocation94_spill] sm:$0xff] }
 0x4c4   :  { %12566 = vst [vmem:[#allocation155_spill] sm:$0xff] %v9173_v30  ;;  %v9289_v30 = vld [vmem:[#allocation2 + $0x49] sm:$0xff]  ;;  %v2058_v34 = vadd.f32 %v12598_v13, %v12597_v26 }
 0x4c5   :  { %12567 = vst [vmem:[#allocation158_spill] sm:$0xff] %v9176_v33 }
 0x4c6   :  { %12568 = vst [vmem:[#allocation160_spill] sm:$0xff] %v9179_v57  ;;  %v9281_v57 = vld [vmem:[#allocation2 + $0x31] sm:$0xff] }
 0x4c7   :  { %12570 = vst [vmem:[#allocation162_spill] sm:$0xff] %v9183_v21  ;;  %v2185_v35 = vmul.f32 %v5066_v0, %v9281_v57 }
 0x4c8   :  { %12572 = vst [vmem:[#allocation164_spill] sm:$0xff] %v9187_v41 }
 0x4c9   :  { %12573 = vst [vmem:[#allocation166_spill] sm:$0xff] %v9190_v11  ;;  %v1792_v11 = vld [vmem:[#allocation2 + $0x7] sm:$0xff] }
 0x4ca   :  { %12574 = vst [vmem:[#allocation29_spill] sm:$0xff] %v9193_v1  ;;  %v2948_v1 = vld [vmem:[#allocation2 + $0x3ef] sm:$0xff] }
 0x4cb   :  { %12575 = vst [vmem:[#allocation175_spill] sm:$0xff] %v9196_v61  ;;  %v9217_v61 = vmul.f32 %v9131_v51, %v2934_v12  ;;  %v9236_v12 = vmul.f32 %v9131_v51, %v2939_v25  ;;  %v9254_v25 = vld [vmem:[#allocation2 + $0x50] sm:$0xff] }
 0x4cc   :  { %12576 = vst [vmem:[#allocation178_spill] sm:$0xff] %v9199_v63  ;;  %v9257_v63 = vmul.f32 %v9131_v51, %v2942_v44  ;;  %v2117_v44 = vld [vmem:[#allocation2 + $0x11] sm:$0xff] }
 0x4cd   :  { %12577 = vst [vmem:[#allocation32_spill] sm:$0xff] %v9202_v14  ;;  %v9222_v14 = vld [vmem:[#allocation2 + $0x27] sm:$0xff] }
 0x4ce   :  { %12578 = vst [vmem:[#allocation33_spill] sm:$0xff] %v9205_v47  ;;  %v2946_v47 = vld [vmem:[#allocation2 + $0x3cf] sm:$0xff] }
 0x4cf   :  { %12579 = vst [vmem:[#allocation35_spill] sm:$0xff] %v9208_v55  ;;  %v2945_v55 = vld [vmem:[#allocation2 + $0x3c7] sm:$0xff] }
 0x4d0   :  { %12580 = vst [vmem:[#allocation37_spill] sm:$0xff] %v9211_v7 }
 0x4d1   :  { %12581 = vst [vmem:[#allocation50_spill] sm:$0xff] %v9214_v58  ;;  %v9245_v58 = vmul.f32 %v9131_v51, %v2940_v32  ;;  %v9260_v32 = vmul.f32 %v9131_v51, %v2943_v45 }
 0x4d2   :  { %12582 = vst [vmem:[#allocation53_spill] sm:$0xff] %v9217_v61  ;;  %v9238_v61 = vld [vmem:[#allocation2 + $0x47] sm:$0xff] }
 0x4d3   :  { %12583 = vst [vmem:[#allocation190_spill] sm:$0xff] %v9220_v42  ;;  %v9242_v42 = vld [vmem:[#allocation2 + $0x30] sm:$0xff] }
 0x4d4   :  { %12584 = vst [vmem:[#allocation191_spill] sm:$0xff] %v9227_v48  ;;  %v5065_v48 = vld [vmem:[#allocation9 + $0x1] ss:$0 sm:$0xff] }
 0x4d5   :  { %12585 = vst [vmem:[#allocation195_spill] sm:$0xff] %v9230_v28  ;;  %v5063_v28 = vld [vmem:[#allocation9] ss:$0 sm:$0xff]  ;;  %v1991_v31 = vmul.f32 %v5065_v48, %v9242_v42 }
 0x4d6   :  { %12586 = vst [vmem:[#allocation196_spill] sm:$0xff] %v9233_v36  ;;  %v1858_v56 = vmul.f32 %v5063_v28, %v1792_v11  ;;  %v9252_v36 = vld [vmem:[#allocation2 + $0x48] sm:$0xff]  ;;  %v1860_v3 = vmul.f32 %v5063_v28, %v9222_v14  ;;  %v1861_v41 = vmul.f32 %v5063_v28, %v9224_v2  ;;  %v1863_v45 = vmul.f32 %v5063_v28, %v9250_v39 }
 0x4d7   :  { %12587 = vst [vmem:[#allocation197_spill] sm:$0xff] %v9236_v12  ;;  %v5064_v12 = vld [vmem:[#allocation2] sm:$0xff]  ;;  %v2116_v11 = vld [vmem:[#allocation2 + $0x9] sm:$0xff]  ;;  %v1992_v8 = vmul.f32 %v5065_v48, %v9252_v36 }
 0x4d8   :  { %12588 = vst [vmem:[#allocation198_spill] sm:$0xff] %v9245_v58  ;;  %v1988_v7 = vmul.f32 %v5065_v48, %v5064_v12  ;;  %v2947_v58 = vld [vmem:[#allocation2 + $0x3e7] sm:$0xff]  ;;  %v1990_v12 = vmul.f32 %v5065_v48, %v9240_v16  ;;  %v2182_v33 = vmul.f32 %v5066_v0, %v2116_v11  ;;  %v12600_v11 = vld [vmem:[#allocation98_spill] sm:$0xff] }
 0x4d9   :  { %12589 = vst [vmem:[#allocation200_spill] sm:$0xff] %v9248_v18  ;;  %v1859_v18 = vmul.f32 %v5063_v28, %v1793_v19  ;;  %v1993_v19 = vmul.f32 %v5065_v48, %v9254_v25  ;;  %v9284_v23 = vmul.f32 %v9131_v51, %v2947_v58  ;;  %v2059_v24 = vadd.f32 %v12600_v11, %v12599_v6  ;;  %v9297_v58 = vld [vmem:[#allocation2 + $0x69] sm:$0xff] }
 0x4da   :  { %12590 = vst [vmem:[#allocation201_spill] sm:$0xff] %v9257_v63  ;;  %v1862_v63 = vmul.f32 %v5063_v28, %v9238_v61  ;;  %v2052_v21 = vadd.f32 %v1988_v7, %v1858_v56  ;;  %v9287_v28 = vmul.f32 %v9131_v51, %v2948_v1  ;;  %v2054_v56 = vadd.f32 %v1990_v12, %v1860_v3  ;;  %v2950_v1 = vld [vmem:[#allocation2 + $0x40f] sm:$0xff] }
 0x4db   :  { %12591 = vst [vmem:[#allocation202_spill] sm:$0xff] %v9260_v32  ;;  %v9277_v32 = vmul.f32 %v9131_v51, %v2946_v47  ;;  %v2053_v48 = vadd.f32 %v1988_v7, %v1859_v18  ;;  %v2183_v47 = vmul.f32 %v5066_v0, %v2117_v44  ;;  %v2057_v7 = vadd.f32 %v1993_v19, %v1863_v45 }
 0x4dc   :  { %12592 = vst [vmem:[#allocation203_spill] sm:$0xff] %v9263_v46  ;;  %v9274_v46 = vmul.f32 %v9131_v51, %v2945_v55  ;;  %v9291_v55 = vld [vmem:[#allocation2 + $0x51] sm:$0xff]  ;;  %v2184_v18 = vmul.f32 %v5066_v0, %v9279_v59  ;;  %v2186_v44 = vmul.f32 %v5066_v0, %v9289_v30  ;;  %v2246_v3 = vadd.f32 %v2182_v33, %v2052_v21 }
 0x4dd   :  { %12594 = vst [vmem:[#allocation206_spill] sm:$0xff] %v9277_v32  ;;  %v2123_v32 = vld [vmem:[#allocation2 + $0x71] sm:$0xff]  ;;  %v2188_v6 = vmul.f32 %v5066_v0, %v9297_v58  ;;  %v2247_v12 = vadd.f32 %v2183_v47, %v2053_v48  ;;  %v9310_v45 = vmul.f32 %v9131_v51, %v2950_v1 }
 0x4de   :  { %12593 = vst [vmem:[#allocation205_spill] sm:$0xff] %v9274_v46  ;;  %v2055_v46 = vadd.f32 %v1991_v31, %v1861_v41  ;;  %v2187_v31 = vmul.f32 %v5066_v0, %v9291_v55  ;;  %v5067_v41 = vld [vmem:[#allocation9 + $0x3] ss:$0 sm:$0xff]  ;;  %v2189_v13 = vmul.f32 %v5066_v0, %v2123_v32  ;;  %v9314_v21 = vld [vmem:[#allocation2 + $0x6f] sm:$0xff]  ;;  %v9316_v0 = vld [vmem:[#allocation2 + $0x87] sm:$0xff] }
 0x4df   :  { %12595 = vst [vmem:[#allocation207_spill] sm:$0xff] %v9284_v23  ;;  %v2949_v23 = vld [vmem:[#allocation2 + $0x407] sm:$0xff]  ;;  %v2376_v26 = vmul.f32 %v5067_v41, %v9222_v14  ;;  %v2377_v11 = vmul.f32 %v5067_v41, %v9224_v2  ;;  %v2252_v17 = vadd.f32 %v2188_v6, %v2058_v34  ;;  %v9318_v32 = vld [vmem:[#allocation2 + $0x8f] sm:$0xff]  ;;  %v12603_v2 = vld [vmem:[#allocation62_spill] sm:$0xff]  ;;  %v2381_v34 = vmul.f32 %v5067_v41, %v9314_v21 }
 0x4e0   :  { %12596 = vst [vmem:[#allocation208_spill] sm:$0xff] %v9287_v28  ;;  %v2056_v28 = vadd.f32 %v1992_v8, %v1862_v63  ;;  %v9307_v63 = vmul.f32 %v9131_v51, %v2949_v23  ;;  %v2248_v8 = vadd.f32 %v2184_v18, %v2054_v56  ;;  %v2249_v19 = vadd.f32 %v2185_v35, %v2055_v46  ;;  %v12604_v23 = vld [vmem:[#allocation71_spill] sm:$0xff]  ;;  %v12605_v47 = vld [vmem:[#allocation65_spill] sm:$0xff]  ;;  %v12606_v1 = vld [vmem:[#allocation204_spill] sm:$0xff] }
 0x4e1   :  { %12602 = vst [vmem:[#allocation210_spill] sm:$0xff] %v9310_v45  ;;  %v2251_v14 = vadd.f32 %v2187_v31, %v2057_v7  ;;  %v2253_v15 = vadd.f32 %v2189_v13, %v2059_v24  ;;  %v2254_v48 = vadd.f32 %v12604_v23, %v12603_v2  ;;  %v2255_v45 = vadd.f32 %v12606_v1, %v12605_v47  ;;  %v12607_v31 = vld [vmem:[#allocation52_spill] sm:$0xff] }
 0x4e2   :  { %12601 = vst [vmem:[#allocation209_spill] sm:$0xff] %v9307_v63  ;;  %v2250_v33 = vadd.f32 %v2186_v44, %v2056_v28  ;;  %v2378_v35 = vmul.f32 %v5067_v41, %v9238_v61  ;;  %v2440_v46 = vadd.f32 %v2376_v26, %v2246_v3  ;;  %v2379_v56 = vmul.f32 %v5067_v41, %v9250_v39  ;;  %v9332_v47 = vld [vmem:[#allocation2 + $0x68] sm:$0xff]  ;;  %v9334_v3 = vld [vmem:[#allocation2 + $0x70] sm:$0xff] }
 0x4e3   :  { %v2380_v28 = vmul.f32 %v5067_v41, %v9312_v53  ;;  %v2441_v24 = vadd.f32 %v2377_v11, %v2247_v12  ;;  %v2382_v7 = vmul.f32 %v5067_v41, %v9316_v0  ;;  %v2383_v18 = vmul.f32 %v5067_v41, %v9318_v32  ;;  %v2512_v1 = vld [vmem:[#allocation2 + $0xa8] sm:$0xff]  ;;  %v9340_v41 = vld [vmem:[#allocation2 + $0x90] sm:$0xff] }
 0x4e4   :  { %v2442_v44 = vadd.f32 %v2378_v35, %v2248_v8  ;;  %v2570_v6 = vmul.f32 %v12607_v31, %v9240_v16  ;;  %v2443_v13 = vadd.f32 %v2379_v56, %v2249_v19  ;;  %v2445_v23 = vadd.f32 %v2381_v34, %v2251_v14  ;;  %v9338_v63 = vld [vmem:[#allocation2 + $0x88] sm:$0xff]  ;;  %v2513_v19 = vld [vmem:[#allocation2 + $0xb0] sm:$0xff] }
 0x4e5   :  { %v2444_v2 = vadd.f32 %v2380_v28, %v2250_v33  ;;  %v2571_v26 = vmul.f32 %v12607_v31, %v9242_v42  ;;  %v2446_v12 = vadd.f32 %v2382_v7, %v2252_v17  ;;  %v2447_v11 = vadd.f32 %v2383_v18, %v2253_v15  ;;  %v12608_v33 = vld [vmem:[#allocation182_spill] sm:$0xff]  ;;  %v12609_v35 = vld [vmem:[#allocation39_spill] sm:$0xff] }
 0x4e6   :  { %v2572_v16 = vmul.f32 %v12607_v31, %v9252_v36  ;;  %v2634_v8 = vadd.f32 %v2570_v6, %v2440_v46  ;;  %v2448_v14 = vadd.f32 %v12608_v33, %v2254_v48  ;;  %v2449_v56 = vadd.f32 %v12609_v35, %v2255_v45 }
 0x4e7   :  { %v2573_v28 = vmul.f32 %v12607_v31, %v9254_v25  ;;  %v2635_v42 = vadd.f32 %v2571_v26, %v2441_v24  ;;  %v2574_v15 = vmul.f32 %v12607_v31, %v9332_v47  ;;  %v2575_v17 = vmul.f32 %v12607_v31, %v9334_v3 }
 0x4e8   :  { %v2636_v34 = vadd.f32 %v2572_v16, %v2442_v44  ;;  %v2764_v7 = vmul.f32 %v12413_v52, %v9279_v59  ;;  %v2576_v46 = vmul.f32 %v12607_v31, %v9338_v63  ;;  %v2577_v45 = vmul.f32 %v12607_v31, %v9340_v41 }
 0x4e9   :  { %v2578_v48 = vmul.f32 %v12607_v31, %v2512_v1  ;;  %v2765_v24 = vmul.f32 %v12413_v52, %v9281_v57  ;;  %v2579_v18 = vmul.f32 %v12607_v31, %v2513_v19  ;;  %v2637_v6 = vadd.f32 %v2573_v28, %v2443_v13  ;;  %v9368_v1 = vld [vmem:[#allocation2 + $0x91] sm:$0xff]  ;;  %v12610_v19 = vld [vmem:[#allocation194_spill] sm:$0xff]  ;;  %v12611_v28 = vld [vmem:[#allocation171_spill] sm:$0xff] }
 0x4ea   :  { %v2766_v44 = vmul.f32 %v12413_v52, %v9289_v30  ;;  %v2828_v26 = vadd.f32 %v2764_v7, %v2634_v8  ;;  %v2638_v16 = vadd.f32 %v2574_v15, %v2444_v2  ;;  %v2639_v59 = vadd.f32 %v2575_v17, %v2445_v23  ;;  %v12612_v2 = vld [vmem:[#allocation199_spill] sm:$0xff]  ;;  %v12613_v23 = vld [vmem:[#allocation173_spill] sm:$0xff] }
 0x4eb   :  { %v2640_v33 = vadd.f32 %v2576_v46, %v2446_v12  ;;  %v2829_v35 = vadd.f32 %v2765_v24, %v2635_v42  ;;  %v2641_v38 = vadd.f32 %v2577_v45, %v2447_v11  ;;  %v2642_v40 = vadd.f32 %v2578_v48, %v2448_v14  ;;  %v9376_v42 = vld [vmem:[#allocation2 + $0xa9] sm:$0xff]  ;;  %v9380_v14 = vld [vmem:[#allocation2 + $0xb1] sm:$0xff] }
 0x4ec   :  { %v2830_v57 = vadd.f32 %v2766_v44, %v2636_v34  ;;  %v2959_v31 = vmul.f32 %v9131_v51, %v9238_v61  ;;  %v2643_v13 = vadd.f32 %v2579_v18, %v2449_v56  ;;  %v2644_v8 = vadd.f32 %v12611_v28, %v12610_v19  ;;  %v9396_v18 = vld [vmem:[#allocation9 + $0x7] ss:$0 sm:$0xff] }
 0x4ed   :  { %v2645_v12 = vadd.f32 %v12613_v23, %v12612_v2  ;;  %v2960_v11 = vmul.f32 %v9131_v51, %v9250_v39  ;;  %v2767_v15 = vmul.f32 %v12413_v52, %v9291_v55  ;;  %v2768_v61 = vmul.f32 %v12413_v52, %v9297_v58 }
 0x4ee   :  { %v2961_v56 = vmul.f32 %v9131_v51, %v9312_v53  ;;  %v3023_v17 = vadd.f32 %v2959_v31, %v2828_v26  ;;  %v2769_v34 = vmul.f32 %v12413_v52, %v9364_v37  ;;  %v2770_v7 = vmul.f32 %v12413_v52, %v9366_v10  ;;  %v5069_v26 = vld [vmem:[#allocation2 + $0xc9] sm:$0xff] }
 0x4ef   :  { %v2771_v39 = vmul.f32 %v12413_v52, %v9368_v1  ;;  %v3024_v46 = vadd.f32 %v2960_v11, %v2829_v35  ;;  %v2772_v45 = vmul.f32 %v12413_v52, %v9376_v42  ;;  %v2831_v48 = vadd.f32 %v2767_v15, %v2637_v6 }
 0x4f0   :  { %v3025_v24 = vadd.f32 %v2961_v56, %v2830_v57  ;;  %v3153_v53 = vmul.f32 %v9396_v18, %v9252_v36  ;;  %v2773_v44 = vmul.f32 %v12413_v52, %v9380_v14  ;;  %v2774_v31 = vmul.f32 %v5069_v26, %v12413_v52  ;;  %v2899_v56 = vld [vmem:[#allocation2 + $0xa7] sm:$0xff] }
 0x4f1   :  { %v2832_v19 = vadd.f32 %v2768_v61, %v2638_v16  ;;  %v3154_v35 = vmul.f32 %v9396_v18, %v9254_v25  ;;  %v2833_v28 = vadd.f32 %v2769_v34, %v2639_v59  ;;  %v2962_v6 = vmul.f32 %v9131_v51, %v9314_v21  ;;  %v9411_v26 = vld [vmem:[#allocation9 + $0x8] ss:$0 sm:$0xff] }
 0x4f2   :  { %v3155_v57 = vmul.f32 %v9396_v18, %v9332_v47  ;;  %v3217_v2 = vadd.f32 %v3153_v53, %v3023_v17  ;;  %v2834_v23 = vadd.f32 %v2770_v7, %v2640_v33  ;;  %v2835_v36 = vadd.f32 %v2771_v39, %v2641_v38  ;;  %v2900_v38 = vld [vmem:[#allocation2 + $0xaf] sm:$0xff]  ;;  %v2901_v33 = vld [vmem:[#allocation2 + $0xc7] sm:$0xff] }
 0x4f3   :  { %v2836_v11 = vadd.f32 %v2772_v45, %v2642_v40  ;;  %v3218_v15 = vadd.f32 %v3154_v35, %v3024_v46  ;;  %v2963_v52 = vmul.f32 %v9131_v51, %v9316_v0  ;;  %v3026_v16 = vadd.f32 %v2962_v6, %v2831_v48  ;;  %v12616_v45 = vld [vmem:[#allocation169_spill] sm:$0xff]  ;;  %v2903_v35 = vld [vmem:[#allocation2 + $0xe7] sm:$0xff] }
 0x4f4   :  { %v3219_v61 = vadd.f32 %v3155_v57, %v3025_v24  ;;  %v3347_v25 = vmul.f32 %v9411_v26, %v9289_v30  ;;  %v2837_v21 = vadd.f32 %v2773_v44, %v2643_v13  ;;  %v2838_v59 = vadd.f32 %v2774_v31, %v2644_v8  ;;  %v12614_v30 = vld [vmem:[#allocation167_spill] sm:$0xff]  ;;  %v2902_v8 = vld [vmem:[#allocation2 + $0xcf] sm:$0xff] }
 0x4f5   :  { %v2964_v47 = vmul.f32 %v9131_v51, %v9318_v32  ;;  %v3348_v40 = vmul.f32 %v9411_v26, %v9291_v55  ;;  %v3027_v17 = vadd.f32 %v2963_v52, %v2832_v19  ;;  %v3156_v0 = vmul.f32 %v9396_v18, %v9334_v3  ;;  %v12615_v55 = vld [vmem:[#allocation250_spill] sm:$0xff]  ;;  %v3093_v24 = vld [vmem:[#allocation2 + $0xa8] sm:$0xff]  ;;  %v3094_v6 = vld [vmem:[#allocation2 + $0xb0] sm:$0xff] }
 0x4f6   :  { %v3349_v34 = vmul.f32 %v9411_v26, %v9297_v58  ;;  %v9423_v7 = vadd.f32 %v3347_v25, %v3217_v2  ;;  %v2839_v13 = vadd.f32 %v12614_v30, %v2645_v12  ;;  %v2965_v39 = vmul.f32 %v9131_v51, %v2899_v56 }
 0x4f7   :  { %v3028_v32 = vadd.f32 %v2964_v47, %v2833_v28  ;;  %v9427_v46 = vadd.f32 %v3348_v40, %v3218_v15  ;;  %v9431_v48 = vadd.f32 %v12616_v45, %v12615_v55  ;;  %v3157_v3 = vmul.f32 %v9396_v18, %v9338_v63  ;;  %v3097_v55 = vld [vmem:[#allocation2 + $0xe8] sm:$0xff] }
 0x4f8   :  { %v3220_v53 = vadd.f32 %v3156_v0, %v3026_v16  ;;  %v9435_v58 = vadd.f32 %v3349_v34, %v3219_v61  ;;  %v2966_v44 = vmul.f32 %v9131_v51, %v2900_v38  ;;  %v2967_v12 = vmul.f32 %v9131_v51, %v2901_v33  ;;  %v2904_v16 = vld [vmem:[#allocation2 + $0xef] sm:$0xff] }
 0x4f9   :  { %v3029_v31 = vadd.f32 %v2965_v39, %v2834_v23  ;;  %v3158_v19 = vmul.f32 %v9396_v18, %v9340_v41  ;;  %v2968_v28 = vmul.f32 %v9131_v51, %v2902_v8  ;;  %v3221_v57 = vadd.f32 %v3157_v3, %v3027_v17  ;;  %v3095_v41 = vld [vmem:[#allocation2 + $0xc8] sm:$0xff]  ;;  %v3096_v17 = vld [vmem:[#allocation2 + $0xd0] sm:$0xff] }
 0x4fa   :  { %v3350_v2 = vmul.f32 %v9411_v26, %v9364_v37  ;;  %v3477_v63 = vadd.f32 %v9427_v46, %v9423_v7  ;;  %v3030_v15 = vadd.f32 %v2966_v44, %v2835_v36  ;;  %v3159_v56 = vmul.f32 %v9396_v18, %v3093_v24  ;;  %v3289_v45 = vld [vmem:[#allocation2 + $0xc9] sm:$0xff] }
 0x4fb   :  { %v3222_v52 = vadd.f32 %v3158_v19, %v3028_v32  ;;  %v3351_v23 = vmul.f32 %v9411_v26, %v9366_v10  ;;  %v3546_v47 = vmul.f32 %v9423_v7, %v9423_v7  ;;  %v3547_v37 = vmul.f32 %v9427_v46, %v9427_v46  ;;  %v3098_v19 = vld [vmem:[#allocation2 + $0xf0] sm:$0xff] }
 0x4fc   :  { %v9449_v61 = vadd.f32 %v3350_v2, %v3220_v53  ;;  %v3478_v25 = vadd.f32 %v3477_v63, %v9435_v58  ;;  %v2969_v36 = vmul.f32 %v9131_v51, %v2903_v35  ;;  %v3031_v40 = vadd.f32 %v2967_v12, %v2836_v11  ;;  %v3290_v35 = vld [vmem:[#allocation2 + $0xd1] sm:$0xff] }
 0x4fd   :  { %v3160_v38 = vmul.f32 %v9396_v18, %v3094_v6  ;;  %v3223_v33 = vadd.f32 %v3159_v56, %v3029_v31  ;;  %v3352_v10 = vmul.f32 %v9411_v26, %v9368_v1  ;;  %v9460_v0 = vadd.f32 %v3351_v23, %v3221_v57  ;;  %v3291_v56 = vld [vmem:[#allocation2 + $0xe9] sm:$0xff] }
 0x4fe   :  { %v3479_v34 = vadd.f32 %v3478_v25, %v9449_v61  ;;  %v3548_v30 = vmul.f32 %v9435_v58, %v9435_v58  ;;  %v2970_v8 = vmul.f32 %v9131_v51, %v2904_v16  ;;  %v3032_v39 = vadd.f32 %v2968_v28, %v2837_v21 }
 0x4ff   :  { %v3161_v32 = vmul.f32 %v9396_v18, %v3095_v41  ;;  %v3224_v11 = vadd.f32 %v3160_v38, %v3030_v15  ;;  %v3353_v24 = vmul.f32 %v9411_v26, %v9376_v42  ;;  %v9469_v3 = vadd.f32 %v3352_v10, %v3222_v52 }
 0x500   :  { %v3480_v1 = vadd.f32 %v3479_v34, %v9460_v0  ;;  %v3610_v53 = vadd.f32 %v3547_v37, %v3546_v47  ;;  %v3033_v44 = vadd.f32 %v2969_v36, %v2838_v59  ;;  %v3162_v12 = vmul.f32 %v9396_v18, %v3096_v17  ;;  %v3292_v37 = vld [vmem:[#allocation2 + $0xf1] sm:$0xff]  ;;  %v5071_v17 = vld [vmem:[#allocation2 + $0x108] sm:$0xff] }
 0x501   :  { %v3225_v31 = vadd.f32 %v3161_v32, %v3031_v40  ;;  %v3354_v21 = vmul.f32 %v9411_v26, %v9380_v14  ;;  %v9475_v28 = vadd.f32 %v3353_v24, %v3223_v33  ;;  %v3549_v42 = vmul.f32 %v9449_v61, %v9449_v61 }
 0x502   :  { %v3481_v6 = vadd.f32 %v3480_v1, %v9469_v3  ;;  %v3611_v57 = vadd.f32 %v3610_v53, %v3548_v30  ;;  %v3034_v2 = vadd.f32 %v2970_v8, %v2839_v13  ;;  %v3163_v63 = vmul.f32 %v9396_v18, %v3097_v55  ;;  %v3293_v30 = vld [vmem:[#allocation2 + $0x109] sm:$0xff] }
 0x503   :  { %v3226_v59 = vadd.f32 %v3162_v12, %v3032_v39  ;;  %v3355_v15 = vmul.f32 %v9411_v26, %v3289_v45  ;;  %v9482_v52 = vadd.f32 %v3354_v21, %v3224_v11  ;;  %v3550_v23 = vmul.f32 %v9460_v0, %v9460_v0  ;;  %v5072_v45 = vld [vmem:[#allocation2 + $0x110] sm:$0xff] }
 0x504   :  { %v3482_v14 = vadd.f32 %v3481_v6, %v9475_v28  ;;  %v3612_v16 = vadd.f32 %v3611_v57, %v3549_v42  ;;  %v3035_v41 = vadd.f32 %v9134_v43, %v9431_v48  ;;  %v3164_v25 = vmul.f32 %v9396_v18, %v3098_v19  ;;  %v5073_v19 = vld [vmem:[#allocation2 + $0x128] sm:$0xff] }
 0x505   :  { %v3227_v13 = vadd.f32 %v3163_v63, %v3033_v44  ;;  %v3356_v47 = vmul.f32 %v9411_v26, %v3290_v35  ;;  %v9491_v36 = vadd.f32 %v3355_v15, %v3225_v31  ;;  %v3551_v38 = vmul.f32 %v9469_v3, %v9469_v3  ;;  %v3295_v6 = vld [vmem:[#allocation2 + $0x129] sm:$0xff] }
 0x506   :  { %v3483_v40 = vadd.f32 %v3482_v14, %v9482_v52  ;;  %v3613_v33 = vadd.f32 %v3612_v16, %v3550_v23  ;;  %v3165_v10 = vmul.f32 %v5071_v17, %v9396_v18  ;;  %v3036_v43 = vadd.f32 %v9137_v20, %v8970_v54  ;;  %v3294_v20 = vld [vmem:[#allocation2 + $0x111] sm:$0xff] }
 0x507   :  { %v3228_v48 = vadd.f32 %v3164_v25, %v3034_v2  ;;  %v3357_v34 = vmul.f32 %v9411_v26, %v3291_v56  ;;  %v9500_v8 = vadd.f32 %v3356_v47, %v3226_v59  ;;  %v3552_v32 = vmul.f32 %v9475_v28, %v9475_v28  ;;  %v5074_v15 = vld [vmem:[#allocation2 + $0x130] sm:$0xff]  ;;  %v5075_v47 = vld [vmem:[#allocation2 + $0x148] sm:$0xff] }
 0x508   :  { %v3484_v39 = vadd.f32 %v3483_v40, %v9491_v36  ;;  %v3614_v11 = vadd.f32 %v3613_v33, %v3551_v38  ;;  %v3037_v55 = vadd.f32 %v9140_v62, %v8973_v4  ;;  %v3166_v24 = vmul.f32 %v5072_v45, %v9396_v18  ;;  %v3296_v14 = vld [vmem:[#allocation2 + $0x131] sm:$0xff]  ;;  %v3297_v40 = vld [vmem:[#allocation2 + $0x149] sm:$0xff] }
 0x509   :  { %v3229_v1 = vadd.f32 %v3165_v10, %v3035_v41  ;;  %v3358_v54 = vmul.f32 %v9411_v26, %v3292_v37  ;;  %v9509_v53 = vadd.f32 %v3357_v34, %v3227_v13  ;;  %v3553_v12 = vmul.f32 %v9482_v52, %v9482_v52  ;;  %v12617_v45 = vld [vmem:[#allocation193_spill] sm:$0xff] }
 0x50a   :  { %v3485_v44 = vadd.f32 %v3484_v39, %v9500_v8  ;;  %v3615_v31 = vadd.f32 %v3614_v11, %v3552_v32  ;;  %v3038_v21 = vadd.f32 %v9143_v9, %v8976_v29  ;;  %v3167_v4 = vmul.f32 %v5073_v19, %v9396_v18 }
 0x50b   :  { %v3230_v62 = vadd.f32 %v3166_v24, %v3036_v43  ;;  %v3359_v35 = vmul.f32 %v9411_v26, %v3293_v30  ;;  %v9518_v42 = vadd.f32 %v3358_v54, %v3228_v48  ;;  %v3554_v2 = vmul.f32 %v9491_v36, %v9491_v36  ;;  %v5076_v48 = vld [vmem:[#allocation2 + $0x150] sm:$0xff]  ;;  %v12618_v24 = vld [vmem:[#allocation143_spill] sm:$0xff] }
 0x50c   :  { %v3486_v57 = vadd.f32 %v3485_v44, %v9509_v53  ;;  %v3616_v63 = vadd.f32 %v3615_v31, %v3553_v12  ;;  %v3039_v59 = vadd.f32 %v9146_v60, %v8979_v22  ;;  %v3168_v29 = vmul.f32 %v5074_v15, %v9396_v18  ;;  %v3298_v30 = vld [vmem:[#allocation2 + $0x151] sm:$0xff]  ;;  %v5077_v54 = vld [vmem:[#allocation2 + $0x168] sm:$0xff] }
 0x50d   :  { %v3231_v9 = vadd.f32 %v3167_v4, %v3037_v55  ;;  %v3360_v56 = vmul.f32 %v9411_v26, %v3294_v20  ;;  %v9527_v23 = vadd.f32 %v3359_v35, %v3229_v1  ;;  %v3555_v41 = vmul.f32 %v9500_v8, %v9500_v8  ;;  %v3299_v44 = vld [vmem:[#allocation2 + $0x169] sm:$0xff] }
 0x50e   :  { %v3487_v16 = vadd.f32 %v3486_v57, %v9518_v42  ;;  %v3617_v25 = vadd.f32 %v3616_v63, %v3554_v2  ;;  %v3040_v13 = vadd.f32 %v9149_v27, %v8982_v49  ;;  %v3169_v22 = vmul.f32 %v5075_v47, %v9396_v18  ;;  %v12619_v4 = vld [vmem:[#allocation31_spill] sm:$0xff] }
 0x50f   :  { %v3232_v60 = vadd.f32 %v3168_v29, %v3038_v21  ;;  %v3361_v37 = vmul.f32 %v9411_v26, %v3295_v6  ;;  %v9536_v38 = vadd.f32 %v3360_v56, %v3230_v62  ;;  %v3556_v17 = vmul.f32 %v9509_v53, %v9509_v53  ;;  %v12620_v62 = vld [vmem:[#allocation144_spill] sm:$0xff] }
 0x510   :  { %v3488_v33 = vadd.f32 %v3487_v16, %v9527_v23  ;;  %v3618_v10 = vadd.f32 %v3617_v25, %v3555_v41  ;;  %v3041_v43 = vadd.f32 %v9152_v5, %v8985_v50  ;;  %v3170_v49 = vmul.f32 %v5076_v48, %v9396_v18  ;;  %v5078_v6 = vld [vmem:[#allocation2 + $0x170] sm:$0xff]  ;;  %v12622_v16 = vld [vmem:[#allocation147_spill] sm:$0xff] }
 0x511   :  { %v3233_v27 = vadd.f32 %v3169_v22, %v3039_v59  ;;  %v3362_v34 = vmul.f32 %v9411_v26, %v3296_v14  ;;  %v9545_v39 = vadd.f32 %v3361_v37, %v3231_v9  ;;  %v3557_v11 = vmul.f32 %v9518_v42, %v9518_v42  ;;  %v3300_v59 = vld [vmem:[#allocation2 + $0x171] sm:$0xff]  ;;  %v5079_v25 = vld [vmem:[#allocation2 + $0x188] sm:$0xff] }
 0x512   :  { %v3489_v32 = vadd.f32 %v3488_v33, %v9536_v38  ;;  %v3619_v55 = vadd.f32 %v3618_v10, %v3556_v17  ;;  %v3042_v1 = vadd.f32 %v12618_v24, %v12617_v45  ;;  %v3171_v50 = vmul.f32 %v5077_v54, %v9396_v18  ;;  %v12621_v14 = vld [vmem:[#allocation92_spill] sm:$0xff]  ;;  %v12623_v10 = vld [vmem:[#allocation93_spill] sm:$0xff]  ;;  %v12626_v54 = vld [vmem:[#allocation150_spill] sm:$0xff] }
 0x513   :  { %v3234_v5 = vadd.f32 %v3170_v49, %v3040_v13  ;;  %v3363_v20 = vmul.f32 %v9411_v26, %v3297_v40  ;;  %v9554_v12 = vadd.f32 %v3362_v34, %v3232_v60  ;;  %v3558_v21 = vmul.f32 %v9527_v23, %v9527_v23  ;;  %v3301_v60 = vld [vmem:[#allocation2 + $0x189] sm:$0xff] }
 0x514   :  { %v3490_v31 = vadd.f32 %v3489_v32, %v9545_v39  ;;  %v3620_v19 = vadd.f32 %v3619_v55, %v3557_v11  ;;  %v3043_v35 = vadd.f32 %v12620_v62, %v12619_v4  ;;  %v3172_v57 = vmul.f32 %v5078_v6, %v9396_v18  ;;  %v5080_v49 = vld [vmem:[#allocation2 + $0x190] sm:$0xff] }
 0x515   :  { %v3235_v2 = vadd.f32 %v3171_v50, %v3041_v43  ;;  %v3364_v63 = vmul.f32 %v9411_v26, %v3298_v30  ;;  %v9563_v15 = vadd.f32 %v3363_v20, %v3233_v27  ;;  %v3559_v9 = vmul.f32 %v9536_v38, %v9536_v38  ;;  %v12624_v43 = vld [vmem:[#allocation148_spill] sm:$0xff]  ;;  %v12627_v6 = vld [vmem:[#allocation177_spill] sm:$0xff] }
 0x516   :  { %v3491_v29 = vadd.f32 %v3490_v31, %v9554_v12  ;;  %v3621_v56 = vadd.f32 %v3620_v19, %v3558_v21  ;;  %v3044_v41 = vadd.f32 %v12622_v16, %v12621_v14  ;;  %v3173_v13 = vmul.f32 %v5079_v25, %v9396_v18  ;;  %v3302_v32 = vld [vmem:[#allocation2 + $0x191] sm:$0xff]  ;;  %v3303_v21 = vld [vmem:[#allocation2 + $0x1a9] sm:$0xff] }
 0x517   :  { %v3236_v47 = vadd.f32 %v3172_v57, %v3042_v1  ;;  %v3365_v22 = vmul.f32 %v9411_v26, %v3299_v44  ;;  %v9572_v37 = vadd.f32 %v3364_v63, %v3234_v5  ;;  %v3560_v33 = vmul.f32 %v9545_v39, %v9545_v39  ;;  %v12625_v1 = vld [vmem:[#allocation96_spill] sm:$0xff] }
 0x518   :  { %v3492_v40 = vadd.f32 %v3491_v29, %v9563_v15  ;;  %v3622_v17 = vadd.f32 %v3621_v56, %v3559_v9  ;;  %v3045_v48 = vadd.f32 %v12624_v43, %v12623_v10  ;;  %v3174_v27 = vmul.f32 %v5080_v49, %v9396_v18  ;;  %v5081_v5 = vld [vmem:[#allocation2 + $0x1a8] sm:$0xff]  ;;  %v5082_v63 = vld [vmem:[#allocation2 + $0x1b0] sm:$0xff] }
 0x519   :  { %v3237_v34 = vadd.f32 %v3173_v13, %v3043_v35  ;;  %v3366_v30 = vmul.f32 %v9411_v26, %v3300_v59  ;;  %v9581_v11 = vadd.f32 %v3365_v22, %v3235_v2  ;;  %v3561_v45 = vmul.f32 %v9554_v12, %v9554_v12  ;;  %v12628_v57 = vld [vmem:[#allocation152_spill] sm:$0xff]  ;;  %v12629_v13 = vld [vmem:[#allocation99_spill] sm:$0xff] }
 0x51a   :  { %v3493_v55 = vadd.f32 %v3492_v40, %v9572_v37  ;;  %v3623_v24 = vadd.f32 %v3622_v17, %v3560_v33  ;;  %v3046_v50 = vadd.f32 %v12626_v54, %v12625_v1  ;;  %v3175_v20 = vmul.f32 %v5081_v5, %v9396_v18  ;;  %v3304_v56 = vld [vmem:[#allocation2 + $0x1b1] sm:$0xff]  ;;  %v3305_v10 = vld [vmem:[#allocation2 + $0x1c9] sm:$0xff] }
 0x51b   :  { %v3238_v44 = vadd.f32 %v3174_v27, %v3044_v41  ;;  %v3367_v31 = vmul.f32 %v9411_v26, %v3301_v60  ;;  %v9590_v19 = vadd.f32 %v3366_v30, %v3236_v47  ;;  %v3562_v62 = vmul.f32 %v9563_v15, %v9563_v15  ;;  %v12630_v47 = vld [vmem:[#allocation155_spill] sm:$0xff]  ;;  %v12632_v30 = vld [vmem:[#allocation158_spill] sm:$0xff]  ;;  %v3306_v54 = vld [vmem:[#allocation2 + $0x1d1] sm:$0xff] }
 0x51c   :  { %v3494_v4 = vadd.f32 %v3493_v55, %v9581_v11  ;;  %v3624_v35 = vadd.f32 %v3623_v24, %v3561_v45  ;;  %v3047_v2 = vadd.f32 %v12628_v57, %v12627_v6  ;;  %v3176_v59 = vmul.f32 %v5082_v63, %v9396_v18  ;;  %v5083_v60 = vld [vmem:[#allocation2 + $0x1c8] sm:$0xff]  ;;  %v5084_v55 = vld [vmem:[#allocation2 + $0x1d0] sm:$0xff] }
 0x51d   :  { %v3239_v29 = vadd.f32 %v3175_v20, %v3045_v48  ;;  %v3368_v9 = vmul.f32 %v9411_v26, %v3302_v32  ;;  %v9599_v14 = vadd.f32 %v3367_v31, %v3237_v34  ;;  %v3563_v41 = vmul.f32 %v9572_v37, %v9572_v37  ;;  %v12631_v34 = vld [vmem:[#allocation179_spill] sm:$0xff]  ;;  %v12633_v31 = vld [vmem:[#allocation101_spill] sm:$0xff] }
 0x51e   :  { %v3495_v16 = vadd.f32 %v3494_v4, %v9590_v19  ;;  %v3625_v25 = vadd.f32 %v3624_v35, %v3562_v62  ;;  %v3048_v22 = vadd.f32 %v12630_v47, %v12629_v13  ;;  %v3177_v40 = vmul.f32 %v5083_v60, %v9396_v18  ;;  %v5085_v62 = vld [vmem:[#allocation2 + $0x1e8] sm:$0xff]  ;;  %v3308_v60 = vld [vmem:[#allocation2 + $0x1f1] sm:$0xff] }
 0x51f   :  { %v3240_v33 = vadd.f32 %v3176_v59, %v3046_v50  ;;  %v3369_v17 = vmul.f32 %v9411_v26, %v3303_v21  ;;  %v9608_v43 = vadd.f32 %v3368_v9, %v3238_v44  ;;  %v3564_v48 = vmul.f32 %v9581_v11, %v9581_v11  ;;  %v12634_v21 = vld [vmem:[#allocation160_spill] sm:$0xff] }
 0x520   :  { %v3496_v49 = vadd.f32 %v3495_v16, %v9599_v14  ;;  %v3626_v27 = vadd.f32 %v3625_v25, %v3563_v41  ;;  %v3049_v32 = vadd.f32 %v12632_v30, %v12631_v34  ;;  %v3178_v45 = vmul.f32 %v5084_v55, %v9396_v18  ;;  %v12636_v16 = vld [vmem:[#allocation162_spill] sm:$0xff]  ;;  %v5086_v25 = vld [vmem:[#allocation2 + $0x1f0] sm:$0xff]  ;;  %v5087_v34 = vld [vmem:[#allocation2 + $0x208] sm:$0xff] }
 0x521   :  { %v3241_v24 = vadd.f32 %v3177_v40, %v3047_v2  ;;  %v3370_v1 = vmul.f32 %v9411_v26, %v3304_v56  ;;  %v9617_v50 = vadd.f32 %v3369_v17, %v3239_v29  ;;  %v3565_v5 = vmul.f32 %v9590_v19, %v9590_v19  ;;  %v3307_v2 = vld [vmem:[#allocation2 + $0x1e9] sm:$0xff]  ;;  %v12635_v56 = vld [vmem:[#allocation181_spill] sm:$0xff] }
 0x522   :  { %v3497_v20 = vadd.f32 %v3496_v49, %v9608_v43  ;;  %v3627_v44 = vadd.f32 %v3626_v27, %v3564_v48  ;;  %v3050_v4 = vadd.f32 %v12634_v21, %v12633_v31  ;;  %v3179_v35 = vmul.f32 %v5085_v62, %v9396_v18  ;;  %v12638_v48 = vld [vmem:[#allocation83_spill] sm:$0xff]  ;;  %v12639_v49 = vld [vmem:[#allocation164_spill] sm:$0xff] }
 0x523   :  { %v3242_v6 = vadd.f32 %v3178_v45, %v3048_v22  ;;  %v3371_v57 = vmul.f32 %v9411_v26, %v3305_v10  ;;  %v9626_v63 = vadd.f32 %v3370_v1, %v3240_v33  ;;  %v3566_v59 = vmul.f32 %v9599_v14, %v9599_v14  ;;  %v2951_v45 = vld [vmem:[#allocation2 + $0x427] sm:$0xff]  ;;  %v5088_v21 = vld [vmem:[#allocation2 + $0x210] sm:$0xff] }
 0x524   :  { %v3498_v29 = vadd.f32 %v3497_v20, %v9617_v50  ;;  %v3628_v9 = vadd.f32 %v3627_v44, %v3565_v5  ;;  %v3051_v41 = vadd.f32 %v12636_v16, %v12635_v56  ;;  %v3180_v13 = vmul.f32 %v5086_v25, %v9396_v18  ;;  %v12641_v20 = vld [vmem:[#allocation59_spill] sm:$0xff]  ;;  %v12642_v44 = vld [vmem:[#allocation74_spill] sm:$0xff]  ;;  %v12644_v56 = vld [vmem:[#allocation89_spill] sm:$0xff] }
 0x525   :  { %v3243_v47 = vadd.f32 %v3179_v35, %v3049_v32  ;;  %v3372_v22 = vmul.f32 %v9411_v26, %v3306_v54  ;;  %v9635_v40 = vadd.f32 %v3371_v57, %v3241_v24  ;;  %v3567_v33 = vmul.f32 %v9608_v43, %v9608_v43  ;;  %v2952_v57 = vld [vmem:[#allocation2 + $0x42f] sm:$0xff]  ;;  %v12645_v16 = vld [vmem:[#allocation79_spill] sm:$0xff] }
 0x526   :  { %v3499_v17 = vadd.f32 %v3498_v29, %v9626_v63  ;;  %v3629_v10 = vadd.f32 %v3628_v9, %v3566_v59  ;;  %v3052_v27 = vadd.f32 %v12639_v49, %v12638_v48  ;;  %v3181_v30 = vmul.f32 %v5087_v34, %v9396_v18  ;;  %v12647_v48 = vld [vmem:[#allocation68_spill] sm:$0xff]  ;;  %v12648_v49 = vld [vmem:[#allocation166_spill] sm:$0xff] }
 0x527   :  { %12637 = vst [vmem:[#allocation211_spill] sm:$0xff] %v9635_v40  ;;  %v3244_v55 = vadd.f32 %v3180_v13, %v3050_v4  ;;  %v3373_v32 = vmul.f32 %v9411_v26, %v3307_v2  ;;  %v9644_v1 = vadd.f32 %v3372_v22, %v3242_v6  ;;  %v3568_v24 = vmul.f32 %v9617_v50, %v9617_v50  ;;  %v5089_v22 = vld [vmem:[#allocation2 + $0x209] sm:$0xff] }
 0x528   :  { %v3500_v54 = vadd.f32 %v3499_v17, %v9635_v40  ;;  %v3630_v5 = vadd.f32 %v3629_v10, %v3567_v33  ;;  %v3053_v31 = vadd.f32 %v12642_v44, %v12641_v20  ;;  %v3182_v62 = vmul.f32 %v5088_v21, %v9396_v18  ;;  %v5091_v20 = vld [vmem:[#allocation2 + $0x447] sm:$0xff] }
 0x529   :  { %12640 = vst [vmem:[#allocation212_spill] sm:$0xff] %v9644_v1  ;;  %v3245_v35 = vadd.f32 %v3181_v30, %v3051_v41  ;;  %v3374_v4 = vmul.f32 %v9411_v26, %v3308_v60  ;;  %v9653_v2 = vadd.f32 %v3373_v32, %v3243_v47  ;;  %v3569_v6 = vmul.f32 %v9626_v63, %v9626_v63  ;;  %v12649_v30 = vld [vmem:[#allocation77_spill] sm:$0xff]  ;;  %v12651_v21 = vld [vmem:[#allocation104_spill] sm:$0xff] }
 0x52a   :  { %v3501_v59 = vadd.f32 %v3500_v54, %v9644_v1  ;;  %v3631_v29 = vadd.f32 %v3630_v5, %v3568_v24  ;;  %v9659_v9 = vmul.f32 %v9131_v51, %v2951_v45  ;;  %v3054_v25 = vadd.f32 %v12645_v16, %v12644_v56 }
 0x52b   :  { %12643 = vst [vmem:[#allocation213_spill] sm:$0xff] %v9653_v2  ;;  %v3246_v13 = vadd.f32 %v3182_v62, %v3052_v27  ;;  %v3375_v41 = vmul.f32 %v5089_v22, %v9411_v26  ;;  %v9664_v60 = vadd.f32 %v3374_v4, %v3244_v55  ;;  %v3570_v47 = vmul.f32 %v9635_v40, %v9635_v40  ;;  %v5090_v27 = vld [vmem:[#allocation2 + $0x211] sm:$0xff] }
 0x52c   :  { %v3502_v33 = vadd.f32 %v3501_v59, %v9653_v2  ;;  %v3632_v17 = vadd.f32 %v3631_v29, %v3569_v6  ;;  %v9670_v10 = vmul.f32 %v9131_v51, %v2952_v57  ;;  %v3055_v34 = vadd.f32 %v12648_v49, %v12647_v48  ;;  %v12652_v62 = vld [vmem:[#allocation29_spill] sm:$0xff]  ;;  %v5092_v57 = vld [vmem:[#allocation2 + $0x288] sm:$0xff] }
 0x52d   :  { %12646 = vst [vmem:[#allocation214_spill] sm:$0xff] %v9664_v60  ;;  %v3247_v32 = vadd.f32 %v12649_v30, %v3053_v31  ;;  %v3376_v45 = vmul.f32 %v5090_v27, %v9411_v26  ;;  %v9676_v24 = vadd.f32 %v3375_v41, %v3245_v35  ;;  %v3571_v55 = vmul.f32 %v9644_v1, %v9644_v1  ;;  %v3313_v35 = vld [vmem:[#allocation2 + $0x289] sm:$0xff] }
 0x52e   :  { %v3503_v54 = vadd.f32 %v3502_v33, %v9664_v60  ;;  %v3633_v5 = vadd.f32 %v3632_v17, %v3570_v47  ;;  %v9682_v44 = vmul.f32 %v5091_v20, %v9131_v51  ;;  %v3056_v4 = vadd.f32 %v12652_v62, %v12651_v21  ;;  %v5093_v22 = vld [vmem:[#allocation2 + $0x44f] sm:$0xff]  ;;  %v12654_v47 = vld [vmem:[#allocation183_spill] sm:$0xff] }
 0x52f   :  { %12650 = vst [vmem:[#allocation215_spill] sm:$0xff] %v9676_v24  ;;  %v3185_v31 = vmul.f32 %v5092_v57, %v9396_v18  ;;  %v3248_v6 = vadd.f32 %v12649_v30, %v3054_v25  ;;  %v9688_v59 = vadd.f32 %v3376_v45, %v3246_v13  ;;  %v3572_v29 = vmul.f32 %v9653_v2, %v9653_v2  ;;  %v12655_v33 = vld [vmem:[#allocation175_spill] sm:$0xff]  ;;  %v5094_v48 = vld [vmem:[#allocation2 + $0x290] sm:$0xff]  ;;  %v12656_v13 = vld [vmem:[#allocation82_spill] sm:$0xff] }
 0x530   :  { %v3504_v56 = vadd.f32 %v3503_v54, %v9676_v24  ;;  %v3634_v16 = vadd.f32 %v3633_v5, %v3571_v55  ;;  %v9694_v41 = vmul.f32 %v5093_v22, %v9131_v51  ;;  %v3057_v17 = vadd.f32 %v12655_v33, %v12654_v47  ;;  %v3314_v30 = vld [vmem:[#allocation2 + $0x291] sm:$0xff]  ;;  %v12659_v51 = vld [vmem:[#allocation178_spill] sm:$0xff]  ;;  %v5095_v21 = vld [vmem:[#allocation2 + $0x2a8] sm:$0xff] }
 0x531   :  { %12653 = vst [vmem:[#allocation216_spill] sm:$0xff] %v9688_v59  ;;  %v3186_v49 = vmul.f32 %v5094_v48, %v9396_v18  ;;  %v3249_v25 = vadd.f32 %v3185_v31, %v3055_v34  ;;  %v9700_v27 = vadd.f32 %v12656_v13, %v3247_v32  ;;  %v3573_v45 = vmul.f32 %v9664_v60, %v9664_v60  ;;  %v12658_v5 = vld [vmem:[#allocation105_spill] sm:$0xff]  ;;  %v3315_v34 = vld [vmem:[#allocation2 + $0x2a9] sm:$0xff] }
 0x532   :  { %v3505_v55 = vadd.f32 %v3504_v56, %v9688_v59  ;;  %v3635_v54 = vadd.f32 %v3634_v16, %v3572_v29  ;;  %v3058_v20 = vadd.f32 %v12659_v51, %v12658_v5  ;;  %v3187_v62 = vmul.f32 %v5095_v21, %v9396_v18  ;;  %v12660_v31 = vld [vmem:[#allocation85_spill] sm:$0xff]  ;;  %v12662_v29 = vld [vmem:[#allocation184_spill] sm:$0xff] }
 0x533   :  { %12657 = vst [vmem:[#allocation217_spill] sm:$0xff] %v9700_v27  ;;  %v3250_v57 = vadd.f32 %v3186_v49, %v3056_v4  ;;  %v3379_v22 = vmul.f32 %v9411_v26, %v3313_v35  ;;  %v9710_v47 = vadd.f32 %v12660_v31, %v3248_v6  ;;  %v3574_v32 = vmul.f32 %v9676_v24, %v9676_v24  ;;  %v12663_v16 = vld [vmem:[#allocation32_spill] sm:$0xff] }
 0x534   :  { %v3506_v33 = vadd.f32 %v3505_v55, %v9700_v27  ;;  %v3636_v56 = vadd.f32 %v3635_v54, %v3573_v45  ;;  %v3059_v48 = vadd.f32 %v12663_v16, %v12662_v29  ;;  %v5096_v13 = vld [vmem:[#allocation2 + $0x2b0] sm:$0xff]  ;;  %v3251_v51 = vadd.f32 %v3187_v62, %v3057_v17  ;;  %v12665_v55 = vld [vmem:[#allocation34_spill] sm:$0xff]  ;;  %v5097_v24 = vld [vmem:[#allocation2 + $0x2c8] sm:$0xff] }
 0x535   :  { %12661 = vst [vmem:[#allocation221_spill] sm:$0xff] %v9710_v47  ;;  %v3188_v5 = vmul.f32 %v5096_v13, %v9396_v18  ;;  %v3380_v4 = vmul.f32 %v9411_v26, %v3314_v30  ;;  %v3316_v35 = vld [vmem:[#allocation2 + $0x2b1] sm:$0xff]  ;;  %v9719_v49 = vadd.f32 %v3379_v22, %v3249_v25  ;;  %v3575_v6 = vmul.f32 %v9688_v59, %v9688_v59  ;;  %v3317_v62 = vld [vmem:[#allocation2 + $0x2c9] sm:$0xff] }
 0x536   :  { %v3507_v21 = vadd.f32 %v3506_v33, %v9710_v47  ;;  %v3637_v31 = vadd.f32 %v3636_v56, %v3574_v32  ;;  %v12666_v45 = vld [vmem:[#allocation33_spill] sm:$0xff]  ;;  %v3189_v29 = vmul.f32 %v5097_v24, %v9396_v18  ;;  %v3381_v17 = vmul.f32 %v9411_v26, %v3315_v34  ;;  %v12669_v32 = vld [vmem:[#allocation35_spill] sm:$0xff] }
 0x537   :  { %12664 = vst [vmem:[#allocation222_spill] sm:$0xff] %v9719_v49  ;;  %v3060_v54 = vadd.f32 %v12666_v45, %v12665_v55  ;;  %v3252_v16 = vadd.f32 %v3188_v5, %v3058_v20  ;;  %v9728_v30 = vadd.f32 %v3380_v4, %v3250_v57  ;;  %v3576_v25 = vmul.f32 %v9700_v27, %v9700_v27  ;;  %v12668_v33 = vld [vmem:[#allocation185_spill] sm:$0xff]  ;;  %v5099_v27 = vld [vmem:[#allocation2 + $0x2e8] sm:$0xff] }
 0x538   :  { %v3508_v22 = vadd.f32 %v3507_v21, %v9719_v49  ;;  %v3638_v13 = vadd.f32 %v3637_v31, %v3575_v6  ;;  %v3061_v56 = vadd.f32 %v12669_v32, %v12668_v33  ;;  %v5098_v59 = vld [vmem:[#allocation2 + $0x2d0] sm:$0xff]  ;;  %v3253_v45 = vadd.f32 %v3189_v29, %v3059_v48  ;;  %v5117_v60 = vld [vmem:[#allocation2 + $0x408] sm:$0xff] }
 0x539   :  { %12667 = vst [vmem:[#allocation223_spill] sm:$0xff] %v9728_v30  ;;  %v3190_v55 = vmul.f32 %v5098_v59, %v9396_v18  ;;  %v3382_v24 = vmul.f32 %v9411_v26, %v3316_v35  ;;  %v3318_v20 = vld [vmem:[#allocation2 + $0x2d1] sm:$0xff]  ;;  %v9737_v34 = vadd.f32 %v3381_v17, %v3251_v51  ;;  %v3577_v57 = vmul.f32 %v9710_v47, %v9710_v47  ;;  %v3319_v48 = vld [vmem:[#allocation2 + $0x2e9] sm:$0xff] }
 0x53a   :  { %v3509_v5 = vadd.f32 %v3508_v22, %v9728_v30  ;;  %v3639_v4 = vadd.f32 %v3638_v13, %v3576_v25  ;;  %v12671_v21 = vld [vmem:[#allocation36_spill] sm:$0xff]  ;;  %v12672_v6 = vld [vmem:[#allocation37_spill] sm:$0xff]  ;;  %v3191_v33 = vmul.f32 %v5099_v27, %v9396_v18  ;;  %v3383_v59 = vmul.f32 %v9411_v26, %v3317_v62  ;;  %v12675_v25 = vld [vmem:[#allocation50_spill] sm:$0xff] }
 0x53b   :  { %12670 = vst [vmem:[#allocation228_spill] sm:$0xff] %v9737_v34  ;;  %v3062_v31 = vadd.f32 %v12672_v6, %v12671_v21  ;;  %v3254_v32 = vadd.f32 %v3190_v55, %v3060_v54  ;;  %v9746_v35 = vadd.f32 %v3382_v24, %v3252_v16  ;;  %v3578_v51 = vmul.f32 %v9719_v49, %v9719_v49  ;;  %v12674_v22 = vld [vmem:[#allocation40_spill] sm:$0xff] }
 0x53c   :  { %v3510_v29 = vadd.f32 %v3509_v5, %v9737_v34  ;;  %v3640_v17 = vadd.f32 %v3639_v4, %v3577_v57  ;;  %v3063_v13 = vadd.f32 %v12675_v25, %v12674_v22  ;;  %v5100_v47 = vld [vmem:[#allocation2 + $0x2f0] sm:$0xff]  ;;  %v3255_v6 = vadd.f32 %v3191_v33, %v3061_v56  ;;  %v12677_v5 = vld [vmem:[#allocation38_spill] sm:$0xff]  ;;  %v5101_v49 = vld [vmem:[#allocation2 + $0x308] sm:$0xff] }
 0x53d   :  { %12673 = vst [vmem:[#allocation229_spill] sm:$0xff] %v9746_v35  ;;  %v3192_v21 = vmul.f32 %v5100_v47, %v9396_v18  ;;  %v3384_v27 = vmul.f32 %v9411_v26, %v3318_v20  ;;  %v3320_v54 = vld [vmem:[#allocation2 + $0x2f1] sm:$0xff]  ;;  %v9755_v62 = vadd.f32 %v3383_v59, %v3253_v45  ;;  %v3579_v16 = vmul.f32 %v9728_v30, %v9728_v30  ;;  %v3321_v56 = vld [vmem:[#allocation2 + $0x309] sm:$0xff] }
 0x53e   :  { %v3511_v55 = vadd.f32 %v3510_v29, %v9746_v35  ;;  %v3641_v24 = vadd.f32 %v3640_v17, %v3578_v51  ;;  %v12678_v57 = vld [vmem:[#allocation53_spill] sm:$0xff]  ;;  %v3193_v22 = vmul.f32 %v5101_v49, %v9396_v18  ;;  %v3385_v47 = vmul.f32 %v9411_v26, %v3319_v48  ;;  %v12681_v51 = vld [vmem:[#allocation190_spill] sm:$0xff] }
 0x53f   :  { %12676 = vst [vmem:[#allocation230_spill] sm:$0xff] %v9755_v62  ;;  %v3064_v4 = vadd.f32 %v12678_v57, %v12677_v5  ;;  %v3256_v25 = vadd.f32 %v3192_v21, %v3062_v31  ;;  %v9764_v20 = vadd.f32 %v3384_v27, %v3254_v32  ;;  %v3580_v45 = vmul.f32 %v9737_v34, %v9737_v34  ;;  %v12680_v29 = vld [vmem:[#allocation145_spill] sm:$0xff]  ;;  %v5103_v34 = vld [vmem:[#allocation2 + $0x328] sm:$0xff] }
 0x540   :  { %v3512_v33 = vadd.f32 %v3511_v55, %v9755_v62  ;;  %v3642_v59 = vadd.f32 %v3641_v24, %v3579_v16  ;;  %v3065_v17 = vadd.f32 %v12681_v51, %v12680_v29  ;;  %v5102_v30 = vld [vmem:[#allocation2 + $0x310] sm:$0xff]  ;;  %v3257_v57 = vadd.f32 %v3193_v22, %v3063_v13  ;;  %v12684_v16 = vld [vmem:[#allocation191_spill] sm:$0xff] }
 0x541   :  { %12679 = vst [vmem:[#allocation235_spill] sm:$0xff] %v9764_v20  ;;  %v3194_v5 = vmul.f32 %v5102_v30, %v9396_v18  ;;  %v3386_v49 = vmul.f32 %v9411_v26, %v3320_v54  ;;  %v3322_v31 = vld [vmem:[#allocation2 + $0x311] sm:$0xff]  ;;  %v9773_v48 = vadd.f32 %v3385_v47, %v3255_v6  ;;  %v3581_v32 = vmul.f32 %v9746_v35, %v9746_v35  ;;  %v3323_v13 = vld [vmem:[#allocation2 + $0x329] sm:$0xff] }
 0x542   :  { %v3513_v21 = vadd.f32 %v3512_v33, %v9764_v20  ;;  %v3643_v27 = vadd.f32 %v3642_v59, %v3580_v45  ;;  %v12683_v55 = vld [vmem:[#allocation49_spill] sm:$0xff]  ;;  %v3195_v29 = vmul.f32 %v5103_v34, %v9396_v18  ;;  %v3387_v30 = vmul.f32 %v9411_v26, %v3321_v56  ;;  %v12687_v45 = vld [vmem:[#allocation195_spill] sm:$0xff] }
 0x543   :  { %12682 = vst [vmem:[#allocation236_spill] sm:$0xff] %v9773_v48  ;;  %v3066_v24 = vadd.f32 %v12684_v16, %v12683_v55  ;;  %v3258_v51 = vadd.f32 %v3194_v5, %v3064_v4  ;;  %v9782_v54 = vadd.f32 %v3386_v49, %v3256_v25  ;;  %v3582_v6 = vmul.f32 %v9755_v62, %v9755_v62  ;;  %v12686_v33 = vld [vmem:[#allocation61_spill] sm:$0xff]  ;;  %v5105_v62 = vld [vmem:[#allocation2 + $0x348] sm:$0xff] }
 0x544   :  { %v3514_v22 = vadd.f32 %v3513_v21, %v9773_v48  ;;  %v3644_v47 = vadd.f32 %v3643_v27, %v3581_v32  ;;  %v3067_v59 = vadd.f32 %v12687_v45, %v12686_v33  ;;  %v5104_v35 = vld [vmem:[#allocation2 + $0x330] sm:$0xff]  ;;  %v3259_v16 = vadd.f32 %v3195_v29, %v3065_v17  ;;  %v12689_v21 = vld [vmem:[#allocation55_spill] sm:$0xff] }
 0x545   :  { %12685 = vst [vmem:[#allocation237_spill] sm:$0xff] %v9782_v54  ;;  %v3196_v55 = vmul.f32 %v5104_v35, %v9396_v18  ;;  %v3388_v34 = vmul.f32 %v9411_v26, %v3322_v31  ;;  %v3324_v4 = vld [vmem:[#allocation2 + $0x331] sm:$0xff]  ;;  %v9791_v56 = vadd.f32 %v3387_v30, %v3257_v57  ;;  %v3583_v25 = vmul.f32 %v9764_v20, %v9764_v20  ;;  %v3325_v17 = vld [vmem:[#allocation2 + $0x349] sm:$0xff] }
 0x546   :  { %v3515_v5 = vadd.f32 %v3514_v22, %v9782_v54  ;;  %v3645_v49 = vadd.f32 %v3644_v47, %v3582_v6  ;;  %v12690_v32 = vld [vmem:[#allocation196_spill] sm:$0xff]  ;;  %v3197_v33 = vmul.f32 %v5105_v62, %v9396_v18  ;;  %v3389_v35 = vmul.f32 %v9411_v26, %v3323_v13  ;;  %v12692_v22 = vld [vmem:[#allocation151_spill] sm:$0xff]  ;;  %v12693_v6 = vld [vmem:[#allocation197_spill] sm:$0xff] }
 0x547   :  { %12688 = vst [vmem:[#allocation238_spill] sm:$0xff] %v9791_v56  ;;  %v3068_v27 = vadd.f32 %v12690_v32, %v12689_v21  ;;  %v3260_v45 = vadd.f32 %v3196_v55, %v3066_v24  ;;  %v9800_v31 = vadd.f32 %v3388_v34, %v3258_v51  ;;  %v3584_v57 = vmul.f32 %v9773_v48, %v9773_v48  ;;  %v5106_v20 = vld [vmem:[#allocation2 + $0x350] sm:$0xff]  ;;  %v5107_v48 = vld [vmem:[#allocation2 + $0x368] sm:$0xff] }
 0x548   :  { %v3516_v29 = vadd.f32 %v3515_v5, %v9791_v56  ;;  %v3646_v30 = vadd.f32 %v3645_v49, %v3583_v25  ;;  %v3069_v47 = vadd.f32 %v12693_v6, %v12692_v22  ;;  %v3198_v21 = vmul.f32 %v5106_v20, %v9396_v18  ;;  %v3326_v24 = vld [vmem:[#allocation2 + $0x351] sm:$0xff]  ;;  %v12695_v5 = vld [vmem:[#allocation70_spill] sm:$0xff] }
 0x549   :  { %12691 = vst [vmem:[#allocation239_spill] sm:$0xff] %v9800_v31  ;;  %v3261_v32 = vadd.f32 %v3197_v33, %v3067_v59  ;;  %v3390_v62 = vmul.f32 %v9411_v26, %v3324_v4  ;;  %v9809_v13 = vadd.f32 %v3389_v35, %v3259_v16  ;;  %v3585_v51 = vmul.f32 %v9782_v54, %v9782_v54  ;;  %v12696_v25 = vld [vmem:[#allocation198_spill] sm:$0xff]  ;;  %v3327_v59 = vld [vmem:[#allocation2 + $0x369] sm:$0xff] }
 0x54a   :  { %v3517_v55 = vadd.f32 %v3516_v29, %v9800_v31  ;;  %v3647_v34 = vadd.f32 %v3646_v30, %v3584_v57  ;;  %v3070_v49 = vadd.f32 %v12696_v25, %v12695_v5  ;;  %v3199_v22 = vmul.f32 %v5107_v48, %v9396_v18  ;;  %v12698_v29 = vld [vmem:[#allocation188_spill] sm:$0xff] }
 0x54b   :  { %12694 = vst [vmem:[#allocation240_spill] sm:$0xff] %v9809_v13  ;;  %v3262_v6 = vadd.f32 %v3198_v21, %v3068_v27  ;;  %v3391_v20 = vmul.f32 %v9411_v26, %v3325_v17  ;;  %v9818_v4 = vadd.f32 %v3390_v62, %v3260_v45  ;;  %v3586_v16 = vmul.f32 %v9791_v56, %v9791_v56  ;;  %v12699_v57 = vld [vmem:[#allocation200_spill] sm:$0xff] }
 0x54c   :  { %v3518_v33 = vadd.f32 %v3517_v55, %v9809_v13  ;;  %v3648_v35 = vadd.f32 %v3647_v34, %v3585_v51  ;;  %v3071_v30 = vadd.f32 %v12699_v57, %v12698_v29  ;;  %v5108_v54 = vld [vmem:[#allocation2 + $0x370] sm:$0xff]  ;;  %v3263_v25 = vadd.f32 %v3199_v22, %v3069_v47  ;;  %v5109_v56 = vld [vmem:[#allocation2 + $0x388] sm:$0xff] }
 0x54d   :  { %12697 = vst [vmem:[#allocation241_spill] sm:$0xff] %v9818_v4  ;;  %v3200_v5 = vmul.f32 %v5108_v54, %v9396_v18  ;;  %v3392_v48 = vmul.f32 %v9411_v26, %v3326_v24  ;;  %v3328_v27 = vld [vmem:[#allocation2 + $0x371] sm:$0xff]  ;;  %v9827_v17 = vadd.f32 %v3391_v20, %v3261_v32  ;;  %v3587_v45 = vmul.f32 %v9800_v31, %v9800_v31  ;;  %v3329_v47 = vld [vmem:[#allocation2 + $0x389] sm:$0xff] }
 0x54e   :  { %v3519_v21 = vadd.f32 %v3518_v33, %v9818_v4  ;;  %v3649_v62 = vadd.f32 %v3648_v35, %v3586_v16  ;;  %v12701_v55 = vld [vmem:[#allocation73_spill] sm:$0xff]  ;;  %v3201_v29 = vmul.f32 %v5109_v56, %v9396_v18  ;;  %v3393_v54 = vmul.f32 %v9411_v26, %v3327_v59  ;;  %v12705_v16 = vld [vmem:[#allocation202_spill] sm:$0xff] }
 0x54f   :  { %12700 = vst [vmem:[#allocation242_spill] sm:$0xff] %v9827_v17  ;;  %v12702_v51 = vld [vmem:[#allocation201_spill] sm:$0xff]  ;;  %v3264_v57 = vadd.f32 %v3200_v5, %v3070_v49  ;;  %v9836_v24 = vadd.f32 %v3392_v48, %v3262_v6  ;;  %v3588_v32 = vmul.f32 %v9809_v13, %v9809_v13  ;;  %v3394_v56 = vmul.f32 %v9411_v26, %v3328_v27  ;;  %v5111_v13 = vld [vmem:[#allocation2 + $0x3a8] sm:$0xff] }
 0x550   :  { %v3072_v34 = vadd.f32 %v12702_v51, %v12701_v55  ;;  %v3520_v22 = vadd.f32 %v3519_v21, %v9827_v17  ;;  %v3650_v20 = vadd.f32 %v3649_v62, %v3587_v45  ;;  %v12704_v33 = vld [vmem:[#allocation189_spill] sm:$0xff]  ;;  %v3265_v51 = vadd.f32 %v3201_v29, %v3071_v30  ;;  %v12707_v21 = vld [vmem:[#allocation134_spill] sm:$0xff]  ;;  %v12708_v45 = vld [vmem:[#allocation203_spill] sm:$0xff] }
 0x551   :  { %12703 = vst [vmem:[#allocation243_spill] sm:$0xff] %v9836_v24  ;;  %v3073_v35 = vadd.f32 %v12705_v16, %v12704_v33  ;;  %v5110_v31 = vld [vmem:[#allocation2 + $0x390] sm:$0xff]  ;;  %v9845_v59 = vadd.f32 %v3393_v54, %v3263_v25  ;;  %v3589_v6 = vmul.f32 %v9818_v4, %v9818_v4  ;;  %v3074_v62 = vadd.f32 %v12708_v45, %v12707_v21 }
 0x552   :  { %v3202_v55 = vmul.f32 %v5110_v31, %v9396_v18  ;;  %v3330_v49 = vld [vmem:[#allocation2 + $0x391] sm:$0xff]  ;;  %v3521_v5 = vadd.f32 %v3520_v22, %v9836_v24  ;;  %v3651_v48 = vadd.f32 %v3650_v20, %v3588_v32  ;;  %v3203_v33 = vmul.f32 %v5111_v13, %v9396_v18  ;;  %v3331_v30 = vld [vmem:[#allocation2 + $0x3a9] sm:$0xff] }
 0x553   :  { %12706 = vst [vmem:[#allocation244_spill] sm:$0xff] %v9845_v59  ;;  %v3395_v31 = vmul.f32 %v9411_v26, %v3329_v47  ;;  %v9854_v27 = vadd.f32 %v3394_v56, %v3264_v57  ;;  %v3590_v25 = vmul.f32 %v9827_v17, %v9827_v17  ;;  %v12710_v22 = vld [vmem:[#allocation247_spill] sm:$0xff]  ;;  %v12711_v32 = vld [vmem:[#allocation205_spill] sm:$0xff]  ;;  %v3396_v13 = vmul.f32 %v9411_v26, %v3330_v49 }
 0x554   :  { %v3266_v16 = vadd.f32 %v3202_v55, %v3072_v34  ;;  %v3522_v29 = vadd.f32 %v3521_v5, %v9845_v59  ;;  %v3652_v54 = vadd.f32 %v3651_v48, %v3589_v6  ;;  %v3075_v20 = vadd.f32 %v12711_v32, %v12710_v22  ;;  %v5112_v4 = vld [vmem:[#allocation2 + $0x3b0] sm:$0xff]  ;;  %v12713_v6 = vld [vmem:[#allocation206_spill] sm:$0xff]  ;;  %v5113_v17 = vld [vmem:[#allocation2 + $0x3c8] sm:$0xff] }
 0x555   :  { %12709 = vst [vmem:[#allocation245_spill] sm:$0xff] %v9854_v27  ;;  %v3204_v21 = vmul.f32 %v5112_v4, %v9396_v18  ;;  %v3267_v45 = vadd.f32 %v3203_v33, %v3073_v35  ;;  %v3332_v34 = vld [vmem:[#allocation2 + $0x3b1] sm:$0xff]  ;;  %v9863_v47 = vadd.f32 %v3395_v31, %v3265_v51  ;;  %v3591_v57 = vmul.f32 %v9836_v24, %v9836_v24  ;;  %v3333_v35 = vld [vmem:[#allocation2 + $0x3c9] sm:$0xff] }
 0x556   :  { %v3523_v55 = vadd.f32 %v3522_v29, %v9854_v27  ;;  %v3653_v56 = vadd.f32 %v3652_v54, %v3590_v25  ;;  %v12712_v5 = vld [vmem:[#allocation136_spill] sm:$0xff]  ;;  %v3205_v22 = vmul.f32 %v5113_v17, %v9396_v18  ;;  %v3397_v4 = vmul.f32 %v9411_v26, %v3331_v30  ;;  %v12715_v25 = vld [vmem:[#allocation207_spill] sm:$0xff] }
 0x557   :  { %v3076_v48 = vadd.f32 %v12713_v6, %v12712_v5  ;;  %v3268_v32 = vadd.f32 %v3204_v21, %v3074_v62  ;;  %v9872_v49 = vadd.f32 %v3396_v13, %v3266_v16  ;;  %v3592_v51 = vmul.f32 %v9845_v59, %v9845_v59  ;;  %v12714_v29 = vld [vmem:[#allocation248_spill] sm:$0xff] }
 0x558   :  { %v3524_v33 = vadd.f32 %v3523_v55, %v9863_v47  ;;  %v3654_v31 = vadd.f32 %v3653_v56, %v3591_v57  ;;  %v3077_v54 = vadd.f32 %v12715_v25, %v12714_v29  ;;  %v5114_v24 = vld [vmem:[#allocation2 + $0x3d0] sm:$0xff]  ;;  %v3269_v6 = vadd.f32 %v3205_v22, %v3075_v20  ;;  %v5115_v59 = vld [vmem:[#allocation2 + $0x3e8] sm:$0xff] }
 0x559   :  { %v3206_v5 = vmul.f32 %v5114_v24, %v9396_v18  ;;  %v3398_v17 = vmul.f32 %v9411_v26, %v3332_v34  ;;  %v3334_v62 = vld [vmem:[#allocation2 + $0x3d1] sm:$0xff]  ;;  %v9881_v30 = vadd.f32 %v3397_v4, %v3267_v45  ;;  %v3593_v16 = vmul.f32 %v9854_v27, %v9854_v27  ;;  %v3335_v20 = vld [vmem:[#allocation2 + $0x3e9] sm:$0xff] }
 0x55a   :  { %v3525_v21 = vadd.f32 %v3524_v33, %v9872_v49  ;;  %v3655_v13 = vadd.f32 %v3654_v31, %v3592_v51  ;;  %v12716_v55 = vld [vmem:[#allocation137_spill] sm:$0xff]  ;;  %v12717_v57 = vld [vmem:[#allocation208_spill] sm:$0xff]  ;;  %v3207_v29 = vmul.f32 %v5115_v59, %v9396_v18  ;;  %v3399_v24 = vmul.f32 %v9411_v26, %v3333_v35 }
 0x55b   :  { %v3078_v56 = vadd.f32 %v12717_v57, %v12716_v55  ;;  %v3270_v25 = vadd.f32 %v3206_v5, %v3076_v48  ;;  %v9890_v34 = vadd.f32 %v3398_v17, %v3268_v32  ;;  %v3594_v45 = vmul.f32 %v9863_v47, %v9863_v47  ;;  %v12718_v33 = vld [vmem:[#allocation249_spill] sm:$0xff] }
 0x55c   :  { %v3526_v22 = vadd.f32 %v3525_v21, %v9881_v30  ;;  %v3656_v4 = vadd.f32 %v3655_v13, %v3593_v16  ;;  %v12719_v51 = vld [vmem:[#allocation209_spill] sm:$0xff]  ;;  %v3271_v57 = vadd.f32 %v3207_v29, %v3077_v54  ;;  %v3400_v59 = vmul.f32 %v9411_v26, %v3334_v62  ;;  %v12720_v21 = vld [vmem:[#allocation138_spill] sm:$0xff]  ;;  %v3337_v54 = vld [vmem:[#allocation2 + $0x409] sm:$0xff] }
 0x55d   :  { %v3079_v31 = vadd.f32 %v12719_v51, %v12718_v33  ;;  %v5116_v27 = vld [vmem:[#allocation2 + $0x3f0] sm:$0xff]  ;;  %v9899_v35 = vadd.f32 %v3399_v24, %v3269_v6  ;;  %v3595_v32 = vmul.f32 %v9872_v49, %v9872_v49  ;;  %v12721_v16 = vld [vmem:[#allocation210_spill] sm:$0xff]  ;;  %v3209_v33 = vmul.f32 %v5117_v60, %v9396_v18 }
 0x55e   :  { %v3208_v55 = vmul.f32 %v5116_v27, %v9396_v18  ;;  %v3336_v48 = vld [vmem:[#allocation2 + $0x3f1] sm:$0xff]  ;;  %v3527_v5 = vadd.f32 %v3526_v22, %v9890_v34  ;;  %v3657_v17 = vadd.f32 %v3656_v4, %v3594_v45  ;;  %v3080_v13 = vadd.f32 %v12721_v16, %v12720_v21  ;;  %v12722_v22 = vld [vmem:[#allocation139_spill] sm:$0xff] }
 0x55f   :  { %v3401_v27 = vmul.f32 %v9411_v26, %v3335_v20  ;;  %v9908_v62 = vadd.f32 %v3400_v59, %v3270_v25  ;;  %v3596_v6 = vmul.f32 %v9881_v30, %v9881_v30  ;;  %v3081_v45 = vadd.f32 %v9659_v9, %v12722_v22  ;;  %v5118_v4 = vld [vmem:[#allocation2 + $0x410] sm:$0xff]  ;;  %v5120_v9 = vld [vmem:[#allocation2 + $0x428] sm:$0xff] }
 0x560   :  { %v3272_v51 = vadd.f32 %v3208_v55, %v3078_v56  ;;  %v3528_v29 = vadd.f32 %v3527_v5, %v9899_v35  ;;  %v3658_v24 = vadd.f32 %v3657_v17, %v3595_v32  ;;  %v3210_v21 = vmul.f32 %v5118_v4, %v9396_v18  ;;  %v3338_v56 = vld [vmem:[#allocation2 + $0x411] sm:$0xff]  ;;  %v5119_v17 = vld [vmem:[#allocation9 + $0x7] ss:$0 sm:$0xff] }
 0x561   :  { %v3273_v16 = vadd.f32 %v3209_v33, %v3079_v31  ;;  %v3402_v60 = vmul.f32 %v9411_v26, %v3336_v48  ;;  %v9917_v20 = vadd.f32 %v3401_v27, %v3271_v57  ;;  %v3597_v25 = vmul.f32 %v9890_v34, %v9890_v34  ;;  %v12723_v5 = vld [vmem:[#allocation140_spill] sm:$0xff] }
 0x562   :  { %v3529_v55 = vadd.f32 %v3528_v29, %v9908_v62  ;;  %v3659_v59 = vadd.f32 %v3658_v24, %v3596_v6  ;;  %v3082_v32 = vadd.f32 %v9670_v10, %v12723_v5  ;;  %v3211_v22 = vmul.f32 %v5120_v9, %v5119_v17  ;;  %v3339_v31 = vld [vmem:[#allocation2 + $0x429] sm:$0xff]  ;;  %v12724_v29 = vld [vmem:[#allocation141_spill] sm:$0xff] }
 0x563   :  { %v3274_v2 = vadd.f32 %v3210_v21, %v3080_v13  ;;  %v3403_v18 = vmul.f32 %v9411_v26, %v3337_v54  ;;  %v9925_v48 = vadd.f32 %v3402_v60, %v3272_v51  ;;  %v3598_v57 = vmul.f32 %v9899_v35, %v9899_v35  ;;  %v5121_v24 = vld [vmem:[#allocation2 + $0x430] sm:$0xff]  ;;  %v5122_v5 = vld [vmem:[#allocation9 + $0x8] ss:$0 sm:$0xff]  ;;  %v12725_v60 = vld [vmem:[#allocation142_spill] sm:$0xff] }
 0x564   :  { %v3530_v33 = vadd.f32 %v3529_v55, %v9917_v20  ;;  %v3660_v27 = vadd.f32 %v3659_v59, %v3597_v25  ;;  %v3083_v6 = vadd.f32 %v9682_v44, %v12724_v29  ;;  %v3212_v10 = vmul.f32 %v5121_v24, %v5119_v17  ;;  %v3340_v13 = vld [vmem:[#allocation2 + $0x431] sm:$0xff]  ;;  %v5123_v55 = vld [vmem:[#allocation2 + $0x448] sm:$0xff] }
 0x565   :  { %v3275_v4 = vadd.f32 %v3211_v22, %v3081_v45  ;;  %v3404_v9 = vmul.f32 %v5122_v5, %v3338_v56  ;;  %v9932_v21 = vadd.f32 %v3403_v18, %v3273_v16  ;;  %v3599_v26 = vmul.f32 %v9908_v62, %v9908_v62  ;;  %v5124_v22 = vld [vmem:[#allocation2 + $0x450] sm:$0xff] }
 0x566   :  { %v3531_v51 = vadd.f32 %v3530_v33, %v9925_v48  ;;  %v3661_v54 = vadd.f32 %v3660_v27, %v3598_v57  ;;  %v3084_v25 = vadd.f32 %v9694_v41, %v12725_v60  ;;  %v3213_v59 = vmul.f32 %v5123_v55, %v5119_v17  ;;  %v3343_v57 = vld [vmem:[#allocation2 + $0x469] sm:$0xff]  ;;  %v3344_v60 = vld [vmem:[#allocation2 + $0x471] sm:$0xff] }
 0x567   :  { %v3276_v44 = vadd.f32 %v3212_v10, %v3082_v32  ;;  %v3405_v29 = vmul.f32 %v5122_v5, %v3339_v31  ;;  %v9939_v24 = vadd.f32 %v3404_v9, %v3274_v2  ;;  %v3600_v45 = vmul.f32 %v9917_v20, %v9917_v20  ;;  %v5125_v10 = vld [vmem:[#allocation2 + $0x449] sm:$0xff] }
 0x568   :  { %v3532_v16 = vadd.f32 %v3531_v51, %v9932_v21  ;;  %v3662_v56 = vadd.f32 %v3661_v54, %v3599_v26  ;;  %v3214_v18 = vmul.f32 %v5124_v22, %v5119_v17  ;;  %v3277_v1 = vadd.f32 %v3213_v59, %v3083_v6  ;;  %v5126_v26 = vld [vmem:[#allocation2 + $0x451] sm:$0xff] }
 0x569   :  { %v3406_v33 = vmul.f32 %v5122_v5, %v3340_v13  ;;  %v9944_v27 = vadd.f32 %v3405_v29, %v3275_v4  ;;  %v3601_v41 = vmul.f32 %v9925_v48, %v9925_v48  ;;  %v3407_v9 = vmul.f32 %v5125_v10, %v5122_v5 }
 0x56a   :  { %v3533_v32 = vadd.f32 %v3532_v16, %v9939_v24  ;;  %v3663_v2 = vadd.f32 %v3662_v56, %v3600_v45  ;;  %v3278_v31 = vadd.f32 %v3214_v18, %v3084_v25  ;;  %v3602_v17 = vmul.f32 %v9932_v21, %v9932_v21  ;;  %v12726_v18 = vld [vmem:[#allocation251_spill] sm:$0xff] }
 0x56b   :  { %v9949_v55 = vadd.f32 %v3406_v33, %v3276_v44  ;;  %v3409_v4 = vmul.f32 %v5122_v5, %v3343_v57  ;;  %v3408_v51 = vmul.f32 %v5126_v26, %v5122_v5  ;;  %v9954_v54 = vadd.f32 %v3407_v9, %v3277_v1 }
 0x56c   :  { %v3534_v6 = vadd.f32 %v3533_v32, %v9944_v27  ;;  %v3664_v13 = vadd.f32 %v3663_v2, %v3601_v41  ;;  %v3603_v59 = vmul.f32 %v9939_v24, %v9939_v24  ;;  %v3410_v45 = vmul.f32 %v5122_v5, %v3344_v60  ;;  %v12727_v32 = vld [vmem:[#allocation252_spill] sm:$0xff] }
 0x56d   :  { %v9959_v44 = vadd.f32 %v3408_v51, %v3278_v31  ;;  %v3604_v16 = vmul.f32 %v9944_v27, %v9944_v27  ;;  %v9965_v33 = vadd.f32 %v3409_v4, %v12726_v18  ;;  %v3605_v1 = vmul.f32 %v9949_v55, %v9949_v55 }
 0x56e   :  { %v3535_v25 = vadd.f32 %v3534_v6, %v9949_v55  ;;  %v3665_v29 = vadd.f32 %v3664_v13, %v3602_v17  ;;  %v9971_v2 = vadd.f32 %v3410_v45, %v12727_v32  ;;  %v3606_v5 = vmul.f32 %v9954_v54, %v9954_v54 }
 0x56f   :  { %v3607_v9 = vmul.f32 %v9959_v44, %v9959_v44  ;;  %v3608_v6 = vmul.f32 %v9965_v33, %v9965_v33 }
 0x570   :  { %v3536_v56 = vadd.f32 %v3535_v25, %v9954_v54  ;;  %v3666_v22 = vadd.f32 %v3665_v29, %v3603_v59  ;;  %v3609_v26 = vmul.f32 %v9971_v2, %v9971_v2 }
 0x572   :  { %v3537_v57 = vadd.f32 %v3536_v56, %v9959_v44  ;;  %v3667_v41 = vadd.f32 %v3666_v22, %v3604_v16 }
 0x574   :  { %v3538_v31 = vadd.f32 %v3537_v57, %v9965_v33  ;;  %v3668_v10 = vadd.f32 %v3667_v41, %v3605_v1 }
 0x576   :  { %v3539_v60 = vadd.f32 %v3538_v31, %v9971_v2  ;;  %v3669_v17 = vadd.f32 %v3668_v10, %v3606_v5 }
 0x578   :  { %v3540_v13 = vrot.slane %v3539_v60, 4  ;;  %v3670_v4 = vadd.f32 %v3669_v17, %v3607_v9 }
 0x57a   :  { %v3541_v51 = vadd.f32 %v3540_v13, %v3539_v60  ;;  %v3671_v59 = vadd.f32 %v3670_v4, %v3608_v6 }
 0x57c   :  { %v3542_v25 = vrot.slane %v3541_v51, 2  ;;  %v3672_v29 = vadd.f32 %v3671_v59, %v3609_v26  ;;  %v3475_v26 = vld [vmem:[%s11042_s5] sm:$0x1] }
 0x57e   :  { %v3543_v45 = vadd.f32 %v3542_v25, %v3541_v51  ;;  %v3673_v16 = vrot.slane %v3672_v29, 4 }
 0x580   :  { %v3544_v56 = vrot.slane %v3543_v45, 1  ;;  %v3674_v22 = vadd.f32 %v3673_v16, %v3672_v29  ;;  %v3476_v29 = vld [vmem:[%s11043_s6] sm:$0x1] }
 0x582   :  { %v3545_v18 = vadd.f32 %v3544_v56, %v3543_v45  ;;  %v3675_v1 = vrot.slane %v3674_v22, 2 }
 0x584   :  { %v3676_v57 = vadd.f32 %v3675_v1, %v3674_v22  ;;  %v3679_v41 = vmul.f32 0.001953125, %v3545_v18 }
 0x586   :  { %v3677_v32 = vrot.slane %v3676_v57, 1  ;;  %v3681_v31 = vmul.f32 %v3679_v41, %v3679_v41 }
 0x588   :  { %v3678_v5 = vadd.f32 %v3677_v32, %v3676_v57 }
 0x58a   :  { %v3680_v10 = vmul.f32 0.001953125, %v3678_v5 }
 0x58c   :  { %v3682_v9 = vsub.f32 %v3680_v10, %v3681_v31 }
 0x58e   :  { %v3683_v17 = vadd.f32 1e-05, %v3682_v9 }
 0x590   :  { %5057 = vrsqrt.f32 %v3683_v17  ;;  %vm3690_vm8 = vweird.f32 %v3683_v17 }
 0x596   :  { %v5058_v40 = vpop.eup %5057 }
 0x597   :  { %v3685_v60 = vmul.f32 %v5058_v40, %v3683_v17  ;;  %vm3691_vm7 = vweird.f32 %v5058_v40 }
 0x598   :  { %vm3692_vm9 = vmor %vm3690_vm8, %vm3691_vm7 }
 0x599   :  { %v3686_v6 = vmul.f32 %v5058_v40, %v3685_v60 }
 0x59b   :  { %v3687_v13 = vmul.f32 0.5, %v3686_v6 }
 0x59d   :  { %v3688_v4 = vsub.f32 1.5, %v3687_v13 }
 0x59f   :  { %v3689_v51 = vmul.f32 %v5058_v40, %v3688_v4 }
 0x5a1   :  { %v3693_v59 = vsel %vm3692_vm9, %v5058_v40, %v3689_v51 }
 0x5a2   :  { %v3694_v25 = vmul.f32 %v3693_v59, %v3475_v26 }
 0x5a4   :  { %v3695_v45 = vmul.f32 %v3694_v25, %v3679_v41  ;;  %v9989_v16 = vperm.slane %v3694_v25, 0 }
 0x5a6   :  { %v3696_v56 = vsub.f32 %v3476_v29, %v3695_v45  ;;  %v3700_v22 = vmul.f32 %v9989_v16, %v9423_v7  ;;  %v3701_v18 = vmul.f32 %v9989_v16, %v9427_v46  ;;  %v3748_v1 = vmul.f32 %v9989_v16, %v9863_v47 }
 0x5a7   :  { %v3749_v40 = vmul.f32 %v9989_v16, %v9872_v49  ;;  %v3702_v57 = vmul.f32 %v9989_v16, %v9435_v58  ;;  %v3703_v41 = vmul.f32 %v9989_v16, %v9449_v61  ;;  %v3750_v32 = vmul.f32 %v9989_v16, %v9881_v30 }
 0x5a8   :  { %v10005_v5 = vperm.slane %v3696_v56, 0  ;;  %v3751_v7 = vmul.f32 %v9989_v16, %v9890_v34  ;;  %v3704_v46 = vmul.f32 %v9989_v16, %v9460_v0  ;;  %v3705_v47 = vmul.f32 %v9989_v16, %v9469_v3 }
 0x5a9   :  { %v3752_v58 = vmul.f32 %v9989_v16, %v9899_v35  ;;  %v3753_v61 = vmul.f32 %v9989_v16, %v9908_v62  ;;  %v3706_v49 = vmul.f32 %v9989_v16, %v9475_v28  ;;  %v3707_v30 = vmul.f32 %v9989_v16, %v9482_v52 }
 0x5aa   :  { %v3767_v34 = vadd.f32 %v10005_v5, %v3700_v22  ;;  %v3768_v31 = vadd.f32 %v10005_v5, %v3701_v18  ;;  %v3815_v0 = vadd.f32 %v10005_v5, %v3748_v1  ;;  %v3816_v3 = vadd.f32 %v10005_v5, %v3749_v40 }
 0x5ab   :  { %v3769_v10 = vadd.f32 %v10005_v5, %v3702_v57  ;;  %v3770_v35 = vadd.f32 %v10005_v5, %v3703_v41  ;;  %v3817_v62 = vadd.f32 %v10005_v5, %v3750_v32  ;;  %v3818_v9 = vadd.f32 %v10005_v5, %v3751_v7 }
 0x5ac   :  { %v3831_v28 = vmax.f32 %v3767_v34, 0.0  ;;  %v3832_v17 = vmax.f32 %v3768_v31, 0.0  ;;  %v3879_v60 = vmax.f32 %v3815_v0, 0.0  ;;  %v3880_v52 = vmax.f32 %v3816_v3, 0.0 }
 0x5ad   :  { %v3833_v6 = vmax.f32 %v3769_v10, 0.0  ;;  %v3834_v13 = vmax.f32 %v3770_v35, 0.0  ;;  %v3881_v4 = vmax.f32 %v3817_v62, 0.0  ;;  %v3882_v26 = vmax.f32 %v3818_v9, 0.0 }
 0x5ae   :  { %v3895_v51 = vpack.c.bf16 %v3832_v17, %v3831_v28  ;;  %v3919_v59 = vpack.c.bf16 %v3880_v52, %v3879_v60  ;;  %v3771_v25 = vadd.f32 %v10005_v5, %v3704_v46  ;;  %v3772_v29 = vadd.f32 %v10005_v5, %v3705_v47 }
 0x5af   :  { %v3819_v45 = vadd.f32 %v10005_v5, %v3752_v58  ;;  %v3820_v56 = vadd.f32 %v10005_v5, %v3753_v61  ;;  %v10034_v1 = vadd.f32 %v10005_v5, %v3706_v49  ;;  %v10037_v40 = vadd.f32 %v10005_v5, %v3707_v30 }
 0x5b0   :  { %3999 = vmatmul.bf16.vlgmr.msra.gmra.mxu2 %v3895_v51  ;;  %4119 = vmatmul.bf16.vlgmr.msra.gmra.mxu3 %v3919_v59  ;;  %v3835_v22 = vmax.f32 %v3771_v25, 0.0  ;;  %v3836_v18 = vmax.f32 %v3772_v29, 0.0  ;;  %v3754_v32 = vmul.f32 %v9989_v16, %v9917_v20  ;;  %v3755_v7 = vmul.f32 %v9989_v16, %v9925_v48 }
 0x5b1   :  { %v3883_v57 = vmax.f32 %v3819_v45, 0.0  ;;  %v3884_v41 = vmax.f32 %v3820_v56, 0.0  ;;  %v3896_v46 = vpack.c.bf16 %v3834_v13, %v3833_v6  ;;  %v3920_v47 = vpack.c.bf16 %v3882_v26, %v3881_v4 }
 0x5b2   :  { %v10043_v58 = vpack.c.bf16 %v3836_v18, %v3835_v22  ;;  %v3708_v61 = vmul.f32 %v9989_v16, %v9491_v36  ;;  %v3837_v49 = vmax.f32 %v10034_v1, 0.0  ;;  %v10049_v30 = vadd.f32 %v10005_v5, %v3754_v32 }
 0x5b3   :  { %v10052_v34 = vadd.f32 %v10005_v5, %v3755_v7  ;;  %v3709_v20 = vmul.f32 %v9989_v16, %v9500_v8  ;;  %v3838_v48 = vmax.f32 %v10037_v40, 0.0  ;;  %v3756_v0 = vmul.f32 %v9989_v16, %v9932_v21 }
 0x5b4   :  { %v3775_v31 = vadd.f32 %v10005_v5, %v3708_v61  ;;  %v3757_v36 = vmul.f32 %v9989_v16, %v9939_v24  ;;  %v10062_v3 = vpack.c.bf16 %v3884_v41, %v3883_v57  ;;  %v3885_v10 = vmax.f32 %v10049_v30, 0.0 }
 0x5b5   :  { %v3776_v35 = vadd.f32 %v10005_v5, %v3709_v20  ;;  %v3710_v62 = vmul.f32 %v9989_v16, %v9509_v53  ;;  %v3823_v9 = vadd.f32 %v10005_v5, %v3756_v0  ;;  %v3711_v21 = vmul.f32 %v9989_v16, %v9518_v42 }
 0x5b6   :  { %v3839_v8 = vmax.f32 %v3775_v31, 0.0  ;;  %v3824_v28 = vadd.f32 %v10005_v5, %v3757_v36  ;;  %v3886_v17 = vmax.f32 %v10052_v34, 0.0  ;;  %v3758_v52 = vmul.f32 %v9989_v16, %v9944_v27 }
 0x5b7   :  { %v3840_v24 = vmax.f32 %v3776_v35, 0.0  ;;  %v3777_v60 = vadd.f32 %v10005_v5, %v3710_v62  ;;  %v3887_v6 = vmax.f32 %v3823_v9, 0.0  ;;  %v3778_v53 = vadd.f32 %v10005_v5, %v3711_v21 }
 0x5b8   :  { %v3888_v13 = vmax.f32 %v3824_v28, 0.0  ;;  %v3759_v4 = vmul.f32 %v9989_v16, %v9949_v55  ;;  %v3825_v42 = vadd.f32 %v10005_v5, %v3758_v52  ;;  %v3712_v59 = vmul.f32 %v9989_v16, %v9527_v23 }
 0x5b9   :  { %v10079_v26 = vpack.c.bf16 %v3840_v24, %v3839_v8  ;;  %v3841_v51 = vmax.f32 %v3777_v60, 0.0  ;;  %v3842_v29 = vmax.f32 %v3778_v53, 0.0  ;;  %v3713_v45 = vmul.f32 %v9989_v16, %v9536_v38 }
 0x5ba   :  { %v10084_v25 = vpack.c.bf16 %v3888_v13, %v3887_v6  ;;  %v3826_v27 = vadd.f32 %v10005_v5, %v3759_v4  ;;  %v3889_v56 = vmax.f32 %v3825_v42, 0.0  ;;  %v3779_v22 = vadd.f32 %v10005_v5, %v3712_v59 }
 0x5bb   :  { %v3760_v55 = vmul.f32 %v9989_v16, %v9954_v54  ;;  %v3761_v18 = vmul.f32 %v9989_v16, %v9959_v44  ;;  %v10094_v57 = vpack.c.bf16 %v3842_v29, %v3841_v51  ;;  %v3780_v41 = vadd.f32 %v10005_v5, %v3713_v45 }
 0x5bc   :  { %v3890_v23 = vmax.f32 %v3826_v27, 0.0  ;;  %v3714_v32 = vmul.f32 %v9989_v16, %v9545_v39  ;;  %v3843_v7 = vmax.f32 %v3779_v22, 0.0  ;;  %v3715_v20 = vmul.f32 %v9989_v16, %v9554_v12 }
 0x5bd   :  { %v3827_v38 = vadd.f32 %v10005_v5, %v3760_v55  ;;  %v3828_v61 = vadd.f32 %v10005_v5, %v3761_v18  ;;  %v3844_v31 = vmax.f32 %v3780_v41, 0.0  ;;  %v3762_v0 = vmul.f32 %v9989_v16, %v9965_v33  ;;  %v12728_v18 = vld [vmem:[#allocation211_spill] sm:$0xff] }
 0x5be   :  { %v10103_v54 = vpack.c.bf16 %v3890_v23, %v3889_v56  ;;  %v3781_v44 = vadd.f32 %v10005_v5, %v3714_v32  ;;  %v3782_v39 = vadd.f32 %v10005_v5, %v3715_v20  ;;  %v3763_v62 = vmul.f32 %v9989_v16, %v9971_v2 }
 0x5bf   :  { %v3891_v36 = vmax.f32 %v3827_v38, 0.0  ;;  %v3892_v35 = vmax.f32 %v3828_v61, 0.0  ;;  %v10111_v8 = vpack.c.bf16 %v3844_v31, %v3843_v7  ;;  %v3829_v9 = vadd.f32 %v10005_v5, %v3762_v0  ;;  %v12729_v7 = vld [vmem:[#allocation212_spill] sm:$0xff] }
 0x5c0   :  { %4004 = vmatmul.bf16.gmra.mxu2 %v3896_v46  ;;  %4124 = vmatmul.bf16.gmra.mxu3 %v3920_v47  ;;  %v3845_v12 = vmax.f32 %v3781_v44, 0.0  ;;  %v3716_v28 = vmul.f32 %v9989_v16, %v9563_v15  ;;  %v3846_v33 = vmax.f32 %v3782_v39, 0.0  ;;  %v3830_v24 = vadd.f32 %v10005_v5, %v3763_v62  ;;  %v12731_v44 = vld [vmem:[#allocation214_spill] sm:$0xff]  ;;  %v12732_v62 = vld [vmem:[#allocation215_spill] sm:$0xff] }
 0x5c1   :  { %v10116_v21 = vpack.c.bf16 %v3892_v35, %v3891_v36  ;;  %v3717_v60 = vmul.f32 %v9989_v16, %v9572_v37  ;;  %v3893_v52 = vmax.f32 %v3829_v9, 0.0  ;;  %v3718_v46 = vmul.f32 %v9989_v16, %v9581_v11 }
 0x5c2   :  { %v3783_v2 = vadd.f32 %v10005_v5, %v3716_v28  ;;  %v3719_v47 = vmul.f32 %v9989_v16, %v9590_v19  ;;  %v10126_v6 = vpack.c.bf16 %v3846_v33, %v3845_v12  ;;  %v3894_v15 = vmax.f32 %v3830_v24, 0.0  ;;  %v12733_v24 = vld [vmem:[#allocation216_spill] sm:$0xff] }
 0x5c3   :  { %v3784_v13 = vadd.f32 %v10005_v5, %v3717_v60  ;;  %v3720_v53 = vmul.f32 %v9989_v16, %v9599_v14  ;;  %v3785_v37 = vadd.f32 %v10005_v5, %v3718_v46  ;;  %v3721_v42 = vmul.f32 %v9989_v16, %v9608_v43 }
 0x5c4   :  { %v3847_v4 = vmax.f32 %v3783_v2, 0.0  ;;  %v3786_v51 = vadd.f32 %v10005_v5, %v3719_v47  ;;  %v10135_v11 = vpack.c.bf16 %v3894_v15, %v3893_v52  ;;  %v3722_v29 = vmul.f32 %v9989_v16, %v9617_v50  ;;  %v12734_v47 = vld [vmem:[#allocation217_spill] sm:$0xff] }
 0x5c5   :  { %v3848_v59 = vmax.f32 %v3784_v13, 0.0  ;;  %v3787_v19 = vadd.f32 %v10005_v5, %v3720_v53  ;;  %v3849_v27 = vmax.f32 %v3785_v37, 0.0  ;;  %v3788_v14 = vadd.f32 %v10005_v5, %v3721_v42  ;;  %v12735_v37 = vld [vmem:[#allocation221_spill] sm:$0xff] }
 0x5c6   :  { %v3850_v45 = vmax.f32 %v3786_v51, 0.0  ;;  %v3723_v56 = vmul.f32 %v9989_v16, %v9626_v63  ;;  %v3789_v43 = vadd.f32 %v10005_v5, %v3722_v29  ;;  %v3724_v23 = vmul.f32 %v9989_v16, %v12728_v18  ;;  %v12730_v63 = vld [vmem:[#allocation213_spill] sm:$0xff]  ;;  %v12736_v29 = vld [vmem:[#allocation222_spill] sm:$0xff] }
 0x5c7   :  { %v10143_v22 = vpack.c.bf16 %v3848_v59, %v3847_v4  ;;  %v3851_v55 = vmax.f32 %v3787_v19, 0.0  ;;  %v3852_v32 = vmax.f32 %v3788_v14, 0.0  ;;  %v3725_v38 = vmul.f32 %v9989_v16, %v12729_v7  ;;  %v12739_v7 = vld [vmem:[#allocation229_spill] sm:$0xff] }
 0x5c8   :  { %v10148_v41 = vpack.c.bf16 %v3850_v45, %v3849_v27  ;;  %v3790_v50 = vadd.f32 %v10005_v5, %v3723_v56  ;;  %v3853_v61 = vmax.f32 %v3789_v43, 0.0  ;;  %v3791_v20 = vadd.f32 %v10005_v5, %v3724_v23 }
 0x5c9   :  { %v3726_v31 = vmul.f32 %v9989_v16, %v12730_v63  ;;  %v3727_v0 = vmul.f32 %v9989_v16, %v12731_v44  ;;  %v10158_v36 = vpack.c.bf16 %v3852_v32, %v3851_v55  ;;  %v3792_v39 = vadd.f32 %v10005_v5, %v3725_v38  ;;  %v12737_v55 = vld [vmem:[#allocation223_spill] sm:$0xff]  ;;  %v12738_v32 = vld [vmem:[#allocation228_spill] sm:$0xff] }
 0x5ca   :  { %v3854_v35 = vmax.f32 %v3790_v50, 0.0  ;;  %v3728_v12 = vmul.f32 %v9989_v16, %v12732_v62  ;;  %v3855_v9 = vmax.f32 %v3791_v20, 0.0  ;;  %v3729_v60 = vmul.f32 %v9989_v16, %v12733_v24 }
 0x5cb   :  { %v3793_v28 = vadd.f32 %v10005_v5, %v3726_v31  ;;  %v3794_v33 = vadd.f32 %v10005_v5, %v3727_v0  ;;  %v3856_v2 = vmax.f32 %v3792_v39, 0.0  ;;  %v3730_v15 = vmul.f32 %v9989_v16, %v12734_v47  ;;  %v12740_v31 = vld [vmem:[#allocation230_spill] sm:$0xff] }
 0x5cc   :  { %v10167_v52 = vpack.c.bf16 %v3854_v35, %v3853_v61  ;;  %v3795_v46 = vadd.f32 %v10005_v5, %v3728_v12  ;;  %v3796_v4 = vadd.f32 %v10005_v5, %v3729_v60  ;;  %v3731_v51 = vmul.f32 %v9989_v16, %v12735_v37  ;;  %v12741_v35 = vld [vmem:[#allocation235_spill] sm:$0xff] }
 0x5cd   :  { %v3857_v13 = vmax.f32 %v3793_v28, 0.0  ;;  %v3858_v53 = vmax.f32 %v3794_v33, 0.0  ;;  %v10175_v42 = vpack.c.bf16 %v3856_v2, %v3855_v9  ;;  %v3797_v19 = vadd.f32 %v10005_v5, %v3730_v15  ;;  %v12742_v28 = vld [vmem:[#allocation236_spill] sm:$0xff] }
 0x5ce   :  { %v3859_v59 = vmax.f32 %v3795_v46, 0.0  ;;  %v3732_v27 = vmul.f32 %v9989_v16, %v12736_v29  ;;  %v3860_v14 = vmax.f32 %v3796_v4, 0.0  ;;  %v3798_v56 = vadd.f32 %v10005_v5, %v3731_v51  ;;  %v12743_v46 = vld [vmem:[#allocation237_spill] sm:$0xff]  ;;  %v12744_v4 = vld [vmem:[#allocation238_spill] sm:$0xff]  ;;  %v12745_v29 = vld [vmem:[#allocation239_spill] sm:$0xff] }
 0x5cf   :  { %v10180_v45 = vpack.c.bf16 %v3858_v53, %v3857_v13  ;;  %v3733_v43 = vmul.f32 %v9989_v16, %v12737_v55  ;;  %v3861_v18 = vmax.f32 %v3797_v19, 0.0  ;;  %v3734_v50 = vmul.f32 %v9989_v16, %v12738_v32  ;;  %v12746_v55 = vld [vmem:[#allocation240_spill] sm:$0xff] }
 0x5d0   :  { %4009 = vmatmul.bf16.gmra.mxu2 %v10043_v58  ;;  %4129 = vmatmul.bf16.gmra.mxu3 %v10062_v3  ;;  %v3799_v23 = vadd.f32 %v10005_v5, %v3732_v27  ;;  %v3735_v38 = vmul.f32 %v9989_v16, %v12739_v7  ;;  %v10192_v61 = vpack.c.bf16 %v3860_v14, %v3859_v59  ;;  %v3862_v20 = vmax.f32 %v3798_v56, 0.0 }
 0x5d1   :  { %v3800_v63 = vadd.f32 %v10005_v5, %v3733_v43  ;;  %v3736_v44 = vmul.f32 %v9989_v16, %v12740_v31  ;;  %v3801_v3 = vadd.f32 %v10005_v5, %v3734_v50  ;;  %v3737_v39 = vmul.f32 %v9989_v16, %v12741_v35 }
 0x5d2   :  { %v3863_v58 = vmax.f32 %v3799_v23, 0.0  ;;  %v3802_v0 = vadd.f32 %v10005_v5, %v3735_v38  ;;  %v10201_v62 = vpack.c.bf16 %v3862_v20, %v3861_v18  ;;  %v3738_v33 = vmul.f32 %v9989_v16, %v12742_v28  ;;  %v12747_v18 = vld [vmem:[#allocation241_spill] sm:$0xff]  ;;  %v12748_v38 = vld [vmem:[#allocation242_spill] sm:$0xff] }
 0x5d3   :  { %v3864_v12 = vmax.f32 %v3800_v63, 0.0  ;;  %v3803_v9 = vadd.f32 %v10005_v5, %v3736_v44  ;;  %v3865_v24 = vmax.f32 %v3801_v3, 0.0  ;;  %v3804_v2 = vadd.f32 %v10005_v5, %v3737_v39 }
 0x5d4   :  { %v3866_v60 = vmax.f32 %v3802_v0, 0.0  ;;  %v3739_v47 = vmul.f32 %v9989_v16, %v12743_v46  ;;  %v3805_v53 = vadd.f32 %v10005_v5, %v3738_v33  ;;  %v3740_v37 = vmul.f32 %v9989_v16, %v12744_v4 }
 0x5d5   :  { %v10209_v15 = vpack.c.bf16 %v3864_v12, %v3863_v58  ;;  %v3867_v13 = vmax.f32 %v3803_v9, 0.0  ;;  %v3868_v59 = vmax.f32 %v3804_v2, 0.0  ;;  %v3741_v27 = vmul.f32 %v9989_v16, %v12745_v29  ;;  %v12749_v58 = vld [vmem:[#allocation243_spill] sm:$0xff]  ;;  %v12750_v12 = vld [vmem:[#allocation244_spill] sm:$0xff] }
 0x5d6   :  { %v10214_v51 = vpack.c.bf16 %v3866_v60, %v3865_v24  ;;  %v3806_v19 = vadd.f32 %v10005_v5, %v3739_v47  ;;  %v3869_v14 = vmax.f32 %v3805_v53, 0.0  ;;  %v3807_v56 = vadd.f32 %v10005_v5, %v3740_v37  ;;  %v12751_v60 = vld [vmem:[#allocation245_spill] sm:$0xff] }
 0x5d7   :  { %v3742_v43 = vmul.f32 %v9989_v16, %v12746_v55  ;;  %v3743_v23 = vmul.f32 %v9989_v16, %v12747_v18  ;;  %v10224_v32 = vpack.c.bf16 %v3868_v59, %v3867_v13  ;;  %v3808_v7 = vadd.f32 %v10005_v5, %v3741_v27 }
 0x5d8   :  { %v3870_v50 = vmax.f32 %v3806_v19, 0.0  ;;  %v3744_v20 = vmul.f32 %v9989_v16, %v12748_v38  ;;  %v3871_v63 = vmax.f32 %v3807_v56, 0.0  ;;  %v3745_v3 = vmul.f32 %v9989_v16, %v12749_v58 }
 0x5d9   :  { %v3809_v31 = vadd.f32 %v10005_v5, %v3742_v43  ;;  %v3810_v44 = vadd.f32 %v10005_v5, %v3743_v23  ;;  %v3872_v35 = vmax.f32 %v3808_v7, 0.0  ;;  %v3746_v9 = vmul.f32 %v9989_v16, %v12750_v12 }
 0x5da   :  { %v3914_v0 = vpack.c.bf16 %v3870_v50, %v3869_v14  ;;  %v3811_v39 = vadd.f32 %v10005_v5, %v3744_v20  ;;  %v3812_v24 = vadd.f32 %v10005_v5, %v3745_v3  ;;  %v3747_v2 = vmul.f32 %v9989_v16, %v12751_v60 }
 0x5db   :  { %v3873_v28 = vmax.f32 %v3809_v31, 0.0  ;;  %v3874_v33 = vmax.f32 %v3810_v44, 0.0  ;;  %v3915_v46 = vpack.c.bf16 %v3872_v35, %v3871_v63  ;;  %v3813_v13 = vadd.f32 %v10005_v5, %v3746_v9 }
 0x5dc   :  { %v3875_v47 = vmax.f32 %v3811_v39, 0.0  ;;  %v3876_v4 = vmax.f32 %v3812_v24, 0.0  ;;  %v3814_v37 = vadd.f32 %v10005_v5, %v3747_v2  ;;  %v3898_v59 = vpack.c.bf16 %v3838_v48, %v3837_v49 }
 0x5dd   :  { %v3916_v53 = vpack.c.bf16 %v3874_v33, %v3873_v28  ;;  %v3922_v19 = vpack.c.bf16 %v3886_v17, %v3885_v10  ;;  %v3877_v29 = vmax.f32 %v3813_v13, 0.0 }
 0x5de   :  { %v3917_v16 = vpack.c.bf16 %v3876_v4, %v3875_v47  ;;  %v3878_v27 = vmax.f32 %v3814_v37, 0.0 }
 0x5e0   :  { %4014 = vmatmul.bf16.gmra.mxu2 %v3898_v59  ;;  %4134 = vmatmul.bf16.gmra.mxu3 %v3922_v19  ;;  %v3918_v14 = vpack.c.bf16 %v3878_v27, %v3877_v29 }
 0x5f0   :  { %4019 = vmatmul.bf16.gmra.mxu2 %v10079_v26  ;;  %4139 = vmatmul.bf16.gmra.mxu3 %v10084_v25 }
 0x600   :  { %4024 = vmatmul.bf16.gmra.mxu2 %v10094_v57  ;;  %4144 = vmatmul.bf16.gmra.mxu3 %v10103_v54 }
 0x610   :  { %4029 = vmatmul.bf16.gmra.mxu2 %v10111_v8  ;;  %4149 = vmatmul.bf16.gmra.mxu3 %v10116_v21 }
 0x620   :  { %4034 = vmatmul.bf16.gmra.mxu2 %v10126_v6  ;;  %4154 = vmatmul.bf16.gmra.mxu3 %v10135_v11 }
 0x630   :  { %4039 = vmatmul.bf16.gmra.mxu2 %v10143_v22 }
 0x633   :  { %v10258_v5 = vpop.f32.mrf.mxu2  ;;  %v10334_v50 = vpop.f32.mrf.mxu3 }
 0x634   :  { %12764 = vst [vmem:[#allocation88_spill] sm:$0xff] %v10334_v50  ;;  %v4231_v24 = vmul.f32 %v10258_v5, %v10258_v5 }
 0x63b   :  { %v10260_v1 = vpop.f32.mrf.mxu2  ;;  %v10338_v38 = vpop.f32.mrf.mxu3 }
 0x63c   :  { %v4162_v44 = vadd.f32 %v10260_v1, %v10258_v5  ;;  %v4232_v9 = vmul.f32 %v10260_v1, %v10260_v1 }
 0x63e   :  { %v4295_v47 = vadd.f32 %v4232_v9, %v4231_v24 }
 0x640   :  { %4044 = vmatmul.bf16.gmra.mxu2 %v10148_v41 }
 0x643   :  { %v10263_v40 = vpop.f32.mrf.mxu2  ;;  %v10342_v63 = vpop.f32.mrf.mxu3 }
 0x644   :  { %v4163_v58 = vadd.f32 %v4162_v44, %v10263_v40  ;;  %v4233_v60 = vmul.f32 %v10263_v40, %v10263_v40 }
 0x646   :  { %v4296_v4 = vadd.f32 %v4295_v47, %v4233_v60 }
 0x64b   :  { %v10265_v49 = vpop.f32.mrf.mxu2  ;;  %v10349_v3 = vpop.f32.mrf.mxu3 }
 0x64c   :  { %v4164_v35 = vadd.f32 %v4163_v58, %v10265_v49  ;;  %v4234_v13 = vmul.f32 %v10265_v49, %v10265_v49 }
 0x64e   :  { %v4297_v19 = vadd.f32 %v4296_v4, %v4234_v13 }
 0x650   :  { %4049 = vmatmul.bf16.gmra.mxu2 %v10158_v36 }
 0x653   :  { %v10268_v30 = vpop.f32.mrf.mxu2 }
 0x654   :  { %v4165_v39 = vadd.f32 %v4164_v35, %v10268_v30  ;;  %v4235_v37 = vmul.f32 %v10268_v30, %v10268_v30 }
 0x65b   :  { %v10270_v34 = vpop.f32.mrf.mxu2 }
 0x65c   :  { %v4166_v12 = vadd.f32 %v4165_v39, %v10270_v34  ;;  %v4236_v29 = vmul.f32 %v10270_v34, %v10270_v34 }
 0x660   :  { %4054 = vmatmul.bf16.gmra.mxu2 %v10167_v52 }
 0x663   :  { %v10273_v48 = vpop.f32.mrf.mxu2 }
 0x664   :  { %v4167_v28 = vadd.f32 %v4166_v12, %v10273_v48  ;;  %v4237_v44 = vmul.f32 %v10273_v48, %v10273_v48 }
 0x66b   :  { %v10275_v10 = vpop.f32.mrf.mxu2 }
 0x66c   :  { %v4168_v2 = vadd.f32 %v4167_v28, %v10275_v10  ;;  %v4238_v39 = vmul.f32 %v10275_v10, %v10275_v10 }
 0x670   :  { %4059 = vmatmul.bf16.gmra.mxu2 %v10175_v42 }
 0x673   :  { %v10278_v17 = vpop.f32.mrf.mxu2 }
 0x674   :  { %v4239_v24 = vmul.f32 %v10278_v17, %v10278_v17 }
 0x67b   :  { %v10280_v26 = vpop.f32.mrf.mxu2 }
 0x67c   :  { %v4240_v47 = vmul.f32 %v10280_v26, %v10280_v26 }
 0x680   :  { %4064 = vmatmul.bf16.gmra.mxu2 %v10180_v45 }
 0x683   :  { %v10283_v25 = vpop.f32.mrf.mxu2 }
 0x68b   :  { %v10285_v57 = vpop.f32.mrf.mxu2 }
 0x68c   :  { %12752 = vst [vmem:[#allocation246_spill] sm:$0xff] %v10285_v57 }
 0x690   :  { %4069 = vmatmul.bf16.gmra.mxu2 %v10192_v61 }
 0x693   :  { %v10288_v54 = vpop.f32.mrf.mxu2 }
 0x694   :  { %12753 = vst [vmem:[#allocation253_spill] sm:$0xff] %v10288_v54 }
 0x69b   :  { %v10290_v8 = vpop.f32.mrf.mxu2 }
 0x69c   :  { %12754 = vst [vmem:[#allocation254_spill] sm:$0xff] %v10290_v8 }
 0x6a0   :  { %4074 = vmatmul.bf16.gmra.mxu2 %v10201_v62 }
 0x6a3   :  { %v10293_v21 = vpop.f32.mrf.mxu2 }
 0x6a4   :  { %12755 = vst [vmem:[#allocation255_spill] sm:$0xff] %v10293_v21 }
 0x6ab   :  { %v10295_v6 = vpop.f32.mrf.mxu2 }
 0x6ac   :  { %12756 = vst [vmem:[#allocation218_spill] sm:$0xff] %v10295_v6 }
 0x6b0   :  { %4079 = vmatmul.bf16.gmra.mxu2 %v10209_v15 }
 0x6b3   :  { %v10298_v11 = vpop.f32.mrf.mxu2 }
 0x6b4   :  { %12757 = vst [vmem:[#allocation43_spill] sm:$0xff] %v10298_v11 }
 0x6bb   :  { %v10300_v22 = vpop.f32.mrf.mxu2 }
 0x6bc   :  { %12758 = vst [vmem:[#allocation219_spill] sm:$0xff] %v10300_v22 }
 0x6c0   :  { %4084 = vmatmul.bf16.gmra.mxu2 %v10214_v51 }
 0x6c3   :  { %v10303_v41 = vpop.f32.mrf.mxu2 }
 0x6c4   :  { %12759 = vst [vmem:[#allocation146_spill] sm:$0xff] %v10303_v41 }
 0x6cb   :  { %v10305_v36 = vpop.f32.mrf.mxu2 }
 0x6cc   :  { %12760 = vst [vmem:[#allocation220_spill] sm:$0xff] %v10305_v36 }
 0x6d0   :  { %4089 = vmatmul.bf16.gmra.mxu2 %v10224_v32 }
 0x6d3   :  { %v10308_v52 = vpop.f32.mrf.mxu2 }
 0x6d4   :  { %12761 = vst [vmem:[#allocation46_spill] sm:$0xff] %v10308_v52 }
 0x6db   :  { %v10310_v42 = vpop.f32.mrf.mxu2 }
 0x6dc   :  { %12762 = vst [vmem:[#allocation224_spill] sm:$0xff] %v10310_v42 }
 0x6e0   :  { %4094 = vmatmul.bf16.gmra.mxu2 %v3914_v0 }
 0x6e3   :  { %v10312_v45 = vpop.f32.mrf.mxu2 }
 0x6e4   :  { %12763 = vst [vmem:[#allocation64_spill] sm:$0xff] %v10312_v45 }
 0x6eb   :  { %v10314_v61 = vpop.f32.mrf.mxu2 }
 0x6f0   :  { %4099 = vmatmul.bf16.gmra.mxu2 %v3915_v46  ;;  %v10366_v46 = vpop.f32.mrf.mxu3 }
 0x6f1   :  { %12765 = vst [vmem:[#allocation91_spill] sm:$0xff] %v10366_v46 }
 0x6f3   :  { %v10316_v62 = vpop.f32.mrf.mxu2 }
 0x6f8   :  { %v10385_v9 = vpop.f32.mrf.mxu3 }
 0x6fb   :  { %v10318_v15 = vpop.f32.mrf.mxu2 }
 0x700   :  { %4104 = vmatmul.bf16.gmra.mxu2 %v3916_v53  ;;  %v4169_v53 = vadd.f32 %v4168_v2, %v10278_v17 }
 0x702   :  { %v4170_v59 = vadd.f32 %v4169_v53, %v10280_v26 }
 0x703   :  { %v10320_v51 = vpop.f32.mrf.mxu2 }
 0x70b   :  { %v10322_v56 = vpop.f32.mrf.mxu2 }
 0x710   :  { %4109 = vmatmul.bf16.gmra.mxu2 %v3917_v16  ;;  %v4171_v16 = vadd.f32 %v4170_v59, %v10283_v25 }
 0x712   :  { %v4172_v58 = vadd.f32 %v4171_v16, %v10285_v57 }
 0x713   :  { %v10324_v55 = vpop.f32.mrf.mxu2 }
 0x714   :  { %v4173_v12 = vadd.f32 %v4172_v58, %v10288_v54 }
 0x716   :  { %v4174_v60 = vadd.f32 %v4173_v12, %v10290_v8  ;;  %v4244_v12 = vmul.f32 %v10290_v8, %v10290_v8 }
 0x718   :  { %v4175_v13 = vadd.f32 %v4174_v60, %v10293_v21 }
 0x71a   :  { %v4176_v59 = vadd.f32 %v4175_v13, %v10295_v6 }
 0x71b   :  { %v10326_v43 = vpop.f32.mrf.mxu2 }
 0x71c   :  { %v4177_v16 = vadd.f32 %v4176_v59, %v10298_v11 }
 0x71e   :  { %v4178_v58 = vadd.f32 %v4177_v16, %v10300_v22 }
 0x720   :  { %4114 = vmatmul.bf16.gmra.mxu2 %v3918_v14  ;;  %v4298_v14 = vadd.f32 %v4297_v19, %v4235_v37  ;;  %v4241_v37 = vmul.f32 %v10283_v25, %v10283_v25 }
 0x722   :  { %v4299_v35 = vadd.f32 %v4298_v14, %v4236_v29  ;;  %v4242_v29 = vmul.f32 %v10285_v57, %v10285_v57 }
 0x723   :  { %v10328_v18 = vpop.f32.mrf.mxu2 }
 0x724   :  { %v4300_v28 = vadd.f32 %v4299_v35, %v4237_v44  ;;  %v4243_v44 = vmul.f32 %v10288_v54, %v10288_v54  ;;  %v10404_v35 = vpop.f32.mrf.mxu3 }
 0x725   :  { %12766 = vst [vmem:[#allocation225_spill] sm:$0xff] %v10404_v35 }
 0x726   :  { %v4301_v2 = vadd.f32 %v4300_v28, %v4238_v39  ;;  %v4179_v28 = vadd.f32 %v4178_v58, %v10303_v41 }
 0x728   :  { %v4302_v4 = vadd.f32 %v4301_v2, %v4239_v24  ;;  %v4245_v2 = vmul.f32 %v10293_v21, %v10293_v21 }
 0x72a   :  { %v4303_v19 = vadd.f32 %v4302_v4, %v4240_v47  ;;  %v4180_v47 = vadd.f32 %v4179_v28, %v10305_v36  ;;  %v4246_v4 = vmul.f32 %v10295_v6, %v10295_v6  ;;  %v4249_v28 = vmul.f32 %v10303_v41, %v10303_v41 }
 0x72b   :  { %v10330_v23 = vpop.f32.mrf.mxu2 }
 0x72c   :  { %v4304_v14 = vadd.f32 %v4303_v19, %v4241_v37  ;;  %v4181_v37 = vadd.f32 %v4180_v47, %v10308_v52  ;;  %v4247_v19 = vmul.f32 %v10298_v11, %v10298_v11  ;;  %v10423_v58 = vpop.f32.mrf.mxu3  ;;  %v4250_v47 = vmul.f32 %v10305_v36, %v10305_v36 }
 0x72d   :  { %12767 = vst [vmem:[#allocation67_spill] sm:$0xff] %v10423_v58 }
 0x72e   :  { %v4305_v39 = vadd.f32 %v4304_v14, %v4242_v29  ;;  %v4182_v29 = vadd.f32 %v4181_v37, %v10310_v42  ;;  %v4248_v14 = vmul.f32 %v10300_v22, %v10300_v22  ;;  %v4251_v37 = vmul.f32 %v10308_v52, %v10308_v52 }
 0x730   :  { %v4306_v60 = vadd.f32 %v4305_v39, %v4243_v44  ;;  %v4183_v44 = vadd.f32 %v4182_v29, %v10312_v45 }
 0x732   :  { %v4307_v13 = vadd.f32 %v4306_v60, %v4244_v12  ;;  %v4184_v60 = vadd.f32 %v4183_v44, %v10314_v61  ;;  %v4253_v44 = vmul.f32 %v10312_v45, %v10312_v45 }
 0x733   :  { %v10332_v32 = vpop.f32.mrf.mxu2 }
 0x734   :  { %v4308_v59 = vadd.f32 %v4307_v13, %v4245_v2  ;;  %v4185_v13 = vadd.f32 %v4184_v60, %v10316_v62 }
 0x736   :  { %v4309_v16 = vadd.f32 %v4308_v59, %v4246_v4  ;;  %v4186_v59 = vadd.f32 %v4185_v13, %v10318_v15 }
 0x738   :  { %v4310_v12 = vadd.f32 %v4309_v16, %v4247_v19  ;;  %v4252_v19 = vmul.f32 %v10310_v42, %v10310_v42  ;;  %v4187_v16 = vadd.f32 %v4186_v59, %v10320_v51 }
 0x73a   :  { %v4311_v2 = vadd.f32 %v4310_v12, %v4248_v14  ;;  %v4188_v12 = vadd.f32 %v4187_v16, %v10322_v56 }
 0x73b   :  { %v10336_v7 = vpop.f32.mrf.mxu2 }
 0x73c   :  { %v4312_v4 = vadd.f32 %v4311_v2, %v4249_v28  ;;  %v10444_v28 = vpop.f32.mrf.mxu3  ;;  %v4254_v2 = vmul.f32 %v10314_v61, %v10314_v61 }
 0x73d   :  { %12768 = vst [vmem:[#allocation226_spill] sm:$0xff] %v10444_v28 }
 0x73e   :  { %v4313_v29 = vadd.f32 %v4312_v4, %v4250_v47  ;;  %v4189_v47 = vadd.f32 %v4188_v12, %v10324_v55  ;;  %v4255_v4 = vmul.f32 %v10316_v62, %v10316_v62 }
 0x740   :  { %v4314_v14 = vadd.f32 %v4313_v29, %v4251_v37  ;;  %v4190_v59 = vadd.f32 %v4189_v47, %v10326_v43  ;;  %v4256_v29 = vmul.f32 %v10318_v15, %v10318_v15 }
 0x742   :  { %v4315_v60 = vadd.f32 %v4314_v14, %v4252_v19  ;;  %v4191_v16 = vadd.f32 %v4190_v59, %v10328_v18  ;;  %v4257_v14 = vmul.f32 %v10320_v51, %v10320_v51  ;;  %v4259_v59 = vmul.f32 %v10324_v55, %v10324_v55 }
 0x743   :  { %v10340_v20 = vpop.f32.mrf.mxu2 }
 0x744   :  { %v4316_v13 = vadd.f32 %v4315_v60, %v4253_v44  ;;  %v4192_v12 = vadd.f32 %v4191_v16, %v10330_v23  ;;  %v4258_v60 = vmul.f32 %v10322_v56, %v10322_v56 }
 0x746   :  { %v4317_v37 = vadd.f32 %v4316_v13, %v4254_v2  ;;  %v4193_v47 = vadd.f32 %v4192_v12, %v10332_v32  ;;  %v10463_v2 = vpop.f32.mrf.mxu3  ;;  %v4261_v12 = vmul.f32 %v10328_v18, %v10328_v18 }
 0x747   :  { %12769 = vst [vmem:[#allocation149_spill] sm:$0xff] %v10463_v2 }
 0x748   :  { %v4318_v19 = vadd.f32 %v4317_v37, %v4255_v4  ;;  %v4194_v42 = vadd.f32 %v4193_v47, %v10336_v7  ;;  %v4260_v37 = vmul.f32 %v10326_v43, %v10326_v43 }
 0x74a   :  { %v4319_v44 = vadd.f32 %v4318_v19, %v4256_v29  ;;  %v4195_v16 = vadd.f32 %v4194_v42, %v10340_v20 }
 0x74b   :  { %v10344_v31 = vpop.f32.mrf.mxu2 }
 0x74c   :  { %v4320_v13 = vadd.f32 %v4319_v44, %v4257_v14  ;;  %v4196_v52 = vadd.f32 %v4195_v16, %v10344_v31  ;;  %v4262_v44 = vmul.f32 %v10330_v23, %v10330_v23 }
 0x74e   :  { %v4321_v4 = vadd.f32 %v4320_v13, %v4258_v60  ;;  %v4263_v13 = vmul.f32 %v10332_v32, %v10332_v32  ;;  %v10482_v36 = vpop.f32.mrf.mxu3 }
 0x74f   :  { %12770 = vst [vmem:[#allocation227_spill] sm:$0xff] %v10482_v36 }
 0x750   :  { %v4322_v19 = vadd.f32 %v4321_v4, %v4259_v59  ;;  %v4264_v4 = vmul.f32 %v10336_v7, %v10336_v7 }
 0x752   :  { %v4323_v14 = vadd.f32 %v4322_v19, %v4260_v37 }
 0x753   :  { %v10351_v0 = vpop.f32.mrf.mxu2 }
 0x754   :  { %v4197_v47 = vadd.f32 %v4196_v52, %v10351_v0  ;;  %v4324_v60 = vadd.f32 %v4323_v14, %v4261_v12  ;;  %v4265_v52 = vmul.f32 %v10340_v20, %v10340_v20 }
 0x756   :  { %v4325_v59 = vadd.f32 %v4324_v60, %v4262_v44  ;;  %v4267_v60 = vmul.f32 %v10351_v0, %v10351_v0  ;;  %v10501_v6 = vpop.f32.mrf.mxu3 }
 0x757   :  { %12771 = vst [vmem:[#allocation186_spill] sm:$0xff] %v10501_v6 }
 0x758   :  { %v4326_v19 = vadd.f32 %v4325_v59, %v4263_v13 }
 0x75a   :  { %v4327_v14 = vadd.f32 %v4326_v19, %v4264_v4 }
 0x75b   :  { %v10359_v33 = vpop.f32.mrf.mxu2 }
 0x75c   :  { %v4198_v42 = vadd.f32 %v4197_v47, %v10359_v33  ;;  %v4266_v47 = vmul.f32 %v10344_v31, %v10344_v31  ;;  %v4328_v44 = vadd.f32 %v4327_v14, %v4265_v52  ;;  %v4268_v13 = vmul.f32 %v10359_v33, %v10359_v33 }
 0x75e   :  { %v4329_v11 = vadd.f32 %v4328_v44, %v4266_v47 }
 0x763   :  { %v10377_v27 = vpop.f32.mrf.mxu2 }
 0x764   :  { %v4199_v16 = vadd.f32 %v4198_v42, %v10377_v27  ;;  %v4269_v19 = vmul.f32 %v10377_v27, %v10377_v27 }
 0x76b   :  { %v10393_v53 = vpop.f32.mrf.mxu2 }
 0x76c   :  { %v4200_v12 = vadd.f32 %v4199_v16, %v10393_v53  ;;  %v4330_v16 = vadd.f32 %v4329_v11, %v4267_v60 }
 0x773   :  { %v10409_v24 = vpop.f32.mrf.mxu2 }
 0x774   :  { %v4201_v22 = vadd.f32 %v4200_v12, %v10409_v24  ;;  %v4331_v12 = vadd.f32 %v4330_v16, %v4268_v13  ;;  %v4271_v44 = vmul.f32 %v10409_v24, %v10409_v24 }
 0x776   :  { %v4332_v47 = vadd.f32 %v4331_v12, %v4269_v19  ;;  %v10522_v19 = vpop.f32.mrf.mxu3 }
 0x777   :  { %12772 = vst [vmem:[#allocation47_spill] sm:$0xff] %v10522_v19 }
 0x77b   :  { %v10425_v39 = vpop.f32.mrf.mxu2 }
 0x77c   :  { %v4202_v42 = vadd.f32 %v4201_v22, %v10425_v39  ;;  %v4270_v22 = vmul.f32 %v10393_v53, %v10393_v53  ;;  %v4272_v11 = vmul.f32 %v10425_v39, %v10425_v39 }
 0x77e   :  { %v4333_v21 = vadd.f32 %v4332_v47, %v4270_v22 }
 0x780   :  { %v4334_v13 = vadd.f32 %v4333_v21, %v4271_v44 }
 0x783   :  { %v10439_v41 = vpop.f32.mrf.mxu2 }
 0x784   :  { %v4203_v59 = vadd.f32 %v4202_v42, %v10439_v41 }
 0x78b   :  { %v10455_v45 = vpop.f32.mrf.mxu2 }
 0x78c   :  { %v4204_v52 = vadd.f32 %v4203_v59, %v10455_v45  ;;  %v4273_v59 = vmul.f32 %v10439_v41, %v10439_v41  ;;  %v4274_v12 = vmul.f32 %v10455_v45, %v10455_v45 }
 0x793   :  { %v10471_v29 = vpop.f32.mrf.mxu2 }
 0x794   :  { %v4205_v14 = vadd.f32 %v4204_v52, %v10471_v29  ;;  %v4335_v52 = vadd.f32 %v4334_v13, %v4272_v11  ;;  %v4275_v47 = vmul.f32 %v10471_v29, %v10471_v29 }
 0x79b   :  { %v10487_v37 = vpop.f32.mrf.mxu2 }
 0x79c   :  { %v4206_v42 = vadd.f32 %v4205_v14, %v10487_v37  ;;  %v4336_v14 = vadd.f32 %v4335_v52, %v4273_v59  ;;  %v4276_v44 = vmul.f32 %v10487_v37, %v10487_v37 }
 0x79e   :  { %v4337_v21 = vadd.f32 %v4336_v14, %v4274_v12  ;;  %v4279_v14 = vmul.f32 %v10334_v50, %v10334_v50 }
 0x7a0   :  { %v4338_v54 = vadd.f32 %v4337_v21, %v4275_v47  ;;  %v4280_v21 = vmul.f32 %v10338_v38, %v10338_v38 }
 0x7a2   :  { %v4339_v57 = vadd.f32 %v4338_v54, %v4276_v44 }
 0x7a3   :  { %v10503_v4 = vpop.f32.mrf.mxu2 }
 0x7a4   :  { %v4207_v60 = vadd.f32 %v4206_v42, %v10503_v4  ;;  %v4277_v11 = vmul.f32 %v10503_v4, %v10503_v4 }
 0x7a6   :  { %v4340_v52 = vadd.f32 %v4339_v57, %v4277_v11  ;;  %v4281_v57 = vmul.f32 %v10342_v63, %v10342_v63 }
 0x7ab   :  { %v10517_v8 = vpop.f32.mrf.mxu2 }
 0x7ac   :  { %v4208_v16 = vadd.f32 %v4207_v60, %v10517_v8  ;;  %v4278_v12 = vmul.f32 %v10517_v8, %v10517_v8 }
 0x7ae   :  { %v4209_v22 = vadd.f32 %v4208_v16, %v10334_v50  ;;  %v10537_v16 = vpop.f32.mrf.mxu3 }
 0x7af   :  { %12773 = vst [vmem:[#allocation231_spill] sm:$0xff] %v10537_v16 }
 0x7b0   :  { %v4210_v42 = vadd.f32 %v4209_v22, %v10338_v38 }
 0x7b2   :  { %v4211_v60 = vadd.f32 %v4210_v42, %v10342_v63  ;;  %v4341_v42 = vadd.f32 %v4340_v52, %v4278_v12  ;;  %v4283_v52 = vmul.f32 %v10366_v46, %v10366_v46 }
 0x7b4   :  { %v4212_v13 = vadd.f32 %v4211_v60, %v10349_v3  ;;  %v4342_v44 = vadd.f32 %v4341_v42, %v4279_v14 }
 0x7b6   :  { %v4213_v59 = vadd.f32 %v4212_v13, %v10366_v46  ;;  %v4343_v11 = vadd.f32 %v4342_v44, %v4280_v21  ;;  %v4282_v13 = vmul.f32 %v10349_v3, %v10349_v3 }
 0x7b8   :  { %v4214_v22 = vadd.f32 %v4213_v59, %v10385_v9  ;;  %v4344_v50 = vadd.f32 %v4343_v11, %v4281_v57 }
 0x7ba   :  { %v4215_v47 = vadd.f32 %v4214_v22, %v10404_v35  ;;  %v10554_v22 = vpop.f32.mrf.mxu3  ;;  %v4345_v14 = vadd.f32 %v4344_v50, %v4282_v13  ;;  %v4287_v50 = vmul.f32 %v10444_v28, %v10444_v28 }
 0x7bb   :  { %12774 = vst [vmem:[#allocation172_spill] sm:$0xff] %v10554_v22 }
 0x7bc   :  { %v4216_v54 = vadd.f32 %v4215_v47, %v10423_v58  ;;  %v4284_v47 = vmul.f32 %v10385_v9, %v10385_v9  ;;  %v4346_v21 = vadd.f32 %v4345_v14, %v4283_v52  ;;  %v4288_v52 = vmul.f32 %v10463_v2, %v10463_v2 }
 0x7be   :  { %v4217_v60 = vadd.f32 %v4216_v54, %v10444_v28  ;;  %v4285_v54 = vmul.f32 %v10404_v35, %v10404_v35  ;;  %v4347_v57 = vadd.f32 %v4346_v21, %v4284_v47 }
 0x7c0   :  { %v4218_v59 = vadd.f32 %v4217_v60, %v10463_v2  ;;  %v4286_v60 = vmul.f32 %v10423_v58, %v10423_v58  ;;  %v4348_v46 = vadd.f32 %v4347_v57, %v4285_v54  ;;  %v4290_v54 = vmul.f32 %v10501_v6, %v10501_v6 }
 0x7c1   :  { %v4292_v2 = vmul.f32 %v10537_v16, %v10537_v16 }
 0x7c2   :  { %v4219_v12 = vadd.f32 %v4218_v59, %v10482_v36  ;;  %v4349_v59 = vadd.f32 %v4348_v46, %v4286_v60  ;;  %v4291_v46 = vmul.f32 %v10522_v19, %v10522_v19 }
 0x7c4   :  { %v4220_v42 = vadd.f32 %v4219_v12, %v10501_v6  ;;  %v10571_v12 = vpop.f32.mrf.mxu3  ;;  %v4350_v47 = vadd.f32 %v4349_v59, %v4287_v50  ;;  %v4293_v50 = vmul.f32 %v10554_v22, %v10554_v22 }
 0x7c6   :  { %v4221_v44 = vadd.f32 %v4220_v42, %v10522_v19  ;;  %v4289_v42 = vmul.f32 %v10482_v36, %v10482_v36 }
 0x7c8   :  { %v4222_v11 = vadd.f32 %v4221_v44, %v10537_v16  ;;  %v4351_v44 = vadd.f32 %v4350_v47, %v4288_v52  ;;  %v4294_v52 = vmul.f32 %v10571_v12, %v10571_v12 }
 0x7ca   :  { %v4223_v13 = vadd.f32 %v4222_v11, %v10554_v22  ;;  %v4352_v28 = vadd.f32 %v4351_v44, %v4289_v42 }
 0x7cc   :  { %v4224_v14 = vadd.f32 %v4223_v13, %v10571_v12  ;;  %v4353_v11 = vadd.f32 %v4352_v28, %v4290_v54 }
 0x7ce   :  { %v4225_v21 = vrot.slane %v4224_v14, 4  ;;  %v4354_v13 = vadd.f32 %v4353_v11, %v4291_v46 }
 0x7d0   :  { %v4226_v57 = vadd.f32 %v4225_v21, %v4224_v14  ;;  %v4355_v36 = vadd.f32 %v4354_v13, %v4292_v2 }
 0x7d2   :  { %v4227_v60 = vrot.slane %v4226_v57, 2  ;;  %v4356_v47 = vadd.f32 %v4355_v36, %v4293_v50  ;;  %v4160_v50 = vld [vmem:[%s11045_s8] sm:$0x1]  ;;  %s5289_s8 = smov [#allocation12]  }
 0x7d4   :  { %v4228_v59 = vadd.f32 %v4227_v60, %v4226_v57  ;;  %v4357_v42 = vadd.f32 %v4356_v47, %v4294_v52 }
 0x7d6   :  { %v4229_v14 = vrot.slane %v4228_v59, 1  ;;  %v4358_v21 = vrot.slane %v4357_v42, 4 }
 0x7d8   :  { %v4230_v44 = vadd.f32 %v4229_v14, %v4228_v59  ;;  %v4359_v19 = vadd.f32 %v4358_v21, %v4357_v42  ;;  %v12777_v21 = vld [vmem:[#allocation100_spill] sm:$0xff] }
 0x7da   :  { %v4360_v6 = vrot.slane %v4359_v19, 2  ;;  %v4364_v54 = vmul.f32 0.001953125, %v4230_v44 }
 0x7dc   :  { %v4361_v28 = vadd.f32 %v4360_v6, %v4359_v19  ;;  %v4366_v46 = vmul.f32 %v4364_v54, %v4364_v54 }
 0x7de   :  { %v4362_v58 = vrot.slane %v4361_v28, 1 }
 0x7e0   :  { %v4363_v16 = vadd.f32 %v4362_v58, %v4361_v28 }
 0x7e2   :  { %v4365_v11 = vmul.f32 0.001953125, %v4363_v16 }
 0x7e4   :  { %v4367_v35 = vsub.f32 %v4365_v11, %v4366_v46 }
 0x7e6   :  { %v4368_v22 = vadd.f32 1e-05, %v4367_v35  ;;  %v4161_v35 = vld [vmem:[%s11046_s9] sm:$0x1]  ;;  %s4712_s9 = sshll.u32 %s5289_s8, 4  ;;  %s4713_s9 = int_to_ptr.vmem [resolvable:$true] %s4712_s9 }
 0x7e8   :  { %5059 = vrsqrt.f32 %v4368_v22  ;;  %vm4375_vm11 = vweird.f32 %v4368_v22 }
 0x7ee   :  { %v5060_v2 = vpop.eup %5059 }
 0x7ef   :  { %v4370_v57 = vmul.f32 %v5060_v2, %v4368_v22  ;;  %vm4376_vm10 = vweird.f32 %v5060_v2 }
 0x7f0   :  { %vm4377_vm12 = vmor %vm4375_vm11, %vm4376_vm10 }
 0x7f1   :  { %v4371_v60 = vmul.f32 %v5060_v2, %v4370_v57 }
 0x7f3   :  { %v4372_v13 = vmul.f32 0.5, %v4371_v60  ;;  %v12778_v60 = vld [vmem:[#allocation88_spill] sm:$0xff] }
 0x7f5   :  { %v4373_v36 = vsub.f32 1.5, %v4372_v13  ;;  %v12779_v13 = vld [vmem:[#allocation91_spill] sm:$0xff] }
 0x7f7   :  { %v4374_v59 = vmul.f32 %v5060_v2, %v4373_v36  ;;  %v12780_v36 = vld [vmem:[#allocation225_spill] sm:$0xff] }
 0x7f9   :  { %v4378_v6 = vsel %vm4377_vm12, %v5060_v2, %v4374_v59 }
 0x7fa   :  { %v4379_v58 = vmul.f32 %v4378_v6, %v4160_v50  ;;  %v12781_v50 = vld [vmem:[#allocation67_spill] sm:$0xff]  ;;  %v12782_v6 = vld [vmem:[#allocation226_spill] sm:$0xff] }
 0x7fc   :  { %v4380_v19 = vmul.f32 %v4379_v58, %v4364_v54  ;;  %v10594_v16 = vperm.slane %v4379_v58, 0  ;;  %v12783_v58 = vld [vmem:[#allocation149_spill] sm:$0xff] }
 0x7fe   :  { %12775 = vst [vmem:[#allocation153_spill] sm:$0xff] %v10594_v16  ;;  %v4381_v52 = vsub.f32 %v4161_v35, %v4380_v19  ;;  %v4432_v47 = vmul.f32 %v10594_v16, %v10517_v8  ;;  %v10604_v28 = vmul.f32 %v10594_v16, %v10258_v5  ;;  %v10608_v54 = vmul.f32 %v10594_v16, %v10260_v1  ;;  %v12784_v35 = vld [vmem:[#allocation227_spill] sm:$0xff]  ;;  %v12785_v19 = vld [vmem:[#allocation186_spill] sm:$0xff] }
 0x7ff   :  { %v10612_v46 = vmul.f32 %v10594_v16, %v10263_v40  ;;  %v10616_v8 = vmul.f32 %v10594_v16, %v10265_v49  ;;  %v10620_v11 = vmul.f32 %v10594_v16, %v10268_v30  ;;  %v10624_v5 = vmul.f32 %v10594_v16, %v10270_v34 }
 0x800   :  { %v10598_v14 = vperm.slane %v4381_v52, 0  ;;  %v10628_v1 = vmul.f32 %v10594_v16, %v10273_v48  ;;  %v10632_v40 = vmul.f32 %v10594_v16, %v10275_v10  ;;  %v10636_v49 = vmul.f32 %v10594_v16, %v10278_v17 }
 0x801   :  { %v10640_v30 = vmul.f32 %v10594_v16, %v10280_v26  ;;  %v10644_v34 = vmul.f32 %v10594_v16, %v10283_v25  ;;  %v4408_v48 = vmul.f32 %v10594_v16, %v10314_v61  ;;  %v4409_v2 = vmul.f32 %v10594_v16, %v10316_v62 }
 0x802   :  { %12776 = vst [vmem:[#allocation56_spill] sm:$0xff] %v10598_v14  ;;  %v4499_v42 = vadd.f32 %v10598_v14, %v4432_v47  ;;  %v4410_v10 = vmul.f32 %v10594_v16, %v10318_v15  ;;  %v4411_v17 = vmul.f32 %v10594_v16, %v10320_v51  ;;  %v4412_v26 = vmul.f32 %v10594_v16, %v10322_v56  ;;  %v12786_v47 = vld [vmem:[#allocation47_spill] sm:$0xff] }
 0x803   :  { %v4413_v57 = vmul.f32 %v10594_v16, %v10324_v55  ;;  %v4414_v25 = vmul.f32 %v10594_v16, %v10326_v43  ;;  %v4415_v61 = vmul.f32 %v10594_v16, %v10328_v18  ;;  %v4416_v62 = vmul.f32 %v10594_v16, %v10330_v23 }
 0x804   :  { %v4563_v22 = vadd.f32 %v4499_v42, %v12777_v21  ;;  %v4417_v15 = vmul.f32 %v10594_v16, %v10332_v32  ;;  %v4418_v51 = vmul.f32 %v10594_v16, %v10336_v7  ;;  %v4419_v56 = vmul.f32 %v10594_v16, %v10340_v20  ;;  %v12787_v42 = vld [vmem:[#allocation231_spill] sm:$0xff] }
 0x805   :  { %v4420_v55 = vmul.f32 %v10594_v16, %v10344_v31  ;;  %v4421_v43 = vmul.f32 %v10594_v16, %v10351_v0  ;;  %v4422_v18 = vmul.f32 %v10594_v16, %v10359_v33  ;;  %v4423_v23 = vmul.f32 %v10594_v16, %v10377_v27 }
 0x806   :  { %v4627_v44 = vmax.f32 %v4563_v22, 0.0  ;;  %v4424_v32 = vmul.f32 %v10594_v16, %v10393_v53  ;;  %v4425_v7 = vmul.f32 %v10594_v16, %v10409_v24  ;;  %v4426_v20 = vmul.f32 %v10594_v16, %v10425_v39  ;;  %v12788_v22 = vld [vmem:[#allocation172_spill] sm:$0xff] }
 0x807   :  { %v4427_v31 = vmul.f32 %v10594_v16, %v10439_v41  ;;  %v4428_v0 = vmul.f32 %v10594_v16, %v10455_v45  ;;  %v4429_v33 = vmul.f32 %v10594_v16, %v10471_v29  ;;  %v4430_v27 = vmul.f32 %v10594_v16, %v10487_v37 }
 0x808   :  { %4691 = vst [vmem:[#allocation12 + $0x178] sm:$0xff] %v4627_v44  ;;  %v4431_v53 = vmul.f32 %v10594_v16, %v10503_v4  ;;  %v4433_v24 = vmul.f32 %v10594_v16, %v12778_v60  ;;  %v4434_v39 = vmul.f32 %v10594_v16, %v10338_v38  ;;  %v4435_v41 = vmul.f32 %v10594_v16, %v10342_v63 }
 0x809   :  { %v4436_v45 = vmul.f32 %v10594_v16, %v10349_v3  ;;  %v4437_v29 = vmul.f32 %v10594_v16, %v12779_v13  ;;  %v4438_v37 = vmul.f32 %v10594_v16, %v10385_v9  ;;  %v4439_v4 = vmul.f32 %v10594_v16, %v12780_v36 }
 0x80a   :  { %v4440_v59 = vmul.f32 %v10594_v16, %v12781_v50  ;;  %v4441_v38 = vmul.f32 %v10594_v16, %v12782_v6  ;;  %v4442_v63 = vmul.f32 %v10594_v16, %v12783_v58  ;;  %v4443_v3 = vmul.f32 %v10594_v16, %v12784_v35 }
 0x80b   :  { %v4444_v52 = vmul.f32 %v10594_v16, %v12785_v19  ;;  %v4445_v9 = vmul.f32 %v10594_v16, %v12786_v47  ;;  %v4446_v21 = vmul.f32 %v10594_v16, %v12787_v42  ;;  %v4447_v44 = vmul.f32 %v10594_v16, %v12788_v22  ;;  %v12790_v22 = vld [vmem:[#allocation253_spill] sm:$0xff] }
 0x80c   :  { %v4448_v60 = vmul.f32 %v10594_v16, %v10571_v12  ;;  %v4475_v13 = vadd.f32 %v10598_v14, %v4408_v48  ;;  %v4476_v36 = vadd.f32 %v10598_v14, %v4409_v2  ;;  %v4477_v50 = vadd.f32 %v10598_v14, %v4410_v10 }
 0x80d   :  { %v4478_v6 = vadd.f32 %v10598_v14, %v4411_v17  ;;  %v4479_v58 = vadd.f32 %v10598_v14, %v4412_v26  ;;  %v4480_v35 = vadd.f32 %v10598_v14, %v4413_v57  ;;  %v4481_v19 = vadd.f32 %v10598_v14, %v4414_v25 }
 0x80e   :  { %v4482_v47 = vadd.f32 %v10598_v14, %v4415_v61  ;;  %v4483_v42 = vadd.f32 %v10598_v14, %v4416_v62  ;;  %v4484_v12 = vadd.f32 %v10598_v14, %v4417_v15  ;;  %v4485_v48 = vadd.f32 %v10598_v14, %v4418_v51 }
 0x80f   :  { %v4486_v2 = vadd.f32 %v10598_v14, %v4419_v56  ;;  %v4487_v10 = vadd.f32 %v10598_v14, %v4420_v55  ;;  %v4488_v17 = vadd.f32 %v10598_v14, %v4421_v43  ;;  %v4489_v26 = vadd.f32 %v10598_v14, %v4422_v18 }
 0x810   :  { %v4490_v57 = vadd.f32 %v10598_v14, %v4423_v23  ;;  %v4491_v25 = vadd.f32 %v10598_v14, %v4424_v32  ;;  %v4492_v61 = vadd.f32 %v10598_v14, %v4425_v7  ;;  %v4493_v62 = vadd.f32 %v10598_v14, %v4426_v20 }
 0x811   :  { %v4494_v15 = vadd.f32 %v10598_v14, %v4427_v31  ;;  %v4495_v51 = vadd.f32 %v10598_v14, %v4428_v0  ;;  %v4496_v56 = vadd.f32 %v10598_v14, %v4429_v33  ;;  %v4497_v55 = vadd.f32 %v10598_v14, %v4430_v27 }
 0x812   :  { %v4498_v43 = vadd.f32 %v10598_v14, %v4431_v53  ;;  %v4500_v18 = vadd.f32 %v10598_v14, %v4433_v24  ;;  %v4501_v23 = vadd.f32 %v10598_v14, %v4434_v39  ;;  %v4502_v32 = vadd.f32 %v10598_v14, %v4435_v41 }
 0x813   :  { %v4503_v7 = vadd.f32 %v10598_v14, %v4436_v45  ;;  %v4504_v20 = vadd.f32 %v10598_v14, %v4437_v29  ;;  %v4505_v31 = vadd.f32 %v10598_v14, %v4438_v37  ;;  %v4506_v0 = vadd.f32 %v10598_v14, %v4439_v4 }
 0x814   :  { %v4507_v33 = vadd.f32 %v10598_v14, %v4440_v59  ;;  %v4508_v27 = vadd.f32 %v10598_v14, %v4441_v38  ;;  %v4509_v53 = vadd.f32 %v10598_v14, %v4442_v63  ;;  %v4510_v24 = vadd.f32 %v10598_v14, %v4443_v3  ;;  %v12789_v3 = vld [vmem:[#allocation246_spill] sm:$0xff] }
 0x815   :  { %v4511_v39 = vadd.f32 %v10598_v14, %v4444_v52  ;;  %v4512_v41 = vadd.f32 %v10598_v14, %v4445_v9  ;;  %v4513_v45 = vadd.f32 %v10598_v14, %v4446_v21  ;;  %v4514_v29 = vadd.f32 %v10598_v14, %v4447_v44  ;;  %v12791_v44 = vld [vmem:[#allocation254_spill] sm:$0xff] }
 0x816   :  { %v4515_v37 = vadd.f32 %v10598_v14, %v4448_v60  ;;  %v4452_v4 = vadd.f32 %v10598_v14, %v10604_v28  ;;  %v4453_v59 = vadd.f32 %v10598_v14, %v10608_v54  ;;  %v4454_v38 = vadd.f32 %v10598_v14, %v10612_v46 }
 0x817   :  { %v4455_v63 = vadd.f32 %v10598_v14, %v10616_v8  ;;  %v4396_v52 = vmul.f32 %v10594_v16, %v12789_v3  ;;  %v4456_v9 = vadd.f32 %v10598_v14, %v10620_v11  ;;  %v4457_v21 = vadd.f32 %v10598_v14, %v10624_v5  ;;  %v12795_v3 = vld [vmem:[#allocation17_spill] sm:$0xff] }
 0x818   :  { %v4458_v28 = vadd.f32 %v10598_v14, %v10628_v1  ;;  %v4397_v54 = vmul.f32 %v10594_v16, %v12790_v22  ;;  %v10786_v46 = vmul.f32 %v10594_v16, %v12791_v44  ;;  %v4459_v8 = vadd.f32 %v10598_v14, %v10632_v40  ;;  %v12796_v44 = vld [vmem:[#allocation18_spill] sm:$0xff]  ;;  %v12797_v16 = vld [vmem:[#allocation19_spill] sm:$0xff] }
 0x819   :  { %v4460_v60 = vadd.f32 %v10598_v14, %v10636_v49  ;;  %v4461_v11 = vadd.f32 %v10598_v14, %v10640_v30  ;;  %v10796_v5 = vadd.f32 %v10598_v14, %v10644_v34  ;;  %v10799_v1 = vadd.f32 %v10598_v14, %v4396_v52  ;;  %v12799_v49 = vld [vmem:[#allocation20_spill] sm:$0xff]  ;;  %v12800_v34 = vld [vmem:[#allocation21_spill] sm:$0xff]  ;;  %v12801_v14 = vld [vmem:[#allocation22_spill] sm:$0xff] }
 0x81a   :  { %12792 = vst [vmem:[#allocation232_spill] sm:$0xff] %v10786_v46  ;;  %v4516_v22 = vadd.f32 %v4452_v4, %v12795_v3  ;;  %v4517_v46 = vadd.f32 %v4453_v59, %v12796_v44  ;;  %v10804_v40 = vadd.f32 %v4454_v38, %v12797_v16  ;;  %v10807_v30 = vadd.f32 %v4455_v63, %v12799_v49  ;;  %v12803_v4 = vld [vmem:[#allocation80_spill] sm:$0xff]  ;;  %v12804_v59 = vld [vmem:[#allocation109_spill] sm:$0xff]  ;;  %v12805_v38 = vld [vmem:[#allocation110_spill] sm:$0xff] }
 0x81b   :  { %12793 = vst [vmem:[#allocation170_spill] sm:$0xff] %v10796_v5  ;;  %v10810_v5 = vadd.f32 %v4456_v9, %v12800_v34  ;;  %v10813_v52 = vadd.f32 %v4457_v21, %v12801_v14  ;;  %v10819_v44 = vadd.f32 %v4475_v13, %v12803_v4  ;;  %v10822_v16 = vadd.f32 %v4476_v36, %v12804_v59  ;;  %v12806_v63 = vld [vmem:[#allocation111_spill] sm:$0xff]  ;;  %v12807_v9 = vld [vmem:[#allocation112_spill] sm:$0xff]  ;;  %v12808_v14 = vld [vmem:[#allocation113_spill] sm:$0xff] }
 0x81c   :  { %12794 = vst [vmem:[#allocation187_spill] sm:$0xff] %v10799_v1  ;;  %v12802_v1 = vld [vmem:[#allocation23_spill] sm:$0xff]  ;;  %v10828_v49 = vadd.f32 %v4478_v6, %v12806_v63  ;;  %v10831_v34 = vadd.f32 %v4479_v58, %v12807_v9  ;;  %v10834_v21 = vadd.f32 %v4480_v35, %v12808_v14  ;;  %v12811_v36 = vld [vmem:[#allocation116_spill] sm:$0xff]  ;;  %v12813_v6 = vld [vmem:[#allocation118_spill] sm:$0xff] }
 0x81d   :  { %12798 = vst [vmem:[#allocation174_spill] sm:$0xff] %v10804_v40  ;;  %v10816_v3 = vadd.f32 %v4458_v28, %v12802_v1  ;;  %v10825_v40 = vadd.f32 %v4477_v50, %v12805_v38  ;;  %v12809_v28 = vld [vmem:[#allocation114_spill] sm:$0xff]  ;;  %v12810_v13 = vld [vmem:[#allocation115_spill] sm:$0xff]  ;;  %v10843_v59 = vadd.f32 %v4483_v42, %v12811_v36  ;;  %v12812_v50 = vld [vmem:[#allocation117_spill] sm:$0xff]  ;;  %v10849_v63 = vadd.f32 %v4485_v48, %v12813_v6 }
 0x81e   :  { %v10837_v1 = vadd.f32 %v4481_v19, %v12809_v28  ;;  %v10840_v4 = vadd.f32 %v4482_v47, %v12810_v13  ;;  %v10846_v38 = vadd.f32 %v4484_v12, %v12812_v50  ;;  %v12814_v58 = vld [vmem:[#allocation119_spill] sm:$0xff]  ;;  %v12815_v35 = vld [vmem:[#allocation120_spill] sm:$0xff]  ;;  %v12816_v19 = vld [vmem:[#allocation121_spill] sm:$0xff] }
 0x81f   :  { %v10852_v9 = vadd.f32 %v4486_v2, %v12814_v58  ;;  %v10855_v14 = vadd.f32 %v4487_v10, %v12815_v35  ;;  %v10858_v28 = vadd.f32 %v4488_v17, %v12816_v19  ;;  %v12817_v47 = vld [vmem:[#allocation122_spill] sm:$0xff]  ;;  %v12819_v12 = vld [vmem:[#allocation81_spill] sm:$0xff]  ;;  %v12820_v48 = vld [vmem:[#allocation123_spill] sm:$0xff] }
 0x820   :  { %v10861_v13 = vadd.f32 %v4489_v26, %v12817_v47  ;;  %v12818_v42 = vld [vmem:[#allocation106_spill] sm:$0xff]  ;;  %v10867_v50 = vadd.f32 %v4491_v25, %v12819_v12  ;;  %v10870_v6 = vadd.f32 %v4492_v61, %v12820_v48  ;;  %v12821_v2 = vld [vmem:[#allocation124_spill] sm:$0xff]  ;;  %v12823_v17 = vld [vmem:[#allocation125_spill] sm:$0xff] }
 0x821   :  { %v10864_v36 = vadd.f32 %v4490_v57, %v12818_v42  ;;  %v10873_v58 = vadd.f32 %v4493_v62, %v12821_v2  ;;  %v12822_v10 = vld [vmem:[#allocation90_spill] sm:$0xff]  ;;  %v10879_v19 = vadd.f32 %v4495_v51, %v12823_v17  ;;  %v12824_v26 = vld [vmem:[#allocation95_spill] sm:$0xff]  ;;  %v12826_v25 = vld [vmem:[#allocation97_spill] sm:$0xff] }
 0x822   :  { %v10876_v35 = vadd.f32 %v4494_v15, %v12822_v10  ;;  %v10882_v47 = vadd.f32 %v4496_v56, %v12824_v26  ;;  %v12825_v57 = vld [vmem:[#allocation126_spill] sm:$0xff]  ;;  %v10888_v12 = vadd.f32 %v4498_v43, %v12826_v25  ;;  %v12829_v15 = vld [vmem:[#allocation103_spill] sm:$0xff]  ;;  %v12831_v56 = vld [vmem:[#allocation84_spill] sm:$0xff] }
 0x823   :  { %v10885_v42 = vadd.f32 %v4497_v55, %v12825_v57  ;;  %v12827_v61 = vld [vmem:[#allocation102_spill] sm:$0xff]  ;;  %v10897_v10 = vadd.f32 %v4502_v32, %v12829_v15  ;;  %v12830_v51 = vld [vmem:[#allocation107_spill] sm:$0xff]  ;;  %v10903_v26 = vadd.f32 %v4504_v20, %v12831_v56 }
 0x824   :  { %v10891_v48 = vadd.f32 %v4500_v18, %v12827_v61  ;;  %v12828_v62 = vld [vmem:[#allocation86_spill] sm:$0xff]  ;;  %v10900_v17 = vadd.f32 %v4503_v7, %v12830_v51  ;;  %v12832_v55 = vld [vmem:[#allocation87_spill] sm:$0xff]  ;;  %v12834_v18 = vld [vmem:[#allocation128_spill] sm:$0xff] }
 0x825   :  { %v10894_v2 = vadd.f32 %v4501_v23, %v12828_v62  ;;  %v10906_v57 = vadd.f32 %v4505_v31, %v12832_v55  ;;  %v12833_v43 = vld [vmem:[#allocation127_spill] sm:$0xff]  ;;  %v10912_v61 = vadd.f32 %v4507_v33, %v12834_v18  ;;  %v12835_v23 = vld [vmem:[#allocation129_spill] sm:$0xff]  ;;  %v12837_v32 = vld [vmem:[#allocation130_spill] sm:$0xff] }
 0x826   :  { %v10909_v25 = vadd.f32 %v4506_v0, %v12833_v43  ;;  %v10915_v62 = vadd.f32 %v4508_v27, %v12835_v23  ;;  %v10918_v15 = vadd.f32 %v4509_v53, %v12837_v32  ;;  %v12839_v7 = vld [vmem:[#allocation76_spill] sm:$0xff]  ;;  %v12841_v20 = vld [vmem:[#allocation131_spill] sm:$0xff]  ;;  %v12847_v33 = vld [vmem:[#allocation133_spill] sm:$0xff]  ;;  %v4580_v53 = vmax.f32 %v4516_v22, 0.0 }
 0x827   :  { %v10921_v51 = vadd.f32 %v4510_v24, %v12839_v7  ;;  %v10924_v56 = vadd.f32 %v4511_v39, %v12841_v20  ;;  %v12843_v31 = vld [vmem:[#allocation27_spill] sm:$0xff]  ;;  %v12845_v0 = vld [vmem:[#allocation132_spill] sm:$0xff]  ;;  %v10933_v18 = vadd.f32 %v4514_v29, %v12847_v33  ;;  %v4581_v24 = vmax.f32 %v4517_v46, 0.0  ;;  %v12852_v7 = vld [vmem:[#allocation174_spill] sm:$0xff] }
 0x828   :  { %12836 = vst [vmem:[#allocation233_spill] sm:$0xff] %v10915_v62  ;;  %v10927_v55 = vadd.f32 %v4512_v41, %v12843_v31  ;;  %v10930_v43 = vadd.f32 %v4513_v45, %v12845_v0  ;;  %v12849_v27 = vld [vmem:[#allocation108_spill] sm:$0xff]  ;;  %v4583_v39 = vmax.f32 %v10807_v30, 0.0  ;;  %v12853_v20 = vld [vmem:[#allocation255_spill] sm:$0xff]  ;;  %v12854_v41 = vld [vmem:[#allocation153_spill] sm:$0xff]  ;;  %v4584_v29 = vmax.f32 %v10810_v5, 0.0 }
 0x829   :  { %12838 = vst [vmem:[#allocation28_spill] sm:$0xff] %v10918_v15  ;;  %v10936_v23 = vadd.f32 %v4515_v37, %v12849_v27  ;;  %v12851_v32 = vld [vmem:[#allocation24_spill] sm:$0xff]  ;;  %v4399_v31 = vmul.f32 %v12854_v41, %v12853_v20  ;;  %v12856_v0 = vld [vmem:[#allocation25_spill] sm:$0xff]  ;;  %v12857_v37 = vld [vmem:[#allocation218_spill] sm:$0xff]  ;;  %v4585_v30 = vmax.f32 %v10813_v52, 0.0 }
 0x82a   :  { %12840 = vst [vmem:[#allocation154_spill] sm:$0xff] %v10921_v51  ;;  %v4523_v15 = vadd.f32 %v4459_v8, %v12851_v32  ;;  %v4582_v51 = vmax.f32 %v12852_v7, 0.0  ;;  %v4400_v22 = vmul.f32 %v12854_v41, %v12857_v37  ;;  %v12858_v33 = vld [vmem:[#allocation232_spill] sm:$0xff]  ;;  %v12859_v8 = vld [vmem:[#allocation26_spill] sm:$0xff]  ;;  %v12860_v32 = vld [vmem:[#allocation43_spill] sm:$0xff] }
 0x82b   :  { %12842 = vst [vmem:[#allocation192_spill] sm:$0xff] %v10924_v56  ;;  %v4525_v27 = vadd.f32 %v4461_v11, %v12859_v8  ;;  %v4401_v7 = vmul.f32 %v12854_v41, %v12860_v32  ;;  %v12862_v20 = vld [vmem:[#allocation170_spill] sm:$0xff]  ;;  %v12864_v11 = vld [vmem:[#allocation45_spill] sm:$0xff]  ;;  %v12865_v8 = vld [vmem:[#allocation187_spill] sm:$0xff] }
 0x82c   :  { %12844 = vst [vmem:[#allocation234_spill] sm:$0xff] %v10927_v55  ;;  %v12855_v55 = vld [vmem:[#allocation56_spill] sm:$0xff]  ;;  %v4527_v52 = vadd.f32 %v12865_v8, %v12864_v11  ;;  %v12871_v11 = vld [vmem:[#allocation54_spill] sm:$0xff] }
 0x82d   :  { %12846 = vst [vmem:[#allocation176_spill] sm:$0xff] %v10930_v43  ;;  %v4464_v45 = vadd.f32 %v12855_v55, %v4397_v54  ;;  %v4524_v43 = vadd.f32 %v4460_v60, %v12856_v0  ;;  %v4465_v46 = vadd.f32 %v12855_v55, %v12858_v33  ;;  %v4466_v54 = vadd.f32 %v12855_v55, %v4399_v31  ;;  %v12861_v60 = vld [vmem:[#allocation42_spill] sm:$0xff]  ;;  %v12863_v0 = vld [vmem:[#allocation219_spill] sm:$0xff] }
 0x82e   :  { %12848 = vst [vmem:[#allocation156_spill] sm:$0xff] %v10933_v18  ;;  %v4526_v5 = vadd.f32 %v12862_v20, %v12861_v60  ;;  %v4402_v37 = vmul.f32 %v12854_v41, %v12863_v0  ;;  %v4467_v33 = vadd.f32 %v12855_v55, %v4400_v22  ;;  %v4468_v31 = vadd.f32 %v12855_v55, %v4401_v7  ;;  %v12867_v18 = vld [vmem:[#allocation48_spill] sm:$0xff]  ;;  %v12869_v22 = vld [vmem:[#allocation51_spill] sm:$0xff] }
 0x82f   :  { %12850 = vst [vmem:[#allocation157_spill] sm:$0xff] %v10936_v23  ;;  %v12866_v23 = vld [vmem:[#allocation146_spill] sm:$0xff]  ;;  %v4528_v60 = vadd.f32 %v4464_v45, %v12867_v18  ;;  %v4588_v20 = vmax.f32 %v4524_v43, 0.0  ;;  %v4529_v56 = vadd.f32 %v4465_v46, %v12869_v22  ;;  %v4589_v62 = vmax.f32 %v4525_v27, 0.0  ;;  %v12872_v43 = vld [vmem:[#allocation224_spill] sm:$0xff] }
 0x830   :  { %4644 = vst [vmem:[#allocation12] sm:$0xff] %v4580_v53  ;;  %v4586_v53 = vmax.f32 %v10816_v3, 0.0  ;;  %v4403_v32 = vmul.f32 %v12854_v41, %v12866_v23  ;;  %v12868_v3 = vld [vmem:[#allocation220_spill] sm:$0xff]  ;;  %v4469_v0 = vadd.f32 %v12855_v55, %v4402_v37  ;;  %v4530_v7 = vadd.f32 %v4466_v54, %v12871_v11 }
 0x831   :  { %4645 = vst [vmem:[#allocation12 + $0x8] sm:$0xff] %v4581_v24  ;;  %v4587_v24 = vmax.f32 %v4523_v15, 0.0  ;;  %v12870_v15 = vld [vmem:[#allocation46_spill] sm:$0xff]  ;;  %v4590_v8 = vmax.f32 %v4526_v5, 0.0  ;;  %v4406_v18 = vmul.f32 %v12854_v41, %v12872_v43  ;;  %v12874_v46 = vld [vmem:[#allocation64_spill] sm:$0xff]  ;;  %v12876_v5 = vld [vmem:[#allocation63_spill] sm:$0xff] }
 0x832   :  { %4646 = vst [vmem:[#allocation12 + $0x10] sm:$0xff] %v4582_v51  ;;  %v4404_v51 = vmul.f32 %v12854_v41, %v12868_v3  ;;  %v4470_v23 = vadd.f32 %v12855_v55, %v4403_v32  ;;  %v4591_v3 = vmax.f32 %v4527_v52, 0.0  ;;  %v4407_v27 = vmul.f32 %v12854_v41, %v12874_v46  ;;  %v12875_v22 = vld [vmem:[#allocation60_spill] sm:$0xff]  ;;  %v12878_v43 = vld [vmem:[#allocation69_spill] sm:$0xff] }
 0x833   :  { %4647 = vst [vmem:[#allocation12 + $0x18] sm:$0xff] %v4583_v39  ;;  %v4405_v39 = vmul.f32 %v12854_v41, %v12870_v15  ;;  %v4532_v32 = vadd.f32 %v4468_v31, %v12875_v22  ;;  %v4592_v15 = vmax.f32 %v4528_v60, 0.0  ;;  %v4473_v54 = vadd.f32 %v12855_v55, %v4406_v18 }
 0x834   :  { %4648 = vst [vmem:[#allocation12 + $0x20] sm:$0xff] %v4584_v29  ;;  %v4471_v45 = vadd.f32 %v12855_v55, %v4404_v51  ;;  %v12873_v29 = vld [vmem:[#allocation57_spill] sm:$0xff]  ;;  %v4593_v11 = vmax.f32 %v4529_v56, 0.0  ;;  %v4474_v51 = vadd.f32 %v12855_v55, %v4407_v27  ;;  %v12881_v56 = vld [vmem:[#allocation78_spill] sm:$0xff]  ;;  %v4606_v27 = vmax.f32 %v10828_v49, 0.0 }
 0x835   :  { %4649 = vst [vmem:[#allocation12 + $0x28] sm:$0xff] %v4585_v30  ;;  %v4531_v37 = vadd.f32 %v4467_v33, %v12873_v29  ;;  %v4472_v30 = vadd.f32 %v12855_v55, %v4405_v39  ;;  %v12877_v33 = vld [vmem:[#allocation66_spill] sm:$0xff]  ;;  %v12879_v39 = vld [vmem:[#allocation72_spill] sm:$0xff]  ;;  %v4596_v60 = vmax.f32 %v4532_v32, 0.0  ;;  %v4608_v22 = vmax.f32 %v10834_v21, 0.0 }
 0x836   :  { %4650 = vst [vmem:[#allocation12 + $0x30] sm:$0xff] %v4586_v53  ;;  %v4533_v53 = vadd.f32 %v4469_v0, %v12876_v5  ;;  %v4534_v52 = vadd.f32 %v4470_v23, %v12877_v33  ;;  %v4535_v41 = vadd.f32 %v4471_v45, %v12878_v43  ;;  %v4603_v45 = vmax.f32 %v10819_v44, 0.0 }
 0x837   :  { %4651 = vst [vmem:[#allocation12 + $0x38] sm:$0xff] %v4587_v24  ;;  %v4594_v24 = vmax.f32 %v4530_v7, 0.0  ;;  %v4595_v29 = vmax.f32 %v4531_v37, 0.0  ;;  %v4536_v31 = vadd.f32 %v4472_v30, %v12879_v39  ;;  %v4604_v37 = vmax.f32 %v10822_v16, 0.0 }
 0x838   :  { %4652 = vst [vmem:[#allocation12 + $0x40] sm:$0xff] %v4588_v20  ;;  %v12880_v20 = vld [vmem:[#allocation75_spill] sm:$0xff]  ;;  %v4597_v46 = vmax.f32 %v4533_v53, 0.0  ;;  %v4598_v0 = vmax.f32 %v4534_v52, 0.0  ;;  %v4599_v55 = vmax.f32 %v4535_v41, 0.0  ;;  %v4607_v30 = vmax.f32 %v10831_v34, 0.0 }
 0x839   :  { %4653 = vst [vmem:[#allocation12 + $0x48] sm:$0xff] %v4589_v62  ;;  %v4537_v18 = vadd.f32 %v4473_v54, %v12880_v20  ;;  %v4538_v62 = vadd.f32 %v4474_v51, %v12881_v56  ;;  %v4600_v23 = vmax.f32 %v4536_v31, 0.0  ;;  %v4609_v32 = vmax.f32 %v10837_v1, 0.0  ;;  %v12889_v52 = vld [vmem:[#allocation157_spill] sm:$0xff] }
 0x83a   :  { %4654 = vst [vmem:[#allocation12 + $0x50] sm:$0xff] %v4590_v8  ;;  %v4610_v44 = vmax.f32 %v10840_v4, 0.0  ;;  %v4611_v16 = vmax.f32 %v10843_v59, 0.0  ;;  %v4613_v49 = vmax.f32 %v10849_v63, 0.0  ;;  %v4614_v34 = vmax.f32 %v10852_v9, 0.0 }
 0x83b   :  { %4655 = vst [vmem:[#allocation12 + $0x58] sm:$0xff] %v4591_v3  ;;  %v4601_v7 = vmax.f32 %v4537_v18, 0.0  ;;  %v4602_v8 = vmax.f32 %v4538_v62, 0.0  ;;  %v4605_v3 = vmax.f32 %v10825_v40, 0.0  ;;  %v4612_v40 = vmax.f32 %v10846_v38, 0.0 }
 0x83c   :  { %4656 = vst [vmem:[#allocation12 + $0x60] sm:$0xff] %v4592_v15  ;;  %v4615_v21 = vmax.f32 %v10855_v14, 0.0  ;;  %v4616_v1 = vmax.f32 %v10858_v28, 0.0  ;;  %v4617_v4 = vmax.f32 %v10861_v13, 0.0  ;;  %v4618_v59 = vmax.f32 %v10864_v36, 0.0 }
 0x83d   :  { %4657 = vst [vmem:[#allocation12 + $0x68] sm:$0xff] %v4593_v11  ;;  %v4619_v38 = vmax.f32 %v10867_v50, 0.0  ;;  %v4620_v63 = vmax.f32 %v10870_v6, 0.0  ;;  %v4621_v9 = vmax.f32 %v10873_v58, 0.0  ;;  %v4622_v14 = vmax.f32 %v10876_v35, 0.0 }
 0x83e   :  { %4658 = vst [vmem:[#allocation12 + $0x70] sm:$0xff] %v4594_v24  ;;  %v4623_v28 = vmax.f32 %v10879_v19, 0.0  ;;  %v4624_v13 = vmax.f32 %v10882_v47, 0.0  ;;  %v4625_v36 = vmax.f32 %v10885_v42, 0.0  ;;  %v4626_v50 = vmax.f32 %v10888_v12, 0.0 }
 0x83f   :  { %4659 = vst [vmem:[#allocation12 + $0x78] sm:$0xff] %v4595_v29  ;;  %v4628_v6 = vmax.f32 %v10891_v48, 0.0  ;;  %v4629_v58 = vmax.f32 %v10894_v2, 0.0  ;;  %v4630_v35 = vmax.f32 %v10897_v10, 0.0  ;;  %v4631_v19 = vmax.f32 %v10900_v17, 0.0  ;;  %v12882_v2 = vld [vmem:[#allocation233_spill] sm:$0xff] }
 0x840   :  { %4660 = vst [vmem:[#allocation12 + $0x80] sm:$0xff] %v4596_v60  ;;  %v4632_v47 = vmax.f32 %v10903_v26, 0.0  ;;  %v4633_v42 = vmax.f32 %v10906_v57, 0.0  ;;  %v4634_v12 = vmax.f32 %v10909_v25, 0.0  ;;  %v4635_v48 = vmax.f32 %v10912_v61, 0.0  ;;  %v12883_v10 = vld [vmem:[#allocation28_spill] sm:$0xff] }
 0x841   :  { %4661 = vst [vmem:[#allocation12 + $0x88] sm:$0xff] %v4597_v46  ;;  %v4636_v15 = vmax.f32 %v12882_v2, 0.0  ;;  %v4637_v54 = vmax.f32 %v12883_v10, 0.0  ;;  %v12884_v17 = vld [vmem:[#allocation154_spill] sm:$0xff]  ;;  %v12885_v26 = vld [vmem:[#allocation192_spill] sm:$0xff]  ;;  %v4643_v24 = vmax.f32 %v12889_v52, 0.0 }
 0x842   :  { %4662 = vst [vmem:[#allocation12 + $0x90] sm:$0xff] %v4598_v0  ;;  %v4638_v5 = vmax.f32 %v12884_v17, 0.0  ;;  %v4639_v53 = vmax.f32 %v12885_v26, 0.0  ;;  %v12886_v57 = vld [vmem:[#allocation234_spill] sm:$0xff]  ;;  %v12887_v25 = vld [vmem:[#allocation176_spill] sm:$0xff] }
 0x843   :  { %4663 = vst [vmem:[#allocation12 + $0x98] sm:$0xff] %v4599_v55  ;;  %v4640_v11 = vmax.f32 %v12886_v57, 0.0  ;;  %v4641_v51 = vmax.f32 %v12887_v25, 0.0  ;;  %v12888_v61 = vld [vmem:[#allocation156_spill] sm:$0xff] }
 0x844   :  { %4664 = vst [vmem:[#allocation12 + $0xa0] sm:$0xff] %v4600_v23  ;;  %v4642_v33 = vmax.f32 %v12888_v61, 0.0 }
 0x845   :  { %4665 = vst [vmem:[#allocation12 + $0xa8] sm:$0xff] %v4601_v7 }
 0x846   :  { %4666 = vst [vmem:[#allocation12 + $0xb0] sm:$0xff] %v4602_v8 }
 0x847   :  { %4667 = vst [vmem:[#allocation12 + $0xb8] sm:$0xff] %v4603_v45 }
 0x848   :  { %4668 = vst [vmem:[#allocation12 + $0xc0] sm:$0xff] %v4604_v37 }
 0x849   :  { %4669 = vst [vmem:[#allocation12 + $0xc8] sm:$0xff] %v4605_v3 }
 0x84a   :  { %4670 = vst [vmem:[#allocation12 + $0xd0] sm:$0xff] %v4606_v27 }
 0x84b   :  { %4671 = vst [vmem:[#allocation12 + $0xd8] sm:$0xff] %v4607_v30 }
 0x84c   :  { %4672 = vst [vmem:[#allocation12 + $0xe0] sm:$0xff] %v4608_v22 }
 0x84d   :  { %4673 = vst [vmem:[#allocation12 + $0xe8] sm:$0xff] %v4609_v32 }
 0x84e   :  { %4674 = vst [vmem:[#allocation12 + $0xf0] sm:$0xff] %v4610_v44 }
 0x84f   :  { %4675 = vst [vmem:[#allocation12 + $0xf8] sm:$0xff] %v4611_v16 }
 0x850   :  { %4676 = vst [vmem:[#allocation12 + $0x100] sm:$0xff] %v4612_v40 }
 0x851   :  { %4677 = vst [vmem:[#allocation12 + $0x108] sm:$0xff] %v4613_v49 }
 0x852   :  { %4678 = vst [vmem:[#allocation12 + $0x110] sm:$0xff] %v4614_v34 }
 0x853   :  { %4679 = vst [vmem:[#allocation12 + $0x118] sm:$0xff] %v4615_v21 }
 0x854   :  { %4680 = vst [vmem:[#allocation12 + $0x120] sm:$0xff] %v4616_v1 }
 0x855   :  { %4681 = vst [vmem:[#allocation12 + $0x128] sm:$0xff] %v4617_v4 }
 0x856   :  { %4682 = vst [vmem:[#allocation12 + $0x130] sm:$0xff] %v4618_v59 }
 0x857   :  { %4683 = vst [vmem:[#allocation12 + $0x138] sm:$0xff] %v4619_v38 }
 0x858   :  { %4684 = vst [vmem:[#allocation12 + $0x140] sm:$0xff] %v4620_v63 }
 0x859   :  { %4685 = vst [vmem:[#allocation12 + $0x148] sm:$0xff] %v4621_v9 }
 0x85a   :  { %4686 = vst [vmem:[#allocation12 + $0x150] sm:$0xff] %v4622_v14 }
 0x85b   :  { %4687 = vst [vmem:[#allocation12 + $0x158] sm:$0xff] %v4623_v28 }
 0x85c   :  { %4688 = vst [vmem:[#allocation12 + $0x160] sm:$0xff] %v4624_v13 }
 0x85d   :  { %4689 = vst [vmem:[#allocation12 + $0x168] sm:$0xff] %v4625_v36 }
 0x85e   :  { %4690 = vst [vmem:[#allocation12 + $0x170] sm:$0xff] %v4626_v50 }
 0x85f   :  { %4692 = vst [vmem:[#allocation12 + $0x180] sm:$0xff] %v4628_v6 }
 0x860   :  { %4693 = vst [vmem:[#allocation12 + $0x188] sm:$0xff] %v4629_v58 }
 0x861   :  { %4694 = vst [vmem:[#allocation12 + $0x190] sm:$0xff] %v4630_v35 }
 0x862   :  { %4695 = vst [vmem:[#allocation12 + $0x198] sm:$0xff] %v4631_v19 }
 0x863   :  { %4696 = vst [vmem:[#allocation12 + $0x1a0] sm:$0xff] %v4632_v47 }
 0x864   :  { %4697 = vst [vmem:[#allocation12 + $0x1a8] sm:$0xff] %v4633_v42 }
 0x865   :  { %4698 = vst [vmem:[#allocation12 + $0x1b0] sm:$0xff] %v4634_v12 }
 0x866   :  { %4699 = vst [vmem:[#allocation12 + $0x1b8] sm:$0xff] %v4635_v48 }
 0x867   :  { %4700 = vst [vmem:[#allocation12 + $0x1c0] sm:$0xff] %v4636_v15 }
 0x868   :  { %4701 = vst [vmem:[#allocation12 + $0x1c8] sm:$0xff] %v4637_v54 }
 0x869   :  { %4702 = vst [vmem:[#allocation12 + $0x1d0] sm:$0xff] %v4638_v5 }
 0x86a   :  { %4703 = vst [vmem:[#allocation12 + $0x1d8] sm:$0xff] %v4639_v53 }
 0x86b   :  { %4704 = vst [vmem:[#allocation12 + $0x1e0] sm:$0xff] %v4640_v11 }
 0x86c   :  { %4705 = vst [vmem:[#allocation12 + $0x1e8] sm:$0xff] %v4641_v51 }
 0x86d   :  { %4706 = vst [vmem:[#allocation12 + $0x1f0] sm:$0xff] %v4642_v33 }
 0x86e   :  { %4707 = vst [vmem:[#allocation12 + $0x1f8] sm:$0xff] %v4643_v24 }
 0x86f   :  { %4720 = dma.vmem_to_hbm [thread:$0]  %s4713_s9, 8192, %s4715_s4, [#allocation5], %s5280_s21, %s5280_s21, %s5281_s22  }
 0x870   :  { %5277 = dma.done.wait [#allocation5], 8192  }
 0x871   :  { %5278 = vsyncadd [#allocation5], 4294959104 }
 0x872   :  { %4725 = vsyncpa [#allocation4], 1 }
 0x873   :  { %4726 = vsyncpa [#allocation7], 1 }
 0x874   :  { %4727 = vsyncpa [#allocation10], 1 }
 0x875   :  { %4728 = vsyncpa [#allocation5], 1 }

</bundles_post_ra>
